<compile_context>
chip_gen: v5e
topology: v5e:2x2
jax: 0.10.0
libtpu: 0.0.40
codegen_flags: <defaults>
</compile_context>

<pallas_src>
import functools

import jax
import jax.numpy as jnp
from jax import lax
from jax.experimental import pallas as pl
from jax.experimental.pallas import tpu as pltpu

EPS = 1e-5  # nn.BatchNorm2d default eps


def _round_up(v, m):
    return (v + m - 1) // m * m


def _bn_scale_shift(z, gamma, beta, inv_m):
    """Training-mode BatchNorm2d folded to y = z*scale + shift (one-pass stats)."""
    mean = jnp.sum(z, axis=0, keepdims=True) * inv_m
    var = jnp.sum(z * z, axis=0, keepdims=True) * inv_m - mean * mean
    scale = gamma * lax.rsqrt(var + EPS)
    shift = beta - mean * scale
    return z * scale + shift


def basic_block_kernel(xp_ref, xid_ref, w1_ref, w2_ref, g1_ref, b1_ref,
                       g2_ref, b2_ref, out_ref, ypad_ref):
    N, Hp2, Wp2, C = ypad_ref.shape          # C = channels padded to 128*k
    H, W = Hp2 - 2, Wp2 - 2
    M = N * H * W
    inv_m = 1.0 / M

    # ---- conv1: one MXU matmul over the fused K = 9*Cin (im2col from wrapper)
    z1 = jnp.dot(xp_ref[...], w1_ref[...], preferred_element_type=jnp.float32)

    # ---- bn1 (scale/shift) + relu, all lane-dense f32
    y1 = jnp.maximum(_bn_scale_shift(z1, g1_ref[...], b1_ref[...], inv_m), 0.0)

    # ---- stage y1 in a 1-px padded scratch for conv2's shifted taps.
    #      Only the halo is zeroed (no full-buffer memset).
    ypad_ref[:, 0:1, :, :] = jnp.zeros((N, 1, Wp2, C), jnp.float32)
    ypad_ref[:, H + 1:H + 2, :, :] = jnp.zeros((N, 1, Wp2, C), jnp.float32)
    ypad_ref[:, :, 0:1, :] = jnp.zeros((N, Hp2, 1, C), jnp.float32)
    ypad_ref[:, :, W + 1:W + 2, :] = jnp.zeros((N, Hp2, 1, C), jnp.float32)
    ypad_ref[:, 1:H + 1, 1:W + 1, :] = y1.reshape(N, H, W, C)

    # ---- conv2: build the lane-dense (M, 9*C) bf16 im2col slab and do one
    #      fused-K MXU matmul (f32 accumulation).
    ypad = ypad_ref[...]
    taps = [
        ypad[:, dy:dy + H, dx:dx + W, :].reshape(M, C).astype(jnp.bfloat16)
        for dy in range(3) for dx in range(3)
    ]
    slab = jnp.concatenate(taps, axis=-1)                        # (M, 9*C)
    z2 = jnp.dot(slab, w2_ref[...], preferred_element_type=jnp.float32)

    # ---- bn2 + residual add + relu, lane-dense store
    y2 = _bn_scale_shift(z2, g2_ref[...], b2_ref[...], inv_m)
    out_ref[...] = jnp.maximum(y2 + xid_ref[...], 0.0)


def basic_block(x_nchw, w1_oihw, w2_oihw, g1, b1, g2, b2):
    """Fused BasicBlock forward (stride=1, downsample=None path)."""
    # TODO(synk): downsample / stride>1 branch of the module is not implemented.
    N, Cin, H, W = x_nchw.shape
    Cout = w1_oihw.shape[0]
    assert Cin == Cout, "identity path requires in_channels == out_channels"

    C = _round_up(Cout, 128)                 # lane-dense channel padding
    K1 = 9 * Cin
    K1p = _round_up(K1, 128)
    M = N * H * W

    x = jnp.transpose(x_nchw, (0, 2, 3, 1)).astype(jnp.float32)          # NHWC

    # identity path: channel-padded, flattened to a lane-dense (M, C) slab
    x_id = jnp.pad(x, ((0, 0), (0, 0), (0, 0), (0, C - Cin))).reshape(M, C)

    # conv1 im2col patches: (M, 9*Cin), K zero-padded to a 128 multiple, bf16
    xpad = jnp.pad(x, ((0, 0), (1, 1), (1, 1), (0, 0)))
    patches = jnp.concatenate(
        [xpad[:, dy:dy + H, dx:dx + W, :] for dy in range(3) for dx in range(3)],
        axis=-1).reshape(M, K1)
    patches = jnp.pad(patches, ((0, 0), (0, K1p - K1))).astype(jnp.bfloat16)

    # weights: OIHW -> (kh, kw, Cin, Cout) -> fused-K matrices, zero-padded
    w1 = jnp.transpose(w1_oihw, (2, 3, 1, 0)).reshape(K1, Cout)
    w1 = jnp.pad(w1, ((0, K1p - K1), (0, C - Cout))).astype(jnp.bfloat16)
    w2 = jnp.transpose(w2_oihw, (2, 3, 1, 0))                 # (3,3,Cout,Cout)
    w2 = jnp.pad(w2, ((0, 0), (0, 0), (0, C - Cout), (0, C - Cout)))
    w2 = w2.reshape(9 * C, C).astype(jnp.bfloat16)

    pad_c = lambda v: jnp.pad(v.astype(jnp.float32), (0, C - Cout)).reshape(1, C)

    vmem = functools.partial(pl.BlockSpec, memory_space=pltpu.MemorySpace.VMEM)
    out2d = pl.pallas_call(
        basic_block_kernel,
        out_shape=jax.ShapeDtypeStruct((M, C), jnp.float32),
        in_specs=[vmem() for _ in range(8)],
        out_specs=vmem(),
        scratch_shapes=[pltpu.VMEM((N, H + 2, W + 2, C), jnp.float32)],
        compiler_params=pltpu.CompilerParams(vmem_limit_bytes=32 * 1024 * 1024),
    )(patches, x_id, w1, w2, pad_c(g1), pad_c(b1), pad_c(g2), pad_c(b2))

    out = out2d[:, :Cout].reshape(N, H, W, Cout)
    return jnp.transpose(out, (0, 3, 1, 2))                               # NCHW


def reference(x, w1, w2, g1, b1, g2, b2, conv_dtype=jnp.float32):
    """Pure-JAX (XLA) reference; conv_dtype controls matmul-input precision."""
    def conv(x_, w_):
        return lax.conv_general_dilated(
            x_.astype(conv_dtype), w_.astype(conv_dtype),
            (1, 1), ((1, 1), (1, 1)),
            dimension_numbers=("NCHW", "OIHW", "NCHW"),
            preferred_element_type=jnp.float32)

    def bn(y, g, b):
        mean = jnp.mean(y, axis=(0, 2, 3), keepdims=True)
        var = jnp.mean((y - mean) ** 2, axis=(0, 2, 3), keepdims=True)
        return ((y - mean) * lax.rsqrt(var + EPS) * g.reshape(1, -1, 1, 1)
                + b.reshape(1, -1, 1, 1))

    out = jnp.maximum(bn(conv(x, w1), g1, b1), 0.0)
    out = bn(conv(out, w2), g2, b2)
    return jnp.maximum(out + x, 0.0)


if __name__ == "__main__":
    key = jax.random.PRNGKey(0)
    k_x, k_w1, k_w2, k_g1, k_b1, k_g2, k_b2 = jax.random.split(key, 7)

    N, C, H, W = 2, 4, 16, 16  # in_channels == out_channels, stride=1
    x = jax.random.normal(k_x, (N, C, H, W), jnp.float32)
    w1 = jax.random.normal(k_w1, (C, C, 3, 3), jnp.float32) * 0.2
    w2 = jax.random.normal(k_w2, (C, C, 3, 3), jnp.float32) * 0.2
    g1 = jax.random.uniform(k_g1, (C,), jnp.float32, 0.5, 1.5)
    b1 = jax.random.normal(k_b1, (C,), jnp.float32) * 0.1
    g2 = jax.random.uniform(k_g2, (C,), jnp.float32, 0.5, 1.5)
    b2 = jax.random.normal(k_b2, (C,), jnp.float32) * 0.1

    out = jax.block_until_ready(basic_block(x, w1, w2, g1, b1, g2, b2))
    assert out.shape == (N, C, H, W)

    # Same math as the kernel (bf16 conv inputs, f32 accumulation): tight check.
    ref_bf16 = jax.block_until_ready(
        reference(x, w1, w2, g1, b1, g2, b2, conv_dtype=jnp.bfloat16))
    err_b = float(jnp.max(jnp.abs(out - ref_bf16)))
    assert jnp.allclose(out, ref_bf16, rtol=1e-2, atol=1e-2), (
        f"bf16-reference max abs err = {err_b}")

    # Full-f32 module semantics: coarse check (difference is bf16 quantization).
    ref_f32 = jax.block_until_ready(
        reference(x, w1, w2, g1, b1, g2, b2, conv_dtype=jnp.float32))
    err_f = float(jnp.max(jnp.abs(out - ref_f32)))
    assert jnp.allclose(out, ref_f32, rtol=1e-1, atol=1e-1), (
        f"f32-reference max abs err = {err_f}")

    print("KERNEL_OK")
</pallas_src>

<mosaic_0001>
module attributes {stable_mosaic.version = 11 : i64} {
  func.func @basic_block_kernel(%arg0: memref<512x128xbf16, #tpu.memory_space<vmem>>, %arg1: memref<512x128xf32, #tpu.memory_space<vmem>>, %arg2: memref<128x128xbf16, #tpu.memory_space<vmem>>, %arg3: memref<1152x128xbf16, #tpu.memory_space<vmem>>, %arg4: memref<1x128xf32, #tpu.memory_space<vmem>>, %arg5: memref<1x128xf32, #tpu.memory_space<vmem>>, %arg6: memref<1x128xf32, #tpu.memory_space<vmem>>, %arg7: memref<1x128xf32, #tpu.memory_space<vmem>>, %arg8: memref<512x128xf32, #tpu.memory_space<vmem>>, %arg9: memref<2x18x18x128xf32, #tpu.memory_space<vmem>>) attributes {dimension_semantics = [], scalar_prefetch = 0 : i64, scratch_operands = 1 : i64, tpu.core_type = #tpu.core_type<tc>} {
    %c0 = arith.constant 0 : index
    %c0_0 = arith.constant 0 : index
    %0 = vector.load %arg0[%c0, %c0_0] : memref<512x128xbf16, #tpu.memory_space<vmem>>, vector<512x128xbf16>
    %c0_1 = arith.constant 0 : index
    %c0_2 = arith.constant 0 : index
    %1 = vector.load %arg2[%c0_1, %c0_2] : memref<128x128xbf16, #tpu.memory_space<vmem>>, vector<128x128xbf16>
    %cst = arith.constant dense<0.000000e+00> : vector<512x128xf32>
    %2 = tpu.matmul %0, %1, %cst {dimension_numbers = #tpu.dot_dimension_numbers<[1], [0], [0], [1], [0, 0, 1, 1], [], []>} : vector<512x128xbf16>, vector<128x128xbf16>, vector<512x128xf32> -> vector<512x128xf32>
    %c0_3 = arith.constant 0 : index
    %c0_4 = arith.constant 0 : index
    %3 = vector.load %arg4[%c0_3, %c0_4] : memref<1x128xf32, #tpu.memory_space<vmem>>, vector<1x128xf32>
    %c0_5 = arith.constant 0 : index
    %c0_6 = arith.constant 0 : index
    %4 = vector.load %arg5[%c0_5, %c0_6] : memref<1x128xf32, #tpu.memory_space<vmem>>, vector<1x128xf32>
    %cst_7 = arith.constant dense<0.000000e+00> : vector<128xf32>
    %5 = vector.multi_reduction <add>, %2, %cst_7 [0] : vector<512x128xf32> to vector<128xf32>
    %6 = vector.shape_cast %5 : vector<128xf32> to vector<1x128xf32>
    %cst_8 = arith.constant 0.001953125 : f32
    %7 = vector.broadcast %cst_8 : f32 to vector<1x128xf32>
    %8 = arith.mulf %6, %7 : vector<1x128xf32>
    %9 = arith.mulf %2, %2 : vector<512x128xf32>
    %cst_9 = arith.constant dense<0.000000e+00> : vector<128xf32>
    %10 = vector.multi_reduction <add>, %9, %cst_9 [0] : vector<512x128xf32> to vector<128xf32>
    %11 = vector.shape_cast %10 : vector<128xf32> to vector<1x128xf32>
    %cst_10 = arith.constant 0.001953125 : f32
    %12 = vector.broadcast %cst_10 : f32 to vector<1x128xf32>
    %13 = arith.mulf %11, %12 : vector<1x128xf32>
    %14 = arith.mulf %8, %8 : vector<1x128xf32>
    %15 = arith.subf %13, %14 : vector<1x128xf32>
    %cst_11 = arith.constant 9.99999974E-6 : f32
    %16 = vector.broadcast %cst_11 : f32 to vector<1x128xf32>
    %17 = arith.addf %15, %16 : vector<1x128xf32>
    %18 = math.rsqrt %17 : vector<1x128xf32>
    %19 = arith.mulf %3, %18 : vector<1x128xf32>
    %20 = arith.mulf %8, %19 : vector<1x128xf32>
    %21 = arith.subf %4, %20 : vector<1x128xf32>
    %22 = vector.broadcast %19 : vector<1x128xf32> to vector<512x128xf32>
    %23 = arith.mulf %2, %22 : vector<512x128xf32>
    %24 = vector.broadcast %21 : vector<1x128xf32> to vector<512x128xf32>
    %25 = arith.addf %23, %24 : vector<512x128xf32>
    %cst_12 = arith.constant 0.000000e+00 : f32
    %26 = vector.broadcast %cst_12 : f32 to vector<512x128xf32>
    %27 = arith.maximumf %25, %26 : vector<512x128xf32>
    %cst_13 = arith.constant 0.000000e+00 : f32
    %28 = vector.broadcast %cst_13 : f32 to vector<2x1x18x128xf32>
    %c0_14 = arith.constant 0 : index
    %c0_15 = arith.constant 0 : index
    %c0_16 = arith.constant 0 : index
    %c0_17 = arith.constant 0 : index
    %29 = vector.load %arg9[%c0_14, %c0_15, %c0_16, %c0_17] : memref<2x18x18x128xf32, #tpu.memory_space<vmem>>, vector<2x1x18x128xf32>
    tpu.vector_store %arg9[%c0_14, %c0_15, %c0_16, %c0_17], %28 {strides = array<i32>} : memref<2x18x18x128xf32, #tpu.memory_space<vmem>>, vector<2x1x18x128xf32>,
    %cst_18 = arith.constant 0.000000e+00 : f32
    %30 = vector.broadcast %cst_18 : f32 to vector<2x1x18x128xf32>
    %c0_19 = arith.constant 0 : index
    %c17 = arith.constant 17 : index
    %c0_20 = arith.constant 0 : index
    %c0_21 = arith.constant 0 : index
    %31 = vector.load %arg9[%c0_19, %c17, %c0_20, %c0_21] : memref<2x18x18x128xf32, #tpu.memory_space<vmem>>, vector<2x1x18x128xf32>
    tpu.vector_store %arg9[%c0_19, %c17, %c0_20, %c0_21], %30 {strides = array<i32>} : memref<2x18x18x128xf32, #tpu.memory_space<vmem>>, vector<2x1x18x128xf32>,
    %cst_22 = arith.constant 0.000000e+00 : f32
    %32 = vector.broadcast %cst_22 : f32 to vector<2x18x1x128xf32>
    %c0_23 = arith.constant 0 : index
    %c0_24 = arith.constant 0 : index
    %c0_25 = arith.constant 0 : index
    %c0_26 = arith.constant 0 : index
    %33 = vector.load %arg9[%c0_23, %c0_24, %c0_25, %c0_26] : memref<2x18x18x128xf32, #tpu.memory_space<vmem>>, vector<2x18x1x128xf32>
    tpu.vector_store %arg9[%c0_23, %c0_24, %c0_25, %c0_26], %32 {strides = array<i32>} : memref<2x18x18x128xf32, #tpu.memory_space<vmem>>, vector<2x18x1x128xf32>,
    %cst_27 = arith.constant 0.000000e+00 : f32
    %34 = vector.broadcast %cst_27 : f32 to vector<2x18x1x128xf32>
    %c0_28 = arith.constant 0 : index
    %c0_29 = arith.constant 0 : index
    %c17_30 = arith.constant 17 : index
    %c0_31 = arith.constant 0 : index
    %35 = vector.load %arg9[%c0_28, %c0_29, %c17_30, %c0_31] : memref<2x18x18x128xf32, #tpu.memory_space<vmem>>, vector<2x18x1x128xf32>
    tpu.vector_store %arg9[%c0_28, %c0_29, %c17_30, %c0_31], %34 {strides = array<i32>} : memref<2x18x18x128xf32, #tpu.memory_space<vmem>>, vector<2x18x1x128xf32>,
    %36 = vector.shape_cast %27 : vector<512x128xf32> to vector<2x16x16x128xf32>
    %c0_32 = arith.constant 0 : index
    %c1 = arith.constant 1 : index
    %c1_33 = arith.constant 1 : index
    %c0_34 = arith.constant 0 : index
    %37 = vector.load %arg9[%c0_32, %c1, %c1_33, %c0_34] : memref<2x18x18x128xf32, #tpu.memory_space<vmem>>, vector<2x16x16x128xf32>
    tpu.vector_store %arg9[%c0_32, %c1, %c1_33, %c0_34], %36 {strides = array<i32>} : memref<2x18x18x128xf32, #tpu.memory_space<vmem>>, vector<2x16x16x128xf32>,
    %c0_35 = arith.constant 0 : index
    %c0_36 = arith.constant 0 : index
    %c0_37 = arith.constant 0 : index
    %c0_38 = arith.constant 0 : index
    %38 = vector.load %arg9[%c0_35, %c0_36, %c0_37, %c0_38] : memref<2x18x18x128xf32, #tpu.memory_space<vmem>>, vector<2x18x18x128xf32>
    %39 = vector.extract_strided_slice %38 {offsets = [0, 0, 0, 0], sizes = [2, 16, 16, 128], strides = [1, 1, 1, 1]} : vector<2x18x18x128xf32> to vector<2x16x16x128xf32>
    %40 = vector.shape_cast %39 : vector<2x16x16x128xf32> to vector<512x128xf32>
    %41 = arith.truncf %40 : vector<512x128xf32> to vector<512x128xbf16>
    %42 = vector.extract_strided_slice %38 {offsets = [0, 0, 1, 0], sizes = [2, 16, 16, 128], strides = [1, 1, 1, 1]} : vector<2x18x18x128xf32> to vector<2x16x16x128xf32>
    %43 = vector.shape_cast %42 : vector<2x16x16x128xf32> to vector<512x128xf32>
    %44 = arith.truncf %43 : vector<512x128xf32> to vector<512x128xbf16>
    %45 = vector.extract_strided_slice %38 {offsets = [0, 0, 2, 0], sizes = [2, 16, 16, 128], strides = [1, 1, 1, 1]} : vector<2x18x18x128xf32> to vector<2x16x16x128xf32>
    %46 = vector.shape_cast %45 : vector<2x16x16x128xf32> to vector<512x128xf32>
    %47 = arith.truncf %46 : vector<512x128xf32> to vector<512x128xbf16>
    %48 = vector.extract_strided_slice %38 {offsets = [0, 1, 0, 0], sizes = [2, 16, 16, 128], strides = [1, 1, 1, 1]} : vector<2x18x18x128xf32> to vector<2x16x16x128xf32>
    %49 = vector.shape_cast %48 : vector<2x16x16x128xf32> to vector<512x128xf32>
    %50 = arith.truncf %49 : vector<512x128xf32> to vector<512x128xbf16>
    %51 = vector.extract_strided_slice %38 {offsets = [0, 1, 1, 0], sizes = [2, 16, 16, 128], strides = [1, 1, 1, 1]} : vector<2x18x18x128xf32> to vector<2x16x16x128xf32>
    %52 = vector.shape_cast %51 : vector<2x16x16x128xf32> to vector<512x128xf32>
    %53 = arith.truncf %52 : vector<512x128xf32> to vector<512x128xbf16>
    %54 = vector.extract_strided_slice %38 {offsets = [0, 1, 2, 0], sizes = [2, 16, 16, 128], strides = [1, 1, 1, 1]} : vector<2x18x18x128xf32> to vector<2x16x16x128xf32>
    %55 = vector.shape_cast %54 : vector<2x16x16x128xf32> to vector<512x128xf32>
    %56 = arith.truncf %55 : vector<512x128xf32> to vector<512x128xbf16>
    %57 = vector.extract_strided_slice %38 {offsets = [0, 2, 0, 0], sizes = [2, 16, 16, 128], strides = [1, 1, 1, 1]} : vector<2x18x18x128xf32> to vector<2x16x16x128xf32>
    %58 = vector.shape_cast %57 : vector<2x16x16x128xf32> to vector<512x128xf32>
    %59 = arith.truncf %58 : vector<512x128xf32> to vector<512x128xbf16>
    %60 = vector.extract_strided_slice %38 {offsets = [0, 2, 1, 0], sizes = [2, 16, 16, 128], strides = [1, 1, 1, 1]} : vector<2x18x18x128xf32> to vector<2x16x16x128xf32>
    %61 = vector.shape_cast %60 : vector<2x16x16x128xf32> to vector<512x128xf32>
    %62 = arith.truncf %61 : vector<512x128xf32> to vector<512x128xbf16>
    %63 = vector.extract_strided_slice %38 {offsets = [0, 2, 2, 0], sizes = [2, 16, 16, 128], strides = [1, 1, 1, 1]} : vector<2x18x18x128xf32> to vector<2x16x16x128xf32>
    %64 = vector.shape_cast %63 : vector<2x16x16x128xf32> to vector<512x128xf32>
    %65 = arith.truncf %64 : vector<512x128xf32> to vector<512x128xbf16>
    %66 = tpu.concatenate %41, %44, %47, %50, %53, %56, %59, %62, %65 in 1 : vector<512x128xbf16>, vector<512x128xbf16>, vector<512x128xbf16>, vector<512x128xbf16>, vector<512x128xbf16>, vector<512x128xbf16>, vector<512x128xbf16>, vector<512x128xbf16>, vector<512x128xbf16> -> vector<512x1152xbf16>
    %c0_39 = arith.constant 0 : index
    %c0_40 = arith.constant 0 : index
    %67 = vector.load %arg3[%c0_39, %c0_40] : memref<1152x128xbf16, #tpu.memory_space<vmem>>, vector<1152x128xbf16>
    %cst_41 = arith.constant dense<0.000000e+00> : vector<512x128xf32>
    %68 = tpu.matmul %66, %67, %cst_41 {dimension_numbers = #tpu.dot_dimension_numbers<[1], [0], [0], [1], [0, 0, 1, 1], [], []>} : vector<512x1152xbf16>, vector<1152x128xbf16>, vector<512x128xf32> -> vector<512x128xf32>
    %c0_42 = arith.constant 0 : index
    %c0_43 = arith.constant 0 : index
    %69 = vector.load %arg6[%c0_42, %c0_43] : memref<1x128xf32, #tpu.memory_space<vmem>>, vector<1x128xf32>
    %c0_44 = arith.constant 0 : index
    %c0_45 = arith.constant 0 : index
    %70 = vector.load %arg7[%c0_44, %c0_45] : memref<1x128xf32, #tpu.memory_space<vmem>>, vector<1x128xf32>
    %cst_46 = arith.constant dense<0.000000e+00> : vector<128xf32>
    %71 = vector.multi_reduction <add>, %68, %cst_46 [0] : vector<512x128xf32> to vector<128xf32>
    %72 = vector.shape_cast %71 : vector<128xf32> to vector<1x128xf32>
    %cst_47 = arith.constant 0.001953125 : f32
    %73 = vector.broadcast %cst_47 : f32 to vector<1x128xf32>
    %74 = arith.mulf %72, %73 : vector<1x128xf32>
    %75 = arith.mulf %68, %68 : vector<512x128xf32>
    %cst_48 = arith.constant dense<0.000000e+00> : vector<128xf32>
    %76 = vector.multi_reduction <add>, %75, %cst_48 [0] : vector<512x128xf32> to vector<128xf32>
    %77 = vector.shape_cast %76 : vector<128xf32> to vector<1x128xf32>
    %cst_49 = arith.constant 0.001953125 : f32
    %78 = vector.broadcast %cst_49 : f32 to vector<1x128xf32>
    %79 = arith.mulf %77, %78 : vector<1x128xf32>
    %80 = arith.mulf %74, %74 : vector<1x128xf32>
    %81 = arith.subf %79, %80 : vector<1x128xf32>
    %cst_50 = arith.constant 9.99999974E-6 : f32
    %82 = vector.broadcast %cst_50 : f32 to vector<1x128xf32>
    %83 = arith.addf %81, %82 : vector<1x128xf32>
    %84 = math.rsqrt %83 : vector<1x128xf32>
    %85 = arith.mulf %69, %84 : vector<1x128xf32>
    %86 = arith.mulf %74, %85 : vector<1x128xf32>
    %87 = arith.subf %70, %86 : vector<1x128xf32>
    %88 = vector.broadcast %85 : vector<1x128xf32> to vector<512x128xf32>
    %89 = arith.mulf %68, %88 : vector<512x128xf32>
    %90 = vector.broadcast %87 : vector<1x128xf32> to vector<512x128xf32>
    %91 = arith.addf %89, %90 : vector<512x128xf32>
    %c0_51 = arith.constant 0 : index
    %c0_52 = arith.constant 0 : index
    %92 = vector.load %arg1[%c0_51, %c0_52] : memref<512x128xf32, #tpu.memory_space<vmem>>, vector<512x128xf32>
    %93 = arith.addf %91, %92 : vector<512x128xf32>
    %cst_53 = arith.constant 0.000000e+00 : f32
    %94 = vector.broadcast %cst_53 : f32 to vector<512x128xf32>
    %95 = arith.maximumf %93, %94 : vector<512x128xf32>
    %c0_54 = arith.constant 0 : index
    %c0_55 = arith.constant 0 : index
    %96 = vector.load %arg8[%c0_54, %c0_55] : memref<512x128xf32, #tpu.memory_space<vmem>>, vector<512x128xf32>
    tpu.vector_store %arg8[%c0_54, %c0_55], %95 {strides = array<i32>} : memref<512x128xf32, #tpu.memory_space<vmem>>, vector<512x128xf32>,
    return
  }
}

</mosaic_0001>

<bundles_post_ra>
// kernel: tpu_custom_call.1
= control target key start
LH: loop header
LB: loop body
LE: loop exit
PB: predicated region body
PF: predicated region fallthrough
CT: control target
= control target key end

     0   :  { %13 = vsyncpa [#allocation4], 0  ;;  %s10338_s0 = inlined_call_operand.hbm [shape: bf16[512,128], index: 0, kind: input, shape index: {}]   ;;  %s10339_s1 = inlined_call_operand.hbm [shape: f32[512,128], index: 1, kind: input, shape index: {}]   ;;  %s10340_s2 = inlined_call_operand.hbm [shape: bf16[128,128], index: 2, kind: input, shape index: {}]   ;;  %s10341_s3 = inlined_call_operand.hbm [shape: bf16[1152,128], index: 3, kind: input, shape index: {}]   ;;  %s10342_s4 = inlined_call_operand.vmem [shape: f32[1,128], index: 4, kind: input, shape index: {}]   ;;  %s10343_s5 = inlined_call_operand.vmem [shape: f32[1,128], index: 5, kind: input, shape index: {}]   ;;  %s10344_s6 = inlined_call_operand.vmem [shape: f32[1,128], index: 6, kind: input, shape index: {}]   ;;  %s10345_s7 = inlined_call_operand.vmem [shape: f32[1,128], index: 7, kind: input, shape index: {}]   ;;  %s10346_s8 = inlined_call_operand.hbm [shape: f32[512,128], index: 8, kind: output, shape index: {}]  }
   0x1   :  { %14 = vsyncpa [#allocation7], 0 }
   0x2   :  { %15 = vsyncpa [#allocation10], 0  ;;  %s34_s29 = sshll.u32 %s10339_s1, 4  ;;  %s35_s29 = int_to_ptr.hbm [resolvable:$true] %s34_s29 }
   0x3   :  { %16 = vsyncpa [#allocation5], 0  ;;  %s6206_s30 = smov [#allocation6]   ;;  %s21_s12 = sshll.u32 %s10338_s0, 4  ;;  %s22_s12 = int_to_ptr.hbm [resolvable:$true] %s21_s12 }
   0x4   :  { %s36_s9 = sshll.u32 %s6206_s30, 4  ;;  %s6207_s13 = smov 128   ;;  %s37_s9 = int_to_ptr.vmem [resolvable:$true] %s36_s9 }
   0x5   :  { %s6208_s14 = smov 8   ;;  %s6209_s15 = smov [#allocation3]  }
   0x6   :  { %42 = dma.hbm_to_vmem [thread:$0]  %s35_s29, 8192, %s37_s9, [#allocation7], %s6207_s13, %s6207_s13, %s6208_s14  }
   0x7   :  { %s23_s16 = sshll.u32 %s6209_s15, 4  ;;  %s6210_s1 = smov 64   ;;  %s24_s16 = int_to_ptr.vmem [resolvable:$true] %s23_s16 }
   0x8   :  { %s6211_s17 = smov 4   ;;  %s47_s20 = sshll.u32 %s10340_s2, 4  ;;  %s48_s20 = int_to_ptr.hbm [resolvable:$true] %s47_s20 }
   0x9   :  { %29 = dma.hbm_to_vmem [thread:$0]  %s22_s12, 4096, %s24_s16, [#allocation4], %s6210_s1, %s6210_s1, %s6211_s17  }
   0xa   :  { %s6212_s21 = smov [#allocation8]   ;;  %s60_s24 = sshll.u32 %s10341_s3, 4  ;;  %s61_s24 = int_to_ptr.hbm [resolvable:$true] %s60_s24 }
   0xb   :  { %s49_s0 = sshll.u32 %s6212_s21, 4  ;;  %s6213_s25 = smov [#allocation9]   ;;  %s50_s0 = int_to_ptr.vmem [resolvable:$true] %s49_s0 }
   0xc   :  { %55 = dma.hbm_to_vmem [thread:$0]  %s48_s20, 1024, %s50_s0, [#allocation7], %s6210_s1, %s6210_s1, %s6211_s17  }
   0xd   :  { %s62_s26 = sshll.u32 %s6213_s25, 4  ;;  %s63_s26 = int_to_ptr.vmem [resolvable:$true] %s62_s26 }
   0xe   :  { %68 = dma.hbm_to_vmem [thread:$0]  %s61_s24, 9216, %s63_s26, [#allocation10], %s6210_s1, %s6210_s1, %s6211_s17  }
   0xf   :  { %6198 = dma.done.wait [#allocation4], 4096  }
  0x10   :  { %6199 = vsyncadd [#allocation4], 4294963200 }
  0x11   :  { %6200 = dma.done.wait [#allocation7], 9216  }
  0x12   :  { %6201 = vsyncadd [#allocation7], 4294958080 }
  0x13   :  { %6202 = dma.done.wait [#allocation10], 9216  }
  0x14   :  { %6203 = vsyncadd [#allocation10], 4294958080  ;;  %v5955_v0 = vld [vmem:[#allocation8 + $0x38] sm:$0xff]  ;;  %v5954_v1 = vld [vmem:[#allocation8 + $0x30] sm:$0xff]  ;;  %vm1420_vm3 = vcmask 1046528   ;;  %vm1709_vm4 = vcmask 1045504  }
  0x15   :  { %413 = vmatpush.bf16.msra.mxu0 %v5955_v0  ;;  %6028 = vmatpush.bf16.msra.mxu2 %v5955_v0  ;;  %v5953_v2 = vld [vmem:[#allocation8 + $0x28] sm:$0xff]  ;;  %v5952_v3 = vld [vmem:[#allocation8 + $0x20] sm:$0xff]  ;;  %v5951_v4 = vld [vmem:[#allocation8 + $0x18] sm:$0xff]  ;;  %s5453_s11 = sshll.u32 %s10346_s8, 4  ;;  %s5454_s11 = int_to_ptr.hbm [resolvable:$true] %s5453_s11 }
  0x16   :  { %v5950_v5 = vld [vmem:[#allocation8 + $0x10] sm:$0xff]  ;;  %v5949_v6 = vld [vmem:[#allocation8 + $0x8] sm:$0xff]  ;;  %v5948_v7 = vld [vmem:[#allocation8] sm:$0xff] }
  0x17   :  { %v5916_v8 = vld [vmem:[#allocation3] sm:$0xff]  ;;  %v5917_v9 = vld [vmem:[#allocation3 + $0x8] sm:$0xff]  ;;  %v5918_v11 = vld [vmem:[#allocation3 + $0x10] sm:$0xff] }
  0x18   :  { %v5932_v10 = vld [vmem:[#allocation3 + $0x80] sm:$0xff]  ;;  %v5933_v12 = vld [vmem:[#allocation3 + $0x88] sm:$0xff]  ;;  %v5919_v13 = vld [vmem:[#allocation3 + $0x18] sm:$0xff] }
  0x19   :  { %414 = vmatpush.bf16.msra.mxu0 %v5954_v1  ;;  %6029 = vmatpush.bf16.msra.mxu2 %v5954_v1  ;;  %v5934_v14 = vld [vmem:[#allocation3 + $0x90] sm:$0xff]  ;;  %v5920_v15 = vld [vmem:[#allocation3 + $0x20] sm:$0xff]  ;;  %v5935_v16 = vld [vmem:[#allocation3 + $0x98] sm:$0xff] }
  0x1a   :  { %v5921_v17 = vld [vmem:[#allocation3 + $0x28] sm:$0xff]  ;;  %v5936_v18 = vld [vmem:[#allocation3 + $0xa0] sm:$0xff]  ;;  %v5922_v19 = vld [vmem:[#allocation3 + $0x30] sm:$0xff] }
  0x1b   :  { %v5937_v20 = vld [vmem:[#allocation3 + $0xa8] sm:$0xff]  ;;  %v5923_v21 = vld [vmem:[#allocation3 + $0x38] sm:$0xff]  ;;  %v5938_v22 = vld [vmem:[#allocation3 + $0xb0] sm:$0xff] }
  0x1c   :  { %v5924_v23 = vld [vmem:[#allocation3 + $0x40] sm:$0xff]  ;;  %v5939_v25 = vld [vmem:[#allocation3 + $0xb8] sm:$0xff]  ;;  %v5925_v27 = vld [vmem:[#allocation3 + $0x48] sm:$0xff] }
  0x1d   :  { %415 = vmatpush.bf16.msra.mxu0 %v5953_v2  ;;  %6030 = vmatpush.bf16.msra.mxu2 %v5953_v2  ;;  %v5940_v29 = vld [vmem:[#allocation3 + $0xc0] sm:$0xff]  ;;  %v5926_v32 = vld [vmem:[#allocation3 + $0x50] sm:$0xff]  ;;  %v5941_v35 = vld [vmem:[#allocation3 + $0xc8] sm:$0xff] }
  0x1e   :  { %v5927_v38 = vld [vmem:[#allocation3 + $0x58] sm:$0xff]  ;;  %v5942_v41 = vld [vmem:[#allocation3 + $0xd0] sm:$0xff]  ;;  %v5928_v44 = vld [vmem:[#allocation3 + $0x60] sm:$0xff] }
  0x1f   :  { %v5943_v47 = vld [vmem:[#allocation3 + $0xd8] sm:$0xff]  ;;  %v5929_v50 = vld [vmem:[#allocation3 + $0x68] sm:$0xff]  ;;  %v5944_v53 = vld [vmem:[#allocation3 + $0xe0] sm:$0xff] }
  0x20   :  { %v5930_v56 = vld [vmem:[#allocation3 + $0x70] sm:$0xff]  ;;  %v5945_v59 = vld [vmem:[#allocation3 + $0xe8] sm:$0xff]  ;;  %v5931_v62 = vld [vmem:[#allocation3 + $0x78] sm:$0xff] }
  0x21   :  { %416 = vmatpush.bf16.msra.mxu0 %v5952_v3  ;;  %6031 = vmatpush.bf16.msra.mxu2 %v5952_v3  ;;  %v5946_v1 = vld [vmem:[#allocation3 + $0xf0] sm:$0xff] }
  0x25   :  { %417 = vmatpush.bf16.msra.mxu0 %v5951_v4  ;;  %6032 = vmatpush.bf16.msra.mxu2 %v5951_v4 }
  0x29   :  { %418 = vmatpush.bf16.msra.mxu0 %v5950_v5  ;;  %6033 = vmatpush.bf16.msra.mxu2 %v5950_v5 }
  0x2d   :  { %419 = vmatpush.bf16.msra.mxu0 %v5949_v6  ;;  %6034 = vmatpush.bf16.msra.mxu2 %v5949_v6  ;;  %v5947_v6 = vld [vmem:[#allocation3 + $0xf8] sm:$0xff] }
  0x31   :  { %420 = vmatpush.bf16.msra.mxu0 %v5948_v7  ;;  %6035 = vmatpush.bf16.msra.mxu2 %v5948_v7 }
  0x34   :  { %421 = vmatmul.bf16.vlgmr.msra.gmra.mxu0 %v5916_v8  ;;  %501 = vmatmul.bf16.vlgmr.msra.gmra.mxu2 %v5932_v10 }
  0x44   :  { %426 = vmatmul.bf16.gmra.mxu0 %v5917_v9  ;;  %506 = vmatmul.bf16.gmra.mxu2 %v5933_v12 }
  0x54   :  { %431 = vmatmul.bf16.gmra.mxu0 %v5918_v11  ;;  %511 = vmatmul.bf16.gmra.mxu2 %v5934_v14 }
  0x64   :  { %436 = vmatmul.bf16.gmra.mxu0 %v5919_v13  ;;  %516 = vmatmul.bf16.gmra.mxu2 %v5935_v16 }
  0x74   :  { %441 = vmatmul.bf16.gmra.mxu0 %v5920_v15  ;;  %521 = vmatmul.bf16.gmra.mxu2 %v5936_v18 }
  0x84   :  { %446 = vmatmul.bf16.gmra.mxu0 %v5921_v17  ;;  %526 = vmatmul.bf16.gmra.mxu2 %v5937_v20 }
  0x94   :  { %451 = vmatmul.bf16.gmra.mxu0 %v5922_v19  ;;  %531 = vmatmul.bf16.gmra.mxu2 %v5938_v22 }
  0xa4   :  { %456 = vmatmul.bf16.gmra.mxu0 %v5923_v21  ;;  %536 = vmatmul.bf16.gmra.mxu2 %v5939_v25 }
  0xb1   :  { %v6277_v24 = vpop.f32.mrf.mxu0 }
  0xb2   :  { %v654_v20 = vmul.f32 %v6277_v24, %v6277_v24 }
  0xb4   :  { %461 = vmatmul.bf16.gmra.mxu0 %v5924_v23  ;;  %541 = vmatmul.bf16.gmra.mxu2 %v5940_v29 }
  0xb7   :  { %v6285_v31 = vpop.f32.mrf.mxu2 }
  0xb8   :  { %10610 = vst [vmem:[#allocation16_spill] sm:$0xff] %v6285_v31 }
  0xb9   :  { %v6279_v26 = vpop.f32.mrf.mxu0 }
  0xba   :  { %v655_v19 = vmul.f32 %v6279_v26, %v6279_v26  ;;  %v584_v21 = vadd.f32 %v6279_v26, %v6277_v24 }
  0xbf   :  { %v6289_v34 = vpop.f32.mrf.mxu2 }
  0xc0   :  { %10611 = vst [vmem:[#allocation17_spill] sm:$0xff] %v6289_v34 }
  0xc1   :  { %v6281_v28 = vpop.f32.mrf.mxu0 }
  0xc2   :  { %v656_v22 = vmul.f32 %v6281_v28, %v6281_v28  ;;  %v585_v25 = vadd.f32 %v584_v21, %v6281_v28 }
  0xc4   :  { %466 = vmatmul.bf16.gmra.mxu0 %v5925_v27  ;;  %546 = vmatmul.bf16.gmra.mxu2 %v5941_v35  ;;  %v718_v27 = vadd.f32 %v655_v19, %v654_v20 }
  0xc6   :  { %v719_v35 = vadd.f32 %v718_v27, %v656_v22 }
  0xc7   :  { %v6293_v37 = vpop.f32.mrf.mxu2 }
  0xc8   :  { %10612 = vst [vmem:[#allocation18_spill] sm:$0xff] %v6293_v37 }
  0xc9   :  { %v6283_v30 = vpop.f32.mrf.mxu0 }
  0xca   :  { %v657_v29 = vmul.f32 %v6283_v30, %v6283_v30 }
  0xcf   :  { %v6297_v40 = vpop.f32.mrf.mxu2 }
  0xd0   :  { %10613 = vst [vmem:[#allocation19_spill] sm:$0xff] %v6297_v40 }
  0xd1   :  { %v6287_v33 = vpop.f32.mrf.mxu0 }
  0xd4   :  { %471 = vmatmul.bf16.gmra.mxu0 %v5926_v32  ;;  %551 = vmatmul.bf16.gmra.mxu2 %v5942_v41  ;;  %v658_v41 = vmul.f32 %v6287_v33, %v6287_v33 }
  0xd7   :  { %v6301_v43 = vpop.f32.mrf.mxu2 }
  0xd8   :  { %10614 = vst [vmem:[#allocation20_spill] sm:$0xff] %v6301_v43 }
  0xd9   :  { %v6291_v36 = vpop.f32.mrf.mxu0 }
  0xdf   :  { %v6305_v46 = vpop.f32.mrf.mxu2 }
  0xe1   :  { %v6295_v39 = vpop.f32.mrf.mxu0 }
  0xe4   :  { %476 = vmatmul.bf16.gmra.mxu0 %v5927_v38  ;;  %556 = vmatmul.bf16.gmra.mxu2 %v5943_v47  ;;  %v586_v38 = vadd.f32 %v585_v25, %v6283_v30  ;;  %v720_v47 = vadd.f32 %v719_v35, %v657_v29 }
  0xe7   :  { %v6309_v49 = vpop.f32.mrf.mxu2 }
  0xe9   :  { %v6299_v42 = vpop.f32.mrf.mxu0 }
  0xef   :  { %v6313_v52 = vpop.f32.mrf.mxu2 }
  0xf1   :  { %v6303_v45 = vpop.f32.mrf.mxu0 }
  0xf2   :  { %v662_v25 = vmul.f32 %v6303_v45, %v6303_v45 }
  0xf4   :  { %481 = vmatmul.bf16.gmra.mxu0 %v5928_v44  ;;  %561 = vmatmul.bf16.gmra.mxu2 %v5944_v53  ;;  %v587_v44 = vadd.f32 %v586_v38, %v6287_v33  ;;  %v721_v53 = vadd.f32 %v720_v47, %v658_v41 }
  0xf7   :  { %v6317_v55 = vpop.f32.mrf.mxu2 }
  0xf9   :  { %v6307_v48 = vpop.f32.mrf.mxu0 }
  0xfa   :  { %v663_v35 = vmul.f32 %v6307_v48, %v6307_v48 }
  0xff   :  { %v6321_v58 = vpop.f32.mrf.mxu2 }
 0x101   :  { %v6311_v51 = vpop.f32.mrf.mxu0 }
 0x104   :  { %486 = vmatmul.bf16.gmra.mxu0 %v5929_v50  ;;  %566 = vmatmul.bf16.gmra.mxu2 %v5945_v59  ;;  %v659_v50 = vmul.f32 %v6291_v36, %v6291_v36  ;;  %v660_v59 = vmul.f32 %v6295_v39, %v6295_v39 }
 0x107   :  { %v6325_v61 = vpop.f32.mrf.mxu2 }
 0x109   :  { %v6315_v54 = vpop.f32.mrf.mxu0 }
 0x10f   :  { %v6329_v0 = vpop.f32.mrf.mxu2 }
 0x111   :  { %v6319_v57 = vpop.f32.mrf.mxu0 }
 0x114   :  { %491 = vmatmul.bf16.gmra.mxu0 %v5930_v56  ;;  %571 = vmatmul.bf16.gmra.mxu2 %v5946_v1  ;;  %v588_v56 = vadd.f32 %v587_v44, %v6291_v36  ;;  %v722_v1 = vadd.f32 %v721_v53, %v659_v50  ;;  %v664_v44 = vmul.f32 %v6311_v51, %v6311_v51 }
 0x115   :  { %v665_v53 = vmul.f32 %v6315_v54, %v6315_v54 }
 0x116   :  { %v723_v21 = vadd.f32 %v722_v1, %v660_v59  ;;  %v666_v1 = vmul.f32 %v6319_v57, %v6319_v57 }
 0x117   :  { %v6333_v3 = vpop.f32.mrf.mxu2 }
 0x119   :  { %v6323_v60 = vpop.f32.mrf.mxu0 }
 0x11f   :  { %v6337_v5 = vpop.f32.mrf.mxu2 }
 0x121   :  { %v6327_v63 = vpop.f32.mrf.mxu0 }
 0x124   :  { %496 = vmatmul.bf16.gmra.mxu0 %v5931_v62  ;;  %576 = vmatmul.bf16.gmra.mxu2 %v5947_v6  ;;  %v589_v62 = vadd.f32 %v588_v56, %v6295_v39  ;;  %v661_v6 = vmul.f32 %v6299_v42, %v6299_v42 }
 0x126   :  { %v590_v22 = vadd.f32 %v589_v62, %v6299_v42  ;;  %v724_v29 = vadd.f32 %v723_v21, %v661_v6 }
 0x127   :  { %v6341_v8 = vpop.f32.mrf.mxu2 }
 0x128   :  { %v591_v27 = vadd.f32 %v590_v22, %v6303_v45  ;;  %v725_v38 = vadd.f32 %v724_v29, %v662_v25  ;;  %v667_v25 = vmul.f32 %v6323_v60, %v6323_v60 }
 0x129   :  { %v6331_v2 = vpop.f32.mrf.mxu0 }
 0x12a   :  { %10615 = vst [vmem:[#allocation21_spill] sm:$0xff] %v6331_v2  ;;  %v592_v41 = vadd.f32 %v591_v27, %v6307_v48  ;;  %v726_v50 = vadd.f32 %v725_v38, %v663_v35  ;;  %v668_v35 = vmul.f32 %v6327_v63, %v6327_v63 }
 0x12c   :  { %v593_v47 = vadd.f32 %v592_v41, %v6311_v51  ;;  %v727_v59 = vadd.f32 %v726_v50, %v664_v44  ;;  %v669_v44 = vmul.f32 %v6331_v2, %v6331_v2 }
 0x12e   :  { %v594_v62 = vadd.f32 %v593_v47, %v6315_v54  ;;  %v728_v22 = vadd.f32 %v727_v59, %v665_v53 }
 0x12f   :  { %v6345_v10 = vpop.f32.mrf.mxu2 }
 0x130   :  { %v595_v21 = vadd.f32 %v594_v62, %v6319_v57  ;;  %v729_v27 = vadd.f32 %v728_v22, %v666_v1 }
 0x131   :  { %v6335_v4 = vpop.f32.mrf.mxu0 }
 0x132   :  { %10616 = vst [vmem:[#allocation22_spill] sm:$0xff] %v6335_v4  ;;  %v596_v29 = vadd.f32 %v595_v21, %v6323_v60  ;;  %v730_v41 = vadd.f32 %v729_v27, %v667_v25  ;;  %v670_v59 = vmul.f32 %v6335_v4, %v6335_v4 }
 0x134   :  { %v597_v38 = vadd.f32 %v596_v29, %v6327_v63  ;;  %v731_v50 = vadd.f32 %v730_v41, %v668_v35 }
 0x136   :  { %v598_v53 = vadd.f32 %v597_v38, %v6331_v2  ;;  %v732_v1 = vadd.f32 %v731_v50, %v669_v44 }
 0x137   :  { %v6351_v13 = vpop.f32.mrf.mxu2 }
 0x138   :  { %v599_v62 = vadd.f32 %v598_v53, %v6335_v4  ;;  %v733_v25 = vadd.f32 %v732_v1, %v670_v59 }
 0x139   :  { %v6339_v7 = vpop.f32.mrf.mxu0 }
 0x13a   :  { %10617 = vst [vmem:[#allocation23_spill] sm:$0xff] %v6339_v7  ;;  %v671_v21 = vmul.f32 %v6339_v7, %v6339_v7  ;;  %v600_v27 = vadd.f32 %v599_v62, %v6339_v7 }
 0x13c   :  { %v734_v38 = vadd.f32 %v733_v25, %v671_v21 }
 0x13f   :  { %v6355_v15 = vpop.f32.mrf.mxu2 }
 0x141   :  { %v6343_v9 = vpop.f32.mrf.mxu0 }
 0x142   :  { %10618 = vst [vmem:[#allocation24_spill] sm:$0xff] %v6343_v9  ;;  %v672_v29 = vmul.f32 %v6343_v9, %v6343_v9  ;;  %v601_v35 = vadd.f32 %v600_v27, %v6343_v9 }
 0x144   :  { %v735_v44 = vadd.f32 %v734_v38, %v672_v29 }
 0x147   :  { %v6359_v17 = vpop.f32.mrf.mxu2 }
 0x149   :  { %v6347_v11 = vpop.f32.mrf.mxu0 }
 0x14a   :  { %10619 = vst [vmem:[#allocation25_spill] sm:$0xff] %v6347_v11  ;;  %v673_v41 = vmul.f32 %v6347_v11, %v6347_v11  ;;  %v602_v50 = vadd.f32 %v601_v35, %v6347_v11 }
 0x14c   :  { %v736_v62 = vadd.f32 %v735_v44, %v673_v41 }
 0x14f   :  { %v6371_v23 = vpop.f32.mrf.mxu2 }
 0x151   :  { %v6349_v12 = vpop.f32.mrf.mxu0 }
 0x152   :  { %10620 = vst [vmem:[#allocation26_spill] sm:$0xff] %v6349_v12  ;;  %v674_v53 = vmul.f32 %v6349_v12, %v6349_v12  ;;  %v603_v59 = vadd.f32 %v602_v50, %v6349_v12 }
 0x154   :  { %v737_v7 = vadd.f32 %v736_v62, %v674_v53 }
 0x157   :  { %v6392_v20 = vpop.f32.mrf.mxu2 }
 0x159   :  { %v6353_v14 = vpop.f32.mrf.mxu0 }
 0x15a   :  { %10621 = vst [vmem:[#allocation27_spill] sm:$0xff] %v6353_v14  ;;  %v675_v1 = vmul.f32 %v6353_v14, %v6353_v14  ;;  %v604_v21 = vadd.f32 %v603_v59, %v6353_v14 }
 0x15c   :  { %v738_v35 = vadd.f32 %v737_v7, %v675_v1 }
 0x15f   :  { %v6411_v6 = vpop.f32.mrf.mxu2 }
 0x161   :  { %v6357_v16 = vpop.f32.mrf.mxu0 }
 0x162   :  { %10622 = vst [vmem:[#allocation28_spill] sm:$0xff] %v6357_v16  ;;  %v676_v25 = vmul.f32 %v6357_v16, %v6357_v16  ;;  %v605_v29 = vadd.f32 %v604_v21, %v6357_v16  ;;  %v5962_v16 = vld [vmem:[#allocation9 + $0x30] sm:$0xff] }
 0x164   :  { %v739_v41 = vadd.f32 %v738_v35, %v676_v25 }
 0x167   :  { %v6430_v22 = vpop.f32.mrf.mxu2 }
 0x169   :  { %v6361_v18 = vpop.f32.mrf.mxu0 }
 0x16a   :  { %10623 = vst [vmem:[#allocation29_spill] sm:$0xff] %v6361_v18  ;;  %v677_v38 = vmul.f32 %v6361_v18, %v6361_v18  ;;  %v606_v44 = vadd.f32 %v605_v29, %v6361_v18 }
 0x16c   :  { %v740_v59 = vadd.f32 %v739_v41, %v677_v38 }
 0x16f   :  { %v6449_v27 = vpop.f32.mrf.mxu2 }
 0x171   :  { %v6376_v32 = vpop.f32.mrf.mxu0 }
 0x172   :  { %10624 = vst [vmem:[#allocation30_spill] sm:$0xff] %v6376_v32  ;;  %v678_v50 = vmul.f32 %v6376_v32, %v6376_v32  ;;  %v607_v53 = vadd.f32 %v606_v44, %v6376_v32 }
 0x174   :  { %v741_v14 = vadd.f32 %v740_v59, %v678_v50 }
 0x177   :  { %v6470_v18 = vpop.f32.mrf.mxu2 }
 0x179   :  { %v6390_v19 = vpop.f32.mrf.mxu0 }
 0x17a   :  { %10625 = vst [vmem:[#allocation31_spill] sm:$0xff] %v6390_v19  ;;  %v679_v62 = vmul.f32 %v6390_v19, %v6390_v19  ;;  %v608_v7 = vadd.f32 %v607_v53, %v6390_v19 }
 0x17c   :  { %v742_v25 = vadd.f32 %v741_v14, %v679_v62 }
 0x181   :  { %v6406_v56 = vpop.f32.mrf.mxu0 }
 0x182   :  { %10626 = vst [vmem:[#allocation32_spill] sm:$0xff] %v6406_v56  ;;  %v680_v1 = vmul.f32 %v6406_v56, %v6406_v56  ;;  %v609_v21 = vadd.f32 %v608_v7, %v6406_v56 }
 0x184   :  { %v743_v38 = vadd.f32 %v742_v25, %v680_v1 }
 0x189   :  { %v6422_v47 = vpop.f32.mrf.mxu0 }
 0x18a   :  { %10627 = vst [vmem:[#allocation33_spill] sm:$0xff] %v6422_v47  ;;  %v681_v29 = vmul.f32 %v6422_v47, %v6422_v47  ;;  %v610_v41 = vadd.f32 %v609_v21, %v6422_v47 }
 0x18c   :  { %v744_v53 = vadd.f32 %v743_v38, %v681_v29  ;;  %v6487_v38 = vpop.f32.mrf.mxu2 }
 0x191   :  { %v6438_v2 = vpop.f32.mrf.mxu0 }
 0x192   :  { %10628 = vst [vmem:[#allocation34_spill] sm:$0xff] %v6438_v2  ;;  %v682_v44 = vmul.f32 %v6438_v2, %v6438_v2  ;;  %v611_v50 = vadd.f32 %v610_v41, %v6438_v2  ;;  %v686_v41 = vmul.f32 %v6285_v31, %v6285_v31 }
 0x194   :  { %v745_v14 = vadd.f32 %v744_v53, %v682_v44  ;;  %v687_v53 = vmul.f32 %v6289_v34, %v6289_v34 }
 0x199   :  { %v6454_v11 = vpop.f32.mrf.mxu0 }
 0x19a   :  { %10629 = vst [vmem:[#allocation35_spill] sm:$0xff] %v6454_v11  ;;  %v683_v59 = vmul.f32 %v6454_v11, %v6454_v11  ;;  %v612_v62 = vadd.f32 %v611_v50, %v6454_v11 }
 0x19c   :  { %v746_v1 = vadd.f32 %v745_v14, %v683_v59 }
 0x1a1   :  { %v6468_v35 = vpop.f32.mrf.mxu0 }
 0x1a2   :  { %10630 = vst [vmem:[#allocation36_spill] sm:$0xff] %v6468_v35  ;;  %v684_v7 = vmul.f32 %v6468_v35, %v6468_v35  ;;  %v613_v56 = vadd.f32 %v612_v62, %v6468_v35 }
 0x1a4   :  { %v747_v21 = vadd.f32 %v746_v1, %v684_v7  ;;  %v689_v1 = vmul.f32 %v6297_v40, %v6297_v40 }
 0x1a9   :  { %v6482_v25 = vpop.f32.mrf.mxu0 }
 0x1aa   :  { %10631 = vst [vmem:[#allocation37_spill] sm:$0xff] %v6482_v25  ;;  %v614_v47 = vadd.f32 %v613_v56, %v6482_v25  ;;  %v685_v29 = vmul.f32 %v6482_v25, %v6482_v25  ;;  %v688_v56 = vmul.f32 %v6293_v37, %v6293_v37 }
 0x1ac   :  { %v615_v44 = vadd.f32 %v614_v47, %v6285_v31  ;;  %v748_v50 = vadd.f32 %v747_v21, %v685_v29  ;;  %v690_v47 = vmul.f32 %v6301_v43, %v6301_v43 }
 0x1ae   :  { %v616_v59 = vadd.f32 %v615_v44, %v6289_v34  ;;  %v749_v14 = vadd.f32 %v748_v50, %v686_v41  ;;  %v6504_v44 = vpop.f32.mrf.mxu2  ;;  %v691_v41 = vmul.f32 %v6305_v46, %v6305_v46 }
 0x1b0   :  { %v617_v62 = vadd.f32 %v616_v59, %v6293_v37  ;;  %v750_v7 = vadd.f32 %v749_v14, %v687_v53  ;;  %v692_v59 = vmul.f32 %v6309_v49, %v6309_v49 }
 0x1b2   :  { %v618_v25 = vadd.f32 %v617_v62, %v6297_v40  ;;  %v751_v35 = vadd.f32 %v750_v7, %v688_v56  ;;  %v693_v62 = vmul.f32 %v6313_v52, %v6313_v52  ;;  %v694_v7 = vmul.f32 %v6317_v55, %v6317_v55 }
 0x1b4   :  { %v619_v21 = vadd.f32 %v618_v25, %v6301_v43  ;;  %v752_v29 = vadd.f32 %v751_v35, %v689_v1 }
 0x1b6   :  { %v620_v50 = vadd.f32 %v619_v21, %v6305_v46  ;;  %v753_v53 = vadd.f32 %v752_v29, %v690_v47  ;;  %v695_v47 = vmul.f32 %v6321_v58, %v6321_v58 }
 0x1b8   :  { %v621_v14 = vadd.f32 %v620_v50, %v6309_v49  ;;  %v754_v56 = vadd.f32 %v753_v53, %v691_v41  ;;  %v6521_v50 = vpop.f32.mrf.mxu2  ;;  %v696_v41 = vmul.f32 %v6325_v61, %v6325_v61 }
 0x1ba   :  { %v622_v25 = vadd.f32 %v621_v14, %v6313_v52  ;;  %v755_v35 = vadd.f32 %v754_v56, %v692_v59  ;;  %v697_v14 = vmul.f32 %v6329_v0, %v6329_v0 }
 0x1bc   :  { %v623_v1 = vadd.f32 %v622_v25, %v6317_v55  ;;  %v756_v43 = vadd.f32 %v755_v35, %v693_v62  ;;  %v698_v25 = vmul.f32 %v6333_v3, %v6333_v3 }
 0x1be   :  { %v624_v21 = vadd.f32 %v623_v1, %v6321_v58  ;;  %v757_v29 = vadd.f32 %v756_v43, %v694_v7  ;;  %v699_v7 = vmul.f32 %v6337_v5, %v6337_v5 }
 0x1c0   :  { %v625_v53 = vadd.f32 %v624_v21, %v6325_v61  ;;  %v758_v59 = vadd.f32 %v757_v29, %v695_v47  ;;  %v700_v47 = vmul.f32 %v6341_v8, %v6341_v8 }
 0x1c2   :  { %v759_v56 = vadd.f32 %v758_v59, %v696_v41  ;;  %v626_v62 = vadd.f32 %v625_v53, %v6329_v0  ;;  %v6538_v41 = vpop.f32.mrf.mxu2  ;;  %v701_v53 = vmul.f32 %v6345_v10, %v6345_v10 }
 0x1c4   :  { %v627_v35 = vadd.f32 %v626_v62, %v6333_v3  ;;  %v760_v43 = vadd.f32 %v759_v56, %v697_v14  ;;  %v702_v56 = vmul.f32 %v6351_v13, %v6351_v13 }
 0x1c6   :  { %v628_v1 = vadd.f32 %v627_v35, %v6337_v5  ;;  %v761_v40 = vadd.f32 %v760_v43, %v698_v25  ;;  %v703_v35 = vmul.f32 %v6355_v15, %v6355_v15 }
 0x1c8   :  { %v629_v21 = vadd.f32 %v628_v1, %v6341_v8  ;;  %v762_v29 = vadd.f32 %v761_v40, %v699_v7  ;;  %v704_v7 = vmul.f32 %v6359_v17, %v6359_v17 }
 0x1ca   :  { %v630_v59 = vadd.f32 %v629_v21, %v6345_v10  ;;  %v763_v14 = vadd.f32 %v762_v29, %v700_v47  ;;  %v705_v47 = vmul.f32 %v6371_v23, %v6371_v23 }
 0x1cc   :  { %v631_v62 = vadd.f32 %v630_v59, %v6351_v13  ;;  %v764_v25 = vadd.f32 %v763_v14, %v701_v53  ;;  %v6555_v59 = vpop.f32.mrf.mxu2  ;;  %v706_v53 = vmul.f32 %v6392_v20, %v6392_v20 }
 0x1ce   :  { %v632_v43 = vadd.f32 %v631_v62, %v6355_v15  ;;  %v765_v40 = vadd.f32 %v764_v25, %v702_v56  ;;  %v707_v62 = vmul.f32 %v6411_v6, %v6411_v6 }
 0x1d0   :  { %v633_v1 = vadd.f32 %v632_v43, %v6359_v17  ;;  %v766_v37 = vadd.f32 %v765_v40, %v703_v35  ;;  %v708_v43 = vmul.f32 %v6430_v22, %v6430_v22 }
 0x1d2   :  { %v634_v21 = vadd.f32 %v633_v1, %v6371_v23  ;;  %v767_v29 = vadd.f32 %v766_v37, %v704_v7  ;;  %v709_v7 = vmul.f32 %v6449_v27, %v6449_v27 }
 0x1d4   :  { %v635_v14 = vadd.f32 %v634_v21, %v6392_v20  ;;  %v768_v56 = vadd.f32 %v767_v29, %v705_v47  ;;  %v710_v21 = vmul.f32 %v6470_v18, %v6470_v18 }
 0x1d6   :  { %v636_v25 = vadd.f32 %v635_v14, %v6411_v6  ;;  %v769_v35 = vadd.f32 %v768_v56, %v706_v53  ;;  %v6572_v14 = vpop.f32.mrf.mxu2  ;;  %v711_v56 = vmul.f32 %v6487_v38, %v6487_v38 }
 0x1d8   :  { %v637_v40 = vadd.f32 %v636_v25, %v6430_v22  ;;  %v770_v37 = vadd.f32 %v769_v35, %v707_v62  ;;  %v712_v35 = vmul.f32 %v6504_v44, %v6504_v44 }
 0x1da   :  { %v638_v1 = vadd.f32 %v637_v40, %v6449_v27  ;;  %v771_v34 = vadd.f32 %v770_v37, %v708_v43  ;;  %v713_v37 = vmul.f32 %v6521_v50, %v6521_v50 }
 0x1dc   :  { %v639_v47 = vadd.f32 %v638_v1, %v6470_v18  ;;  %v772_v29 = vadd.f32 %v771_v34, %v709_v7  ;;  %v5963_v7 = vld [vmem:[#allocation9 + $0x38] sm:$0xff] }
 0x1dd   :  { %6036 = vmatpush.bf16.msra.mxu3 %v5963_v7  ;;  %3314 = vmatpush.bf16.msra.mxu1 %v5963_v7 }
 0x1de   :  { %v773_v53 = vadd.f32 %v772_v29, %v710_v21  ;;  %v640_v62 = vadd.f32 %v639_v47, %v6487_v38  ;;  %v714_v21 = vmul.f32 %v6538_v41, %v6538_v41 }
 0x1e0   :  { %v641_v25 = vadd.f32 %v640_v62, %v6504_v44  ;;  %v774_v43 = vadd.f32 %v773_v53, %v711_v56  ;;  %v715_v62 = vmul.f32 %v6555_v59, %v6555_v59  ;;  %v579_v56 = vpop.f32.mrf.mxu2 }
 0x1e1   :  { %v717_v11 = vmul.f32 %v579_v56, %v579_v56  ;;  %6037 = vmatpush.bf16.msra.mxu3 %v5962_v16  ;;  %3315 = vmatpush.bf16.msra.mxu1 %v5962_v16  ;;  %v582_v16 = vld [vmem:[%s10342_s4] sm:$0x1] }
 0x1e2   :  { %v775_v40 = vadd.f32 %v774_v43, %v712_v35  ;;  %v642_v34 = vadd.f32 %v641_v25, %v6521_v50  ;;  %v716_v25 = vmul.f32 %v6572_v14, %v6572_v14 }
 0x1e4   :  { %v643_v1 = vadd.f32 %v642_v34, %v6538_v41  ;;  %v776_v29 = vadd.f32 %v775_v40, %v713_v37 }
 0x1e6   :  { %v777_v47 = vadd.f32 %v776_v29, %v714_v21  ;;  %v644_v53 = vadd.f32 %v643_v1, %v6555_v59 }
 0x1e8   :  { %v645_v35 = vadd.f32 %v644_v53, %v6572_v14  ;;  %v778_v43 = vadd.f32 %v777_v47, %v715_v62 }
 0x1ea   :  { %v779_v34 = vadd.f32 %v778_v43, %v716_v25  ;;  %v646_v31 = vadd.f32 %v645_v35, %v579_v56 }
 0x1ec   :  { %v647_v2 = vrot.slane %v646_v31, 4  ;;  %v780_v40 = vadd.f32 %v779_v34, %v717_v11 }
 0x1ee   :  { %v648_v37 = vadd.f32 %v647_v2, %v646_v31  ;;  %v781_v7 = vrot.slane %v780_v40, 4  ;;  %v5971_v31 = vld [vmem:[#allocation9 + $0x78] sm:$0xff] }
 0x1ef   :  { %3483 = vmatpush.bf16.msrb.mxu2 %v5971_v31 }
 0x1f0   :  { %v649_v21 = vrot.slane %v648_v37, 2  ;;  %v782_v29 = vadd.f32 %v781_v7, %v780_v40 }
 0x1f2   :  { %v650_v19 = vadd.f32 %v649_v21, %v648_v37  ;;  %v783_v32 = vrot.slane %v782_v29, 2 }
 0x1f4   :  { %v651_v1 = vrot.slane %v650_v19, 1  ;;  %v784_v12 = vadd.f32 %v783_v32, %v782_v29 }
 0x1f6   :  { %v652_v53 = vadd.f32 %v651_v1, %v650_v19  ;;  %v785_v9 = vrot.slane %v784_v12, 1  ;;  %v583_v19 = vld [vmem:[%s10343_s5] sm:$0x1] }
 0x1f8   :  { %v653_v4 = vmul.f32 0.001953125, %v652_v53  ;;  %v786_v47 = vadd.f32 %v785_v9, %v784_v12 }
 0x1fa   :  { %v787_v62 = vmul.f32 0.001953125, %v786_v47  ;;  %v788_v35 = vmul.f32 %v653_v4, %v653_v4 }
 0x1fc   :  { %v789_v25 = vsub.f32 %v787_v62, %v788_v35 }
 0x1fe   :  { %v790_v43 = vadd.f32 1e-05, %v789_v25 }
 0x200   :  { %6054 = vrsqrt.f32 %v790_v43  ;;  %vm797_vm1 = vweird.f32 %v790_v43 }
 0x206   :  { %v6055_v2 = vpop.eup %6054 }
 0x207   :  { %v792_v11 = vmul.f32 %v6055_v2, %v790_v43  ;;  %vm798_vm0 = vweird.f32 %v6055_v2 }
 0x208   :  { %vm799_vm2 = vmor %vm797_vm1, %vm798_vm0 }
 0x209   :  { %v793_v34 = vmul.f32 %v6055_v2, %v792_v11 }
 0x20b   :  { %v794_v40 = vmul.f32 0.5, %v793_v34 }
 0x20d   :  { %v795_v37 = vsub.f32 1.5, %v794_v40 }
 0x20f   :  { %v796_v32 = vmul.f32 %v6055_v2, %v795_v37 }
 0x211   :  { %v800_v9 = vsel %vm799_vm2, %v6055_v2, %v796_v32 }
 0x212   :  { %v801_v12 = vmul.f32 %v800_v9, %v582_v16 }
 0x214   :  { %v802_v7 = vmul.f32 %v801_v12, %v653_v4  ;;  %v6598_v21 = vperm.slane %v801_v12, 0 }
 0x216   :  { %v803_v29 = vsub.f32 %v583_v19, %v802_v7  ;;  %v870_v1 = vmul.f32 %v6598_v21, %v579_v56  ;;  %v807_v35 = vmul.f32 %v6598_v21, %v6277_v24  ;;  %v808_v25 = vmul.f32 %v6598_v21, %v6279_v26 }
 0x217   :  { %v809_v4 = vmul.f32 %v6598_v21, %v6281_v28  ;;  %v810_v43 = vmul.f32 %v6598_v21, %v6283_v30  ;;  %v811_v56 = vmul.f32 %v6598_v21, %v6287_v33  ;;  %v812_v31 = vmul.f32 %v6598_v21, %v6291_v36 }
 0x218   :  { %v6601_v53 = vperm.slane %v803_v29, 0  ;;  %v813_v2 = vmul.f32 %v6598_v21, %v6295_v39  ;;  %v6620_v24 = vmul.f32 %v6598_v21, %v6299_v42  ;;  %v6624_v26 = vmul.f32 %v6598_v21, %v6303_v45 }
 0x219   :  { %v6628_v28 = vmul.f32 %v6598_v21, %v6307_v48  ;;  %v844_v30 = vmul.f32 %v6598_v21, %v6305_v46  ;;  %v845_v33 = vmul.f32 %v6598_v21, %v6309_v49  ;;  %v846_v36 = vmul.f32 %v6598_v21, %v6313_v52 }
 0x21a   :  { %v937_v47 = vadd.f32 %v6601_v53, %v870_v1  ;;  %v847_v39 = vmul.f32 %v6598_v21, %v6317_v55  ;;  %v848_v42 = vmul.f32 %v6598_v21, %v6321_v58  ;;  %v849_v45 = vmul.f32 %v6598_v21, %v6325_v61 }
 0x21b   :  { %v850_v48 = vmul.f32 %v6598_v21, %v6329_v0  ;;  %v851_v46 = vmul.f32 %v6598_v21, %v6333_v3  ;;  %v852_v49 = vmul.f32 %v6598_v21, %v6337_v5  ;;  %v853_v52 = vmul.f32 %v6598_v21, %v6341_v8 }
 0x21c   :  { %v1001_v62 = vmax.f32 %v937_v47, 0.0  ;;  %v854_v55 = vmul.f32 %v6598_v21, %v6345_v10  ;;  %v855_v58 = vmul.f32 %v6598_v21, %v6351_v13  ;;  %v856_v61 = vmul.f32 %v6598_v21, %v6355_v15 }
 0x21d   :  { %v857_v0 = vmul.f32 %v6598_v21, %v6359_v17  ;;  %v858_v3 = vmul.f32 %v6598_v21, %v6371_v23  ;;  %v859_v5 = vmul.f32 %v6598_v21, %v6392_v20  ;;  %v860_v8 = vmul.f32 %v6598_v21, %v6411_v6 }
 0x21e   :  { %1151 = vst [vmem:[#allocation2 + $0x339] sm:$0xff] %v1001_v62  ;;  %v861_v10 = vmul.f32 %v6598_v21, %v6430_v22  ;;  %v862_v13 = vmul.f32 %v6598_v21, %v6449_v27  ;;  %v863_v15 = vmul.f32 %v6598_v21, %v6470_v18  ;;  %v864_v17 = vmul.f32 %v6598_v21, %v6487_v38 }
 0x21f   :  { %v865_v23 = vmul.f32 %v6598_v21, %v6504_v44  ;;  %v866_v20 = vmul.f32 %v6598_v21, %v6521_v50  ;;  %v867_v6 = vmul.f32 %v6598_v21, %v6538_v41  ;;  %v868_v22 = vmul.f32 %v6598_v21, %v6555_v59 }
 0x220   :  { %v869_v27 = vmul.f32 %v6598_v21, %v6572_v14  ;;  %v874_v18 = vadd.f32 %v6601_v53, %v807_v35  ;;  %v875_v11 = vadd.f32 %v6601_v53, %v808_v25  ;;  %v876_v38 = vadd.f32 %v6601_v53, %v809_v4  ;;  %v5961_v25 = vld [vmem:[#allocation9 + $0x28] sm:$0xff]  ;;  %v5970_v4 = vld [vmem:[#allocation9 + $0x70] sm:$0xff] }
 0x221   :  { %v877_v44 = vadd.f32 %v6601_v53, %v810_v43  ;;  %v6687_v34 = vadd.f32 %v6601_v53, %v811_v56  ;;  %v6690_v50 = vadd.f32 %v6601_v53, %v812_v31  ;;  %v6693_v41 = vadd.f32 %v6601_v53, %v813_v2  ;;  %6038 = vmatpush.bf16.msra.mxu3 %v5961_v25 }
 0x222   :  { %v6696_v59 = vadd.f32 %v6601_v53, %v844_v30  ;;  %v6699_v14 = vadd.f32 %v6601_v53, %v845_v33  ;;  %v6702_v40 = vadd.f32 %v6601_v53, %v846_v36  ;;  %v6705_v37 = vadd.f32 %v6601_v53, %v847_v39  ;;  %3484 = vmatpush.bf16.msrb.mxu2 %v5970_v4 }
 0x223   :  { %v6708_v16 = vadd.f32 %v6601_v53, %v848_v42  ;;  %v6711_v32 = vadd.f32 %v6601_v53, %v849_v45  ;;  %v6714_v9 = vadd.f32 %v6601_v53, %v850_v48  ;;  %v6717_v12 = vadd.f32 %v6601_v53, %v851_v46  ;;  %3316 = vmatpush.bf16.msra.mxu1 %v5961_v25 }
 0x224   :  { %v6720_v19 = vadd.f32 %v6601_v53, %v852_v49  ;;  %v6723_v7 = vadd.f32 %v6601_v53, %v853_v52  ;;  %v6726_v29 = vadd.f32 %v6601_v53, %v854_v55  ;;  %v6729_v1 = vadd.f32 %v6601_v53, %v855_v58 }
 0x225   :  { %v6732_v47 = vadd.f32 %v6601_v53, %v856_v61  ;;  %v6735_v62 = vadd.f32 %v6601_v53, %v857_v0  ;;  %v6738_v35 = vadd.f32 %v6601_v53, %v858_v3  ;;  %v6741_v43 = vadd.f32 %v6601_v53, %v859_v5  ;;  %v5960_v61 = vld [vmem:[#allocation9 + $0x20] sm:$0xff]  ;;  %v5969_v0 = vld [vmem:[#allocation9 + $0x68] sm:$0xff] }
 0x226   :  { %v6744_v56 = vadd.f32 %v6601_v53, %v860_v8  ;;  %v6747_v31 = vadd.f32 %v6601_v53, %v861_v10  ;;  %v6750_v2 = vadd.f32 %v6601_v53, %v862_v13  ;;  %v6753_v30 = vadd.f32 %v6601_v53, %v863_v15  ;;  %6039 = vmatpush.bf16.msra.mxu3 %v5960_v61 }
 0x227   :  { %v6756_v33 = vadd.f32 %v6601_v53, %v864_v17  ;;  %v6759_v36 = vadd.f32 %v6601_v53, %v865_v23  ;;  %v6762_v39 = vadd.f32 %v6601_v53, %v866_v20  ;;  %v6765_v42 = vadd.f32 %v6601_v53, %v867_v6  ;;  %3485 = vmatpush.bf16.msrb.mxu2 %v5969_v0  ;;  %v5959_v23 = vld [vmem:[#allocation9 + $0x18] sm:$0xff]  ;;  %v10636_v0 = vld [vmem:[#allocation25_spill] sm:$0xff] }
 0x228   :  { %v6768_v45 = vadd.f32 %v6601_v53, %v868_v22  ;;  %v6771_v48 = vadd.f32 %v6601_v53, %v869_v27  ;;  %v938_v46 = vmax.f32 %v874_v18, 0.0  ;;  %v881_v49 = vadd.f32 %v6601_v53, %v6620_v24  ;;  %3317 = vmatpush.bf16.msra.mxu1 %v5960_v61  ;;  %v5968_v22 = vld [vmem:[#allocation9 + $0x60] sm:$0xff]  ;;  %v10632_v27 = vld [vmem:[#allocation21_spill] sm:$0xff]  ;;  %v5967_v61 = vld [vmem:[#allocation9 + $0x58] sm:$0xff] }
 0x229   :  { %v939_v52 = vmax.f32 %v875_v11, 0.0  ;;  %v940_v55 = vmax.f32 %v876_v38, 0.0  ;;  %v941_v58 = vmax.f32 %v877_v44, 0.0  ;;  %v817_v3 = vmul.f32 %v6598_v21, %v6311_v51 }
 0x22a   :  { %v882_v5 = vadd.f32 %v6601_v53, %v6624_v26  ;;  %v942_v8 = vmax.f32 %v6687_v34, 0.0  ;;  %1088 = vst [vmem:[#allocation2 + $0x19] sm:$0xff] %v938_v46  ;;  %v818_v10 = vmul.f32 %v6598_v21, %v6315_v54  ;;  %v883_v24 = vadd.f32 %v6601_v53, %v6628_v28  ;;  %6040 = vmatpush.bf16.msra.mxu3 %v5959_v23  ;;  %v5958_v46 = vld [vmem:[#allocation9 + $0x10] sm:$0xff] }
 0x22b   :  { %v943_v13 = vmax.f32 %v6690_v50, 0.0  ;;  %1089 = vst [vmem:[#allocation2 + $0x21] sm:$0xff] %v939_v52  ;;  %v819_v15 = vmul.f32 %v6598_v21, %v6319_v57  ;;  %v884_v51 = vadd.f32 %v6601_v53, %v817_v3  ;;  %v944_v26 = vmax.f32 %v6693_v41, 0.0  ;;  %3486 = vmatpush.bf16.msrb.mxu2 %v5968_v22  ;;  %v5966_v22 = vld [vmem:[#allocation9 + $0x50] sm:$0xff] }
 0x22c   :  { %1090 = vst [vmem:[#allocation2 + $0x31] sm:$0xff] %v940_v55  ;;  %v820_v54 = vmul.f32 %v6598_v21, %v6323_v60  ;;  %v885_v17 = vadd.f32 %v6601_v53, %v818_v10  ;;  %v945_v28 = vmax.f32 %v881_v49, 0.0  ;;  %v821_v20 = vmul.f32 %v6598_v21, %v6327_v63  ;;  %v10633_v60 = vld [vmem:[#allocation22_spill] sm:$0xff]  ;;  %3318 = vmatpush.bf16.msra.mxu1 %v5959_v23  ;;  %v10634_v63 = vld [vmem:[#allocation23_spill] sm:$0xff]  ;;  %v10635_v49 = vld [vmem:[#allocation24_spill] sm:$0xff] }
 0x22d   :  { %1091 = vst [vmem:[#allocation2 + $0x39] sm:$0xff] %v941_v58  ;;  %v886_v57 = vadd.f32 %v6601_v53, %v819_v15  ;;  %v946_v6 = vmax.f32 %v882_v5, 0.0  ;;  %v822_v18 = vmul.f32 %v6598_v21, %v10632_v27  ;;  %v947_v38 = vmax.f32 %v883_v24, 0.0  ;;  %v10637_v10 = vld [vmem:[#allocation26_spill] sm:$0xff]  ;;  %v10639_v23 = vld [vmem:[#allocation28_spill] sm:$0xff]  ;;  %v10640_v27 = vld [vmem:[#allocation29_spill] sm:$0xff] }
 0x22e   :  { %1092 = vst [vmem:[#allocation2 + $0x49] sm:$0xff] %v942_v8  ;;  %v887_v11 = vadd.f32 %v6601_v53, %v820_v54  ;;  %v823_v44 = vmul.f32 %v6598_v21, %v10633_v60  ;;  %v888_v34 = vadd.f32 %v6601_v53, %v821_v20  ;;  %v948_v50 = vmax.f32 %v884_v51, 0.0  ;;  %6041 = vmatpush.bf16.msra.mxu3 %v5958_v46  ;;  %v10638_v51 = vld [vmem:[#allocation27_spill] sm:$0xff] }
 0x22f   :  { %1093 = vst [vmem:[#allocation2 + $0x51] sm:$0xff] %v943_v13  ;;  %v824_v41 = vmul.f32 %v6598_v21, %v10634_v63  ;;  %v889_v25 = vadd.f32 %v6601_v53, %v822_v18  ;;  %v949_v4 = vmax.f32 %v885_v17, 0.0  ;;  %v825_v52 = vmul.f32 %v6598_v21, %v10635_v49  ;;  %3487 = vmatpush.bf16.msrb.mxu2 %v5967_v61  ;;  %v5987_v60 = vld [vmem:[#allocation9 + $0xf8] sm:$0xff]  ;;  %v5956_v49 = vld [vmem:[#allocation9] sm:$0xff] }
 0x230   :  { %1094 = vst [vmem:[#allocation2 + $0x61] sm:$0xff] %v944_v26  ;;  %v890_v55 = vadd.f32 %v6601_v53, %v823_v44  ;;  %v950_v58 = vmax.f32 %v886_v57, 0.0  ;;  %v826_v3 = vmul.f32 %v6598_v21, %v10636_v0  ;;  %v951_v8 = vmax.f32 %v887_v11, 0.0  ;;  %3319 = vmatpush.bf16.msra.mxu1 %v5958_v46  ;;  %v10641_v44 = vld [vmem:[#allocation30_spill] sm:$0xff]  ;;  %3821 = vmatpush.bf16.msrb.mxu0 %v5987_v60  ;;  %v10649_v60 = vld [vmem:[#allocation16_spill] sm:$0xff] }
 0x231   :  { %1095 = vst [vmem:[#allocation2 + $0x69] sm:$0xff] %v945_v28  ;;  %v891_v5 = vadd.f32 %v6601_v53, %v824_v41  ;;  %v827_v24 = vmul.f32 %v6598_v21, %v10637_v10  ;;  %v892_v13 = vadd.f32 %v6601_v53, %v825_v52  ;;  %v952_v15 = vmax.f32 %v888_v34, 0.0  ;;  %v5957_v28 = vld [vmem:[#allocation9 + $0x8] sm:$0xff]  ;;  %v10642_v41 = vld [vmem:[#allocation31_spill] sm:$0xff] }
 0x232   :  { %1096 = vst [vmem:[#allocation2 + $0x79] sm:$0xff] %v946_v6  ;;  %v828_v26 = vmul.f32 %v6598_v21, %v10638_v51  ;;  %v893_v54 = vadd.f32 %v6601_v53, %v826_v3  ;;  %v953_v17 = vmax.f32 %v889_v25, 0.0  ;;  %v829_v20 = vmul.f32 %v6598_v21, %v10639_v23  ;;  %6042 = vmatpush.bf16.msra.mxu3 %v5957_v28  ;;  %v5965_v52 = vld [vmem:[#allocation9 + $0x48] sm:$0xff] }
 0x233   :  { %1097 = vst [vmem:[#allocation2 + $0x81] sm:$0xff] %v947_v38  ;;  %v894_v57 = vadd.f32 %v6601_v53, %v827_v24  ;;  %v954_v6 = vmax.f32 %v890_v55, 0.0  ;;  %v830_v18 = vmul.f32 %v6598_v21, %v10640_v27  ;;  %v955_v38 = vmax.f32 %v891_v5, 0.0  ;;  %3488 = vmatpush.bf16.msrb.mxu2 %v5966_v22  ;;  %v5986_v55 = vld [vmem:[#allocation9 + $0xf0] sm:$0xff]  ;;  %v10644_v5 = vld [vmem:[#allocation33_spill] sm:$0xff] }
 0x234   :  { %1098 = vst [vmem:[#allocation2 + $0x91] sm:$0xff] %v948_v50  ;;  %v895_v11 = vadd.f32 %v6601_v53, %v828_v26  ;;  %v831_v34 = vmul.f32 %v6598_v21, %v10641_v44  ;;  %v896_v50 = vadd.f32 %v6601_v53, %v829_v20  ;;  %v956_v63 = vmax.f32 %v892_v13, 0.0  ;;  %3320 = vmatpush.bf16.msra.mxu1 %v5957_v28  ;;  %v10645_v13 = vld [vmem:[#allocation34_spill] sm:$0xff]  ;;  %v10647_v20 = vld [vmem:[#allocation36_spill] sm:$0xff]  ;;  %v10648_v27 = vld [vmem:[#allocation37_spill] sm:$0xff] }
 0x235   :  { %1099 = vst [vmem:[#allocation2 + $0x99] sm:$0xff] %v949_v4  ;;  %v832_v25 = vmul.f32 %v6598_v21, %v10642_v41  ;;  %v897_v4 = vadd.f32 %v6601_v53, %v830_v18  ;;  %v957_v46 = vmax.f32 %v893_v54, 0.0  ;;  %v958_v3 = vmax.f32 %v894_v57, 0.0  ;;  %v10646_v54 = vld [vmem:[#allocation35_spill] sm:$0xff]  ;;  %3822 = vmatpush.bf16.msrb.mxu0 %v5986_v55 }
 0x236   :  { %1100 = vst [vmem:[#allocation2 + $0xa9] sm:$0xff] %v950_v58  ;;  %v10643_v58 = vld [vmem:[#allocation32_spill] sm:$0xff]  ;;  %v898_v0 = vadd.f32 %v6601_v53, %v831_v34  ;;  %v959_v24 = vmax.f32 %v895_v11, 0.0  ;;  %6043 = vmatpush.bf16.msra.mxu3 %v5956_v49  ;;  %v960_v26 = vmax.f32 %v896_v50, 0.0  ;;  %v837_v57 = vmul.f32 %v6598_v21, %v10647_v20 }
 0x237   :  { %1101 = vst [vmem:[#allocation2 + $0xb1] sm:$0xff] %v951_v8  ;;  %v833_v61 = vmul.f32 %v6598_v21, %v10643_v58  ;;  %v834_v8 = vmul.f32 %v6598_v21, %v10644_v5  ;;  %v899_v10 = vadd.f32 %v6601_v53, %v832_v25  ;;  %3489 = vmatpush.bf16.msrb.mxu2 %v5965_v52  ;;  %v961_v23 = vmax.f32 %v897_v4, 0.0  ;;  %v10652_v58 = vld [vmem:[#allocation19_spill] sm:$0xff]  ;;  %v10653_v5 = vld [vmem:[#allocation20_spill] sm:$0xff] }
 0x238   :  { %1102 = vst [vmem:[#allocation2 + $0xc1] sm:$0xff] %v952_v15  ;;  %v835_v15 = vmul.f32 %v6598_v21, %v10645_v13  ;;  %3321 = vmatpush.bf16.msra.mxu1 %v5956_v49  ;;  %v962_v22 = vmax.f32 %v898_v0, 0.0  ;;  %v838_v18 = vmul.f32 %v6598_v21, %v10648_v27  ;;  %v839_v44 = vmul.f32 %v6598_v21, %v10649_v60  ;;  %v5979_v60 = vld [vmem:[#allocation9 + $0xb8] sm:$0xff] }
 0x239   :  { %1103 = vst [vmem:[#allocation2 + $0xc9] sm:$0xff] %v953_v17  ;;  %v900_v51 = vadd.f32 %v6601_v53, %v833_v61  ;;  %v836_v17 = vmul.f32 %v6598_v21, %v10646_v54  ;;  %v901_v28 = vadd.f32 %v6601_v53, %v834_v8  ;;  %v904_v34 = vadd.f32 %v6601_v53, %v837_v57 }
 0x23a   :  { %1104 = vst [vmem:[#allocation2 + $0xd9] sm:$0xff] %v954_v6  ;;  %v902_v6 = vadd.f32 %v6601_v53, %v835_v15  ;;  %v905_v25 = vadd.f32 %v6601_v53, %v838_v18  ;;  %v906_v52 = vadd.f32 %v6601_v53, %v839_v44  ;;  %v842_v61 = vmul.f32 %v6598_v21, %v10652_v58  ;;  %v5964_v18 = vld [vmem:[#allocation9 + $0x40] sm:$0xff]  ;;  %v5983_v44 = vld [vmem:[#allocation9 + $0xd8] sm:$0xff] }
 0x23b   :  { %1105 = vst [vmem:[#allocation2 + $0xe1] sm:$0xff] %v955_v38  ;;  %v903_v11 = vadd.f32 %v6601_v53, %v836_v17  ;;  %v963_v38 = vmax.f32 %v899_v10, 0.0  ;;  %v964_v50 = vmax.f32 %v900_v51, 0.0  ;;  %v965_v4 = vmax.f32 %v901_v28, 0.0  ;;  %3490 = vmatpush.bf16.msrb.mxu2 %v5964_v18  ;;  %3652 = vmatpush.bf16.msrb.mxu3 %v5979_v60 }
 0x23c   :  { %1106 = vst [vmem:[#allocation2 + $0xf1] sm:$0xff] %v956_v63  ;;  %v10650_v63 = vld [vmem:[#allocation17_spill] sm:$0xff]  ;;  %v966_v55 = vmax.f32 %v902_v6, 0.0  ;;  %v843_v8 = vmul.f32 %v6598_v21, %v10653_v5  ;;  %v909_v13 = vadd.f32 %v6601_v53, %v842_v61  ;;  %v969_v15 = vmax.f32 %v905_v25, 0.0 }
 0x23d   :  { %1107 = vst [vmem:[#allocation2 + $0xf9] sm:$0xff] %v957_v46  ;;  %v840_v41 = vmul.f32 %v6598_v21, %v10650_v63  ;;  %v10651_v46 = vld [vmem:[#allocation18_spill] sm:$0xff]  ;;  %v976_v20 = vmax.f32 %v6699_v14, 0.0  ;;  %v977_v57 = vmax.f32 %v6702_v40, 0.0  ;;  %v979_v6 = vmax.f32 %v6708_v16, 0.0 }
 0x23e   :  { %1108 = vst [vmem:[#allocation2 + $0x109] sm:$0xff] %v958_v3  ;;  %v841_v49 = vmul.f32 %v6598_v21, %v10651_v46  ;;  %v967_v3 = vmax.f32 %v903_v11, 0.0  ;;  %v910_v51 = vadd.f32 %v6601_v53, %v843_v8  ;;  %v973_v28 = vmax.f32 %v909_v13, 0.0  ;;  %v5985_v11 = vld [vmem:[#allocation9 + $0xe8] sm:$0xff] }
 0x23f   :  { %1109 = vst [vmem:[#allocation2 + $0x111] sm:$0xff] %v959_v24  ;;  %v907_v0 = vadd.f32 %v6601_v53, %v840_v41  ;;  %v968_v24 = vmax.f32 %v904_v34, 0.0  ;;  %v975_v21 = vmax.f32 %v6696_v59, 0.0  ;;  %v981_v27 = vmax.f32 %v6714_v9, 0.0  ;;  %3823 = vmatpush.bf16.msrb.mxu0 %v5985_v11  ;;  %v5995_v34 = vld [vmem:[#allocation9 + $0x138] sm:$0xff]  ;;  %v6962_v41 = vld [vmem:[#allocation2 + $0x20] sm:$0xff] }
 0x240   :  { %1110 = vst [vmem:[#allocation2 + $0x121] sm:$0xff] %v960_v26  ;;  %v908_v10 = vadd.f32 %v6601_v53, %v841_v49  ;;  %v970_v26 = vmax.f32 %v906_v52, 0.0  ;;  %v978_v53 = vmax.f32 %v6705_v37, 0.0  ;;  %v982_v59 = vmax.f32 %v6717_v12, 0.0  ;;  %3990 = vmatpush.bf16.msrb.mxu1 %v5995_v34  ;;  %v5981_v46 = vld [vmem:[#allocation9 + $0xc8] sm:$0xff] }
 0x241   :  { %1111 = vst [vmem:[#allocation2 + $0x129] sm:$0xff] %v961_v23  ;;  %v971_v54 = vmax.f32 %v907_v0, 0.0  ;;  %v974_v23 = vmax.f32 %v910_v51, 0.0  ;;  %v983_v14 = vmax.f32 %v6720_v19, 0.0  ;;  %v984_v40 = vmax.f32 %v6723_v7, 0.0 }
 0x242   :  { %1112 = vst [vmem:[#allocation2 + $0x139] sm:$0xff] %v962_v22  ;;  %v972_v17 = vmax.f32 %v908_v10, 0.0  ;;  %v980_v22 = vmax.f32 %v6711_v32, 0.0  ;;  %v985_v37 = vmax.f32 %v6726_v29, 0.0  ;;  %v986_v16 = vmax.f32 %v6729_v1, 0.0 }
 0x243   :  { %1113 = vst [vmem:[#allocation2 + $0x141] sm:$0xff] %v963_v38  ;;  %v987_v32 = vmax.f32 %v6732_v47, 0.0  ;;  %v988_v9 = vmax.f32 %v6735_v62, 0.0  ;;  %v989_v12 = vmax.f32 %v6738_v35, 0.0  ;;  %v990_v19 = vmax.f32 %v6741_v43, 0.0  ;;  %v5984_v38 = vld [vmem:[#allocation9 + $0xe0] sm:$0xff] }
 0x244   :  { %1114 = vst [vmem:[#allocation2 + $0x151] sm:$0xff] %v964_v50  ;;  %v991_v7 = vmax.f32 %v6744_v56, 0.0  ;;  %v992_v29 = vmax.f32 %v6747_v31, 0.0  ;;  %v993_v1 = vmax.f32 %v6750_v2, 0.0  ;;  %v994_v47 = vmax.f32 %v6753_v30, 0.0  ;;  %3824 = vmatpush.bf16.msrb.mxu0 %v5984_v38  ;;  %v5982_v50 = vld [vmem:[#allocation9 + $0xd0] sm:$0xff] }
 0x245   :  { %1115 = vst [vmem:[#allocation2 + $0x159] sm:$0xff] %v965_v4  ;;  %v995_v62 = vmax.f32 %v6756_v33, 0.0  ;;  %v996_v35 = vmax.f32 %v6759_v36, 0.0  ;;  %v997_v43 = vmax.f32 %v6762_v39, 0.0  ;;  %v998_v56 = vmax.f32 %v6765_v42, 0.0 }
 0x246   :  { %1116 = vst [vmem:[#allocation2 + $0x169] sm:$0xff] %v966_v55  ;;  %v999_v31 = vmax.f32 %v6768_v45, 0.0  ;;  %v1000_v2 = vmax.f32 %v6771_v48, 0.0  ;;  %v6214_v30 = vmov 0.0   ;;  %v6215_v39 = vmov 0.0|0.0  }
 0x247   :  { %1117 = vst [vmem:[#allocation2 + $0x171] sm:$0xff] %v967_v3  ;;  %v6897_v42 = vunpack.c.l.b16 %v6215_v39  ;;  %v1263_v4 = vpack.c.bf16 %v6962_v41, %v6962_v41  ;;  %v5980_v3 = vld [vmem:[#allocation9 + $0xc0] sm:$0xff]  ;;  %v6994_v13 = vrot.slane %v6214_v30, 1 }
 0x248   :  { %1118 = vst [vmem:[#allocation2 + $0x181] sm:$0xff] %v968_v24  ;;  %3825 = vmatpush.bf16.msrb.mxu0 %v5983_v44 }
 0x249   :  { %1119 = vst [vmem:[#allocation2 + $0x189] sm:$0xff] %v969_v15  ;;  %v2157_v0 = vunpack.c.l.b16 %v1263_v4 }
 0x24a   :  { %1120 = vst [vmem:[#allocation2 + $0x1c9] sm:$0xff] %v970_v26 }
 0x24b   :  { %1121 = vst [vmem:[#allocation2 + $0x1d1] sm:$0xff] %v971_v54 }
 0x24c   :  { %1122 = vst [vmem:[#allocation2 + $0x1e1] sm:$0xff] %v972_v17  ;;  %3826 = vmatpush.bf16.msrb.mxu0 %v5982_v50 }
 0x24d   :  { %1123 = vst [vmem:[#allocation2 + $0x1e9] sm:$0xff] %v973_v28 }
 0x24e   :  { %1124 = vst [vmem:[#allocation2 + $0x1f9] sm:$0xff] %v974_v23 }
 0x24f   :  { %1125 = vst [vmem:[#allocation2 + $0x201] sm:$0xff] %v975_v21 }
 0x250   :  { %1126 = vst [vmem:[#allocation2 + $0x211] sm:$0xff] %v976_v20  ;;  %3827 = vmatpush.bf16.msrb.mxu0 %v5981_v46 }
 0x251   :  { %1127 = vst [vmem:[#allocation2 + $0x219] sm:$0xff] %v977_v57 }
 0x252   :  { %1128 = vst [vmem:[#allocation2 + $0x229] sm:$0xff] %v978_v53  ;;  %v6975_v52 = vld [vmem:[#allocation2 + $0x1d0] sm:$0xff] }
 0x253   :  { %1129 = vst [vmem:[#allocation2 + $0x231] sm:$0xff] %v979_v6  ;;  %v1295_v58 = vpack.c.bf16 %v6975_v52, %v6975_v52 }
 0x254   :  { %1130 = vst [vmem:[#allocation2 + $0x241] sm:$0xff] %v980_v22  ;;  %3828 = vmatpush.bf16.msrb.mxu0 %v5980_v3  ;;  %v7000_v17 = vld [vmem:[#allocation2 + $0x1e8] sm:$0xff]  ;;  %v7008_v22 = vld [vmem:[#allocation2 + $0x38] sm:$0xff] }
 0x255   :  { %1131 = vst [vmem:[#allocation2 + $0x249] sm:$0xff] %v981_v27  ;;  %v2189_v8 = vunpack.c.l.b16 %v1295_v58 }
 0x256   :  { %1132 = vst [vmem:[#allocation2 + $0x259] sm:$0xff] %v982_v59  ;;  %v1297_v59 = vpack.c.bf16 %v7000_v17, %v7000_v17  ;;  %v7047_v46 = vld [vmem:[#allocation2 + $0x200] sm:$0xff] }
 0x257   :  { %1133 = vst [vmem:[#allocation2 + $0x261] sm:$0xff] %v983_v14 }
 0x258   :  { %1134 = vst [vmem:[#allocation2 + $0x271] sm:$0xff] %v984_v40 }
 0x259   :  { %1135 = vst [vmem:[#allocation2 + $0x279] sm:$0xff] %v985_v37 }
 0x25a   :  { %1136 = vst [vmem:[#allocation2 + $0x289] sm:$0xff] %v986_v16  ;;  %v1427_v16 = vrot.slane %v6962_v41, 1 }
 0x25b   :  { %1137 = vst [vmem:[#allocation2 + $0x291] sm:$0xff] %v987_v32 }
 0x25c   :  { %1138 = vst [vmem:[#allocation2 + $0x2a1] sm:$0xff] %v988_v9 }
 0x25d   :  { %1139 = vst [vmem:[#allocation2 + $0x2a9] sm:$0xff] %v989_v12 }
 0x25e   :  { %1140 = vst [vmem:[#allocation2 + $0x2b9] sm:$0xff] %v990_v19 }
 0x25f   :  { %1141 = vst [vmem:[#allocation2 + $0x2c1] sm:$0xff] %v991_v7  ;;  %v1265_v7 = vpack.c.bf16 %v7008_v22, %v7008_v22 }
 0x260   :  { %1142 = vst [vmem:[#allocation2 + $0x2d1] sm:$0xff] %v992_v29  ;;  %v5978_v29 = vld [vmem:[#allocation9 + $0xb0] sm:$0xff] }
 0x261   :  { %1143 = vst [vmem:[#allocation2 + $0x2d9] sm:$0xff] %v993_v1  ;;  %3653 = vmatpush.bf16.msrb.mxu3 %v5978_v29 }
 0x262   :  { %1144 = vst [vmem:[#allocation2 + $0x2e9] sm:$0xff] %v994_v47  ;;  %v2191_v47 = vunpack.c.l.b16 %v1297_v59 }
 0x263   :  { %1145 = vst [vmem:[#allocation2 + $0x2f1] sm:$0xff] %v995_v62 }
 0x264   :  { %1146 = vst [vmem:[#allocation2 + $0x301] sm:$0xff] %v996_v35 }
 0x265   :  { %1147 = vst [vmem:[#allocation2 + $0x309] sm:$0xff] %v997_v43 }
 0x266   :  { %1148 = vst [vmem:[#allocation2 + $0x319] sm:$0xff] %v998_v56 }
 0x267   :  { %1149 = vst [vmem:[#allocation2 + $0x321] sm:$0xff] %v999_v31 }
 0x268   :  { %1150 = vst [vmem:[#allocation2 + $0x331] sm:$0xff] %v1000_v2 }
 0x269   :  { %1005 = vst [vmem:[#allocation2 + $0x1b0] sm:$0xff] %v6214_v30 }
 0x26a   :  { %1006 = vst [vmem:[#allocation2 + $0x1b8] sm:$0xff] %v6214_v30 }
 0x26b   :  { %1033 = vst [vmem:[#allocation2 + $0x1b0] sm:$0x1] %v6214_v30 }
 0x26c   :  { %1002 = vst [vmem:[#allocation2] sm:$0xff] %v6214_v30 }
 0x26d   :  { %1004 = vst [vmem:[#allocation2 + $0x10] sm:$0x3] %v6214_v30 }
 0x26e   :  { %1007 = vst [vmem:[#allocation2 + $0x1c0] sm:$0x3] %v6214_v30 }
 0x26f   :  { %1009 = vst [vmem:[#allocation2 + $0x198] sm:$0xff] %v6214_v30 }
 0x270   :  { %1011 = vst [vmem:[#allocation2 + $0x1a8] sm:$0x3] %v6214_v30 }
 0x271   :  { %1012 = vst [vmem:[#allocation2 + $0x348] sm:$0xff] %v6214_v30 }
 0x272   :  { %v1206_v33 = vld [vmem:[#allocation2 + $0x1b0] sm:$0xff]  ;;  %1014 = vst [vmem:[#allocation2 + $0x358] sm:$0x3] %v6214_v30 }
 0x273   :  { %v1292_v36 = vpack.c.bf16 %v1206_v33, %v1206_v33  ;;  %1016 = vst [vmem:[#allocation2 + $0x18] sm:$0x1] %v6214_v30 }
 0x274   :  { %1017 = vst [vmem:[#allocation2 + $0x30] sm:$0x1] %v6214_v30 }
 0x275   :  { %v2186_v45 = vunpack.c.l.b16 %v1292_v36  ;;  %1018 = vst [vmem:[#allocation2 + $0x48] sm:$0x1] %v6214_v30  ;;  %v1432_v36 = vrot.slane %v7008_v22, 1 }
 0x276   :  { %1019 = vst [vmem:[#allocation2 + $0x60] sm:$0x1] %v6214_v30 }
 0x277   :  { %v2234_v48 = vpack.c.b16 %v6897_v42, %v2186_v45  ;;  %1020 = vst [vmem:[#allocation2 + $0x78] sm:$0x1] %v6214_v30  ;;  %v5994_v45 = vld [vmem:[#allocation9 + $0x130] sm:$0xff] }
 0x278   :  { %1021 = vst [vmem:[#allocation2 + $0x90] sm:$0x1] %v6214_v30  ;;  %3991 = vmatpush.bf16.msrb.mxu1 %v5994_v45 }
 0x279   :  { %3402 = vmatmul.bf16.vlgmr.msra.gmra.mxu3 %v2234_v48  ;;  %1022 = vst [vmem:[#allocation2 + $0xa8] sm:$0x1] %v6214_v30 }
 0x27a   :  { %1023 = vst [vmem:[#allocation2 + $0xc0] sm:$0x1] %v6214_v30  ;;  %v6960_v63 = vld [vmem:[#allocation2 + $0x18] sm:$0xff] }
 0x27b   :  { %1024 = vst [vmem:[#allocation2 + $0xd8] sm:$0x1] %v6214_v30  ;;  %v1262_v25 = vpack.c.bf16 %v6960_v63, %v6960_v63  ;;  %v7006_v6 = vld [vmem:[#allocation2 + $0x30] sm:$0xff]  ;;  %v1426_v37 = vrot.slane %v6960_v63, 1 }
 0x27c   :  { %1025 = vst [vmem:[#allocation2 + $0xf0] sm:$0x1] %v6214_v30  ;;  %v1264_v19 = vpack.c.bf16 %v7006_v6, %v7006_v6  ;;  %v1431_v33 = vrot.slane %v7006_v6, 1  ;;  %v7038_v44 = vld [vmem:[#allocation2 + $0x48] sm:$0xff] }
 0x27d   :  { %1026 = vst [vmem:[#allocation2 + $0x108] sm:$0x1] %v6214_v30  ;;  %v2156_v61 = vunpack.c.l.b16 %v1262_v25  ;;  %v1428_v43 = vsel %vm1420_vm3, %v1426_v37, %v1427_v16  ;;  %v7043_v25 = vld [vmem:[#allocation2 + $0x50] sm:$0xff] }
 0x27e   :  { %1027 = vst [vmem:[#allocation2 + $0x120] sm:$0x1] %v6214_v30  ;;  %v2158_v2 = vunpack.c.l.b16 %v1264_v19  ;;  %v1647_v48 = vpack.c.bf16 %v1428_v43, %v1428_v43  ;;  %v1433_v38 = vsel %vm1420_vm3, %v1431_v33, %v1432_v36 }
 0x27f   :  { %1028 = vst [vmem:[#allocation2 + $0x138] sm:$0x1] %v6214_v30  ;;  %v6989_v24 = vpack.c.b16 %v2157_v0, %v2156_v61 }
 0x280   :  { %1029 = vst [vmem:[#allocation2 + $0x150] sm:$0x1] %v6214_v30  ;;  %v2348_v0 = vunpack.c.l.b16 %v1647_v48 }
 0x281   :  { %1030 = vst [vmem:[#allocation2 + $0x168] sm:$0x1] %v6214_v30  ;;  %3829 = vmatmul.bf16.vlgmr.msrb.gmra.mxu0 %v6989_v24 }
 0x282   :  { %1031 = vst [vmem:[#allocation2 + $0x180] sm:$0x1] %v6214_v30 }
 0x283   :  { %1034 = vst [vmem:[#allocation2 + $0x1c8] sm:$0x1] %v6214_v30 }
 0x284   :  { %1035 = vst [vmem:[#allocation2 + $0x1e0] sm:$0x1] %v6214_v30 }
 0x285   :  { %1036 = vst [vmem:[#allocation2 + $0x1f8] sm:$0x1] %v6214_v30 }
 0x286   :  { %1037 = vst [vmem:[#allocation2 + $0x210] sm:$0x1] %v6214_v30 }
 0x287   :  { %1038 = vst [vmem:[#allocation2 + $0x228] sm:$0x1] %v6214_v30 }
 0x288   :  { %1039 = vst [vmem:[#allocation2 + $0x240] sm:$0x1] %v6214_v30 }
 0x289   :  { %1040 = vst [vmem:[#allocation2 + $0x258] sm:$0x1] %v6214_v30 }
 0x28a   :  { %1041 = vst [vmem:[#allocation2 + $0x270] sm:$0x1] %v6214_v30  ;;  %v6973_v49 = vld [vmem:[#allocation2 + $0x1c8] sm:$0xff] }
 0x28b   :  { %1042 = vst [vmem:[#allocation2 + $0x288] sm:$0x1] %v6214_v30  ;;  %v1294_v55 = vpack.c.bf16 %v6973_v49, %v6973_v49  ;;  %v6998_v54 = vld [vmem:[#allocation2 + $0x1e0] sm:$0xff] }
 0x28c   :  { %1043 = vst [vmem:[#allocation2 + $0x2a0] sm:$0x1] %v6214_v30  ;;  %v1296_v27 = vpack.c.bf16 %v6998_v54, %v6998_v54  ;;  %v7045_v4 = vld [vmem:[#allocation2 + $0x1f8] sm:$0xff] }
 0x28d   :  { %1044 = vst [vmem:[#allocation2 + $0x2b8] sm:$0x1] %v6214_v30  ;;  %v2188_v5 = vunpack.c.l.b16 %v1294_v55  ;;  %v7085_v33 = vld [vmem:[#allocation2 + $0x210] sm:$0xff] }
 0x28e   :  { %1045 = vst [vmem:[#allocation2 + $0x2d0] sm:$0x1] %v6214_v30  ;;  %v2190_v1 = vunpack.c.l.b16 %v1296_v27  ;;  %v1267_v27 = vpack.c.bf16 %v7043_v25, %v7043_v25 }
 0x28f   :  { %1046 = vst [vmem:[#allocation2 + $0x2e8] sm:$0x1] %v6214_v30  ;;  %v6986_v10 = vpack.c.b16 %v2189_v8, %v2188_v5  ;;  %v1649_v8 = vpack.c.bf16 %v1433_v38, %v1433_v38 }
 0x290   :  { %1047 = vst [vmem:[#allocation2 + $0x300] sm:$0x1] %v6214_v30  ;;  %v7030_v39 = vpack.c.b16 %v2191_v47, %v2190_v1 }
 0x291   :  { %1048 = vst [vmem:[#allocation2 + $0x318] sm:$0x1] %v6214_v30  ;;  %3407 = vmatmul.bf16.gmra.mxu3 %v6986_v10 }
 0x292   :  { %1049 = vst [vmem:[#allocation2 + $0x330] sm:$0x1] %v6214_v30 }
 0x293   :  { %1052 = vst [vmem:[#allocation2 + $0x29] sm:$0x1] %v6214_v30 }
 0x294   :  { %1053 = vst [vmem:[#allocation2 + $0x41] sm:$0x1] %v6214_v30 }
 0x295   :  { %1054 = vst [vmem:[#allocation2 + $0x59] sm:$0x1] %v6214_v30 }
 0x296   :  { %1055 = vst [vmem:[#allocation2 + $0x71] sm:$0x1] %v6214_v30 }
 0x297   :  { %1056 = vst [vmem:[#allocation2 + $0x89] sm:$0x1] %v6214_v30 }
 0x298   :  { %1057 = vst [vmem:[#allocation2 + $0xa1] sm:$0x1] %v6214_v30 }
 0x299   :  { %1058 = vst [vmem:[#allocation2 + $0xb9] sm:$0x1] %v6214_v30 }
 0x29a   :  { %1059 = vst [vmem:[#allocation2 + $0xd1] sm:$0x1] %v6214_v30  ;;  %v7004_v20 = vld [vmem:[#allocation2 + $0x28] sm:$0x3] }
 0x29b   :  { %1060 = vst [vmem:[#allocation2 + $0xe9] sm:$0x1] %v6214_v30  ;;  %v1429_v32 = vrot.slane %v7004_v20, 1  ;;  %v7024_v35 = vld [vmem:[#allocation2 + $0x40] sm:$0x3] }
 0x29c   :  { %1061 = vst [vmem:[#allocation2 + $0x101] sm:$0x1] %v6214_v30  ;;  %v7052_v3 = vld [vmem:[#allocation2 + $0x58] sm:$0x3] }
 0x29d   :  { %1062 = vst [vmem:[#allocation2 + $0x119] sm:$0x1] %v6214_v30  ;;  %v1430_v31 = vsel %vm1420_vm3, %v1427_v16, %v1429_v32  ;;  %v1439_v59 = vrot.slane %v7052_v3, 1  ;;  %v7071_v32 = vld [vmem:[#allocation2 + $0x60] sm:$0xff] }
 0x29e   :  { %1063 = vst [vmem:[#allocation2 + $0x131] sm:$0x1] %v6214_v30  ;;  %v1648_v18 = vpack.c.bf16 %v1430_v31, %v1430_v31  ;;  %v2161_v31 = vunpack.c.l.b16 %v1267_v27  ;;  %v1268_v48 = vpack.c.bf16 %v7071_v32, %v7071_v32 }
 0x29f   :  { %1064 = vst [vmem:[#allocation2 + $0x149] sm:$0x1] %v6214_v30  ;;  %v7155_v37 = vld [vmem:[#allocation2 + $0xa0] sm:$0x3] }
 0x2a0   :  { %1065 = vst [vmem:[#allocation2 + $0x161] sm:$0x1] %v6214_v30  ;;  %v2349_v5 = vunpack.c.l.b16 %v1648_v18 }
 0x2a1   :  { %1066 = vst [vmem:[#allocation2 + $0x179] sm:$0x1] %v6214_v30  ;;  %3412 = vmatmul.bf16.gmra.mxu3 %v7030_v39 }
 0x2a2   :  { %1067 = vst [vmem:[#allocation2 + $0x191] sm:$0x1] %v6214_v30 }
 0x2a3   :  { %1070 = vst [vmem:[#allocation2 + $0x1d9] sm:$0x1] %v6214_v30 }
 0x2a4   :  { %1071 = vst [vmem:[#allocation2 + $0x1f1] sm:$0x1] %v6214_v30 }
 0x2a5   :  { %1072 = vst [vmem:[#allocation2 + $0x209] sm:$0x1] %v6214_v30 }
 0x2a6   :  { %1073 = vst [vmem:[#allocation2 + $0x221] sm:$0x1] %v6214_v30 }
 0x2a7   :  { %1074 = vst [vmem:[#allocation2 + $0x239] sm:$0x1] %v6214_v30 }
 0x2a8   :  { %1075 = vst [vmem:[#allocation2 + $0x251] sm:$0x1] %v6214_v30 }
 0x2a9   :  { %1076 = vst [vmem:[#allocation2 + $0x269] sm:$0x1] %v6214_v30 }
 0x2aa   :  { %1077 = vst [vmem:[#allocation2 + $0x281] sm:$0x1] %v6214_v30 }
 0x2ab   :  { %1078 = vst [vmem:[#allocation2 + $0x299] sm:$0x1] %v6214_v30 }
 0x2ac   :  { %1079 = vst [vmem:[#allocation2 + $0x2b1] sm:$0x1] %v6214_v30 }
 0x2ad   :  { %1080 = vst [vmem:[#allocation2 + $0x2c9] sm:$0x1] %v6214_v30 }
 0x2ae   :  { %1081 = vst [vmem:[#allocation2 + $0x2e1] sm:$0x1] %v6214_v30 }
 0x2af   :  { %1082 = vst [vmem:[#allocation2 + $0x2f9] sm:$0x1] %v6214_v30 }
 0x2b0   :  { %1083 = vst [vmem:[#allocation2 + $0x311] sm:$0x1] %v6214_v30 }
 0x2b1   :  { %1084 = vst [vmem:[#allocation2 + $0x329] sm:$0x1] %v6214_v30 }
 0x2b2   :  { %1085 = vst [vmem:[#allocation2 + $0x341] sm:$0x1] %v6214_v30 }
 0x2b3   :  { %1015 = vst [vmem:[#allocation2] sm:$0x1] %v6214_v30 }
 0x2b4   :  { %1032 = vst [vmem:[#allocation2 + $0x198] sm:$0x1] %v6214_v30 }
 0x2b5   :  { %1050 = vst [vmem:[#allocation2 + $0x348] sm:$0x1] %v6214_v30 }
 0x2b6   :  { %1051 = vst [vmem:[#allocation2 + $0x11] sm:$0x1] %v6214_v30 }
 0x2b7   :  { %10654 = vst [vmem:[#allocation21_spill] sm:$0xff] %v6986_v10  ;;  %v7217_v10 = vld [vmem:[#allocation2 + $0xc0] sm:$0xff] }
 0x2b8   :  { %1068 = vst [vmem:[#allocation2 + $0x1a9] sm:$0x1] %v6214_v30 }
 0x2b9   :  { %1069 = vst [vmem:[#allocation2 + $0x1c1] sm:$0x1] %v6214_v30 }
 0x2ba   :  { %10655 = vst [vmem:[#allocation22_spill] sm:$0xff] %v6994_v13  ;;  %v1152_v15 = vld [vmem:[#allocation2] sm:$0xff] }
 0x2bb   :  { %1086 = vst [vmem:[#allocation2 + $0x359] sm:$0x1] %v6214_v30  ;;  %v1421_v51 = vrot.slane %v1152_v15, 1  ;;  %v1260_v26 = vpack.c.bf16 %v1152_v15, %v1152_v15  ;;  %v2159_v30 = vunpack.c.l.b16 %v1265_v7  ;;  %v2350_v7 = vunpack.c.l.b16 %v1649_v8 }
 0x2bc   :  { %10656 = vst [vmem:[#allocation23_spill] sm:$0xff] %v6998_v54 }
 0x2bd   :  { %v1154_v28 = vld [vmem:[#allocation2 + $0x10] sm:$0x3]  ;;  %v1423_v23 = vsel %vm1420_vm3, %v1421_v51, %v6994_v13  ;;  %v2154_v21 = vunpack.c.l.b16 %v1260_v26  ;;  %10657 = vst [vmem:[#allocation24_spill] sm:$0xff] %v7030_v39  ;;  %v7034_v11 = vpack.c.b16 %v2159_v30, %v2158_v2  ;;  %v1266_v51 = vpack.c.bf16 %v7038_v44, %v7038_v44  ;;  %v7190_v39 = vld [vmem:[#allocation2 + $0xb8] sm:$0x3] }
 0x2be   :  { %v1424_v57 = vrot.slane %v1154_v28, 1  ;;  %v1645_v53 = vpack.c.bf16 %v1423_v23, %v1423_v23  ;;  %v1436_v26 = vrot.slane %v7038_v44, 1  ;;  %v1437_v28 = vrot.slane %v7043_v25, 1  ;;  %10670 = vst [vmem:[#allocation37_spill] sm:$0xff] %v7155_v37 }
 0x2bf   :  { %v2218_v14 = vpack.c.b16 %v6897_v42, %v2154_v21  ;;  %v1434_v42 = vrot.slane %v7024_v35, 1  ;;  %10658 = vst [vmem:[#allocation25_spill] sm:$0xff] %v7034_v11  ;;  %3834 = vmatmul.bf16.gmra.mxu0 %v7034_v11  ;;  %v1298_v23 = vpack.c.bf16 %v7045_v4, %v7045_v4  ;;  %v1299_v21 = vpack.c.bf16 %v7047_v46, %v7047_v46 }
 0x2c0   :  { %v1425_v40 = vsel %vm1420_vm3, %v6994_v13, %v1424_v57  ;;  %v2346_v12 = vunpack.c.l.b16 %v1645_v53  ;;  %v2160_v1 = vunpack.c.l.b16 %v1266_v51  ;;  %v1438_v43 = vsel %vm1420_vm3, %v1436_v26, %v1437_v28  ;;  %v7123_v57 = vld [vmem:[#allocation2 + $0x228] sm:$0xff]  ;;  %10678 = vst [vmem:[#allocation40_spill] sm:$0xff] %v7190_v39 }
 0x2c1   :  { %v1646_v9 = vpack.c.bf16 %v1425_v40, %v1425_v40  ;;  %3322 = vmatmul.bf16.vlgmr.msra.gmra.mxu1 %v2218_v14  ;;  %v1435_v60 = vsel %vm1420_vm3, %v1432_v36, %v1434_v42  ;;  %v2192_v47 = vunpack.c.l.b16 %v1298_v23  ;;  %v1440_v2 = vsel %vm1420_vm3, %v1437_v28, %v1439_v59  ;;  %v7087_v36 = vld [vmem:[#allocation2 + $0x218] sm:$0xff]  ;;  %10663 = vst [vmem:[#allocation30_spill] sm:$0xff] %v7123_v57  ;;  %v7144_v23 = vld [vmem:[#allocation2 + $0x90] sm:$0xff] }
 0x2c2   :  { %v1650_v15 = vpack.c.bf16 %v1435_v60, %v1435_v60  ;;  %v1441_v30 = vrot.slane %v7071_v32, 1  ;;  %v1300_v51 = vpack.c.bf16 %v7085_v33, %v7085_v33  ;;  %v1301_v26 = vpack.c.bf16 %v7087_v36, %v7087_v36  ;;  %10666 = vst [vmem:[#allocation33_spill] sm:$0xff] %v7144_v23  ;;  %v7146_v42 = vld [vmem:[#allocation2 + $0x98] sm:$0xff] }
 0x2c3   :  { %v2347_v62 = vunpack.c.l.b16 %v1646_v9  ;;  %v7073_v9 = vld [vmem:[#allocation2 + $0x68] sm:$0xff]  ;;  %v7106_v28 = vpack.c.b16 %v2161_v31, %v2160_v1  ;;  %v1302_v31 = vpack.c.bf16 %v7123_v57, %v7123_v57  ;;  %10667 = vst [vmem:[#allocation34_spill] sm:$0xff] %v7146_v42  ;;  %v1451_v55 = vrot.slane %v7144_v23, 1 }
 0x2c4   :  { %v2351_v29 = vunpack.c.l.b16 %v1650_v15  ;;  %v1269_v18 = vpack.c.bf16 %v7073_v9, %v7073_v9  ;;  %v1652_v15 = vpack.c.bf16 %v1440_v2, %v1440_v2  ;;  %v2194_v16 = vunpack.c.l.b16 %v1300_v51  ;;  %10682 = vst [vmem:[#allocation44_spill] sm:$0xff] %v7217_v10  ;;  %v7264_v57 = vld [vmem:[#allocation2 + $0xe8] sm:$0x3] }
 0x2c5   :  { %v2410_v56 = vpack.c.b16 %v2347_v62, %v2346_v12  ;;  %v7076_v12 = vpack.c.b16 %v2349_v5, %v2348_v0  ;;  %v2193_v62 = vunpack.c.l.b16 %v1299_v21  ;;  %v1651_v0 = vpack.c.bf16 %v1438_v43, %v1438_v43  ;;  %10662 = vst [vmem:[#allocation29_spill] sm:$0xff] %v7106_v28  ;;  %v7116_v43 = vld [vmem:[#allocation2 + $0x80] sm:$0xff] }
 0x2c6   :  { %v7095_v38 = vpack.c.b16 %v2351_v29, %v2350_v7  ;;  %v2162_v29 = vunpack.c.l.b16 %v1268_v48  ;;  %v2353_v59 = vunpack.c.l.b16 %v1652_v15  ;;  %v2195_v19 = vunpack.c.l.b16 %v1301_v26  ;;  %v7125_v48 = vld [vmem:[#allocation2 + $0x230] sm:$0xff]  ;;  %10694 = vst [vmem:[#allocation56_spill] sm:$0xff] %v7264_v57 }
 0x2c7   :  { %3491 = vmatmul.bf16.vlgmr.msrb.gmra.mxu2 %v2410_v56  ;;  %10659 = vst [vmem:[#allocation26_spill] sm:$0xff] %v7076_v12  ;;  %v7080_v56 = vld [vmem:[#allocation2 + $0x70] sm:$0x3]  ;;  %v7099_v8 = vpack.c.b16 %v2193_v62, %v2192_v47  ;;  %v2163_v47 = vunpack.c.l.b16 %v1269_v18  ;;  %v7114_v62 = vld [vmem:[#allocation2 + $0x78] sm:$0xff]  ;;  %v2352_v1 = vunpack.c.l.b16 %v1651_v0  ;;  %v1271_v0 = vpack.c.bf16 %v7116_v43, %v7116_v43 }
 0x2c8   :  { %10660 = vst [vmem:[#allocation27_spill] sm:$0xff] %v7095_v38  ;;  %v1444_v5 = vrot.slane %v7080_v56, 1  ;;  %v1270_v18 = vpack.c.bf16 %v7114_v62, %v7114_v62  ;;  %v1303_v60 = vpack.c.bf16 %v7125_v48, %v7125_v48  ;;  %v1454_v51 = vrot.slane %v7155_v37, 1 }
 0x2c9   :  { %10661 = vst [vmem:[#allocation28_spill] sm:$0xff] %v7099_v8  ;;  %3417 = vmatmul.bf16.gmra.mxu3 %v7099_v8  ;;  %v7134_v15 = vpack.c.b16 %v2163_v47, %v2162_v29  ;;  %v7148_v29 = vpack.c.b16 %v2353_v59, %v2352_v1  ;;  %v7150_v47 = vpack.c.b16 %v2195_v19, %v2194_v16  ;;  %v2165_v45 = vunpack.c.l.b16 %v1271_v0  ;;  %v7160_v16 = vld [vmem:[#allocation2 + $0x240] sm:$0xff]  ;;  %v5977_v19 = vld [vmem:[#allocation9 + $0xa8] sm:$0xff]  ;;  %v7188_v8 = vld [vmem:[#allocation2 + $0xb0] sm:$0xff] }
 0x2ca   :  { %10664 = vst [vmem:[#allocation31_spill] sm:$0xff] %v7125_v48  ;;  %v2164_v7 = vunpack.c.l.b16 %v1270_v18  ;;  %v1452_v59 = vrot.slane %v7146_v42, 1  ;;  %v2196_v1 = vunpack.c.l.b16 %v1302_v31  ;;  %v2197_v18 = vunpack.c.l.b16 %v1303_v60  ;;  %3654 = vmatpush.bf16.msrb.mxu3 %v5977_v19  ;;  %v7198_v19 = vld [vmem:[#allocation2 + $0x260] sm:$0xff]  ;;  %v7269_v48 = vld [vmem:[#allocation2 + $0x288] sm:$0xff] }
 0x2cb   :  { %10665 = vst [vmem:[#allocation32_spill] sm:$0xff] %v7134_v15  ;;  %v1272_v0 = vpack.c.bf16 %v7144_v23, %v7144_v23  ;;  %v1304_v60 = vpack.c.bf16 %v7160_v16, %v7160_v16 }
 0x2cc   :  { %10668 = vst [vmem:[#allocation35_spill] sm:$0xff] %v7148_v29  ;;  %v7179_v50 = vpack.c.b16 %v2165_v45, %v2164_v7  ;;  %v7259_v45 = vld [vmem:[#allocation2 + $0xe0] sm:$0xff] }
 0x2cd   :  { %10669 = vst [vmem:[#allocation36_spill] sm:$0xff] %v7150_v47  ;;  %v2166_v2 = vunpack.c.l.b16 %v1272_v0 }
 0x2ce   :  { %10671 = vst [vmem:[#allocation16_spill] sm:$0xff] %v7160_v16  ;;  %v7230_v16 = vld [vmem:[#allocation2 + $0x270] sm:$0xff] }
 0x2cf   :  { %3839 = vmatmul.bf16.gmra.mxu0 %v7106_v28  ;;  %10674 = vst [vmem:[#allocation19_spill] sm:$0xff] %v7179_v50 }
 0x2d0   :  { %10677 = vst [vmem:[#allocation39_spill] sm:$0xff] %v7188_v8 }
 0x2d1   :  { %3327 = vmatmul.bf16.gmra.mxu1 %v6989_v24  ;;  %v1442_v24 = vrot.slane %v7073_v9, 1  ;;  %10680 = vst [vmem:[#allocation42_spill] sm:$0xff] %v7198_v19 }
 0x2d2   :  { %10686 = vst [vmem:[#allocation48_spill] sm:$0xff] %v7230_v16 }
 0x2d3   :  { %v1443_v27 = vsel %vm1420_vm3, %v1441_v30, %v1442_v24  ;;  %v1445_v21 = vsel %vm1420_vm3, %v1442_v24, %v1444_v5  ;;  %v7121_v30 = vld [vmem:[#allocation2 + $0x88] sm:$0x3]  ;;  %v1446_v24 = vrot.slane %v7114_v62, 1  ;;  %v1447_v5 = vrot.slane %v7116_v43, 1  ;;  %10692 = vst [vmem:[#allocation54_spill] sm:$0xff] %v7259_v45 }
 0x2d4   :  { %v1653_v61 = vpack.c.bf16 %v1443_v27, %v1443_v27  ;;  %v1654_v26 = vpack.c.bf16 %v1445_v21, %v1445_v21  ;;  %v1449_v27 = vrot.slane %v7121_v30, 1  ;;  %10695 = vst [vmem:[#allocation57_spill] sm:$0xff] %v7269_v48 }
 0x2d5   :  { %v1448_v40 = vsel %vm1420_vm3, %v1446_v24, %v1447_v5  ;;  %v1273_v24 = vpack.c.bf16 %v7146_v42, %v7146_v42 }
 0x2d6   :  { %v2354_v21 = vunpack.c.l.b16 %v1653_v61  ;;  %v2355_v53 = vunpack.c.l.b16 %v1654_v26  ;;  %v1450_v14 = vsel %vm1420_vm3, %v1447_v5, %v1449_v27  ;;  %v7162_v61 = vld [vmem:[#allocation2 + $0x248] sm:$0xff]  ;;  %v1655_v27 = vpack.c.bf16 %v1448_v40, %v1448_v40  ;;  %v7196_v5 = vld [vmem:[#allocation2 + $0x258] sm:$0xff] }
 0x2d7   :  { %3496 = vmatmul.bf16.gmra.mxu2 %v7076_v12  ;;  %10672 = vst [vmem:[#allocation17_spill] sm:$0xff] %v7162_v61  ;;  %v1656_v58 = vpack.c.bf16 %v1450_v14, %v1450_v14  ;;  %v1305_v31 = vpack.c.bf16 %v7162_v61, %v7162_v61  ;;  %v1453_v40 = vsel %vm1420_vm3, %v1451_v55, %v1452_v59  ;;  %v2167_v14 = vunpack.c.l.b16 %v1273_v24  ;;  %v5993_v55 = vld [vmem:[#allocation9 + $0x128] sm:$0xff]  ;;  %v7232_v61 = vld [vmem:[#allocation2 + $0xd0] sm:$0x3] }
 0x2d8   :  { %v7177_v34 = vpack.c.b16 %v2355_v53, %v2354_v21  ;;  %v7183_v26 = vpack.c.b16 %v2197_v18, %v2196_v1  ;;  %v2356_v53 = vunpack.c.l.b16 %v1655_v27  ;;  %v1455_v21 = vsel %vm1420_vm3, %v1452_v59, %v1454_v51  ;;  %10679 = vst [vmem:[#allocation41_spill] sm:$0xff] %v7196_v5  ;;  %3992 = vmatpush.bf16.msrb.mxu1 %v5993_v55 }
 0x2d9   :  { %v2357_v1 = vunpack.c.l.b16 %v1656_v58  ;;  %v2198_v18 = vunpack.c.l.b16 %v1304_v60  ;;  %v2199_v0 = vunpack.c.l.b16 %v1305_v31  ;;  %v1657_v24 = vpack.c.bf16 %v1453_v40, %v1453_v40  ;;  %3422 = vmatmul.bf16.gmra.mxu3 %v7150_v47  ;;  %10687 = vst [vmem:[#allocation49_spill] sm:$0xff] %v7232_v61 }
 0x2da   :  { %10673 = vst [vmem:[#allocation18_spill] sm:$0xff] %v7177_v34  ;;  %v1457_v51 = vrot.slane %v7188_v8, 1  ;;  %v1459_v59 = vrot.slane %v7190_v39, 1  ;;  %v7206_v58 = vpack.c.b16 %v2167_v14, %v2166_v2  ;;  %v1658_v31 = vpack.c.bf16 %v1455_v21, %v1455_v21  ;;  %v7219_v2 = vld [vmem:[#allocation2 + $0xc8] sm:$0xff] }
 0x2db   :  { %10675 = vst [vmem:[#allocation20_spill] sm:$0xff] %v7183_v26  ;;  %v1275_v40 = vpack.c.bf16 %v7188_v8, %v7188_v8  ;;  %v1307_v12 = vpack.c.bf16 %v7198_v19, %v7198_v19  ;;  %v7222_v14 = vpack.c.b16 %v2357_v1, %v2356_v53  ;;  %v7224_v21 = vpack.c.b16 %v2199_v0, %v2198_v18  ;;  %v7236_v18 = vld [vmem:[#allocation2 + $0x278] sm:$0xff] }
 0x2dc   :  { %10681 = vst [vmem:[#allocation43_spill] sm:$0xff] %v7206_v58  ;;  %v2358_v55 = vunpack.c.l.b16 %v1657_v24  ;;  %v1460_v39 = vsel %vm1420_vm3, %v1457_v51, %v1459_v59  ;;  %v2359_v37 = vunpack.c.l.b16 %v1658_v31  ;;  %v1461_v53 = vrot.slane %v7217_v10, 1 }
 0x2dd   :  { %10683 = vst [vmem:[#allocation45_spill] sm:$0xff] %v7219_v2  ;;  %v2169_v23 = vunpack.c.l.b16 %v1275_v40  ;;  %v1462_v1 = vrot.slane %v7219_v2, 1  ;;  %v2201_v24 = vunpack.c.l.b16 %v1307_v12  ;;  %v1660_v59 = vpack.c.bf16 %v1460_v39, %v1460_v39 }
 0x2de   :  { %10684 = vst [vmem:[#allocation46_spill] sm:$0xff] %v7222_v14  ;;  %v1308_v31 = vpack.c.bf16 %v7230_v16, %v7230_v16  ;;  %v1464_v40 = vrot.slane %v7232_v61, 1  ;;  %v1309_v12 = vpack.c.bf16 %v7236_v18, %v7236_v18  ;;  %v7257_v61 = vld [vmem:[#allocation2 + $0xd8] sm:$0xff]  ;;  %v1467_v19 = vrot.slane %v7259_v45, 1 }
 0x2df   :  { %3844 = vmatmul.bf16.gmra.mxu0 %v7134_v15  ;;  %10685 = vst [vmem:[#allocation47_spill] sm:$0xff] %v7224_v21  ;;  %v1463_v8 = vsel %vm1420_vm3, %v1461_v53, %v1462_v1  ;;  %v1466_v53 = vrot.slane %v7257_v61, 1 }
 0x2e0   :  { %10688 = vst [vmem:[#allocation50_spill] sm:$0xff] %v7236_v18  ;;  %v2203_v39 = vunpack.c.l.b16 %v1309_v12  ;;  %v7300_v12 = vld [vmem:[#allocation2 + $0x100] sm:$0x3] }
 0x2e1   :  { %3332 = vmatmul.bf16.gmra.mxu1 %v7034_v11  ;;  %v7186_v11 = vld [vmem:[#allocation2 + $0xa8] sm:$0xff]  ;;  %10691 = vst [vmem:[#allocation53_spill] sm:$0xff] %v7257_v61 }
 0x2e2   :  { %10676 = vst [vmem:[#allocation38_spill] sm:$0xff] %v7186_v11  ;;  %v1274_v27 = vpack.c.bf16 %v7186_v11, %v7186_v11  ;;  %v1456_v7 = vrot.slane %v7186_v11, 1  ;;  %v7251_v11 = vpack.c.b16 %v2359_v37, %v2358_v55  ;;  %v2361_v55 = vunpack.c.l.b16 %v1660_v59 }
 0x2e3   :  { %10702 = vst [vmem:[#allocation64_spill] sm:$0xff] %v7300_v12 }
 0x2e4   :  { %v2168_v60 = vunpack.c.l.b16 %v1274_v27  ;;  %v1458_v13 = vsel %vm1420_vm3, %v1456_v7, %v1457_v51  ;;  %v1276_v27 = vpack.c.bf16 %v7217_v10, %v7217_v10  ;;  %v1277_v7 = vpack.c.bf16 %v7219_v2, %v7219_v2  ;;  %10689 = vst [vmem:[#allocation51_spill] sm:$0xff] %v7251_v11  ;;  %v7305_v10 = vld [vmem:[#allocation2 + $0x2a0] sm:$0xff] }
 0x2e5   :  { %v1659_v51 = vpack.c.bf16 %v1458_v13, %v1458_v13  ;;  %10703 = vst [vmem:[#allocation65_spill] sm:$0xff] %v7305_v10 }
 0x2e6   :  { %v7253_v13 = vpack.c.b16 %v2169_v23, %v2168_v60  ;;  %v2171_v42 = vunpack.c.l.b16 %v1277_v7  ;;  %v2202_v23 = vunpack.c.l.b16 %v1308_v31  ;;  %v1465_v60 = vsel %vm1420_vm3, %v1462_v1, %v1464_v40 }
 0x2e7   :  { %3501 = vmatmul.bf16.gmra.mxu2 %v7095_v38  ;;  %v1306_v38 = vpack.c.bf16 %v7196_v5, %v7196_v5  ;;  %v2170_v5 = vunpack.c.l.b16 %v1276_v27  ;;  %v2360_v37 = vunpack.c.l.b16 %v1659_v51  ;;  %v1278_v7 = vpack.c.bf16 %v7257_v61, %v7257_v61  ;;  %v7330_v61 = vld [vmem:[#allocation2 + $0x108] sm:$0xff] }
 0x2e8   :  { %10690 = vst [vmem:[#allocation52_spill] sm:$0xff] %v7253_v13  ;;  %v1469_v51 = vrot.slane %v7264_v57, 1  ;;  %v1662_v59 = vpack.c.bf16 %v1465_v60, %v1465_v60  ;;  %v1279_v31 = vpack.c.bf16 %v7259_v45, %v7259_v45  ;;  %v1310_v27 = vpack.c.bf16 %v7269_v48, %v7269_v48  ;;  %v7332_v45 = vld [vmem:[#allocation2 + $0x110] sm:$0xff] }
 0x2e9   :  { %v2200_v0 = vunpack.c.l.b16 %v1306_v38  ;;  %v7278_v1 = vpack.c.b16 %v2171_v42, %v2170_v5  ;;  %v7290_v42 = vld [vmem:[#allocation2 + $0xf0] sm:$0xff]  ;;  %v7292_v5 = vld [vmem:[#allocation2 + $0xf8] sm:$0xff]  ;;  %3427 = vmatmul.bf16.gmra.mxu3 %v7183_v26  ;;  %v7295_v60 = vpack.c.b16 %v2361_v55, %v2360_v37  ;;  %v1468_v40 = vsel %vm1420_vm3, %v1466_v53, %v1467_v19 }
 0x2ea   :  { %10698 = vst [vmem:[#allocation60_spill] sm:$0xff] %v7290_v42  ;;  %v2172_v16 = vunpack.c.l.b16 %v1278_v7  ;;  %v1470_v18 = vsel %vm1420_vm3, %v1467_v19, %v1469_v51  ;;  %v2363_v2 = vunpack.c.l.b16 %v1662_v59  ;;  %v2173_v26 = vunpack.c.l.b16 %v1279_v31 }
 0x2eb   :  { %v7261_v47 = vpack.c.b16 %v2201_v24, %v2200_v0  ;;  %v7271_v0 = vld [vmem:[#allocation2 + $0x290] sm:$0xff]  ;;  %10697 = vst [vmem:[#allocation59_spill] sm:$0xff] %v7278_v1  ;;  %v1471_v37 = vrot.slane %v7290_v42, 1  ;;  %v2204_v55 = vunpack.c.l.b16 %v1310_v27  ;;  %v1663_v53 = vpack.c.bf16 %v1468_v40, %v1468_v40  ;;  %v7338_v1 = vld [vmem:[#allocation2 + $0x118] sm:$0x3] }
 0x2ec   :  { %10696 = vst [vmem:[#allocation58_spill] sm:$0xff] %v7271_v0  ;;  %v1311_v38 = vpack.c.bf16 %v7271_v0, %v7271_v0  ;;  %v1664_v7 = vpack.c.bf16 %v1470_v18, %v1470_v18  ;;  %v1280_v19 = vpack.c.bf16 %v7290_v42, %v7290_v42  ;;  %v1281_v51 = vpack.c.bf16 %v7292_v5, %v7292_v5  ;;  %v5992_v42 = vld [vmem:[#allocation9 + $0x120] sm:$0xff] }
 0x2ed   :  { %10693 = vst [vmem:[#allocation55_spill] sm:$0xff] %v7261_v47  ;;  %v1312_v59 = vpack.c.bf16 %v7305_v10, %v7305_v10  ;;  %v7326_v18 = vpack.c.b16 %v2173_v26, %v2172_v16  ;;  %v2364_v57 = vunpack.c.l.b16 %v1663_v53  ;;  %v1476_v53 = vrot.slane %v7330_v61, 1  ;;  %3993 = vmatpush.bf16.msrb.mxu1 %v5992_v42 }
 0x2ee   :  { %10699 = vst [vmem:[#allocation61_spill] sm:$0xff] %v7292_v5  ;;  %v2174_v16 = vunpack.c.l.b16 %v1280_v19  ;;  %v2175_v26 = vunpack.c.l.b16 %v1281_v51  ;;  %v1477_v27 = vrot.slane %v7332_v45, 1  ;;  %v1479_v19 = vrot.slane %v7338_v1, 1 }
 0x2ef   :  { %10700 = vst [vmem:[#allocation62_spill] sm:$0xff] %v7295_v60  ;;  %3849 = vmatmul.bf16.gmra.mxu0 %v7179_v50 }
 0x2f0   :  { %10705 = vst [vmem:[#allocation67_spill] sm:$0xff] %v7326_v18  ;;  %v7375_v18 = vld [vmem:[#allocation2 + $0x2d8] sm:$0xff] }
 0x2f1   :  { %3337 = vmatmul.bf16.gmra.mxu1 %v7106_v28  ;;  %v1661_v28 = vpack.c.bf16 %v1463_v8, %v1463_v8  ;;  %v7297_v8 = vpack.c.b16 %v2203_v39, %v2202_v23  ;;  %v1472_v39 = vrot.slane %v7292_v5, 1  ;;  %v2205_v23 = vunpack.c.l.b16 %v1311_v38  ;;  %10707 = vst [vmem:[#allocation69_spill] sm:$0xff] %v7338_v1  ;;  %v7363_v1 = vld [vmem:[#allocation2 + $0x120] sm:$0xff] }
 0x2f2   :  { %10709 = vst [vmem:[#allocation71_spill] sm:$0xff] %v7363_v1 }
 0x2f3   :  { %10701 = vst [vmem:[#allocation63_spill] sm:$0xff] %v7297_v8  ;;  %v2362_v24 = vunpack.c.l.b16 %v1661_v28  ;;  %v7309_v28 = vld [vmem:[#allocation2 + $0x2a8] sm:$0xff]  ;;  %v1473_v60 = vsel %vm1420_vm3, %v1471_v37, %v1472_v39  ;;  %v7334_v31 = vpack.c.b16 %v2205_v23, %v2204_v55  ;;  %v7342_v37 = vld [vmem:[#allocation2 + $0x2c0] sm:$0xff] }
 0x2f4   :  { %v1313_v38 = vpack.c.bf16 %v7309_v28, %v7309_v28  ;;  %v1665_v23 = vpack.c.bf16 %v1473_v60, %v1473_v60 }
 0x2f5   :  { %v7324_v40 = vpack.c.b16 %v2363_v2, %v2362_v24  ;;  %10706 = vst [vmem:[#allocation68_spill] sm:$0xff] %v7334_v31  ;;  %v2365_v2 = vunpack.c.l.b16 %v1664_v7  ;;  %v2206_v24 = vunpack.c.l.b16 %v1312_v59  ;;  %v1283_v7 = vpack.c.bf16 %v7332_v45, %v7332_v45 }
 0x2f6   :  { %v2207_v55 = vunpack.c.l.b16 %v1313_v38  ;;  %v1315_v38 = vpack.c.bf16 %v7342_v37, %v7342_v37  ;;  %v2366_v5 = vunpack.c.l.b16 %v1665_v23  ;;  %v1478_v31 = vsel %vm1420_vm3, %v1476_v53, %v1477_v27  ;;  %v7401_v23 = vld [vmem:[#allocation2 + $0x130] sm:$0x3] }
 0x2f7   :  { %3506 = vmatmul.bf16.gmra.mxu2 %v7148_v29  ;;  %v1474_v29 = vrot.slane %v7300_v12, 1  ;;  %10704 = vst [vmem:[#allocation66_spill] sm:$0xff] %v7324_v40  ;;  %v7340_v12 = vld [vmem:[#allocation2 + $0x2b8] sm:$0xff]  ;;  %v5976_v40 = vld [vmem:[#allocation9 + $0xa0] sm:$0xff]  ;;  %v7367_v51 = vpack.c.b16 %v2365_v2, %v2364_v57  ;;  %v1284_v2 = vpack.c.bf16 %v7363_v1, %v7363_v1  ;;  %v1667_v53 = vpack.c.bf16 %v1478_v31, %v1478_v31 }
 0x2f8   :  { %3655 = vmatpush.bf16.msrb.mxu3 %v5976_v40  ;;  %v1314_v60 = vpack.c.bf16 %v7340_v12, %v7340_v12  ;;  %v7365_v40 = vld [vmem:[#allocation2 + $0x128] sm:$0xff]  ;;  %v7369_v59 = vpack.c.b16 %v2207_v55, %v2206_v24  ;;  %v2209_v57 = vunpack.c.l.b16 %v1315_v38  ;;  %v7393_v38 = vld [vmem:[#allocation2 + $0x2f0] sm:$0xff]  ;;  %10715 = vst [vmem:[#allocation77_spill] sm:$0xff] %v7401_v23 }
 0x2f9   :  { %v1475_v48 = vsel %vm1420_vm3, %v1472_v39, %v1474_v29  ;;  %v1282_v39 = vpack.c.bf16 %v7330_v61, %v7330_v61  ;;  %10710 = vst [vmem:[#allocation72_spill] sm:$0xff] %v7365_v40  ;;  %v1285_v24 = vpack.c.bf16 %v7365_v40, %v7365_v40  ;;  %3432 = vmatmul.bf16.gmra.mxu3 %v7224_v21  ;;  %v2178_v21 = vunpack.c.l.b16 %v1284_v2 }
 0x2fa   :  { %v1666_v29 = vpack.c.bf16 %v1475_v48, %v1475_v48  ;;  %v7358_v48 = vpack.c.b16 %v2175_v26, %v2174_v16  ;;  %10711 = vst [vmem:[#allocation73_spill] sm:$0xff] %v7367_v51  ;;  %v2177_v26 = vunpack.c.l.b16 %v1283_v7  ;;  %v2208_v10 = vunpack.c.l.b16 %v1314_v60  ;;  %v7391_v60 = vld [vmem:[#allocation2 + $0x2e8] sm:$0xff]  ;;  %v7407_v51 = vld [vmem:[#allocation2 + $0x138] sm:$0xff] }
 0x2fb   :  { %10712 = vst [vmem:[#allocation74_spill] sm:$0xff] %v7369_v59  ;;  %v2176_v16 = vunpack.c.l.b16 %v1282_v39  ;;  %v1319_v31 = vpack.c.bf16 %v7393_v38, %v7393_v38  ;;  %v7441_v59 = vld [vmem:[#allocation2 + $0x150] sm:$0xff] }
 0x2fc   :  { %10708 = vst [vmem:[#allocation70_spill] sm:$0xff] %v7358_v48  ;;  %v2367_v0 = vunpack.c.l.b16 %v1666_v29  ;;  %v7373_v48 = vld [vmem:[#allocation2 + $0x2d0] sm:$0xff]  ;;  %v1481_v29 = vrot.slane %v7363_v1, 1 }
 0x2fd   :  { %v1316_v7 = vpack.c.bf16 %v7373_v48, %v7373_v48 }
 0x2fe   :  { %v7395_v55 = vpack.c.b16 %v2367_v0, %v2366_v5  ;;  %v7409_v0 = vld [vmem:[#allocation2 + $0x140] sm:$0xff]  ;;  %v2368_v5 = vunpack.c.l.b16 %v1667_v53  ;;  %v1286_v53 = vpack.c.bf16 %v7407_v51, %v7407_v51 }
 0x2ff   :  { %3854 = vmatmul.bf16.gmra.mxu0 %v7206_v58 }
 0x300   :  { %10713 = vst [vmem:[#allocation75_spill] sm:$0xff] %v7395_v55  ;;  %v1484_v55 = vrot.slane %v7401_v23, 1  ;;  %v2213_v23 = vunpack.c.l.b16 %v1319_v31  ;;  %v7448_v31 = vunpack.c.l.b16 %v1286_v53 }
 0x301   :  { %3342 = vmatmul.bf16.gmra.mxu1 %v7134_v15  ;;  %v1480_v15 = vsel %vm1420_vm3, %v1477_v27, %v1479_v19  ;;  %v1317_v19 = vpack.c.bf16 %v7375_v18, %v7375_v18  ;;  %v7397_v27 = vpack.c.b16 %v2177_v26, %v2176_v16  ;;  %v1482_v16 = vrot.slane %v7365_v40, 1 }
 0x302   :  { %v1668_v39 = vpack.c.bf16 %v1480_v15, %v1480_v15  ;;  %v7404_v15 = vpack.c.b16 %v2209_v57, %v2208_v10  ;;  %v1318_v26 = vpack.c.bf16 %v7391_v60, %v7391_v60  ;;  %v2210_v10 = vunpack.c.l.b16 %v1316_v7  ;;  %v7443_v7 = vld [vmem:[#allocation2 + $0x158] sm:$0xff]  ;;  %10722 = vst [vmem:[#allocation84_spill] sm:$0xff] %v7448_v31 }
 0x303   :  { %10714 = vst [vmem:[#allocation76_spill] sm:$0xff] %v7397_v27  ;;  %v2211_v57 = vunpack.c.l.b16 %v1317_v19  ;;  %v1287_v27 = vpack.c.bf16 %v7409_v0, %v7409_v0  ;;  %v7430_v2 = vsel %vm1420_vm3, %v1481_v29, %v1482_v16  ;;  %v7445_v19 = vld [vmem:[#allocation2 + $0x300] sm:$0xff]  ;;  %v10725_v29 = vrot.slane %v6962_v41, 2 }
 0x304   :  { %10716 = vst [vmem:[#allocation78_spill] sm:$0xff] %v7404_v15  ;;  %v2369_v42 = vunpack.c.l.b16 %v1668_v39  ;;  %v7462_v39 = vld [vmem:[#allocation2 + $0x318] sm:$0xff] }
 0x305   :  { %10718 = vst [vmem:[#allocation80_spill] sm:$0xff] %v7430_v2  ;;  %v7435_v40 = vpack.c.b16 %v2211_v57, %v2210_v10  ;;  %v1718_v10 = vrot.slane %v7004_v20, 2  ;;  %v10727_v57 = vrot.slane %v6975_v52, 1  ;;  %v10729_v20 = vmov %v10725_v29 }
 0x306   :  { %v7433_v1 = vpack.c.b16 %v2369_v42, %v2368_v5  ;;  %v7453_v5 = vld [vmem:[#allocation2 + $0x308] sm:$0xff]  ;;  %v10726_v42 = vrot.slane %v6960_v63, 2  ;;  %v10733_v63 = vrot.slane %v6975_v52, 1 }
 0x307   :  { %3511 = vmatmul.bf16.gmra.mxu2 %v7177_v34  ;;  %v2179_v34 = vunpack.c.l.b16 %v1285_v24  ;;  %v2212_v24 = vunpack.c.l.b16 %v1318_v26  ;;  %10720 = vst [vmem:[#allocation82_spill] sm:$0xff] %v7435_v40  ;;  %v7450_v26 = vunpack.c.l.b16 %v1287_v27  ;;  %v7480_v27 = vld [vmem:[#allocation2 + $0x188] sm:$0xff] }
 0x308   :  { %10719 = vst [vmem:[#allocation81_spill] sm:$0xff] %v7433_v1 }
 0x309   :  { %v7423_v15 = vpack.c.b16 %v2179_v34, %v2178_v21  ;;  %v7438_v34 = vsel %vm1420_vm3, %v1482_v16, %v1484_v55  ;;  %10723 = vst [vmem:[#allocation85_spill] sm:$0xff] %v7450_v26  ;;  %v7455_v55 = vld [vmem:[#allocation2 + $0x168] sm:$0xff]  ;;  %v7457_v16 = vld [vmem:[#allocation2 + $0x170] sm:$0xff]  ;;  %v7464_v53 = vpack.c.b16 %v2213_v23, %v2212_v24  ;;  %v7477_v23 = vld [vmem:[#allocation2 + $0x180] sm:$0xff]  ;;  %v10728_v21 = vrot.slane %v6973_v49, 1  ;;  %3437 = vmatmul.bf16.gmra.mxu3 %v7261_v47 }
 0x30a   :  { %10721 = vst [vmem:[#allocation83_spill] sm:$0xff] %v7438_v34  ;;  %v7471_v34 = vld [vmem:[#allocation2 + $0x1d8] sm:$0x3]  ;;  %v1723_v24 = vrot.slane %v7024_v35, 2 }
 0x30b   :  { %10717 = vst [vmem:[#allocation79_spill] sm:$0xff] %v7423_v15  ;;  %v1508_v2 = vsel %vm1420_vm3, %v10728_v21, %v10727_v57  ;;  %v1509_v31 = vrot.slane %v7471_v34, 1  ;;  %v10731_v21 = vrot.slane %v7006_v6, 2 }
 0x30c   :  { %10724 = vst [vmem:[#allocation86_spill] sm:$0xff] %v7464_v53  ;;  %v1717_v53 = vsel %vm1709_vm4, %v10726_v42, %v10725_v29  ;;  %v1679_v1 = vpack.c.bf16 %v1508_v2, %v1508_v2  ;;  %v1719_v29 = vsel %vm1709_vm4, %v10729_v20, %v1718_v10  ;;  %v10730_v42 = vrot.slane %v7008_v22, 2 }
 0x30d   :  { %v1936_v26 = vpack.c.bf16 %v1717_v53, %v1717_v53  ;;  %v7507_v53 = vld [vmem:[#allocation2 + $0x1f0] sm:$0x3]  ;;  %v1510_v41 = vsel %vm1420_vm3, %v10733_v63, %v1509_v31  ;;  %v10737_v22 = vrot.slane %v7043_v25, 2 }
 0x30e   :  { %v1722_v57 = vsel %vm1709_vm4, %v10731_v21, %v10730_v42  ;;  %10732 = vst [vmem:[#allocation87_spill] sm:$0xff] %v7507_v53  ;;  %v1680_v15 = vpack.c.bf16 %v1510_v41, %v1510_v41  ;;  %v2380_v10 = vunpack.c.l.b16 %v1679_v1  ;;  %v10734_v20 = vmov %v10730_v42  ;;  %v7528_v41 = vld [vmem:[#allocation2 + $0x208] sm:$0x3] }
 0x30f   :  { %v2540_v47 = vunpack.c.l.b16 %v1936_v26  ;;  %v1724_v6 = vsel %vm1709_vm4, %v10734_v20, %v1723_v24  ;;  %v1938_v40 = vpack.c.bf16 %v1722_v57, %v1722_v57  ;;  %3859 = vmatmul.bf16.gmra.mxu0 %v7253_v13  ;;  %v10735_v21 = vrot.slane %v7000_v17, 1 }
 0x310   :  { %v1939_v42 = vpack.c.bf16 %v1724_v6, %v1724_v6  ;;  %v1514_v2 = vrot.slane %v7507_v53, 1  ;;  %v2381_v31 = vunpack.c.l.b16 %v1680_v15  ;;  %v10738_v24 = vrot.slane %v7038_v44, 2 }
 0x311   :  { %3347 = vmatmul.bf16.gmra.mxu1 %v7179_v50  ;;  %v7469_v50 = vld [vmem:[#allocation2 + $0x320] sm:$0xff]  ;;  %v2542_v63 = vunpack.c.l.b16 %v1938_v40  ;;  %v10740_v6 = vmov %v10735_v21  ;;  %v10743_v44 = vmov %v10737_v22 }
 0x312   :  { %v1727_v57 = vsel %vm1709_vm4, %v10738_v24, %v10737_v22  ;;  %v2543_v20 = vunpack.c.l.b16 %v1939_v42  ;;  %v7536_v15 = vpack.c.b16 %v2381_v31, %v2380_v10 }
 0x313   :  { %v1940_v53 = vpack.c.bf16 %v1727_v57, %v1727_v57  ;;  %v10747_v57 = vrot.slane %v7073_v9, 2 }
 0x314   :  { %10741 = vst [vmem:[#allocation89_spill] sm:$0xff] %v7536_v15  ;;  %v10754_v15 = vrot.slane %v7116_v43, 2 }
 0x315   :  { %v2544_v31 = vunpack.c.l.b16 %v1940_v53  ;;  %v10750_v53 = vrot.slane %v7085_v33, 1 }
 0x317   :  { %3516 = vmatmul.bf16.gmra.mxu2 %v7222_v14  ;;  %v1937_v14 = vpack.c.bf16 %v1719_v29, %v1719_v29  ;;  %v10736_v29 = vrot.slane %v6998_v54, 1  ;;  %v7538_v54 = vpack.c.b16 %v2543_v20, %v2542_v63  ;;  %v10748_v20 = vrot.slane %v7071_v32, 2 }
 0x319   :  { %v2541_v35 = vunpack.c.l.b16 %v1937_v14  ;;  %v1513_v26 = vsel %vm1420_vm3, %v10736_v29, %v10735_v21  ;;  %v1515_v21 = vsel %vm1420_vm3, %v10740_v6, %v1514_v2  ;;  %v1728_v29 = vrot.slane %v7052_v3, 2  ;;  %10742 = vst [vmem:[#allocation90_spill] sm:$0xff] %v7538_v54  ;;  %3442 = vmatmul.bf16.gmra.mxu3 %v7297_v8 }
 0x31a   :  { %v1681_v1 = vpack.c.bf16 %v1513_v26, %v1513_v26  ;;  %v1682_v40 = vpack.c.bf16 %v1515_v21, %v1515_v21  ;;  %v1519_v2 = vrot.slane %v7528_v41, 1  ;;  %v1732_v6 = vsel %vm1709_vm4, %v10748_v20, %v10747_v57 }
 0x31b   :  { %v7530_v14 = vpack.c.b16 %v2541_v35, %v2540_v47  ;;  %v1729_v22 = vsel %vm1709_vm4, %v10743_v44, %v1728_v29  ;;  %v10744_v47 = vrot.slane %v7047_v46, 1  ;;  %v10745_v35 = vrot.slane %v7045_v4, 1 }
 0x31c   :  { %v2382_v26 = vunpack.c.l.b16 %v1681_v1  ;;  %v2383_v3 = vunpack.c.l.b16 %v1682_v40  ;;  %v1941_v10 = vpack.c.bf16 %v1729_v22, %v1729_v22  ;;  %v7549_v1 = vld [vmem:[#allocation2 + $0x220] sm:$0x3]  ;;  %v1733_v21 = vrot.slane %v7080_v56, 2 }
 0x31d   :  { %10739 = vst [vmem:[#allocation88_spill] sm:$0xff] %v7530_v14  ;;  %v1518_v42 = vsel %vm1420_vm3, %v10745_v35, %v10744_v47  ;;  %v10746_v25 = vmov %v10744_v47  ;;  %v10749_v29 = vrot.slane %v7087_v36, 1  ;;  %v1942_v32 = vpack.c.bf16 %v1732_v6, %v1732_v6 }
 0x31e   :  { %v1683_v24 = vpack.c.bf16 %v1518_v42, %v1518_v42  ;;  %v1520_v63 = vsel %vm1420_vm3, %v10746_v25, %v1519_v2  ;;  %v7566_v44 = vpack.c.b16 %v2383_v3, %v2382_v26  ;;  %v2545_v22 = vunpack.c.l.b16 %v1941_v10  ;;  %v7579_v10 = vld [vmem:[#allocation2 + $0x238] sm:$0x3] }
 0x31f   :  { %v1523_v40 = vsel %vm1420_vm3, %v10750_v53, %v10749_v29  ;;  %v1684_v47 = vpack.c.bf16 %v1520_v63, %v1520_v63  ;;  %v10752_v42 = vmov %v10747_v57  ;;  %v1524_v25 = vrot.slane %v7549_v1, 1 }
 0x320   :  { %10751 = vst [vmem:[#allocation91_spill] sm:$0xff] %v7566_v44  ;;  %v2384_v35 = vunpack.c.l.b16 %v1683_v24  ;;  %v1734_v2 = vsel %vm1709_vm4, %v10752_v42, %v1733_v21  ;;  %v1685_v57 = vpack.c.bf16 %v1523_v40, %v1523_v40  ;;  %v7572_v56 = vpack.c.b16 %v2545_v22, %v2544_v31  ;;  %v10759_v22 = vld [vmem:[#allocation31_spill] sm:$0xff]  ;;  %v10761_v42 = vld [vmem:[#allocation30_spill] sm:$0xff] }
 0x321   :  { %3352 = vmatmul.bf16.gmra.mxu1 %v7206_v58  ;;  %v2385_v20 = vunpack.c.l.b16 %v1684_v47  ;;  %v1943_v58 = vpack.c.bf16 %v1734_v2, %v1734_v2  ;;  %v10755_v26 = vrot.slane %v7114_v62, 2  ;;  %v2546_v24 = vunpack.c.l.b16 %v1942_v32 }
 0x322   :  { %10753 = vst [vmem:[#allocation92_spill] sm:$0xff] %v7572_v56  ;;  %v10756_v9 = vmov %v10749_v29  ;;  %v2386_v6 = vunpack.c.l.b16 %v1685_v57  ;;  %v1738_v21 = vrot.slane %v7121_v30, 2  ;;  %v10758_v62 = vmov %v10754_v15  ;;  %v10763_v30 = vld [vmem:[#allocation34_spill] sm:$0xff]  ;;  %v10765_v57 = vld [vmem:[#allocation33_spill] sm:$0xff] }
 0x323   :  { %v1737_v3 = vsel %vm1709_vm4, %v10755_v26, %v10754_v15  ;;  %v1525_v63 = vsel %vm1420_vm3, %v10756_v9, %v1524_v25  ;;  %v7585_v31 = vpack.c.b16 %v2385_v20, %v2384_v35  ;;  %v2547_v29 = vunpack.c.l.b16 %v1943_v58 }
 0x324   :  { %v1686_v53 = vpack.c.bf16 %v1525_v63, %v1525_v63  ;;  %v1944_v40 = vpack.c.bf16 %v1737_v3, %v1737_v3  ;;  %v1739_v15 = vsel %vm1709_vm4, %v10758_v62, %v1738_v21  ;;  %v10760_v47 = vrot.slane %v10759_v22, 1  ;;  %v7605_v63 = vld [vmem:[#allocation2 + $0x250] sm:$0x3]  ;;  %v7607_v21 = vpop.f32.mrf.mxu3 }
 0x325   :  { %10757 = vst [vmem:[#allocation93_spill] sm:$0xff] %v7585_v31  ;;  %v10762_v2 = vrot.slane %v10761_v42, 1  ;;  %v1529_v25 = vrot.slane %v7579_v10, 1  ;;  %v10764_v35 = vrot.slane %v10763_v30, 2  ;;  %v10766_v58 = vrot.slane %v10765_v57, 2 }
 0x326   :  { %v7603_v26 = vpack.c.b16 %v2547_v29, %v2546_v24  ;;  %v2387_v43 = vunpack.c.l.b16 %v1686_v53  ;;  %v1945_v3 = vpack.c.bf16 %v1739_v15, %v1739_v15  ;;  %v2548_v9 = vunpack.c.l.b16 %v1944_v40  ;;  %10768 = vst [vmem:[#allocation30_spill] sm:$0xff] %v7605_v63  ;;  %v10773_v29 = vld [vmem:[#allocation17_spill] sm:$0xff]  ;;  %v10775_v15 = vld [vmem:[#allocation16_spill] sm:$0xff] }
 0x327   :  { %3521 = vmatmul.bf16.gmra.mxu2 %v7251_v11  ;;  %v1528_v32 = vsel %vm1420_vm3, %v10762_v2, %v10760_v47  ;;  %v1742_v20 = vsel %vm1709_vm4, %v10766_v58, %v10764_v35  ;;  %10769 = vst [vmem:[#allocation34_spill] sm:$0xff] %v7607_v21  ;;  %v10770_v62 = vmov %v10760_v47  ;;  %v10771_v11 = vld [vmem:[#allocation37_spill] sm:$0xff]  ;;  %v10774_v53 = vrot.slane %v10773_v29, 1  ;;  %v10777_v21 = vld [vmem:[#allocation59_spill] sm:$0xff] }
 0x328   :  { %10767 = vst [vmem:[#allocation31_spill] sm:$0xff] %v7603_v26  ;;  %v1530_v47 = vsel %vm1420_vm3, %v10770_v62, %v1529_v25  ;;  %v1687_v2 = vpack.c.bf16 %v1528_v32, %v1528_v32  ;;  %v1743_v57 = vrot.slane %v10771_v11, 2  ;;  %v1946_v31 = vpack.c.bf16 %v1742_v20, %v1742_v20  ;;  %v5975_v26 = vld [vmem:[#allocation9 + $0x98] sm:$0xff]  ;;  %3864 = vmatmul.bf16.gmra.mxu0 %v10777_v21 }
 0x329   :  { %v7613_v35 = vpack.c.b16 %v2387_v43, %v2386_v6  ;;  %v2549_v58 = vunpack.c.l.b16 %v1945_v3  ;;  %v1688_v24 = vpack.c.bf16 %v1530_v47, %v1530_v47  ;;  %v10776_v40 = vrot.slane %v10775_v15, 1  ;;  %v7627_v47 = vld [vmem:[#allocation2 + $0x268] sm:$0x3]  ;;  %3656 = vmatpush.bf16.msrb.mxu3 %v5975_v26 }
 0x32a   :  { %v2388_v44 = vunpack.c.l.b16 %v1687_v2  ;;  %v10778_v25 = vrot.slane %v10763_v30, 2  ;;  %v2550_v11 = vunpack.c.l.b16 %v1946_v31  ;;  %v1534_v6 = vrot.slane %v7605_v63, 1  ;;  %v10780_v2 = vld [vmem:[#allocation39_spill] sm:$0xff]  ;;  %v10782_v30 = vld [vmem:[#allocation38_spill] sm:$0xff] }
 0x32b   :  { %10772 = vst [vmem:[#allocation33_spill] sm:$0xff] %v7613_v35  ;;  %v1533_v8 = vsel %vm1420_vm3, %v10776_v40, %v10774_v53  ;;  %v7625_v20 = vpack.c.b16 %v2549_v58, %v2548_v9  ;;  %v2389_v43 = vunpack.c.l.b16 %v1688_v24  ;;  %v10781_v35 = vrot.slane %v10780_v2, 2  ;;  %v10785_v9 = vld [vmem:[#allocation42_spill] sm:$0xff]  ;;  %v10787_v24 = vld [vmem:[#allocation41_spill] sm:$0xff] }
 0x32c   :  { %v1744_v32 = vsel %vm1709_vm4, %v10778_v25, %v1743_v57  ;;  %v1689_v62 = vpack.c.bf16 %v1533_v8, %v1533_v8  ;;  %v1535_v40 = vsel %vm1420_vm3, %v10774_v53, %v1534_v6  ;;  %v10783_v56 = vrot.slane %v10782_v30, 2  ;;  %v10784_v57 = vld [vmem:[#allocation40_spill] sm:$0xff] }
 0x32d   :  { %10779 = vst [vmem:[#allocation37_spill] sm:$0xff] %v7625_v20  ;;  %v1947_v3 = vpack.c.bf16 %v1744_v32, %v1744_v32  ;;  %v1748_v25 = vrot.slane %v10784_v57, 2  ;;  %v10786_v58 = vrot.slane %v10785_v9, 1  ;;  %v10788_v32 = vrot.slane %v10787_v24, 1  ;;  %v10792_v24 = vld [vmem:[#allocation45_spill] sm:$0xff] }
 0x32e   :  { %v1747_v31 = vsel %vm1709_vm4, %v10783_v56, %v10781_v35  ;;  %v7643_v20 = vpack.c.b16 %v2389_v43, %v2388_v44  ;;  %v1690_v54 = vpack.c.bf16 %v1535_v40, %v1535_v40  ;;  %v2390_v14 = vunpack.c.l.b16 %v1689_v62 }
 0x32f   :  { %v1538_v8 = vsel %vm1420_vm3, %v10788_v32, %v10786_v58  ;;  %v2551_v26 = vunpack.c.l.b16 %v1947_v3  ;;  %v10790_v6 = vmov %v10781_v35  ;;  %v1948_v30 = vpack.c.bf16 %v1747_v31, %v1747_v31  ;;  %v10794_v58 = vld [vmem:[#allocation44_spill] sm:$0xff] }
 0x330   :  { %10789 = vst [vmem:[#allocation39_spill] sm:$0xff] %v7643_v20  ;;  %v1749_v53 = vsel %vm1709_vm4, %v10790_v6, %v1748_v25  ;;  %v1539_v56 = vrot.slane %v7627_v47, 1  ;;  %v1691_v35 = vpack.c.bf16 %v1538_v8, %v1538_v8  ;;  %v2391_v63 = vunpack.c.l.b16 %v1690_v54  ;;  %v7656_v3 = vld [vmem:[#allocation2 + $0x280] sm:$0x3]  ;;  %v7665_v6 = vpop.f32.mrf.mxu3 }
 0x331   :  { %v7649_v57 = vpack.c.b16 %v2551_v26, %v2550_v11  ;;  %v1949_v15 = vpack.c.bf16 %v1749_v53, %v1749_v53  ;;  %v10793_v29 = vrot.slane %v10792_v24, 2  ;;  %v10795_v44 = vrot.slane %v10794_v58, 2  ;;  %10796 = vst [vmem:[#allocation40_spill] sm:$0xff] %v7656_v3  ;;  %3357 = vmatmul.bf16.gmra.mxu1 %v7253_v13  ;;  %v10798_v11 = vld [vmem:[#allocation49_spill] sm:$0xff]  ;;  %v10804_v13 = vld [vmem:[#allocation48_spill] sm:$0xff] }
 0x332   :  { %v2552_v62 = vunpack.c.l.b16 %v1948_v30  ;;  %v10797_v40 = vrot.slane %v10785_v9, 1  ;;  %v2392_v31 = vunpack.c.l.b16 %v1691_v35  ;;  %v1753_v25 = vrot.slane %v10798_v11, 2  ;;  %10800 = vst [vmem:[#allocation45_spill] sm:$0xff] %v7665_v6  ;;  %v10802_v30 = vld [vmem:[#allocation50_spill] sm:$0xff] }
 0x333   :  { %10791 = vst [vmem:[#allocation38_spill] sm:$0xff] %v7649_v57  ;;  %v1752_v43 = vsel %vm1709_vm4, %v10795_v44, %v10793_v29  ;;  %v7663_v54 = vpack.c.b16 %v2391_v63, %v2390_v14  ;;  %v2553_v32 = vunpack.c.l.b16 %v1949_v15  ;;  %v5991_v29 = vld [vmem:[#allocation9 + $0x118] sm:$0xff]  ;;  %v10801_v53 = vrot.slane %v10792_v24, 2  ;;  %v10806_v14 = vld [vmem:[#allocation54_spill] sm:$0xff]  ;;  %v10808_v15 = vld [vmem:[#allocation53_spill] sm:$0xff] }
 0x334   :  { %v1540_v2 = vsel %vm1420_vm3, %v10797_v40, %v1539_v56  ;;  %v1950_v26 = vpack.c.bf16 %v1752_v43, %v1752_v43  ;;  %v10803_v44 = vrot.slane %v10802_v30, 1  ;;  %v10805_v20 = vrot.slane %v10804_v13, 1  ;;  %3994 = vmatpush.bf16.msrb.mxu1 %v5991_v29 }
 0x335   :  { %10799 = vst [vmem:[#allocation42_spill] sm:$0xff] %v7663_v54  ;;  %v1692_v8 = vpack.c.bf16 %v1540_v2, %v1540_v2  ;;  %v1754_v58 = vsel %vm1709_vm4, %v10801_v53, %v1753_v25  ;;  %v1544_v35 = vrot.slane %v7656_v3, 1  ;;  %v10807_v63 = vrot.slane %v10806_v14, 2  ;;  %v7683_v25 = vld [vmem:[#allocation2 + $0x298] sm:$0x3]  ;;  %v10813_v54 = vld [vmem:[#allocation56_spill] sm:$0xff] }
 0x336   :  { %v1543_v56 = vsel %vm1420_vm3, %v10805_v20, %v10803_v44  ;;  %v10809_v40 = vrot.slane %v10808_v15, 2  ;;  %v7681_v2 = vpack.c.b16 %v2553_v32, %v2552_v62  ;;  %v1951_v24 = vpack.c.bf16 %v1754_v58, %v1754_v58  ;;  %10811 = vst [vmem:[#allocation49_spill] sm:$0xff] %v7683_v25  ;;  %v10815_v62 = vld [vmem:[#allocation58_spill] sm:$0xff] }
 0x337   :  { %v2393_v11 = vunpack.c.l.b16 %v1692_v8  ;;  %v2554_v6 = vunpack.c.l.b16 %v1950_v26  ;;  %v10812_v53 = vmov %v10803_v44  ;;  %v1693_v44 = vpack.c.bf16 %v1543_v56, %v1543_v56  ;;  %v10817_v8 = vld [vmem:[#allocation57_spill] sm:$0xff] }
 0x338   :  { %v1757_v43 = vsel %vm1709_vm4, %v10809_v40, %v10807_v63  ;;  %10810 = vst [vmem:[#allocation44_spill] sm:$0xff] %v7681_v2  ;;  %v1545_v20 = vsel %vm1420_vm3, %v10812_v53, %v1544_v35  ;;  %v1758_v57 = vrot.slane %v10813_v54, 2  ;;  %v2555_v15 = vunpack.c.l.b16 %v1951_v24  ;;  %v10819_v40 = vld [vmem:[#allocation62_spill] sm:$0xff] }
 0x339   :  { %v1952_v3 = vpack.c.bf16 %v1757_v43, %v1757_v43  ;;  %v7689_v13 = vpack.c.b16 %v2393_v11, %v2392_v31  ;;  %v1694_v63 = vpack.c.bf16 %v1545_v20, %v1545_v20  ;;  %v10816_v32 = vrot.slane %v10815_v62, 1  ;;  %3526 = vmatmul.bf16.gmra.mxu2 %v10819_v40  ;;  %v7701_v31 = vpop.f32.mrf.mxu0  ;;  %v10822_v43 = vld [vmem:[#allocation68_spill] sm:$0xff] }
 0x33a   :  { %v10818_v58 = vrot.slane %v10817_v8, 1  ;;  %v2394_v29 = vunpack.c.l.b16 %v1693_v44  ;;  %v10820_v2 = vrot.slane %v10806_v14, 2  ;;  %v1549_v54 = vrot.slane %v7683_v25, 1  ;;  %10821 = vst [vmem:[#allocation54_spill] sm:$0xff] %v7701_v31  ;;  %3447 = vmatmul.bf16.gmra.mxu3 %v10822_v43  ;;  %v10829_v31 = vld [vmem:[#allocation64_spill] sm:$0xff] }
 0x33b   :  { %10814 = vst [vmem:[#allocation50_spill] sm:$0xff] %v7689_v13  ;;  %v2556_v35 = vunpack.c.l.b16 %v1952_v3  ;;  %v7704_v11 = vpack.c.b16 %v2555_v15, %v2554_v6  ;;  %v2395_v24 = vunpack.c.l.b16 %v1694_v63  ;;  %v10824_v44 = vrot.slane %v10815_v62, 1  ;;  %v10827_v3 = vld [vmem:[#allocation60_spill] sm:$0xff]  ;;  %v10831_v15 = vld [vmem:[#allocation65_spill] sm:$0xff] }
 0x33c   :  { %v1548_v26 = vsel %vm1420_vm3, %v10818_v58, %v10816_v32  ;;  %v1759_v56 = vsel %vm1709_vm4, %v10820_v2, %v1758_v57  ;;  %v7706_v32 = vld [vmem:[#allocation2 + $0x2b0] sm:$0x3]  ;;  %v10825_v58 = vld [vmem:[#allocation61_spill] sm:$0xff]  ;;  %v10828_v2 = vrot.slane %v10827_v3, 2  ;;  %v1763_v40 = vrot.slane %v10829_v31, 2 }
 0x33d   :  { %10823 = vst [vmem:[#allocation53_spill] sm:$0xff] %v7704_v11  ;;  %v1953_v53 = vpack.c.bf16 %v1759_v56, %v1759_v56  ;;  %v1695_v20 = vpack.c.bf16 %v1548_v26, %v1548_v26  ;;  %v1550_v14 = vsel %vm1420_vm3, %v10824_v44, %v1549_v54  ;;  %v10826_v57 = vrot.slane %v10825_v58, 2  ;;  %v10834_v54 = vld [vmem:[#allocation67_spill] sm:$0xff]  ;;  %v7725_v44 = vpop.f32.mrf.mxu3 }
 0x33e   :  { %v10830_v6 = vrot.slane %v7309_v28, 1  ;;  %v10832_v63 = vrot.slane %v10831_v15, 1  ;;  %v7722_v56 = vpack.c.b16 %v2395_v24, %v2394_v29  ;;  %v1696_v11 = vpack.c.bf16 %v1550_v14, %v1550_v14  ;;  %3869 = vmatmul.bf16.gmra.mxu0 %v10834_v54  ;;  %10835 = vst [vmem:[#allocation58_spill] sm:$0xff] %v7725_v44  ;;  %v7738_v14 = vld [vmem:[#allocation2 + $0x2c8] sm:$0x3] }
 0x33f   :  { %v1762_v13 = vsel %vm1709_vm4, %v10828_v2, %v10826_v57  ;;  %v2557_v43 = vunpack.c.l.b16 %v1953_v53  ;;  %v2396_v25 = vunpack.c.l.b16 %v1695_v20  ;;  %v10836_v3 = vmov %v10826_v57  ;;  %10840 = vst [vmem:[#allocation60_spill] sm:$0xff] %v7738_v14 }
 0x340   :  { %v1553_v26 = vsel %vm1420_vm3, %v10832_v63, %v10830_v6  ;;  %10833 = vst [vmem:[#allocation56_spill] sm:$0xff] %v7722_v56  ;;  %v1764_v57 = vsel %vm1709_vm4, %v10836_v3, %v1763_v40  ;;  %v1954_v31 = vpack.c.bf16 %v1762_v13, %v1762_v13  ;;  %v1554_v2 = vrot.slane %v7706_v32, 1  ;;  %v10842_v3 = vld [vmem:[#allocation69_spill] sm:$0xff]  ;;  %v10849_v56 = vld [vmem:[#allocation71_spill] sm:$0xff] }
 0x341   :  { %v1697_v8 = vpack.c.bf16 %v1553_v26, %v1553_v26  ;;  %v7731_v15 = vpack.c.b16 %v2557_v43, %v2556_v35  ;;  %v2397_v6 = vunpack.c.l.b16 %v1696_v11  ;;  %v1955_v29 = vpack.c.bf16 %v1764_v57, %v1764_v57  ;;  %v7744_v35 = vpop.f32.mrf.mxu1  ;;  %3362 = vmatmul.bf16.gmra.mxu1 %v10777_v21 }
 0x342   :  { %v10838_v24 = vrot.slane %v7332_v45, 2  ;;  %v10839_v53 = vrot.slane %v7330_v61, 2  ;;  %v2558_v63 = vunpack.c.l.b16 %v1954_v31  ;;  %v10841_v58 = vrot.slane %v7309_v28, 1 }
 0x343   :  { %10837 = vst [vmem:[#allocation61_spill] sm:$0xff] %v7731_v15  ;;  %v2398_v40 = vunpack.c.l.b16 %v1697_v8  ;;  %v1768_v26 = vrot.slane %v10842_v3, 2  ;;  %v7746_v43 = vpack.c.b16 %v2397_v6, %v2396_v25  ;;  %v2559_v11 = vunpack.c.l.b16 %v1955_v29  ;;  %v7762_v29 = vpop.f32.mrf.mxu0  ;;  %v10853_v15 = vld [vmem:[#allocation77_spill] sm:$0xff] }
 0x344   :  { %v1767_v20 = vsel %vm1709_vm4, %v10839_v53, %v10838_v24  ;;  %v1555_v13 = vsel %vm1420_vm3, %v10841_v58, %v1554_v2  ;;  %v10844_v61 = vmov %v10838_v24  ;;  %v10845_v31 = vrot.slane %v7342_v37, 1  ;;  %v10847_v58 = vld [vmem:[#allocation72_spill] sm:$0xff]  ;;  %10851 = vst [vmem:[#allocation69_spill] sm:$0xff] %v7762_v29  ;;  %v5974_v29 = vld [vmem:[#allocation9 + $0x90] sm:$0xff] }
 0x345   :  { %10843 = vst [vmem:[#allocation64_spill] sm:$0xff] %v7746_v43  ;;  %v1698_v57 = vpack.c.bf16 %v1555_v13, %v1555_v13  ;;  %v1956_v44 = vpack.c.bf16 %v1767_v20, %v1767_v20  ;;  %v1769_v24 = vsel %vm1709_vm4, %v10844_v61, %v1768_v26  ;;  %v10846_v53 = vrot.slane %v7340_v12, 1  ;;  %v7766_v61 = vld [vmem:[#allocation2 + $0x2e0] sm:$0x3]  ;;  %v7782_v21 = vpop.f32.mrf.mxu3  ;;  %3657 = vmatpush.bf16.msrb.mxu3 %v5974_v29 }
 0x346   :  { %v1559_v8 = vrot.slane %v7738_v14, 1  ;;  %v10848_v3 = vrot.slane %v10847_v58, 2  ;;  %v10850_v25 = vrot.slane %v10849_v56, 2  ;;  %v7764_v20 = vpack.c.b16 %v2559_v11, %v2558_v63  ;;  %10858 = vst [vmem:[#allocation94_spill] sm:$0xff] %v7782_v21  ;;  %v7808_v29 = vld [vmem:[#allocation2 + $0x160] sm:$0x3] }
 0x347   :  { %v1558_v2 = vsel %vm1420_vm3, %v10846_v53, %v10845_v31  ;;  %v2399_v45 = vunpack.c.l.b16 %v1698_v57  ;;  %v1957_v13 = vpack.c.bf16 %v1769_v24, %v1769_v24  ;;  %v2560_v26 = vunpack.c.l.b16 %v1956_v44 }
 0x348   :  { %v1772_v6 = vsel %vm1709_vm4, %v10850_v25, %v10848_v3  ;;  %10852 = vst [vmem:[#allocation72_spill] sm:$0xff] %v7764_v20  ;;  %v1560_v53 = vsel %vm1420_vm3, %v10845_v31, %v1559_v8  ;;  %v1699_v43 = vpack.c.bf16 %v1558_v2, %v1558_v2  ;;  %v1773_v56 = vrot.slane %v10853_v15, 2  ;;  %v7773_v3 = vld [vmem:[#allocation2 + $0x148] sm:$0x3] }
 0x349   :  { %v1958_v14 = vpack.c.bf16 %v1772_v6, %v1772_v6  ;;  %10854 = vst [vmem:[#allocation71_spill] sm:$0xff] %v7773_v3  ;;  %v7775_v25 = vpack.c.b16 %v2399_v45, %v2398_v40  ;;  %v2561_v63 = vunpack.c.l.b16 %v1957_v13  ;;  %v1700_v11 = vpack.c.bf16 %v1560_v53, %v1560_v53 }
 0x34a   :  { %v10856_v44 = vrot.slane %v7375_v18, 1  ;;  %v10857_v57 = vrot.slane %v7373_v48, 1  ;;  %v2400_v8 = vunpack.c.l.b16 %v1699_v43  ;;  %v10859_v2 = vrot.slane %v10847_v58, 2 }
 0x34b   :  { %10855 = vst [vmem:[#allocation77_spill] sm:$0xff] %v7775_v25  ;;  %v2562_v6 = vunpack.c.l.b16 %v1958_v14  ;;  %v1564_v40 = vrot.slane %v7766_v61, 1  ;;  %v7788_v45 = vpack.c.b16 %v2561_v63, %v2560_v26  ;;  %v2401_v13 = vunpack.c.l.b16 %v1700_v11  ;;  %v7790_v25 = vld [vmem:[#allocation2 + $0x2f8] sm:$0x3] }
 0x34c   :  { %v1563_v24 = vsel %vm1420_vm3, %v10857_v57, %v10856_v44  ;;  %v1774_v15 = vsel %vm1709_vm4, %v10859_v2, %v1773_v56  ;;  %v10861_v43 = vrot.slane %v7409_v0, 2  ;;  %v10862_v58 = vrot.slane %v7407_v51, 2  ;;  %v10866_v51 = vld [vmem:[#allocation66_spill] sm:$0xff] }
 0x34d   :  { %10860 = vst [vmem:[#allocation95_spill] sm:$0xff] %v7788_v45  ;;  %v1959_v31 = vpack.c.bf16 %v1774_v15, %v1774_v15  ;;  %v1701_v53 = vpack.c.bf16 %v1563_v24, %v1563_v24  ;;  %v1565_v57 = vsel %vm1420_vm3, %v10856_v44, %v1564_v40  ;;  %v1778_v56 = vrot.slane %v7773_v3, 2  ;;  %v7806_v24 = vpop.f32.mrf.mxu1  ;;  %3531 = vmatmul.bf16.gmra.mxu2 %v10866_v51 }
 0x34e   :  { %v1777_v14 = vsel %vm1709_vm4, %v10862_v58, %v10861_v43  ;;  %v10863_v26 = vrot.slane %v7393_v38, 1  ;;  %v10864_v63 = vrot.slane %v7391_v60, 1  ;;  %v7810_v2 = vpack.c.b16 %v2401_v13, %v2400_v8 }
 0x34f   :  { %v2563_v15 = vunpack.c.l.b16 %v1959_v31  ;;  %v1702_v40 = vpack.c.bf16 %v1565_v57, %v1565_v57  ;;  %v2402_v44 = vunpack.c.l.b16 %v1701_v53  ;;  %v1779_v58 = vsel %vm1709_vm4, %v10861_v43, %v1778_v56  ;;  %v7827_v57 = vld [vmem:[#allocation2 + $0x310] sm:$0x3] }
 0x350   :  { %v1568_v11 = vsel %vm1420_vm3, %v10864_v63, %v10863_v26  ;;  %10865 = vst [vmem:[#allocation96_spill] sm:$0xff] %v7810_v2  ;;  %v1960_v21 = vpack.c.bf16 %v1777_v14, %v1777_v14  ;;  %v1569_v45 = vrot.slane %v7790_v25, 1  ;;  %v7817_v26 = vpop.f32.mrf.mxu0  ;;  %v10868_v63 = vld [vmem:[#allocation74_spill] sm:$0xff]  ;;  %v1961_v13 = vpack.c.bf16 %v1779_v58, %v1779_v58 }
 0x351   :  { %v1703_v20 = vpack.c.bf16 %v1568_v11, %v1568_v11  ;;  %10867 = vst [vmem:[#allocation66_spill] sm:$0xff] %v7817_v26  ;;  %3452 = vmatmul.bf16.gmra.mxu3 %v10868_v63  ;;  %v7820_v3 = vpack.c.b16 %v2563_v15, %v2562_v6  ;;  %v2403_v8 = vunpack.c.l.b16 %v1702_v40  ;;  %v10870_v31 = vrot.slane %v7443_v7, 2  ;;  %v3492_v6 = vpop.f32.mrf.mxu2  ;;  %v7833_v15 = vld [vmem:[#allocation2 + $0x178] sm:$0x3]  ;;  %3367 = vmatmul.bf16.gmra.mxu1 %v10834_v54 }
 0x352   :  { %v10871_v53 = vrot.slane %v7441_v59, 2  ;;  %v2564_v14 = vunpack.c.l.b16 %v1960_v21  ;;  %v10872_v56 = vrot.slane %v7393_v38, 1  ;;  %v1783_v26 = vrot.slane %v7808_v29, 2  ;;  %v7841_v21 = vpop.f32.mrf.mxu3 }
 0x353   :  { %10869 = vst [vmem:[#allocation97_spill] sm:$0xff] %v7820_v3  ;;  %v2404_v43 = vunpack.c.l.b16 %v1703_v20  ;;  %v7835_v40 = vpack.c.b16 %v2403_v8, %v2402_v44  ;;  %v2565_v58 = vunpack.c.l.b16 %v1961_v13  ;;  %v5990_v3 = vld [vmem:[#allocation9 + $0x110] sm:$0xff]  ;;  %v10876_v20 = vrot.slane %v7443_v7, 2 }
 0x354   :  { %v1782_v0 = vsel %vm1709_vm4, %v10871_v53, %v10870_v31  ;;  %v1570_v11 = vsel %vm1420_vm3, %v10872_v56, %v1569_v45  ;;  %v7838_v31 = vadd.f32 %v3492_v6, %v7744_v35  ;;  %v10874_v53 = vld [vmem:[#allocation70_spill] sm:$0xff]  ;;  %10875 = vst [vmem:[#allocation99_spill] sm:$0xff] %v7841_v21  ;;  %v10877_v56 = vrot.slane %v7453_v5, 1  ;;  %3995 = vmatpush.bf16.msrb.mxu1 %v5990_v3 }
 0x355   :  { %10873 = vst [vmem:[#allocation98_spill] sm:$0xff] %v7835_v40  ;;  %v1704_v2 = vpack.c.bf16 %v1570_v11, %v1570_v11  ;;  %v1962_v59 = vpack.c.bf16 %v1782_v0, %v1782_v0  ;;  %3874 = vmatmul.bf16.gmra.mxu0 %v10874_v53  ;;  %v1784_v45 = vsel %vm1709_vm4, %v10876_v20, %v1783_v26  ;;  %v10878_v44 = vrot.slane %v7445_v19, 1  ;;  %v7854_v40 = vld [vmem:[#allocation2 + $0x190] sm:$0x3] }
 0x356   :  { %v1574_v13 = vrot.slane %v7827_v57, 1  ;;  %v7852_v0 = vpack.c.b16 %v2565_v58, %v2564_v14  ;;  %v1963_v11 = vpack.c.bf16 %v1784_v45, %v1784_v45  ;;  %v10880_v7 = vmov %v10877_v56  ;;  %v7865_v58 = vpop.f32.mrf.mxu1 }
 0x357   :  { %v1573_v8 = vsel %vm1420_vm3, %v10878_v44, %v10877_v56  ;;  %v2405_v35 = vunpack.c.l.b16 %v1704_v2  ;;  %v2566_v6 = vunpack.c.l.b16 %v1962_v59  ;;  %v10881_v21 = vrot.slane %v7457_v16, 2  ;;  %v7869_v44 = vld [vmem:[#allocation2 + $0x328] sm:$0x3] }
 0x358   :  { %10879 = vst [vmem:[#allocation100_spill] sm:$0xff] %v7852_v0  ;;  %v1575_v26 = vsel %vm1420_vm3, %v10880_v7, %v1574_v13  ;;  %v1705_v20 = vpack.c.bf16 %v1573_v8, %v1573_v8  ;;  %v10882_v63 = vrot.slane %v7455_v55, 2  ;;  %v1788_v14 = vrot.slane %v7833_v15, 2 }
 0x359   :  { %v7867_v2 = vpack.c.b16 %v2405_v35, %v2404_v43  ;;  %v2567_v59 = vunpack.c.l.b16 %v1963_v11  ;;  %v1706_v45 = vpack.c.bf16 %v1575_v26, %v1575_v26  ;;  %v10884_v8 = vmov %v10881_v21  ;;  %v7880_v43 = vpop.f32.mrf.mxu0 }
 0x35a   :  { %v1787_v56 = vsel %vm1709_vm4, %v10882_v63, %v10881_v21  ;;  %v2406_v0 = vunpack.c.l.b16 %v1705_v20  ;;  %v1789_v13 = vsel %vm1709_vm4, %v10884_v8, %v1788_v14  ;;  %v10885_v55 = vrot.slane %v7480_v27, 1  ;;  %10887 = vst [vmem:[#allocation102_spill] sm:$0xff] %v7880_v43 }
 0x35b   :  { %10883 = vst [vmem:[#allocation101_spill] sm:$0xff] %v7867_v2  ;;  %v1964_v3 = vpack.c.bf16 %v1787_v56, %v1787_v56  ;;  %v10886_v63 = vrot.slane %v7477_v23, 1  ;;  %v2011_v7 = vrot.slane %v7854_v40, 1  ;;  %v7882_v35 = vpack.c.b16 %v2567_v59, %v2566_v6  ;;  %v3494_v6 = vpop.f32.mrf.mxu2  ;;  %v7899_v2 = vpop.f32.mrf.mxu3 }
 0x35c   :  { %v2407_v11 = vunpack.c.l.b16 %v1706_v45  ;;  %v1965_v26 = vpack.c.bf16 %v1789_v13, %v1789_v13  ;;  %v10889_v16 = vmov %v10885_v55  ;;  %v10890_v8 = vrot.slane %v7469_v50, 1  ;;  %10893 = vst [vmem:[#allocation105_spill] sm:$0xff] %v7899_v2 }
 0x35d   :  { %v2010_v21 = vsel %vm1420_vm3, %v10886_v63, %v10885_v55  ;;  %10888 = vst [vmem:[#allocation103_spill] sm:$0xff] %v7882_v35  ;;  %v2568_v56 = vunpack.c.l.b16 %v1964_v3  ;;  %v2012_v20 = vsel %vm1420_vm3, %v10889_v16, %v2011_v7  ;;  %v10891_v55 = vrot.slane %v7462_v39, 1  ;;  %v7907_v35 = vld [vmem:[#allocation2 + $0x338] sm:$0xff] }
 0x35e   :  { %v2022_v14 = vpack.c.bf16 %v2010_v21, %v2010_v21  ;;  %v1579_v43 = vrot.slane %v7869_v44, 1  ;;  %v7894_v59 = vpack.c.b16 %v2407_v11, %v2406_v0  ;;  %v2569_v45 = vunpack.c.l.b16 %v1965_v26  ;;  %v7915_v21 = vpop.f32.mrf.mxu1 }
 0x35f   :  { %v1578_v63 = vsel %vm1420_vm3, %v10891_v55, %v10890_v8  ;;  %v2023_v3 = vpack.c.bf16 %v2012_v20, %v2012_v20  ;;  %v7897_v54 = vadd.f32 %v3494_v6, %v7806_v24  ;;  %v10894_v16 = vmov %v10890_v8  ;;  %v7905_v55 = vld [vmem:[#allocation2 + $0x330] sm:$0xff] }
 0x360   :  { %10892 = vst [vmem:[#allocation104_spill] sm:$0xff] %v7894_v59  ;;  %v1707_v13 = vpack.c.bf16 %v1578_v63, %v1578_v63  ;;  %v2682_v7 = vunpack.c.l.b16 %v2022_v14  ;;  %v1580_v8 = vsel %vm1420_vm3, %v10894_v16, %v1579_v43  ;;  %v7909_v0 = vpack.c.b16 %v2569_v45, %v2568_v56  ;;  %v10897_v45 = vld [vmem:[#allocation73_spill] sm:$0xff]  ;;  %v10904_v56 = vld [vmem:[#allocation78_spill] sm:$0xff] }
 0x361   :  { %v2683_v11 = vunpack.c.l.b16 %v2023_v3  ;;  %v1708_v26 = vpack.c.bf16 %v1580_v8, %v1580_v8  ;;  %3536 = vmatmul.bf16.gmra.mxu2 %v10897_v45  ;;  %v10899_v8 = vrot.slane %v6973_v49, 2  ;;  %v1798_v14 = vrot.slane %v7471_v34, 2  ;;  %v7934_v24 = vpop.f32.mrf.mxu0  ;;  %3457 = vmatmul.bf16.gmra.mxu3 %v10904_v56 }
 0x362   :  { %10895 = vst [vmem:[#allocation106_spill] sm:$0xff] %v7909_v0  ;;  %v2408_v20 = vunpack.c.l.b16 %v1707_v13  ;;  %v10898_v13 = vrot.slane %v6975_v52, 2  ;;  %3372 = vmatmul.bf16.gmra.mxu1 %v10874_v53 }
 0x363   :  { %v7917_v43 = vpack.c.b16 %v2683_v11, %v2682_v7  ;;  %v2409_v16 = vunpack.c.l.b16 %v1708_v26  ;;  %v10900_v7 = vrot.slane %v7000_v17, 2  ;;  %v10901_v11 = vld [vmem:[#allocation23_spill] sm:$0xff]  ;;  %10903 = vst [vmem:[#allocation73_spill] sm:$0xff] %v7934_v24  ;;  %v1808_v24 = vrot.slane %v7528_v41, 2 }
 0x364   :  { %v1797_v6 = vsel %vm1709_vm4, %v10899_v8, %v10898_v13  ;;  %v10902_v26 = vrot.slane %v10901_v11, 2  ;;  %v10907_v34 = vmov %v10898_v13  ;;  %v10908_v11 = vrot.slane %v7047_v46, 2 }
 0x365   :  { %10896 = vst [vmem:[#allocation107_spill] sm:$0xff] %v7917_v43  ;;  %v7937_v63 = vpack.c.b16 %v2409_v16, %v2408_v20  ;;  %v1968_v3 = vpack.c.bf16 %v1797_v6, %v1797_v6  ;;  %v10906_v43 = vld [vmem:[#allocation87_spill] sm:$0xff]  ;;  %v1799_v8 = vsel %vm1709_vm4, %v10907_v34, %v1798_v14  ;;  %v3497_v20 = vpop.f32.mrf.mxu2  ;;  %v10911_v14 = vld [vmem:[#allocation76_spill] sm:$0xff]  ;;  %v7957_v34 = vpop.f32.mrf.mxu3  ;;  %v10916_v46 = vrot.slane %v10761_v42, 2 }
 0x366   :  { %v1802_v2 = vsel %vm1709_vm4, %v10902_v26, %v10900_v7  ;;  %v1803_v59 = vrot.slane %v10906_v43, 2  ;;  %v10909_v7 = vrot.slane %v7045_v4, 2  ;;  %v1969_v16 = vpack.c.bf16 %v1799_v8, %v1799_v8  ;;  %3879 = vmatmul.bf16.gmra.mxu0 %v10911_v14  ;;  %10912 = vst [vmem:[#allocation87_spill] sm:$0xff] %v7957_v34 }
 0x367   :  { %10905 = vst [vmem:[#allocation23_spill] sm:$0xff] %v7937_v63  ;;  %v1970_v49 = vpack.c.bf16 %v1802_v2, %v1802_v2  ;;  %v2572_v6 = vunpack.c.l.b16 %v1968_v3  ;;  %v10910_v43 = vrot.slane %v7000_v17, 2  ;;  %v7954_v52 = vadd.f32 %v3497_v20, %v7865_v58 }
 0x368   :  { %v1807_v26 = vsel %vm1709_vm4, %v10909_v7, %v10908_v11  ;;  %v1809_v41 = vsel %vm1709_vm4, %v10908_v11, %v1808_v24  ;;  %v2573_v8 = vunpack.c.l.b16 %v1969_v16  ;;  %v10913_v17 = vrot.slane %v7087_v36, 2  ;;  %v10923_v36 = vld [vmem:[#allocation16_spill] sm:$0xff] }
 0x369   :  { %v1804_v2 = vsel %vm1709_vm4, %v10910_v43, %v1803_v59  ;;  %v2574_v13 = vunpack.c.l.b16 %v1970_v49  ;;  %v1972_v7 = vpack.c.bf16 %v1807_v26, %v1807_v26  ;;  %v1973_v3 = vpack.c.bf16 %v1809_v41, %v1809_v41  ;;  %v7973_v26 = vpop.f32.mrf.mxu1 }
 0x36a   :  { %v1971_v4 = vpack.c.bf16 %v1804_v2, %v1804_v2  ;;  %v10914_v59 = vrot.slane %v7085_v33, 2  ;;  %v1813_v58 = vrot.slane %v7549_v1, 2  ;;  %v10915_v2 = vrot.slane %v10759_v22, 2 }
 0x36b   :  { %v2576_v43 = vunpack.c.l.b16 %v1972_v7  ;;  %v7975_v16 = vpack.c.b16 %v2573_v8, %v2572_v6  ;;  %v2577_v11 = vunpack.c.l.b16 %v1973_v3  ;;  %v10917_v33 = vmov %v10913_v17  ;;  %v10921_v8 = vld [vmem:[#allocation17_spill] sm:$0xff] }
 0x36c   :  { %v1812_v49 = vsel %vm1709_vm4, %v10914_v59, %v10913_v17  ;;  %v2575_v20 = vunpack.c.l.b16 %v1971_v4  ;;  %v1817_v24 = vsel %vm1709_vm4, %v10916_v46, %v10915_v2  ;;  %v1814_v41 = vsel %vm1709_vm4, %v10917_v33, %v1813_v58 }
 0x36d   :  { %v1974_v63 = vpack.c.bf16 %v1812_v49, %v1812_v49  ;;  %v1818_v1 = vrot.slane %v7579_v10, 2  ;;  %v1975_v7 = vpack.c.bf16 %v1814_v41, %v1814_v41  ;;  %v1976_v59 = vpack.c.bf16 %v1817_v24, %v1817_v24  ;;  %v7983_v49 = vpop.f32.mrf.mxu0  ;;  %v10925_v10 = vld [vmem:[#allocation30_spill] sm:$0xff] }
 0x36e   :  { %v7981_v4 = vpack.c.b16 %v2575_v20, %v2574_v13  ;;  %10919 = vst [vmem:[#allocation109_spill] sm:$0xff] %v7983_v49  ;;  %v7985_v42 = vpack.c.b16 %v2577_v11, %v2576_v43  ;;  %v10922_v3 = vrot.slane %v10921_v8, 2  ;;  %v10924_v46 = vrot.slane %v10923_v36, 2  ;;  %v3499_v43 = vpop.f32.mrf.mxu2  ;;  %v8014_v8 = vpop.f32.mrf.mxu3  ;;  %v10935_v49 = vld [vmem:[#allocation40_spill] sm:$0xff] }
 0x36f   :  { %v2578_v17 = vunpack.c.l.b16 %v1974_v63  ;;  %v1819_v6 = vsel %vm1709_vm4, %v10915_v2, %v1818_v1  ;;  %v1823_v13 = vrot.slane %v10925_v10, 2  ;;  %v2579_v63 = vunpack.c.l.b16 %v1975_v7  ;;  %v10928_v1 = vld [vmem:[#allocation41_spill] sm:$0xff]  ;;  %v10931_v10 = vld [vmem:[#allocation48_spill] sm:$0xff]  ;;  %10933 = vst [vmem:[#allocation17_spill] sm:$0xff] %v8014_v8 }
 0x370   :  { %10918 = vst [vmem:[#allocation108_spill] sm:$0xff] %v7981_v4  ;;  %v1822_v58 = vsel %vm1709_vm4, %v10924_v46, %v10922_v3  ;;  %v1977_v20 = vpack.c.bf16 %v1819_v6, %v1819_v6  ;;  %v2580_v24 = vunpack.c.l.b16 %v1976_v59  ;;  %v10926_v11 = vmov %v10922_v3 }
 0x371   :  { %10920 = vst [vmem:[#allocation110_spill] sm:$0xff] %v7985_v42  ;;  %v1978_v33 = vpack.c.bf16 %v1822_v58, %v1822_v58  ;;  %v1824_v22 = vsel %vm1709_vm4, %v10926_v11, %v1823_v13  ;;  %v10927_v41 = vrot.slane %v10785_v9, 2  ;;  %v10929_v2 = vrot.slane %v10928_v1, 2  ;;  %v5973_v58 = vld [vmem:[#allocation9 + $0x88] sm:$0xff]  ;;  %v8024_v8 = vpop.f32.mrf.mxu1 }
 0x372   :  { %v1828_v3 = vrot.slane %v7627_v47, 2  ;;  %v10930_v46 = vrot.slane %v10802_v30, 2  ;;  %v10932_v7 = vrot.slane %v10931_v10, 2  ;;  %v8012_v6 = vadd.f32 %v3499_v43, %v7915_v21  ;;  %3658 = vmatpush.bf16.msrb.mxu3 %v5973_v58  ;;  %3377 = vmatmul.bf16.gmra.mxu1 %v10911_v14 }
 0x373   :  { %v1827_v36 = vsel %vm1709_vm4, %v10929_v2, %v10927_v41  ;;  %v8016_v13 = vpack.c.b16 %v2579_v63, %v2578_v17  ;;  %v2581_v11 = vunpack.c.l.b16 %v1977_v20  ;;  %v1979_v1 = vpack.c.bf16 %v1824_v22, %v1824_v22 }
 0x374   :  { %v1832_v59 = vsel %vm1709_vm4, %v10932_v7, %v10930_v46  ;;  %v2582_v53 = vunpack.c.l.b16 %v1978_v33  ;;  %v1829_v47 = vsel %vm1709_vm4, %v10927_v41, %v1828_v3  ;;  %v1980_v2 = vpack.c.bf16 %v1827_v36, %v1827_v36  ;;  %v10939_v33 = vld [vmem:[#allocation57_spill] sm:$0xff] }
 0x375   :  { %10934 = vst [vmem:[#allocation16_spill] sm:$0xff] %v8016_v13  ;;  %v1833_v10 = vrot.slane %v10935_v49, 2  ;;  %v8022_v46 = vpack.c.b16 %v2581_v11, %v2580_v24  ;;  %v2583_v21 = vunpack.c.l.b16 %v1979_v1  ;;  %v1981_v43 = vpack.c.bf16 %v1829_v47, %v1829_v47  ;;  %v10941_v49 = vld [vmem:[#allocation49_spill] sm:$0xff]  ;;  %v10942_v24 = vld [vmem:[#allocation75_spill] sm:$0xff]  ;;  %v8038_v41 = vpop.f32.mrf.mxu0 }
 0x376   :  { %v1982_v7 = vpack.c.bf16 %v1832_v59, %v1832_v59  ;;  %v2584_v17 = vunpack.c.l.b16 %v1980_v2  ;;  %v10937_v63 = vrot.slane %v10802_v30, 2  ;;  %v10938_v9 = vrot.slane %v10815_v62, 2  ;;  %3541 = vmatmul.bf16.gmra.mxu2 %v10942_v24  ;;  %10944 = vst [vmem:[#allocation48_spill] sm:$0xff] %v8038_v41  ;;  %v10945_v30 = vld [vmem:[#allocation82_spill] sm:$0xff] }
 0x377   :  { %10936 = vst [vmem:[#allocation30_spill] sm:$0xff] %v8022_v46  ;;  %v10940_v22 = vrot.slane %v10939_v33, 2  ;;  %v1838_v3 = vrot.slane %v10941_v49, 2  ;;  %v8036_v58 = vpack.c.b16 %v2583_v21, %v2582_v53  ;;  %v2585_v59 = vunpack.c.l.b16 %v1981_v43  ;;  %3462 = vmatmul.bf16.gmra.mxu3 %v10945_v30  ;;  %v3502_v49 = vpop.f32.mrf.mxu2 }
 0x378   :  { %v1834_v20 = vsel %vm1709_vm4, %v10937_v63, %v1833_v10  ;;  %v2586_v1 = vunpack.c.l.b16 %v1982_v7  ;;  %v10946_v47 = vmov %v10938_v9  ;;  %v10947_v63 = vrot.slane %v7309_v28, 2 }
 0x379   :  { %v1837_v36 = vsel %vm1709_vm4, %v10940_v22, %v10938_v9  ;;  %10943 = vst [vmem:[#allocation41_spill] sm:$0xff] %v8036_v58  ;;  %v1983_v11 = vpack.c.bf16 %v1834_v20, %v1834_v20  ;;  %v1839_v2 = vsel %vm1709_vm4, %v10946_v47, %v1838_v3  ;;  %v10948_v9 = vld [vmem:[#allocation65_spill] sm:$0xff]  ;;  %v1843_v53 = vrot.slane %v7706_v32, 2 }
 0x37a   :  { %v1984_v10 = vpack.c.bf16 %v1837_v36, %v1837_v36  ;;  %v10949_v33 = vrot.slane %v10948_v9, 2  ;;  %v8050_v21 = vpack.c.b16 %v2585_v59, %v2584_v17  ;;  %v1985_v7 = vpack.c.bf16 %v1839_v2, %v1839_v2  ;;  %v10955_v17 = vld [vmem:[#allocation79_spill] sm:$0xff]  ;;  %v8065_v59 = vpop.f32.mrf.mxu3 }
 0x37b   :  { %v2587_v43 = vunpack.c.l.b16 %v1983_v11  ;;  %v10951_v62 = vmov %v10947_v63  ;;  %v10952_v36 = vrot.slane %v7342_v37, 2  ;;  %v10953_v47 = vrot.slane %v7340_v12, 2  ;;  %3884 = vmatmul.bf16.gmra.mxu0 %v10955_v17  ;;  %10956 = vst [vmem:[#allocation57_spill] sm:$0xff] %v8065_v59  ;;  %v5989_v11 = vld [vmem:[#allocation9 + $0x108] sm:$0xff] }
 0x37c   :  { %v1842_v22 = vsel %vm1709_vm4, %v10949_v33, %v10947_v63  ;;  %10950 = vst [vmem:[#allocation40_spill] sm:$0xff] %v8050_v21  ;;  %v2588_v41 = vunpack.c.l.b16 %v1984_v10  ;;  %v1844_v3 = vsel %vm1709_vm4, %v10951_v62, %v1843_v53  ;;  %v10954_v63 = vld [vmem:[#allocation60_spill] sm:$0xff]  ;;  %v8062_v32 = vadd.f32 %v3502_v49, %v7973_v26  ;;  %3996 = vmatpush.bf16.msrb.mxu1 %v5989_v11 }
 0x37d   :  { %v1986_v20 = vpack.c.bf16 %v1842_v22, %v1842_v22  ;;  %v1847_v9 = vsel %vm1709_vm4, %v10953_v47, %v10952_v36  ;;  %v1848_v33 = vrot.slane %v10954_v63, 2  ;;  %v8067_v2 = vpack.c.b16 %v2587_v43, %v2586_v1 }
 0x37e   :  { %v2589_v28 = vunpack.c.l.b16 %v1985_v7  ;;  %v1987_v10 = vpack.c.bf16 %v1844_v3, %v1844_v3  ;;  %v10958_v53 = vmov %v10952_v36  ;;  %v1988_v62 = vpack.c.bf16 %v1847_v9, %v1847_v9  ;;  %v8080_v7 = vpop.f32.mrf.mxu1 }
 0x37f   :  { %10957 = vst [vmem:[#allocation49_spill] sm:$0xff] %v8067_v2  ;;  %v2590_v22 = vunpack.c.l.b16 %v1986_v20  ;;  %v1849_v12 = vsel %vm1709_vm4, %v10958_v53, %v1848_v33  ;;  %v10959_v36 = vrot.slane %v7375_v18, 2  ;;  %v10960_v26 = vrot.slane %v7373_v48, 2  ;;  %v11050_v2 = vld [vmem:[#allocation31_spill] sm:$0xff] }
 0x380   :  { %v8077_v47 = vpack.c.b16 %v2589_v28, %v2588_v41  ;;  %v2591_v63 = vunpack.c.l.b16 %v1987_v10  ;;  %v1989_v1 = vpack.c.bf16 %v1849_v12, %v1849_v12  ;;  %v1853_v43 = vrot.slane %v7766_v61, 2  ;;  %v8093_v10 = vpop.f32.mrf.mxu0 }
 0x381   :  { %v1852_v49 = vsel %vm1709_vm4, %v10960_v26, %v10959_v36  ;;  %v2592_v20 = vunpack.c.l.b16 %v1988_v62  ;;  %v10962_v3 = vrot.slane %v7393_v38, 2  ;;  %v10963_v9 = vrot.slane %v7391_v60, 2  ;;  %10966 = vst [vmem:[#allocation60_spill] sm:$0xff] %v8093_v10 }
 0x382   :  { %10961 = vst [vmem:[#allocation75_spill] sm:$0xff] %v8077_v47  ;;  %v1990_v37 = vpack.c.bf16 %v1852_v49, %v1852_v49  ;;  %v1858_v48 = vrot.slane %v7790_v25, 2  ;;  %v8088_v53 = vpack.c.b16 %v2591_v63, %v2590_v22  ;;  %v2593_v41 = vunpack.c.l.b16 %v1989_v1  ;;  %3382 = vmatmul.bf16.gmra.mxu1 %v10955_v17 }
 0x383   :  { %v1857_v33 = vsel %vm1709_vm4, %v10963_v9, %v10962_v3  ;;  %v10965_v11 = vmov %v10959_v36  ;;  %v10967_v36 = vmov %v10962_v3  ;;  %v10968_v26 = vrot.slane %v7453_v5, 2 }
 0x384   :  { %10964 = vst [vmem:[#allocation65_spill] sm:$0xff] %v8088_v53  ;;  %v1854_v28 = vsel %vm1709_vm4, %v10965_v11, %v1853_v43  ;;  %v1992_v61 = vpack.c.bf16 %v1857_v33, %v1857_v33  ;;  %v2594_v62 = vunpack.c.l.b16 %v1990_v37  ;;  %v1859_v60 = vsel %vm1709_vm4, %v10967_v36, %v1858_v48  ;;  %v3504_v43 = vpop.f32.mrf.mxu2 }
 0x385   :  { %v1991_v12 = vpack.c.bf16 %v1854_v28, %v1854_v28  ;;  %v10969_v25 = vrot.slane %v7445_v19, 2  ;;  %v8104_v18 = vpack.c.b16 %v2593_v41, %v2592_v20  ;;  %v1993_v49 = vpack.c.bf16 %v1859_v60, %v1859_v60  ;;  %v8116_v20 = vpop.f32.mrf.mxu3 }
 0x386   :  { %v2596_v63 = vunpack.c.l.b16 %v1992_v61  ;;  %v1863_v1 = vrot.slane %v7827_v57, 2  ;;  %v10971_v38 = vrot.slane %v7469_v50, 2  ;;  %v10972_v9 = vrot.slane %v7462_v39, 2  ;;  %10973 = vst [vmem:[#allocation112_spill] sm:$0xff] %v8116_v20  ;;  %v1256_v61 = vld [vmem:[#allocation2 + $0x340] sm:$0x3] }
 0x387   :  { %v1862_v22 = vsel %vm1709_vm4, %v10969_v25, %v10968_v26  ;;  %10970 = vst [vmem:[#allocation111_spill] sm:$0xff] %v8104_v18  ;;  %v2595_v37 = vunpack.c.l.b16 %v1991_v12  ;;  %v1868_v19 = vrot.slane %v7869_v44, 2  ;;  %v8114_v48 = vadd.f32 %v3504_v43, %v8024_v8  ;;  %v11029_v20 = vld [vmem:[#allocation26_spill] sm:$0xff] }
 0x388   :  { %v1994_v3 = vpack.c.bf16 %v1862_v22, %v1862_v22  ;;  %v1867_v33 = vsel %vm1709_vm4, %v10972_v9, %v10971_v38  ;;  %v2597_v41 = vunpack.c.l.b16 %v1993_v49  ;;  %v10974_v11 = vmov %v10968_v26  ;;  %v6010_v18 = vld [vmem:[#allocation9 + $0x1b0] sm:$0xff] }
 0x389   :  { %v1864_v57 = vsel %vm1709_vm4, %v10974_v11, %v1863_v1  ;;  %v1996_v28 = vpack.c.bf16 %v1867_v33, %v1867_v33  ;;  %v8121_v12 = vpack.c.b16 %v2595_v37, %v2594_v62  ;;  %v10976_v60 = vmov %v10971_v38  ;;  %v3340_v1 = vpop.f32.mrf.mxu1 }
 0x38a   :  { %v1995_v36 = vpack.c.bf16 %v1864_v57, %v1864_v57  ;;  %v2598_v39 = vunpack.c.l.b16 %v1994_v3  ;;  %v1869_v44 = vsel %vm1709_vm4, %v10976_v60, %v1868_v19  ;;  %v8126_v26 = vpack.c.b16 %v2597_v41, %v2596_v63  ;;  %v10982_v63 = vld [vmem:[#allocation81_spill] sm:$0xff] }
 0x38b   :  { %10975 = vst [vmem:[#allocation113_spill] sm:$0xff] %v8121_v12  ;;  %v1997_v8 = vpack.c.bf16 %v1869_v44, %v1869_v44  ;;  %v2600_v25 = vunpack.c.l.b16 %v1996_v28  ;;  %v10978_v22 = vrot.slane %v7907_v35, 1  ;;  %v10979_v5 = vrot.slane %v7905_v55, 1  ;;  %3546 = vmatmul.bf16.gmra.mxu2 %v10982_v63  ;;  %v8145_v28 = vpop.f32.mrf.mxu0  ;;  %v10987_v60 = vld [vmem:[#allocation85_spill] sm:$0xff] }
 0x38c   :  { %10977 = vst [vmem:[#allocation114_spill] sm:$0xff] %v8126_v26  ;;  %v2599_v43 = vunpack.c.l.b16 %v1995_v36  ;;  %v2016_v62 = vrot.slane %v1256_v61, 1  ;;  %v10980_v3 = vrot.slane %v7480_v27, 2  ;;  %v10981_v50 = vrot.slane %v7477_v23, 2  ;;  %v10986_v36 = vld [vmem:[#allocation84_spill] sm:$0xff]  ;;  %v10989_v23 = vld [vmem:[#allocation86_spill] sm:$0xff] }
 0x38d   :  { %v2015_v49 = vsel %vm1420_vm3, %v10979_v5, %v10978_v22  ;;  %v2601_v9 = vunpack.c.l.b16 %v1997_v8  ;;  %v2029_v33 = vrot.slane %v7854_v40, 2  ;;  %v10983_v41 = vrot.slane %v7907_v35, 2  ;;  %10985 = vst [vmem:[#allocation81_spill] sm:$0xff] %v8145_v28  ;;  %3467 = vmatmul.bf16.gmra.mxu3 %v10989_v23 }
 0x38e   :  { %v2024_v37 = vpack.c.bf16 %v2015_v49, %v2015_v49  ;;  %v2028_v38 = vsel %vm1709_vm4, %v10981_v50, %v10980_v3  ;;  %v10984_v11 = vrot.slane %v7905_v55, 2  ;;  %v8149_v44 = vpack.c.b16 %v10987_v60, %v10986_v36 }
 0x38f   :  { %v2040_v19 = vpack.c.bf16 %v2028_v38, %v2028_v38  ;;  %v8152_v22 = vpack.c.b16 %v2599_v43, %v2598_v39  ;;  %v10991_v8 = vrot.slane %v7907_v35, 1  ;;  %v2034_v5 = vrot.slane %v1256_v61, 2  ;;  %v8169_v61 = vpop.f32.mrf.mxu3 }
 0x390   :  { %v2033_v57 = vsel %vm1709_vm4, %v10984_v11, %v10983_v41  ;;  %10988 = vst [vmem:[#allocation84_spill] sm:$0xff] %v8149_v44  ;;  %v8157_v49 = vpack.c.b16 %v2601_v9, %v2600_v25  ;;  %v2684_v3 = vunpack.c.l.b16 %v2024_v37  ;;  %v10993_v50 = vrot.slane %v7480_v27, 2  ;;  %v3507_v41 = vpop.f32.mrf.mxu2  ;;  %3889 = vmatmul.bf16.gmra.mxu0 %v8149_v44  ;;  %v10996_v9 = vld [vmem:[#allocation80_spill] sm:$0xff] }
 0x391   :  { %10990 = vst [vmem:[#allocation85_spill] sm:$0xff] %v8152_v22  ;;  %v2017_v40 = vsel %vm1420_vm3, %v10991_v8, %v2016_v62  ;;  %v2694_v36 = vunpack.c.l.b16 %v2040_v19  ;;  %v10994_v60 = vrot.slane %v7907_v35, 2  ;;  %v2042_v43 = vpack.c.bf16 %v2033_v57, %v2033_v57  ;;  %v10997_v19 = vld [vmem:[#allocation83_spill] sm:$0xff] }
 0x392   :  { %10992 = vst [vmem:[#allocation115_spill] sm:$0xff] %v8157_v49  ;;  %v2025_v55 = vpack.c.bf16 %v2017_v40, %v2017_v40  ;;  %v2030_v38 = vsel %vm1709_vm4, %v10993_v50, %v2029_v33  ;;  %v8166_v14 = vadd.f32 %v3507_v41, %v8080_v7  ;;  %v1669_v33 = vpack.c.bf16 %v10996_v9, %v10996_v9  ;;  %v3343_v40 = vpop.f32.mrf.mxu1  ;;  %v6058_v7 = vld [vmem:[#allocation2 + $0x300] sm:$0xff]  ;;  %v6059_v50 = vld [vmem:[#allocation2 + $0x308] sm:$0xff]  ;;  %v11003_v49 = vld [vmem:[#allocation71_spill] sm:$0xff] }
 0x393   :  { %v2041_v11 = vpack.c.bf16 %v2030_v38, %v2030_v38  ;;  %v2035_v39 = vsel %vm1709_vm4, %v10994_v60, %v2034_v5  ;;  %10995 = vst [vmem:[#allocation116_spill] sm:$0xff] %v8169_v61  ;;  %v2696_v37 = vunpack.c.l.b16 %v2042_v43  ;;  %v1670_v35 = vpack.c.bf16 %v10997_v19, %v10997_v19  ;;  %v8184_v43 = vld [vmem:[#allocation2 + $0x150] sm:$0xff]  ;;  %3387 = vmatmul.bf16.gmra.mxu1 %v8149_v44 }
 0x394   :  { %v2685_v25 = vunpack.c.l.b16 %v2025_v55  ;;  %v2043_v62 = vpack.c.bf16 %v2035_v39, %v2035_v39  ;;  %v1320_v5 = vpack.c.bf16 %v6058_v7, %v6058_v7  ;;  %v1321_v38 = vpack.c.bf16 %v6059_v50, %v6059_v50 }
 0x395   :  { %v2695_v27 = vunpack.c.l.b16 %v2041_v11  ;;  %v8181_v11 = vpop.f32.mrf.mxu0  ;;  %v2370_v60 = vunpack.c.l.b16 %v1669_v33  ;;  %v2371_v39 = vunpack.c.l.b16 %v1670_v35 }
 0x396   :  { %v8175_v8 = vpack.c.b16 %v2685_v25, %v2684_v3  ;;  %v2697_v57 = vunpack.c.l.b16 %v2043_v62  ;;  %11001 = vst [vmem:[#allocation118_spill] sm:$0xff] %v8181_v11  ;;  %v1288_v3 = vpack.c.bf16 %v8184_v43, %v8184_v43  ;;  %v8188_v25 = vld [vmem:[#allocation2 + $0x158] sm:$0xff]  ;;  %v1489_v11 = vrot.slane %v11003_v49, 1 }
 0x397   :  { %v8177_v41 = vpack.c.b16 %v2695_v27, %v2694_v36  ;;  %v1289_v62 = vpack.c.bf16 %v8188_v25, %v8188_v25  ;;  %v2214_v27 = vunpack.c.l.b16 %v1320_v5  ;;  %v8194_v19 = vpop.f32.mrf.mxu3  ;;  %v8196_v33 = vpack.c.b16 %v2371_v39, %v2370_v60 }
 0x398   :  { %10998 = vst [vmem:[#allocation80_spill] sm:$0xff] %v8175_v8  ;;  %v8179_v55 = vpack.c.b16 %v2697_v57, %v2696_v37  ;;  %v3509_v36 = vpop.f32.mrf.mxu2  ;;  %v2215_v37 = vunpack.c.l.b16 %v1321_v38  ;;  %v5972_v57 = vld [vmem:[#allocation9 + $0x80] sm:$0xff]  ;;  %v2182_v35 = vunpack.c.l.b16 %v1288_v3 }
 0x399   :  { %10999 = vst [vmem:[#allocation83_spill] sm:$0xff] %v8177_v41  ;;  %v8192_v9 = vadd.f32 %v3509_v36, %v3340_v1  ;;  %v2183_v7 = vunpack.c.l.b16 %v1289_v62  ;;  %3659 = vmatpush.bf16.msrb.mxu3 %v5972_v57  ;;  %v6063_v41 = vld [vmem:[#allocation2 + $0x140] sm:$0xff] }
 0x39a   :  { %11000 = vst [vmem:[#allocation117_spill] sm:$0xff] %v8179_v55  ;;  %v3345_v50 = vpop.f32.mrf.mxu1  ;;  %v6062_v55 = vld [vmem:[#allocation2 + $0x138] sm:$0xff]  ;;  %v1487_v8 = vrot.slane %v6063_v41, 1  ;;  %v8199_v22 = vpack.c.b16 %v2215_v37, %v2214_v27  ;;  %v5988_v41 = vld [vmem:[#allocation9 + $0x100] sm:$0xff] }
 0x39b   :  { %11002 = vst [vmem:[#allocation119_spill] sm:$0xff] %v8194_v19  ;;  %v1486_v17 = vrot.slane %v6062_v55, 1  ;;  %3551 = vmatmul.bf16.gmra.mxu2 %v8196_v33  ;;  %v8205_v5 = vpack.c.b16 %v2183_v7, %v2182_v35  ;;  %3997 = vmatpush.bf16.msrb.mxu1 %v5988_v41  ;;  %v6064_v27 = vld [vmem:[#allocation2 + $0x318] sm:$0xff]  ;;  %v6065_v57 = vld [vmem:[#allocation2 + $0x320] sm:$0xff] }
 0x39c   :  { %11004 = vst [vmem:[#allocation71_spill] sm:$0xff] %v8199_v22  ;;  %v1490_v39 = vsel %vm1420_vm3, %v1487_v8, %v1489_v11  ;;  %v1322_v37 = vpack.c.bf16 %v6064_v27, %v6064_v27  ;;  %v1323_v35 = vpack.c.bf16 %v6065_v57, %v6065_v57 }
 0x39d   :  { %v8202_v1 = vpop.f32.mrf.mxu0  ;;  %3472 = vmatmul.bf16.gmra.mxu3 %v8199_v22  ;;  %11006 = vst [vmem:[#allocation121_spill] sm:$0xff] %v8205_v5  ;;  %v1488_v60 = vsel %vm1420_vm3, %v1486_v17, %v1487_v8  ;;  %v1672_v62 = vpack.c.bf16 %v1490_v39, %v1490_v39 }
 0x39e   :  { %11005 = vst [vmem:[#allocation120_spill] sm:$0xff] %v8202_v1  ;;  %v1671_v3 = vpack.c.bf16 %v1488_v60, %v1488_v60  ;;  %v2216_v41 = vunpack.c.l.b16 %v1322_v37  ;;  %v2217_v27 = vunpack.c.l.b16 %v1323_v35  ;;  %v1494_v1 = vrot.slane %v7808_v29, 1 }
 0x39f   :  { %v8212_v49 = vpop.f32.mrf.mxu3  ;;  %v2373_v8 = vunpack.c.l.b16 %v1672_v62  ;;  %v1492_v62 = vrot.slane %v8188_v25, 1 }
 0x3a0   :  { %v3512_v38 = vpop.f32.mrf.mxu2  ;;  %3894 = vmatmul.bf16.gmra.mxu0 %v8205_v5  ;;  %11007 = vst [vmem:[#allocation122_spill] sm:$0xff] %v8212_v49  ;;  %v2372_v17 = vunpack.c.l.b16 %v1671_v3  ;;  %v1491_v3 = vrot.slane %v8184_v43, 1  ;;  %v8234_v61 = vpack.c.b16 %v2217_v27, %v2216_v41 }
 0x3a1   :  { %v8209_v55 = vadd.f32 %v3512_v38, %v3343_v40  ;;  %v8217_v40 = vld [vmem:[#allocation2 + $0x168] sm:$0xff]  ;;  %v8221_v38 = vld [vmem:[#allocation2 + $0x170] sm:$0xff]  ;;  %v1495_v43 = vsel %vm1420_vm3, %v1492_v62, %v1494_v1 }
 0x3a2   :  { %v3348_v36 = vpop.f32.mrf.mxu1  ;;  %v1290_v11 = vpack.c.bf16 %v8217_v40, %v8217_v40  ;;  %v1291_v60 = vpack.c.bf16 %v8221_v38, %v8221_v38  ;;  %v8231_v44 = vpack.c.b16 %v2373_v8, %v2372_v17  ;;  %11010 = vst [vmem:[#allocation125_spill] sm:$0xff] %v8234_v61 }
 0x3a3   :  { %3392 = vmatmul.bf16.gmra.mxu1 %v8205_v5 }
 0x3a4   :  { %v2184_v49 = vunpack.c.l.b16 %v1290_v11  ;;  %v2185_v19 = vunpack.c.l.b16 %v1291_v60  ;;  %v1674_v11 = vpack.c.bf16 %v1495_v43, %v1495_v43  ;;  %v6071_v43 = vld [vmem:[#allocation2 + $0x1b8] sm:$0xff] }
 0x3a5   :  { %v8214_v7 = vpop.f32.mrf.mxu0 }
 0x3a6   :  { %11008 = vst [vmem:[#allocation123_spill] sm:$0xff] %v8214_v7  ;;  %v8242_v25 = vpack.c.b16 %v2185_v19, %v2184_v49  ;;  %v2375_v41 = vunpack.c.l.b16 %v1674_v11  ;;  %v6069_v19 = vld [vmem:[#allocation2 + $0x188] sm:$0xff] }
 0x3a7   :  { %v8227_v7 = vpop.f32.mrf.mxu3  ;;  %v1999_v49 = vpack.c.bf16 %v6069_v19, %v6069_v19 }
 0x3a8   :  { %v3514_v39 = vpop.f32.mrf.mxu2  ;;  %11009 = vst [vmem:[#allocation124_spill] sm:$0xff] %v8227_v7  ;;  %v8256_v7 = vrot.slane %v6071_v43, 2  ;;  %v1497_v43 = vrot.slane %v8221_v38, 1  ;;  %v6019_v38 = vld [vmem:[#allocation9 + $0x1f8] sm:$0xff] }
 0x3a9   :  { %v8225_v57 = vadd.f32 %v3514_v39, %v3345_v50  ;;  %v1493_v50 = vsel %vm1420_vm3, %v1491_v3, %v1492_v62  ;;  %11012 = vst [vmem:[#allocation127_spill] sm:$0xff] %v8242_v25  ;;  %v6068_v3 = vld [vmem:[#allocation2 + $0x180] sm:$0xff]  ;;  %v2671_v5 = vunpack.c.l.b16 %v1999_v49  ;;  %4497 = vmatpush.bf16.msra.mxu0 %v6019_v38  ;;  %v11023_v38 = vld [vmem:[#allocation22_spill] sm:$0xff] }
 0x3aa   :  { %v3350_v28 = vpop.f32.mrf.mxu1  ;;  %v1673_v8 = vpack.c.bf16 %v1493_v50, %v1493_v50  ;;  %v1998_v1 = vpack.c.bf16 %v6068_v3, %v6068_v3  ;;  %v1496_v3 = vrot.slane %v8217_v40, 1 }
 0x3ab   :  { %3556 = vmatmul.bf16.gmra.mxu2 %v8231_v44 }
 0x3ac   :  { %v2374_v39 = vunpack.c.l.b16 %v1673_v8  ;;  %v6072_v8 = vld [vmem:[#allocation2 + $0x10] sm:$0x3] }
 0x3ad   :  { %v8237_v37 = vpop.f32.mrf.mxu0  ;;  %3477 = vmatmul.bf16.gmra.mxu3 %v8234_v61  ;;  %v1713_v11 = vrot.slane %v6072_v8, 2  ;;  %v1499_v8 = vrot.slane %v7833_v15, 1 }
 0x3ae   :  { %11011 = vst [vmem:[#allocation126_spill] sm:$0xff] %v8237_v37  ;;  %v6003_v37 = vld [vmem:[#allocation9 + $0x178] sm:$0xff]  ;;  %v8258_v10 = vpack.c.b16 %v2375_v41, %v2374_v39 }
 0x3af   :  { %v8247_v29 = vpop.f32.mrf.mxu3  ;;  %4159 = vmatpush.bf16.msra.mxu2 %v6003_v37  ;;  %v1714_v19 = vsel %vm1709_vm4, %v8256_v7, %v1713_v11 }
 0x3b0   :  { %v3517_v35 = vpop.f32.mrf.mxu2  ;;  %3899 = vmatmul.bf16.gmra.mxu0 %v8242_v25  ;;  %11013 = vst [vmem:[#allocation128_spill] sm:$0xff] %v8247_v29  ;;  %v6070_v29 = vld [vmem:[#allocation2] sm:$0xff]  ;;  %v1935_v39 = vpack.c.bf16 %v1714_v19, %v1714_v19 }
 0x3b1   :  { %v8244_v17 = vadd.f32 %v3517_v35, %v3348_v36  ;;  %v1710_v50 = vrot.slane %v6070_v29, 2  ;;  %11016 = vst [vmem:[#allocation131_spill] sm:$0xff] %v8258_v10 }
 0x3b2   :  { %v3353_v60 = vpop.f32.mrf.mxu1  ;;  %v2539_v41 = vunpack.c.l.b16 %v1935_v39 }
 0x3b3   :  { %3397 = vmatmul.bf16.gmra.mxu1 %v8242_v25 }
 0x3b5   :  { %v8249_v27 = vpop.f32.mrf.mxu0 }
 0x3b6   :  { %11014 = vst [vmem:[#allocation129_spill] sm:$0xff] %v8249_v27  ;;  %v6011_v27 = vld [vmem:[#allocation9 + $0x1b8] sm:$0xff] }
 0x3b7   :  { %v8254_v35 = vpop.f32.mrf.mxu3  ;;  %4328 = vmatpush.bf16.msra.mxu3 %v6011_v27  ;;  %v1500_v27 = vsel %vm1420_vm3, %v1497_v43, %v1499_v8 }
 0x3b8   :  { %v3519_v62 = vpop.f32.mrf.mxu2  ;;  %11015 = vst [vmem:[#allocation130_spill] sm:$0xff] %v8254_v35 }
 0x3b9   :  { %v8252_v36 = vadd.f32 %v3519_v62, %v3350_v28  ;;  %v1712_v28 = vsel %vm1709_vm4, %v1710_v50, %v8256_v7  ;;  %v2670_v62 = vunpack.c.l.b16 %v1998_v1  ;;  %v1498_v1 = vsel %vm1420_vm3, %v1496_v3, %v1497_v43 }
 0x3ba   :  { %v3355_v29 = vpop.f32.mrf.mxu1  ;;  %v1934_v35 = vpack.c.bf16 %v1712_v28, %v1712_v28  ;;  %v6027_v28 = vld [vmem:[#allocation9 + $0x238] sm:$0xff]  ;;  %v1675_v19 = vpack.c.bf16 %v1498_v1, %v1498_v1 }
 0x3bb   :  { %3561 = vmatmul.bf16.gmra.mxu2 %v8258_v10  ;;  %v8270_v50 = vpack.c.b16 %v2671_v5, %v2670_v62  ;;  %4666 = vmatpush.bf16.msra.mxu1 %v6027_v28 }
 0x3bc   :  { %v2538_v37 = vunpack.c.l.b16 %v1934_v35  ;;  %v1676_v35 = vpack.c.bf16 %v1500_v27, %v1500_v27  ;;  %v2376_v3 = vunpack.c.l.b16 %v1675_v19  ;;  %4329 = vmatpush.bf16.msra.mxu3 %v6010_v18 }
 0x3bd   :  { %v8268_v40 = vpop.f32.mrf.mxu0  ;;  %11018 = vst [vmem:[#allocation133_spill] sm:$0xff] %v8270_v50 }
 0x3be   :  { %11017 = vst [vmem:[#allocation132_spill] sm:$0xff] %v8268_v40  ;;  %v2602_v49 = vpack.c.b16 %v2539_v41, %v2538_v37  ;;  %v2377_v43 = vunpack.c.l.b16 %v1676_v35  ;;  %v8288_v37 = vld [vmem:[#allocation2 + $0x1b0] sm:$0xff] }
 0x3bf   :  { %v8277_v15 = vpop.f32.mrf.mxu3  ;;  %v1501_v41 = vrot.slane %v8288_v37, 1 }
 0x3c0   :  { %v3522_v26 = vpop.f32.mrf.mxu2  ;;  %3904 = vmatmul.bf16.gmra.mxu0 %v8270_v50  ;;  %11019 = vst [vmem:[#allocation134_spill] sm:$0xff] %v8277_v15  ;;  %3660 = vmatmul.bf16.vlgmr.msrb.gmra.mxu3 %v2602_v49  ;;  %v8292_v27 = vpack.c.b16 %v2377_v43, %v2376_v3  ;;  %v11027_v43 = vld [vmem:[#allocation88_spill] sm:$0xff] }
 0x3c1   :  { %v8274_v11 = vadd.f32 %v3522_v26, %v3353_v60  ;;  %v8282_v26 = vld [vmem:[#allocation2 + $0x1c0] sm:$0x3]  ;;  %v1503_v28 = vsel %vm1420_vm3, %v1501_v41, %v11023_v38 }
 0x3c2   :  { %v3358_v5 = vpop.f32.mrf.mxu1  ;;  %v1504_v1 = vrot.slane %v8282_v26, 1  ;;  %11022 = vst [vmem:[#allocation137_spill] sm:$0xff] %v8292_v27  ;;  %v1677_v50 = vpack.c.bf16 %v1503_v28, %v1503_v28 }
 0x3c3   :  { %3998 = vmatmul.bf16.vlgmr.msrb.gmra.mxu1 %v11029_v20 }
 0x3c4   :  { %v2378_v40 = vunpack.c.l.b16 %v1677_v50  ;;  %v11034_v50 = vld [vmem:[#allocation90_spill] sm:$0xff] }
 0x3c5   :  { %v8279_v62 = vpop.f32.mrf.mxu0 }
 0x3c6   :  { %11020 = vst [vmem:[#allocation135_spill] sm:$0xff] %v8279_v62  ;;  %v11025_v62 = vld [vmem:[#allocation21_spill] sm:$0xff] }
 0x3c7   :  { %v8286_v39 = vpop.f32.mrf.mxu3 }
 0x3c8   :  { %v3524_v60 = vpop.f32.mrf.mxu2  ;;  %11021 = vst [vmem:[#allocation136_spill] sm:$0xff] %v8286_v39 }
 0x3c9   :  { %v8284_v8 = vadd.f32 %v3524_v60, %v3355_v29  ;;  %v1505_v29 = vsel %vm1420_vm3, %v11023_v38, %v1504_v1 }
 0x3ca   :  { %v3360_v49 = vpop.f32.mrf.mxu1  ;;  %v1678_v25 = vpack.c.bf16 %v1505_v29, %v1505_v29 }
 0x3cb   :  { %3566 = vmatmul.bf16.gmra.mxu2 %v8292_v27 }
 0x3cc   :  { %v2379_v15 = vunpack.c.l.b16 %v1678_v25 }
 0x3cd   :  { %v8299_v19 = vpop.f32.mrf.mxu0 }
 0x3ce   :  { %11024 = vst [vmem:[#allocation22_spill] sm:$0xff] %v8299_v19 }
 0x3cf   :  { %v8304_v3 = vpop.f32.mrf.mxu3 }
 0x3d0   :  { %v3527_v35 = vpop.f32.mrf.mxu2  ;;  %3909 = vmatmul.bf16.gmra.mxu0 %v11025_v62  ;;  %11026 = vst [vmem:[#allocation21_spill] sm:$0xff] %v8304_v3  ;;  %3665 = vmatmul.bf16.gmra.mxu3 %v11027_v43  ;;  %v11032_v3 = vld [vmem:[#allocation24_spill] sm:$0xff] }
 0x3d1   :  { %v8301_v60 = vadd.f32 %v3527_v35, %v3358_v5  ;;  %v2426_v5 = vpack.c.b16 %v2379_v15, %v2378_v40 }
 0x3d2   :  { %v3363_v39 = vpop.f32.mrf.mxu1 }
 0x3d5   :  { %v8307_v41 = vpop.f32.mrf.mxu0 }
 0x3d6   :  { %11028 = vst [vmem:[#allocation88_spill] sm:$0xff] %v8307_v41 }
 0x3d7   :  { %v8312_v35 = vpop.f32.mrf.mxu3 }
 0x3d8   :  { %v3529_v1 = vpop.f32.mrf.mxu2  ;;  %11030 = vst [vmem:[#allocation26_spill] sm:$0xff] %v8312_v35 }
 0x3d9   :  { %v8310_v38 = vadd.f32 %v3529_v1, %v3360_v49  ;;  %v11036_v49 = vld [vmem:[#allocation27_spill] sm:$0xff] }
 0x3da   :  { %v3365_v28 = vpop.f32.mrf.mxu1  ;;  %4003 = vmatmul.bf16.gmra.mxu1 %v11036_v49 }
 0x3db   :  { %3571 = vmatmul.bf16.gmra.mxu2 %v2426_v5 }
 0x3dd   :  { %v8314_v62 = vpop.f32.mrf.mxu0 }
 0x3de   :  { %11031 = vst [vmem:[#allocation138_spill] sm:$0xff] %v8314_v62  ;;  %v11038_v62 = vld [vmem:[#allocation89_spill] sm:$0xff] }
 0x3df   :  { %v8319_v25 = vpop.f32.mrf.mxu3 }
 0x3e0   :  { %v3532_v29 = vpop.f32.mrf.mxu2  ;;  %3914 = vmatmul.bf16.gmra.mxu0 %v11032_v3  ;;  %11033 = vst [vmem:[#allocation139_spill] sm:$0xff] %v8319_v25  ;;  %3670 = vmatmul.bf16.gmra.mxu3 %v11034_v50  ;;  %v11040_v25 = vld [vmem:[#allocation28_spill] sm:$0xff] }
 0x3e1   :  { %v8316_v19 = vadd.f32 %v3532_v29, %v3363_v39 }
 0x3e2   :  { %v3368_v20 = vpop.f32.mrf.mxu1 }
 0x3e5   :  { %v8322_v41 = vpop.f32.mrf.mxu0 }
 0x3e6   :  { %11035 = vst [vmem:[#allocation90_spill] sm:$0xff] %v8322_v41  ;;  %v11042_v41 = vld [vmem:[#allocation92_spill] sm:$0xff] }
 0x3e7   :  { %v8327_v1 = vpop.f32.mrf.mxu3 }
 0x3e8   :  { %v3534_v40 = vpop.f32.mrf.mxu2  ;;  %11037 = vst [vmem:[#allocation27_spill] sm:$0xff] %v8327_v1 }
 0x3e9   :  { %v8325_v15 = vadd.f32 %v3534_v40, %v3365_v28  ;;  %v11044_v28 = vld [vmem:[#allocation35_spill] sm:$0xff] }
 0x3ea   :  { %v3370_v5 = vpop.f32.mrf.mxu1  ;;  %4008 = vmatmul.bf16.gmra.mxu1 %v11044_v28 }
 0x3eb   :  { %3576 = vmatmul.bf16.gmra.mxu2 %v11038_v62 }
 0x3ed   :  { %v8330_v39 = vpop.f32.mrf.mxu0 }
 0x3ee   :  { %11039 = vst [vmem:[#allocation89_spill] sm:$0xff] %v8330_v39  ;;  %v6002_v39 = vld [vmem:[#allocation9 + $0x170] sm:$0xff] }
 0x3ef   :  { %v8335_v35 = vpop.f32.mrf.mxu3  ;;  %4160 = vmatpush.bf16.msra.mxu2 %v6002_v39 }
 0x3f0   :  { %v3537_v29 = vpop.f32.mrf.mxu2  ;;  %3919 = vmatmul.bf16.gmra.mxu0 %v11040_v25  ;;  %11041 = vst [vmem:[#allocation140_spill] sm:$0xff] %v8335_v35  ;;  %3675 = vmatmul.bf16.gmra.mxu3 %v11042_v41 }
 0x3f1   :  { %v8332_v3 = vadd.f32 %v3537_v29, %v3368_v20  ;;  %v11046_v29 = vld [vmem:[#allocation91_spill] sm:$0xff] }
 0x3f2   :  { %v3373_v59 = vpop.f32.mrf.mxu1 }
 0x3f5   :  { %v8338_v12 = vpop.f32.mrf.mxu0 }
 0x3f6   :  { %11043 = vst [vmem:[#allocation141_spill] sm:$0xff] %v8338_v12  ;;  %v11048_v12 = vld [vmem:[#allocation36_spill] sm:$0xff] }
 0x3f7   :  { %v8343_v34 = vpop.f32.mrf.mxu3 }
 0x3f8   :  { %v3539_v40 = vpop.f32.mrf.mxu2  ;;  %11045 = vst [vmem:[#allocation35_spill] sm:$0xff] %v8343_v34  ;;  %v11052_v34 = vld [vmem:[#allocation18_spill] sm:$0xff] }
 0x3f9   :  { %v8341_v1 = vadd.f32 %v3539_v40, %v3370_v5  ;;  %v6018_v5 = vld [vmem:[#allocation9 + $0x1f0] sm:$0xff] }
 0x3fa   :  { %v3375_v20 = vpop.f32.mrf.mxu1  ;;  %v6026_v40 = vld [vmem:[#allocation9 + $0x230] sm:$0xff]  ;;  %4498 = vmatpush.bf16.msra.mxu0 %v6018_v5  ;;  %4013 = vmatmul.bf16.gmra.mxu1 %v11052_v34  ;;  %v11057_v5 = vld [vmem:[#allocation20_spill] sm:$0xff] }
 0x3fb   :  { %3581 = vmatmul.bf16.gmra.mxu2 %v11046_v29  ;;  %4667 = vmatpush.bf16.msra.mxu1 %v6026_v40 }
 0x3fd   :  { %v8346_v25 = vpop.f32.mrf.mxu0 }
 0x3fe   :  { %11047 = vst [vmem:[#allocation91_spill] sm:$0xff] %v8346_v25 }
 0x3ff   :  { %v8351_v47 = vpop.f32.mrf.mxu3 }
 0x400   :  { %v3542_v35 = vpop.f32.mrf.mxu2  ;;  %3924 = vmatmul.bf16.gmra.mxu0 %v11048_v12  ;;  %11049 = vst [vmem:[#allocation142_spill] sm:$0xff] %v8351_v47  ;;  %3680 = vmatmul.bf16.gmra.mxu3 %v11050_v2  ;;  %v11054_v12 = vld [vmem:[#allocation93_spill] sm:$0xff] }
 0x401   :  { %v8348_v53 = vadd.f32 %v3542_v35, %v3373_v59 }
 0x402   :  { %v3378_v39 = vpop.f32.mrf.mxu1 }
 0x405   :  { %v8354_v18 = vpop.f32.mrf.mxu0 }
 0x406   :  { %11051 = vst [vmem:[#allocation143_spill] sm:$0xff] %v8354_v18  ;;  %v11059_v18 = vld [vmem:[#allocation37_spill] sm:$0xff] }
 0x407   :  { %v8359_v59 = vpop.f32.mrf.mxu3 }
 0x408   :  { %v3544_v21 = vpop.f32.mrf.mxu2  ;;  %11053 = vst [vmem:[#allocation18_spill] sm:$0xff] %v8359_v59 }
 0x409   :  { %v8357_v25 = vadd.f32 %v3544_v21, %v3375_v20  ;;  %v11061_v21 = vld [vmem:[#allocation46_spill] sm:$0xff] }
 0x40a   :  { %v3380_v35 = vpop.f32.mrf.mxu1  ;;  %4018 = vmatmul.bf16.gmra.mxu1 %v11061_v21 }
 0x40b   :  { %3586 = vmatmul.bf16.gmra.mxu2 %v11054_v12  ;;  %v11064_v12 = vld [vmem:[#allocation33_spill] sm:$0xff] }
 0x40d   :  { %v8362_v47 = vpop.f32.mrf.mxu0 }
 0x40e   :  { %11055 = vst [vmem:[#allocation144_spill] sm:$0xff] %v8362_v47 }
 0x410   :  { %v3547_v58 = vpop.f32.mrf.mxu2  ;;  %3929 = vmatmul.bf16.gmra.mxu0 %v11057_v5  ;;  %v8367_v40 = vpop.f32.mrf.mxu3  ;;  %3685 = vmatmul.bf16.gmra.mxu3 %v11059_v18 }
 0x411   :  { %v8364_v46 = vadd.f32 %v3547_v58, %v3378_v39  ;;  %11058 = vst [vmem:[#allocation146_spill] sm:$0xff] %v8367_v40  ;;  %v11067_v40 = vld [vmem:[#allocation47_spill] sm:$0xff] }
 0x412   :  { %v3383_v2 = vpop.f32.mrf.mxu1 }
 0x413   :  { %11056 = vst [vmem:[#allocation145_spill] sm:$0xff] %v8364_v46 }
 0x415   :  { %v8370_v13 = vpop.f32.mrf.mxu0 }
 0x416   :  { %11060 = vst [vmem:[#allocation147_spill] sm:$0xff] %v8370_v13  ;;  %v11069_v13 = vld [vmem:[#allocation38_spill] sm:$0xff] }
 0x418   :  { %v3549_v20 = vpop.f32.mrf.mxu2  ;;  %v8375_v41 = vpop.f32.mrf.mxu3 }
 0x419   :  { %v8373_v59 = vadd.f32 %v3549_v20, %v3380_v35  ;;  %11063 = vst [vmem:[#allocation149_spill] sm:$0xff] %v8375_v41  ;;  %v11071_v35 = vld [vmem:[#allocation51_spill] sm:$0xff] }
 0x41a   :  { %v3385_v47 = vpop.f32.mrf.mxu1  ;;  %4023 = vmatmul.bf16.gmra.mxu1 %v11071_v35 }
 0x41b   :  { %11062 = vst [vmem:[#allocation148_spill] sm:$0xff] %v8373_v59  ;;  %3591 = vmatmul.bf16.gmra.mxu2 %v11064_v12  ;;  %v11074_v59 = vld [vmem:[#allocation39_spill] sm:$0xff] }
 0x41d   :  { %v8378_v58 = vpop.f32.mrf.mxu0 }
 0x41e   :  { %11065 = vst [vmem:[#allocation150_spill] sm:$0xff] %v8378_v58 }
 0x420   :  { %v3552_v39 = vpop.f32.mrf.mxu2  ;;  %3934 = vmatmul.bf16.gmra.mxu0 %v11067_v40  ;;  %v8383_v18 = vpop.f32.mrf.mxu3  ;;  %3690 = vmatmul.bf16.gmra.mxu3 %v11069_v13 }
 0x421   :  { %v8380_v5 = vadd.f32 %v3552_v39, %v3383_v2  ;;  %11068 = vst [vmem:[#allocation152_spill] sm:$0xff] %v8383_v18  ;;  %v11077_v18 = vld [vmem:[#allocation55_spill] sm:$0xff] }
 0x422   :  { %v3388_v21 = vpop.f32.mrf.mxu1 }
 0x423   :  { %11066 = vst [vmem:[#allocation151_spill] sm:$0xff] %v8380_v5 }
 0x425   :  { %v8386_v46 = vpop.f32.mrf.mxu0 }
 0x426   :  { %11070 = vst [vmem:[#allocation153_spill] sm:$0xff] %v8386_v46  ;;  %v11079_v46 = vld [vmem:[#allocation44_spill] sm:$0xff] }
 0x428   :  { %v3554_v20 = vpop.f32.mrf.mxu2  ;;  %v8391_v12 = vpop.f32.mrf.mxu3 }
 0x429   :  { %v8389_v41 = vadd.f32 %v3554_v20, %v3385_v47  ;;  %11073 = vst [vmem:[#allocation155_spill] sm:$0xff] %v8391_v12  ;;  %v11081_v47 = vld [vmem:[#allocation62_spill] sm:$0xff] }
 0x42a   :  { %v3390_v58 = vpop.f32.mrf.mxu1  ;;  %4028 = vmatmul.bf16.gmra.mxu1 %v11081_v47  ;;  %v6017_v47 = vld [vmem:[#allocation9 + $0x1e8] sm:$0xff] }
 0x42b   :  { %11072 = vst [vmem:[#allocation154_spill] sm:$0xff] %v8389_v41  ;;  %3596 = vmatmul.bf16.gmra.mxu2 %v11074_v59  ;;  %v6001_v59 = vld [vmem:[#allocation9 + $0x168] sm:$0xff]  ;;  %4499 = vmatpush.bf16.msra.mxu0 %v6017_v47 }
 0x42c   :  { %v6009_v41 = vld [vmem:[#allocation9 + $0x1a8] sm:$0xff]  ;;  %4161 = vmatpush.bf16.msra.mxu2 %v6001_v59 }
 0x42d   :  { %v8394_v2 = vpop.f32.mrf.mxu0  ;;  %4330 = vmatpush.bf16.msra.mxu3 %v6009_v41 }
 0x42e   :  { %11075 = vst [vmem:[#allocation156_spill] sm:$0xff] %v8394_v2 }
 0x430   :  { %v3557_v39 = vpop.f32.mrf.mxu2  ;;  %3939 = vmatmul.bf16.gmra.mxu0 %v11077_v18  ;;  %v8399_v13 = vpop.f32.mrf.mxu3  ;;  %3695 = vmatmul.bf16.gmra.mxu3 %v11079_v46 }
 0x431   :  { %v8396_v40 = vadd.f32 %v3557_v39, %v3388_v21  ;;  %11078 = vst [vmem:[#allocation158_spill] sm:$0xff] %v8399_v13  ;;  %v11083_v39 = vld [vmem:[#allocation42_spill] sm:$0xff] }
 0x432   :  { %v3393_v35 = vpop.f32.mrf.mxu1 }
 0x433   :  { %11076 = vst [vmem:[#allocation157_spill] sm:$0xff] %v8396_v40  ;;  %v6025_v40 = vld [vmem:[#allocation9 + $0x228] sm:$0xff] }
 0x434   :  { %4668 = vmatpush.bf16.msra.mxu1 %v6025_v40 }
 0x435   :  { %v8402_v5 = vpop.f32.mrf.mxu0 }
 0x436   :  { %11080 = vst [vmem:[#allocation159_spill] sm:$0xff] %v8402_v5  ;;  %v11086_v5 = vld [vmem:[#allocation63_spill] sm:$0xff] }
 0x438   :  { %v3559_v20 = vpop.f32.mrf.mxu2  ;;  %v8407_v2 = vpop.f32.mrf.mxu3 }
 0x439   :  { %v8405_v12 = vadd.f32 %v3559_v20, %v3390_v58  ;;  %11082 = vst [vmem:[#allocation160_spill] sm:$0xff] %v8407_v2  ;;  %v11087_v58 = vld [vmem:[#allocation53_spill] sm:$0xff] }
 0x43a   :  { %v3395_v21 = vpop.f32.mrf.mxu1  ;;  %4033 = vmatmul.bf16.gmra.mxu1 %v10866_v51 }
 0x43b   :  { %3601 = vmatmul.bf16.gmra.mxu2 %v11083_v39 }
 0x43d   :  { %v8410_v18 = vpop.f32.mrf.mxu0 }
 0x43e   :  { %11084 = vst [vmem:[#allocation161_spill] sm:$0xff] %v8410_v18 }
 0x440   :  { %v3562_v13 = vpop.f32.mrf.mxu2  ;;  %3944 = vmatmul.bf16.gmra.mxu0 %v11086_v5  ;;  %3700 = vmatmul.bf16.gmra.mxu3 %v11087_v58  ;;  %v11090_v5 = vld [vmem:[#allocation50_spill] sm:$0xff] }
 0x441   :  { %v8412_v46 = vadd.f32 %v3562_v13, %v3393_v35 }
 0x442   :  { %v3398_v20 = vpop.f32.mrf.mxu1 }
 0x443   :  { %11085 = vst [vmem:[#allocation162_spill] sm:$0xff] %v8412_v46  ;;  %v3661_v2 = vpop.f32.mrf.mxu3 }
 0x444   :  { %v8417_v41 = vadd.f32 %v3661_v2, %v7838_v31  ;;  %v11093_v31 = vld [vmem:[#allocation68_spill] sm:$0xff]  ;;  %v11094_v2 = vld [vmem:[#allocation61_spill] sm:$0xff] }
 0x445   :  { %v8419_v59 = vpop.f32.mrf.mxu0 }
 0x446   :  { %11088 = vst [vmem:[#allocation163_spill] sm:$0xff] %v8417_v41 }
 0x447   :  { %11089 = vst [vmem:[#allocation164_spill] sm:$0xff] %v8419_v59 }
 0x448   :  { %v3564_v18 = vpop.f32.mrf.mxu2 }
 0x449   :  { %v8422_v13 = vadd.f32 %v3564_v18, %v3395_v21 }
 0x44a   :  { %v3400_v35 = vpop.f32.mrf.mxu1  ;;  %4038 = vmatmul.bf16.gmra.mxu1 %v10897_v45 }
 0x44b   :  { %3606 = vmatmul.bf16.gmra.mxu2 %v11090_v5  ;;  %v3663_v39 = vpop.f32.mrf.mxu3 }
 0x44c   :  { %v8426_v58 = vadd.f32 %v3663_v39, %v7897_v54 }
 0x44d   :  { %v8428_v40 = vpop.f32.mrf.mxu0 }
 0x44e   :  { %11091 = vst [vmem:[#allocation165_spill] sm:$0xff] %v8426_v58 }
 0x44f   :  { %11092 = vst [vmem:[#allocation166_spill] sm:$0xff] %v8428_v40 }
 0x450   :  { %v3567_v47 = vpop.f32.mrf.mxu2  ;;  %3949 = vmatmul.bf16.gmra.mxu0 %v11093_v31  ;;  %3705 = vmatmul.bf16.gmra.mxu3 %v11094_v2 }
 0x451   :  { %v8430_v46 = vadd.f32 %v3567_v47, %v3398_v20  ;;  %v11099_v20 = vld [vmem:[#allocation56_spill] sm:$0xff] }
 0x452   :  { %v8434_v59 = vpop.f32.mrf.mxu1 }
 0x453   :  { %11095 = vst [vmem:[#allocation167_spill] sm:$0xff] %v8434_v59  ;;  %v3666_v18 = vpop.f32.mrf.mxu3 }
 0x454   :  { %v8437_v21 = vadd.f32 %v3666_v18, %v7954_v52  ;;  %v11102_v52 = vld [vmem:[#allocation74_spill] sm:$0xff]  ;;  %v11103_v18 = vld [vmem:[#allocation72_spill] sm:$0xff] }
 0x455   :  { %v8439_v41 = vpop.f32.mrf.mxu0 }
 0x456   :  { %11096 = vst [vmem:[#allocation168_spill] sm:$0xff] %v8437_v21 }
 0x457   :  { %11097 = vst [vmem:[#allocation169_spill] sm:$0xff] %v8439_v41 }
 0x458   :  { %v3569_v54 = vpop.f32.mrf.mxu2 }
 0x459   :  { %v8442_v39 = vadd.f32 %v3569_v54, %v3400_v35 }
 0x45a   :  { %v8444_v40 = vpop.f32.mrf.mxu1  ;;  %4043 = vmatmul.bf16.gmra.mxu1 %v10942_v24 }
 0x45b   :  { %11098 = vst [vmem:[#allocation170_spill] sm:$0xff] %v8444_v40  ;;  %3611 = vmatmul.bf16.gmra.mxu2 %v11099_v20  ;;  %v3668_v47 = vpop.f32.mrf.mxu3  ;;  %v11119_v40 = vld [vmem:[#allocation97_spill] sm:$0xff] }
 0x45c   :  { %v8448_v31 = vadd.f32 %v3668_v47, %v8012_v6 }
 0x45d   :  { %v8450_v58 = vpop.f32.mrf.mxu0 }
 0x45e   :  { %11100 = vst [vmem:[#allocation56_spill] sm:$0xff] %v8448_v31 }
 0x45f   :  { %11101 = vst [vmem:[#allocation171_spill] sm:$0xff] %v8450_v58  ;;  %v11108_v58 = vld [vmem:[#allocation64_spill] sm:$0xff] }
 0x460   :  { %v8452_v59 = vpop.f32.mrf.mxu2  ;;  %3954 = vmatmul.bf16.gmra.mxu0 %v11102_v52  ;;  %3710 = vmatmul.bf16.gmra.mxu3 %v11103_v18 }
 0x462   :  { %v8456_v41 = vpop.f32.mrf.mxu1 }
 0x463   :  { %11104 = vst [vmem:[#allocation172_spill] sm:$0xff] %v8456_v41  ;;  %v3671_v35 = vpop.f32.mrf.mxu3 }
 0x464   :  { %v8459_v54 = vadd.f32 %v3671_v35, %v8062_v32  ;;  %v11111_v32 = vld [vmem:[#allocation95_spill] sm:$0xff] }
 0x465   :  { %v8461_v21 = vpop.f32.mrf.mxu0 }
 0x466   :  { %11105 = vst [vmem:[#allocation173_spill] sm:$0xff] %v8459_v54 }
 0x467   :  { %11106 = vst [vmem:[#allocation174_spill] sm:$0xff] %v8461_v21 }
 0x468   :  { %v8464_v6 = vpop.f32.mrf.mxu2 }
 0x46a   :  { %v8466_v47 = vpop.f32.mrf.mxu1  ;;  %4048 = vmatmul.bf16.gmra.mxu1 %v10982_v63 }
 0x46b   :  { %11107 = vst [vmem:[#allocation175_spill] sm:$0xff] %v8466_v47  ;;  %3616 = vmatmul.bf16.gmra.mxu2 %v11108_v58  ;;  %v3673_v31 = vpop.f32.mrf.mxu3 }
 0x46c   :  { %v8470_v52 = vadd.f32 %v3673_v31, %v8114_v48  ;;  %v6000_v31 = vld [vmem:[#allocation9 + $0x160] sm:$0xff] }
 0x46d   :  { %v8472_v18 = vpop.f32.mrf.mxu0  ;;  %4162 = vmatpush.bf16.msra.mxu2 %v6000_v31 }
 0x46e   :  { %11109 = vst [vmem:[#allocation176_spill] sm:$0xff] %v8470_v52 }
 0x46f   :  { %11110 = vst [vmem:[#allocation177_spill] sm:$0xff] %v8472_v18  ;;  %v6008_v18 = vld [vmem:[#allocation9 + $0x1a0] sm:$0xff] }
 0x470   :  { %v8474_v41 = vpop.f32.mrf.mxu2  ;;  %3959 = vmatmul.bf16.gmra.mxu0 %v10904_v56  ;;  %3715 = vmatmul.bf16.gmra.mxu3 %v11111_v32  ;;  %v11116_v56 = vld [vmem:[#allocation77_spill] sm:$0xff] }
 0x471   :  { %4331 = vmatpush.bf16.msra.mxu3 %v6008_v18 }
 0x472   :  { %v8478_v35 = vpop.f32.mrf.mxu1 }
 0x473   :  { %11112 = vst [vmem:[#allocation178_spill] sm:$0xff] %v8478_v35  ;;  %v3676_v21 = vpop.f32.mrf.mxu3 }
 0x474   :  { %v8481_v54 = vadd.f32 %v3676_v21, %v8166_v14 }
 0x475   :  { %v8483_v47 = vpop.f32.mrf.mxu0 }
 0x476   :  { %11113 = vst [vmem:[#allocation179_spill] sm:$0xff] %v8481_v54  ;;  %v6024_v54 = vld [vmem:[#allocation9 + $0x220] sm:$0xff] }
 0x477   :  { %11114 = vst [vmem:[#allocation180_spill] sm:$0xff] %v8483_v47  ;;  %v6016_v47 = vld [vmem:[#allocation9 + $0x1e0] sm:$0xff]  ;;  %4669 = vmatpush.bf16.msra.mxu1 %v6024_v54 }
 0x478   :  { %v8486_v48 = vpop.f32.mrf.mxu2  ;;  %4500 = vmatpush.bf16.msra.mxu0 %v6016_v47 }
 0x47a   :  { %v8488_v52 = vpop.f32.mrf.mxu1  ;;  %4053 = vmatmul.bf16.gmra.mxu1 %v8196_v33 }
 0x47b   :  { %11115 = vst [vmem:[#allocation181_spill] sm:$0xff] %v8488_v52  ;;  %3621 = vmatmul.bf16.gmra.mxu2 %v11116_v56  ;;  %v3678_v32 = vpop.f32.mrf.mxu3 }
 0x47c   :  { %v8492_v35 = vadd.f32 %v3678_v32, %v8192_v9 }
 0x47d   :  { %v8494_v14 = vpop.f32.mrf.mxu0 }
 0x47e   :  { %11117 = vst [vmem:[#allocation77_spill] sm:$0xff] %v8492_v35 }
 0x47f   :  { %11118 = vst [vmem:[#allocation182_spill] sm:$0xff] %v8494_v14 }
 0x480   :  { %v8496_v21 = vpop.f32.mrf.mxu2  ;;  %3964 = vmatmul.bf16.gmra.mxu0 %v10945_v30  ;;  %3720 = vmatmul.bf16.gmra.mxu3 %v11119_v40  ;;  %v11124_v30 = vld [vmem:[#allocation96_spill] sm:$0xff] }
 0x482   :  { %v8500_v18 = vpop.f32.mrf.mxu1 }
 0x483   :  { %11120 = vst [vmem:[#allocation183_spill] sm:$0xff] %v8500_v18  ;;  %v3681_v31 = vpop.f32.mrf.mxu3 }
 0x484   :  { %v8503_v52 = vadd.f32 %v3681_v31, %v8209_v55  ;;  %v11127_v55 = vld [vmem:[#allocation100_spill] sm:$0xff] }
 0x485   :  { %v8505_v9 = vpop.f32.mrf.mxu0 }
 0x486   :  { %11121 = vst [vmem:[#allocation184_spill] sm:$0xff] %v8503_v52 }
 0x487   :  { %11122 = vst [vmem:[#allocation185_spill] sm:$0xff] %v8505_v9 }
 0x488   :  { %v8508_v32 = vpop.f32.mrf.mxu2 }
 0x48a   :  { %v8510_v14 = vpop.f32.mrf.mxu1  ;;  %4058 = vmatmul.bf16.gmra.mxu1 %v8231_v44 }
 0x48b   :  { %11123 = vst [vmem:[#allocation186_spill] sm:$0xff] %v8510_v14  ;;  %3626 = vmatmul.bf16.gmra.mxu2 %v11124_v30  ;;  %v3683_v35 = vpop.f32.mrf.mxu3 }
 0x48c   :  { %v8514_v47 = vadd.f32 %v3683_v35, %v8225_v57 }
 0x48d   :  { %v8516_v54 = vpop.f32.mrf.mxu0 }
 0x48e   :  { %11125 = vst [vmem:[#allocation96_spill] sm:$0xff] %v8514_v47 }
 0x48f   :  { %11126 = vst [vmem:[#allocation187_spill] sm:$0xff] %v8516_v54  ;;  %v11132_v54 = vld [vmem:[#allocation98_spill] sm:$0xff] }
 0x490   :  { %v8518_v18 = vpop.f32.mrf.mxu2  ;;  %3969 = vmatmul.bf16.gmra.mxu0 %v10989_v23  ;;  %3725 = vmatmul.bf16.gmra.mxu3 %v11127_v55 }
 0x492   :  { %v8522_v31 = vpop.f32.mrf.mxu1 }
 0x493   :  { %11128 = vst [vmem:[#allocation188_spill] sm:$0xff] %v8522_v31  ;;  %v3686_v9 = vpop.f32.mrf.mxu3 }
 0x494   :  { %v8525_v52 = vadd.f32 %v3686_v9, %v8244_v17  ;;  %v11135_v17 = vld [vmem:[#allocation103_spill] sm:$0xff] }
 0x495   :  { %v8527_v14 = vpop.f32.mrf.mxu0 }
 0x496   :  { %11129 = vst [vmem:[#allocation189_spill] sm:$0xff] %v8525_v52 }
 0x497   :  { %11130 = vst [vmem:[#allocation190_spill] sm:$0xff] %v8527_v14 }
 0x498   :  { %v8530_v57 = vpop.f32.mrf.mxu2 }
 0x49a   :  { %v8532_v35 = vpop.f32.mrf.mxu1  ;;  %4063 = vmatmul.bf16.gmra.mxu1 %v8258_v10 }
 0x49b   :  { %11131 = vst [vmem:[#allocation191_spill] sm:$0xff] %v8532_v35  ;;  %3631 = vmatmul.bf16.gmra.mxu2 %v11132_v54  ;;  %v3688_v47 = vpop.f32.mrf.mxu3 }
 0x49c   :  { %v8536_v23 = vadd.f32 %v3688_v47, %v8252_v36 }
 0x49d   :  { %v8538_v55 = vpop.f32.mrf.mxu0 }
 0x49e   :  { %11133 = vst [vmem:[#allocation192_spill] sm:$0xff] %v8536_v23 }
 0x49f   :  { %11134 = vst [vmem:[#allocation193_spill] sm:$0xff] %v8538_v55  ;;  %v11140_v55 = vld [vmem:[#allocation101_spill] sm:$0xff] }
 0x4a0   :  { %v8540_v31 = vpop.f32.mrf.mxu2  ;;  %3974 = vmatmul.bf16.gmra.mxu0 %v8199_v22  ;;  %3730 = vmatmul.bf16.gmra.mxu3 %v11135_v17  ;;  %v5999_v22 = vld [vmem:[#allocation9 + $0x158] sm:$0xff] }
 0x4a1   :  { %4163 = vmatpush.bf16.msra.mxu2 %v5999_v22  ;;  %v6074_v22 = vld [vmem:[#allocation2 + $0x330] sm:$0xff] }
 0x4a2   :  { %v8544_v9 = vpop.f32.mrf.mxu1 }
 0x4a3   :  { %11136 = vst [vmem:[#allocation194_spill] sm:$0xff] %v8544_v9  ;;  %v3691_v14 = vpop.f32.mrf.mxu3 }
 0x4a4   :  { %v8547_v52 = vadd.f32 %v3691_v14, %v8274_v11  ;;  %v5998_v14 = vld [vmem:[#allocation9 + $0x150] sm:$0xff] }
 0x4a5   :  { %v8549_v35 = vpop.f32.mrf.mxu0  ;;  %4164 = vmatpush.bf16.msra.mxu2 %v5998_v14 }
 0x4a6   :  { %11137 = vst [vmem:[#allocation195_spill] sm:$0xff] %v8547_v52 }
 0x4a7   :  { %11138 = vst [vmem:[#allocation196_spill] sm:$0xff] %v8549_v35  ;;  %v5997_v35 = vld [vmem:[#allocation9 + $0x148] sm:$0xff] }
 0x4a8   :  { %v8552_v36 = vpop.f32.mrf.mxu2 }
 0x4a9   :  { %4165 = vmatpush.bf16.msra.mxu2 %v5997_v35 }
 0x4aa   :  { %v8554_v47 = vpop.f32.mrf.mxu1  ;;  %4068 = vmatmul.bf16.gmra.mxu1 %v8292_v27 }
 0x4ab   :  { %11139 = vst [vmem:[#allocation197_spill] sm:$0xff] %v8554_v47  ;;  %3636 = vmatmul.bf16.gmra.mxu2 %v11140_v55  ;;  %v3693_v23 = vpop.f32.mrf.mxu3  ;;  %v1790_v47 = vrot.slane %v8288_v37, 2  ;;  %v1793_v37 = vrot.slane %v8282_v26, 2  ;;  %v6014_v26 = vld [vmem:[#allocation9 + $0x1d0] sm:$0xff] }
 0x4ac   :  { %v8558_v17 = vadd.f32 %v3693_v23, %v8284_v8 }
 0x4ad   :  { %v8560_v9 = vpop.f32.mrf.mxu0  ;;  %v1792_v14 = vsel %vm1709_vm4, %v1790_v47, %v8256_v7 }
 0x4ae   :  { %11141 = vst [vmem:[#allocation198_spill] sm:$0xff] %v8558_v17 }
 0x4af   :  { %11142 = vst [vmem:[#allocation199_spill] sm:$0xff] %v8560_v9  ;;  %v6075_v9 = vld [vmem:[#allocation2 + $0x338] sm:$0xff] }
 0x4b0   :  { %v8562_v11 = vpop.f32.mrf.mxu2  ;;  %3979 = vmatmul.bf16.gmra.mxu0 %v8234_v61  ;;  %3735 = vmatmul.bf16.gmra.mxu3 %v7909_v0  ;;  %v2000_v61 = vpack.c.bf16 %v6074_v22, %v6074_v22  ;;  %v2001_v17 = vpack.c.bf16 %v6075_v9, %v6075_v9 }
 0x4b1   :  { %11143 = vst [vmem:[#allocation200_spill] sm:$0xff] %v8562_v11  ;;  %v6007_v11 = vld [vmem:[#allocation9 + $0x198] sm:$0xff] }
 0x4b2   :  { %v8566_v52 = vpop.f32.mrf.mxu1  ;;  %v2673_v35 = vunpack.c.l.b16 %v2001_v17  ;;  %4332 = vmatpush.bf16.msra.mxu3 %v6007_v11  ;;  %v6013_v17 = vld [vmem:[#allocation9 + $0x1c8] sm:$0xff]  ;;  %v6023_v11 = vld [vmem:[#allocation9 + $0x218] sm:$0xff] }
 0x4b3   :  { %11144 = vst [vmem:[#allocation201_spill] sm:$0xff] %v8566_v52  ;;  %v3696_v55 = vpop.f32.mrf.mxu3  ;;  %v5996_v52 = vld [vmem:[#allocation9 + $0x140] sm:$0xff]  ;;  %4670 = vmatpush.bf16.msra.mxu1 %v6023_v11 }
 0x4b4   :  { %v8570_v23 = vadd.f32 %v3696_v55, %v8301_v60  ;;  %v6015_v60 = vld [vmem:[#allocation9 + $0x1d8] sm:$0xff]  ;;  %v1966_v55 = vpack.c.bf16 %v1792_v14, %v1792_v14  ;;  %4166 = vmatpush.bf16.msra.mxu2 %v5996_v52 }
 0x4b5   :  { %v8572_v8 = vpop.f32.mrf.mxu0  ;;  %4501 = vmatpush.bf16.msra.mxu0 %v6015_v60 }
 0x4b6   :  { %11145 = vst [vmem:[#allocation202_spill] sm:$0xff] %v8570_v23  ;;  %v2672_v23 = vunpack.c.l.b16 %v2000_v61  ;;  %v2570_v27 = vunpack.c.l.b16 %v1966_v55  ;;  %v11152_v55 = vld [vmem:[#allocation107_spill] sm:$0xff] }
 0x4b7   :  { %11146 = vst [vmem:[#allocation203_spill] sm:$0xff] %v8572_v8  ;;  %v1794_v8 = vsel %vm1709_vm4, %v8256_v7, %v1793_v37 }
 0x4b8   :  { %v8575_v0 = vpop.f32.mrf.mxu2  ;;  %v1967_v9 = vpack.c.bf16 %v1794_v8, %v1794_v8  ;;  %v8590_v7 = vpack.c.b16 %v2673_v35, %v2672_v23  ;;  %v11153_v35 = vld [vmem:[#allocation23_spill] sm:$0xff] }
 0x4b9   :  { %11147 = vst [vmem:[#allocation204_spill] sm:$0xff] %v8575_v0  ;;  %v11148_v0 = vld [vmem:[#allocation104_spill] sm:$0xff]  ;;  %4502 = vmatpush.bf16.msra.mxu0 %v6014_v26 }
 0x4ba   :  { %v8582_v22 = vpop.f32.mrf.mxu1  ;;  %v2571_v40 = vunpack.c.l.b16 %v1967_v9  ;;  %11150 = vst [vmem:[#allocation205_spill] sm:$0xff] %v8590_v7  ;;  %4073 = vmatmul.bf16.gmra.mxu1 %v11152_v55 }
 0x4bb   :  { %3641 = vmatmul.bf16.gmra.mxu2 %v11148_v0  ;;  %v3698_v47 = vpop.f32.mrf.mxu3 }
 0x4bc   :  { %v8586_v10 = vadd.f32 %v3698_v47, %v8310_v38  ;;  %v2618_v52 = vpack.c.b16 %v2571_v40, %v2570_v27  ;;  %v6012_v38 = vld [vmem:[#allocation9 + $0x1c0] sm:$0xff] }
 0x4bd   :  { %v8588_v14 = vpop.f32.mrf.mxu0  ;;  %4503 = vmatpush.bf16.msra.mxu0 %v6013_v17 }
 0x4be   :  { %11149 = vst [vmem:[#allocation104_spill] sm:$0xff] %v8588_v14 }
 0x4c0   :  { %v8592_v61 = vpop.f32.mrf.mxu2  ;;  %3984 = vmatmul.bf16.gmra.mxu0 %v8590_v7  ;;  %3740 = vmatmul.bf16.gmra.mxu3 %v2618_v52 }
 0x4c1   :  { %4504 = vmatpush.bf16.msra.mxu0 %v6012_v38 }
 0x4c2   :  { %v8595_v8 = vpop.f32.mrf.mxu1 }
 0x4c3   :  { %v3701_v37 = vpop.f32.mrf.mxu3 }
 0x4c4   :  { %v8598_v60 = vadd.f32 %v3701_v37, %v8316_v19 }
 0x4c5   :  { %v8600_v23 = vpop.f32.mrf.mxu0 }
 0x4c6   :  { %11151 = vst [vmem:[#allocation206_spill] sm:$0xff] %v8600_v23 }
 0x4c8   :  { %v8603_v27 = vpop.f32.mrf.mxu2 }
 0x4ca   :  { %v8605_v40 = vpop.f32.mrf.mxu1  ;;  %4078 = vmatmul.bf16.gmra.mxu1 %v11038_v62 }
 0x4cb   :  { %3646 = vmatmul.bf16.gmra.mxu2 %v11153_v35  ;;  %v3703_v9 = vpop.f32.mrf.mxu3 }
 0x4cc   :  { %v8609_v47 = vadd.f32 %v3703_v9, %v8325_v15 }
 0x4cd   :  { %v8611_v26 = vpop.f32.mrf.mxu0 }
 0x4ce   :  { %11154 = vst [vmem:[#allocation107_spill] sm:$0xff] %v8611_v26 }
 0x4d0   :  { %v8613_v52 = vpop.f32.mrf.mxu2  ;;  %4505 = vmatmul.bf16.vlgmr.msra.gmra.mxu0 %v11036_v49  ;;  %3745 = vmatmul.bf16.gmra.mxu3 %v7975_v16 }
 0x4d2   :  { %v8617_v19 = vpop.f32.mrf.mxu1 }
 0x4d3   :  { %v3706_v17 = vpop.f32.mrf.mxu3 }
 0x4d4   :  { %v8620_v11 = vadd.f32 %v3706_v17, %v8332_v3 }
 0x4d5   :  { %v8622_v38 = vpop.f32.mrf.mxu0 }
 0x4d6   :  { %11155 = vst [vmem:[#allocation207_spill] sm:$0xff] %v8620_v11 }
 0x4d7   :  { %11156 = vst [vmem:[#allocation208_spill] sm:$0xff] %v8622_v38 }
 0x4d8   :  { %v8625_v15 = vpop.f32.mrf.mxu2 }
 0x4da   :  { %v8627_v37 = vpop.f32.mrf.mxu1  ;;  %4083 = vmatmul.bf16.gmra.mxu1 %v11046_v29 }
 0x4db   :  { %4167 = vmatmul.bf16.vlgmr.msra.gmra.mxu2 %v11027_v43  ;;  %v3708_v9 = vpop.f32.mrf.mxu3 }
 0x4dc   :  { %v8631_v49 = vadd.f32 %v3708_v9, %v8341_v1 }
 0x4dd   :  { %v8633_v7 = vpop.f32.mrf.mxu0 }
 0x4de   :  { %11157 = vst [vmem:[#allocation209_spill] sm:$0xff] %v8631_v49 }
 0x4df   :  { %11158 = vst [vmem:[#allocation210_spill] sm:$0xff] %v8633_v7 }
 0x4e0   :  { %v8635_v26 = vpop.f32.mrf.mxu2  ;;  %4510 = vmatmul.bf16.gmra.mxu0 %v11044_v28  ;;  %3750 = vmatmul.bf16.gmra.mxu3 %v7981_v4 }
 0x4e2   :  { %v8639_v3 = vpop.f32.mrf.mxu1 }
 0x4e3   :  { %11159 = vst [vmem:[#allocation211_spill] sm:$0xff] %v8639_v3  ;;  %v3711_v62 = vpop.f32.mrf.mxu3 }
 0x4e4   :  { %v8642_v17 = vadd.f32 %v3711_v62, %v8348_v53 }
 0x4e5   :  { %v8644_v38 = vpop.f32.mrf.mxu0 }
 0x4e6   :  { %11160 = vst [vmem:[#allocation212_spill] sm:$0xff] %v8642_v17 }
 0x4e7   :  { %11161 = vst [vmem:[#allocation213_spill] sm:$0xff] %v8644_v38  ;;  %v11166_v38 = vld [vmem:[#allocation145_spill] sm:$0xff] }
 0x4e8   :  { %v8647_v43 = vpop.f32.mrf.mxu2 }
 0x4ea   :  { %v8649_v1 = vpop.f32.mrf.mxu1 }
 0x4eb   :  { %11162 = vst [vmem:[#allocation214_spill] sm:$0xff] %v8649_v1  ;;  %4172 = vmatmul.bf16.gmra.mxu2 %v11034_v50  ;;  %v3713_v9 = vpop.f32.mrf.mxu3  ;;  %v11169_v1 = vld [vmem:[#allocation93_spill] sm:$0xff] }
 0x4ec   :  { %v8653_v28 = vadd.f32 %v3713_v9, %v8357_v25  ;;  %4088 = vmatmul.bf16.gmra.mxu1 %v11169_v1  ;;  %v6006_v9 = vld [vmem:[#allocation9 + $0x190] sm:$0xff] }
 0x4ed   :  { %v8655_v7 = vpop.f32.mrf.mxu0  ;;  %4333 = vmatpush.bf16.msra.mxu3 %v6006_v9 }
 0x4ee   :  { %11163 = vst [vmem:[#allocation215_spill] sm:$0xff] %v8653_v28  ;;  %v11171_v28 = vld [vmem:[#allocation92_spill] sm:$0xff] }
 0x4ef   :  { %11164 = vst [vmem:[#allocation216_spill] sm:$0xff] %v8655_v7 }
 0x4f0   :  { %v8657_v23 = vpop.f32.mrf.mxu2  ;;  %4515 = vmatmul.bf16.gmra.mxu0 %v11052_v34  ;;  %3755 = vmatmul.bf16.gmra.mxu3 %v7985_v42  ;;  %v11172_v42 = vld [vmem:[#allocation148_spill] sm:$0xff] }
 0x4f2   :  { %v8661_v53 = vpop.f32.mrf.mxu1 }
 0x4f3   :  { %11165 = vst [vmem:[#allocation217_spill] sm:$0xff] %v8661_v53  ;;  %v3716_v62 = vpop.f32.mrf.mxu3 }
 0x4f4   :  { %v8664_v14 = vadd.f32 %v3716_v62, %v11166_v38  ;;  %v11175_v62 = vld [vmem:[#allocation46_spill] sm:$0xff] }
 0x4f5   :  { %v8666_v17 = vpop.f32.mrf.mxu0 }
 0x4f6   :  { %11167 = vst [vmem:[#allocation145_spill] sm:$0xff] %v8664_v14  ;;  %v11176_v14 = vld [vmem:[#allocation16_spill] sm:$0xff] }
 0x4f7   :  { %11168 = vst [vmem:[#allocation218_spill] sm:$0xff] %v8666_v17  ;;  %v6022_v17 = vld [vmem:[#allocation9 + $0x210] sm:$0xff] }
 0x4f8   :  { %v8669_v25 = vpop.f32.mrf.mxu2  ;;  %4671 = vmatpush.bf16.msra.mxu1 %v6022_v17 }
 0x4fa   :  { %v8671_v7 = vpop.f32.mrf.mxu1 }
 0x4fb   :  { %11170 = vst [vmem:[#allocation93_spill] sm:$0xff] %v8671_v7  ;;  %4177 = vmatmul.bf16.gmra.mxu2 %v11171_v28  ;;  %v3718_v34 = vpop.f32.mrf.mxu3  ;;  %v11178_v7 = vld [vmem:[#allocation151_spill] sm:$0xff]  ;;  %v11185_v28 = vld [vmem:[#allocation154_spill] sm:$0xff] }
 0x4fc   :  { %v8675_v49 = vadd.f32 %v3718_v34, %v11172_v42  ;;  %v11181_v42 = vld [vmem:[#allocation33_spill] sm:$0xff] }
 0x4fd   :  { %v8677_v53 = vpop.f32.mrf.mxu0  ;;  %4093 = vmatmul.bf16.gmra.mxu1 %v11181_v42  ;;  %v11191_v42 = vld [vmem:[#allocation157_spill] sm:$0xff] }
 0x4fe   :  { %11173 = vst [vmem:[#allocation148_spill] sm:$0xff] %v8675_v49  ;;  %v11184_v49 = vld [vmem:[#allocation31_spill] sm:$0xff] }
 0x4ff   :  { %11174 = vst [vmem:[#allocation219_spill] sm:$0xff] %v8677_v53 }
 0x500   :  { %v8679_v38 = vpop.f32.mrf.mxu2  ;;  %4520 = vmatmul.bf16.gmra.mxu0 %v11175_v62  ;;  %3760 = vmatmul.bf16.gmra.mxu3 %v11176_v14 }
 0x502   :  { %v8683_v3 = vpop.f32.mrf.mxu1 }
 0x503   :  { %11177 = vst [vmem:[#allocation46_spill] sm:$0xff] %v8683_v3  ;;  %v3721_v9 = vpop.f32.mrf.mxu3 }
 0x504   :  { %v8686_v4 = vadd.f32 %v3721_v9, %v11178_v7  ;;  %v11188_v7 = vld [vmem:[#allocation51_spill] sm:$0xff]  ;;  %v11189_v9 = vld [vmem:[#allocation30_spill] sm:$0xff] }
 0x505   :  { %v8688_v11 = vpop.f32.mrf.mxu0 }
 0x506   :  { %11179 = vst [vmem:[#allocation151_spill] sm:$0xff] %v8686_v4 }
 0x507   :  { %11180 = vst [vmem:[#allocation220_spill] sm:$0xff] %v8688_v11 }
 0x508   :  { %v8691_v34 = vpop.f32.mrf.mxu2 }
 0x509   :  { %11182 = vst [vmem:[#allocation221_spill] sm:$0xff] %v8691_v34 }
 0x50a   :  { %v8693_v53 = vpop.f32.mrf.mxu1 }
 0x50b   :  { %11183 = vst [vmem:[#allocation222_spill] sm:$0xff] %v8693_v53  ;;  %4182 = vmatmul.bf16.gmra.mxu2 %v11184_v49  ;;  %v3723_v62 = vpop.f32.mrf.mxu3  ;;  %v11194_v49 = vld [vmem:[#allocation39_spill] sm:$0xff] }
 0x50c   :  { %v8697_v14 = vadd.f32 %v3723_v62, %v11185_v28 }
 0x50d   :  { %v8699_v17 = vpop.f32.mrf.mxu0  ;;  %4098 = vmatmul.bf16.gmra.mxu1 %v11194_v49  ;;  %v11203_v49 = vld [vmem:[#allocation162_spill] sm:$0xff] }
 0x50e   :  { %11186 = vst [vmem:[#allocation154_spill] sm:$0xff] %v8697_v14 }
 0x50f   :  { %11187 = vst [vmem:[#allocation223_spill] sm:$0xff] %v8699_v17  ;;  %v11197_v17 = vld [vmem:[#allocation37_spill] sm:$0xff] }
 0x510   :  { %v8701_v3 = vpop.f32.mrf.mxu2  ;;  %4525 = vmatmul.bf16.gmra.mxu0 %v11188_v7  ;;  %3765 = vmatmul.bf16.gmra.mxu3 %v11189_v9 }
 0x512   :  { %v8705_v11 = vpop.f32.mrf.mxu1 }
 0x513   :  { %11190 = vst [vmem:[#allocation51_spill] sm:$0xff] %v8705_v11  ;;  %v3726_v4 = vpop.f32.mrf.mxu3 }
 0x514   :  { %v8708_v34 = vadd.f32 %v3726_v4, %v11191_v42  ;;  %v11200_v4 = vld [vmem:[#allocation62_spill] sm:$0xff]  ;;  %v11201_v42 = vld [vmem:[#allocation41_spill] sm:$0xff] }
 0x515   :  { %v8710_v53 = vpop.f32.mrf.mxu0 }
 0x516   :  { %11192 = vst [vmem:[#allocation157_spill] sm:$0xff] %v8708_v34 }
 0x517   :  { %11193 = vst [vmem:[#allocation224_spill] sm:$0xff] %v8710_v53 }
 0x518   :  { %v8713_v28 = vpop.f32.mrf.mxu2 }
 0x519   :  { %11195 = vst [vmem:[#allocation225_spill] sm:$0xff] %v8713_v28 }
 0x51a   :  { %v8715_v62 = vpop.f32.mrf.mxu1 }
 0x51b   :  { %11196 = vst [vmem:[#allocation226_spill] sm:$0xff] %v8715_v62  ;;  %4187 = vmatmul.bf16.gmra.mxu2 %v11197_v17  ;;  %v3728_v14 = vpop.f32.mrf.mxu3  ;;  %v11206_v17 = vld [vmem:[#allocation42_spill] sm:$0xff] }
 0x51c   :  { %v8719_v7 = vadd.f32 %v3728_v14, %v8405_v12 }
 0x51d   :  { %v8721_v9 = vpop.f32.mrf.mxu0  ;;  %4103 = vmatmul.bf16.gmra.mxu1 %v11206_v17 }
 0x51e   :  { %11198 = vst [vmem:[#allocation227_spill] sm:$0xff] %v8719_v7 }
 0x51f   :  { %11199 = vst [vmem:[#allocation228_spill] sm:$0xff] %v8721_v9  ;;  %v11208_v9 = vld [vmem:[#allocation38_spill] sm:$0xff] }
 0x520   :  { %v8723_v11 = vpop.f32.mrf.mxu2  ;;  %4530 = vmatmul.bf16.gmra.mxu0 %v11200_v4  ;;  %3770 = vmatmul.bf16.gmra.mxu3 %v11201_v42 }
 0x522   :  { %v8727_v53 = vpop.f32.mrf.mxu1 }
 0x523   :  { %11202 = vst [vmem:[#allocation62_spill] sm:$0xff] %v8727_v53  ;;  %v3731_v34 = vpop.f32.mrf.mxu3 }
 0x524   :  { %v8730_v28 = vadd.f32 %v3731_v34, %v11203_v49  ;;  %v11211_v49 = vld [vmem:[#allocation40_spill] sm:$0xff] }
 0x525   :  { %v8732_v62 = vpop.f32.mrf.mxu0 }
 0x526   :  { %11204 = vst [vmem:[#allocation162_spill] sm:$0xff] %v8730_v28 }
 0x527   :  { %11205 = vst [vmem:[#allocation229_spill] sm:$0xff] %v8732_v62 }
 0x528   :  { %v8735_v12 = vpop.f32.mrf.mxu2 }
 0x52a   :  { %v8737_v14 = vpop.f32.mrf.mxu1 }
 0x52b   :  { %11207 = vst [vmem:[#allocation42_spill] sm:$0xff] %v8737_v14  ;;  %4192 = vmatmul.bf16.gmra.mxu2 %v11208_v9  ;;  %v3733_v7 = vpop.f32.mrf.mxu3 }
 0x52c   :  { %v8741_v4 = vadd.f32 %v3733_v7, %v8422_v13  ;;  %v6005_v7 = vld [vmem:[#allocation9 + $0x188] sm:$0xff] }
 0x52d   :  { %v8743_v42 = vpop.f32.mrf.mxu0  ;;  %4108 = vmatmul.bf16.gmra.mxu1 %v11090_v5  ;;  %4334 = vmatpush.bf16.msra.mxu3 %v6005_v7 }
 0x52e   :  { %11209 = vst [vmem:[#allocation38_spill] sm:$0xff] %v8741_v4  ;;  %v11216_v4 = vld [vmem:[#allocation44_spill] sm:$0xff] }
 0x52f   :  { %11210 = vst [vmem:[#allocation230_spill] sm:$0xff] %v8743_v42 }
 0x530   :  { %v8745_v53 = vpop.f32.mrf.mxu2  ;;  %4535 = vmatmul.bf16.gmra.mxu0 %v10866_v51  ;;  %3775 = vmatmul.bf16.gmra.mxu3 %v11211_v49 }
 0x532   :  { %v8749_v34 = vpop.f32.mrf.mxu1 }
 0x533   :  { %11212 = vst [vmem:[#allocation231_spill] sm:$0xff] %v8749_v34  ;;  %v3736_v62 = vpop.f32.mrf.mxu3 }
 0x534   :  { %v8752_v28 = vadd.f32 %v3736_v62, %v8430_v46  ;;  %v6021_v62 = vld [vmem:[#allocation9 + $0x208] sm:$0xff] }
 0x535   :  { %v8754_v14 = vpop.f32.mrf.mxu0  ;;  %4672 = vmatpush.bf16.msra.mxu1 %v6021_v62  ;;  %v11226_v62 = vld [vmem:[#allocation53_spill] sm:$0xff] }
 0x536   :  { %11213 = vst [vmem:[#allocation232_spill] sm:$0xff] %v8752_v28  ;;  %v11220_v28 = vld [vmem:[#allocation34_spill] sm:$0xff] }
 0x537   :  { %11214 = vst [vmem:[#allocation233_spill] sm:$0xff] %v8754_v14  ;;  %v11219_v14 = vld [vmem:[#allocation49_spill] sm:$0xff]  ;;  %v3573_v7 = vadd.f32 %v8452_v59, %v11220_v28 }
 0x538   :  { %v8757_v13 = vpop.f32.mrf.mxu2 }
 0x53a   :  { %v8759_v42 = vpop.f32.mrf.mxu1 }
 0x53b   :  { %11215 = vst [vmem:[#allocation234_spill] sm:$0xff] %v8759_v42  ;;  %4197 = vmatmul.bf16.gmra.mxu2 %v11216_v4  ;;  %v3738_v51 = vpop.f32.mrf.mxu3 }
 0x53c   :  { %v8763_v49 = vadd.f32 %v3738_v51, %v8442_v39 }
 0x53d   :  { %v8765_v34 = vpop.f32.mrf.mxu0  ;;  %4113 = vmatmul.bf16.gmra.mxu1 %v11099_v20 }
 0x53e   :  { %11217 = vst [vmem:[#allocation235_spill] sm:$0xff] %v8763_v49 }
 0x53f   :  { %11218 = vst [vmem:[#allocation236_spill] sm:$0xff] %v8765_v34  ;;  %v11224_v34 = vld [vmem:[#allocation45_spill] sm:$0xff] }
 0x540   :  { %v8767_v46 = vpop.f32.mrf.mxu2  ;;  %4540 = vmatmul.bf16.gmra.mxu0 %v10897_v45  ;;  %3780 = vmatmul.bf16.gmra.mxu3 %v11219_v14  ;;  %v3575_v45 = vadd.f32 %v8464_v6, %v11224_v34 }
 0x542   :  { %v8773_v42 = vpop.f32.mrf.mxu1 }
 0x543   :  { %11221 = vst [vmem:[#allocation34_spill] sm:$0xff] %v8773_v42  ;;  %v3741_v4 = vpop.f32.mrf.mxu3 }
 0x544   :  { %v8775_v5 = vadd.f32 %v3741_v4, %v3573_v7  ;;  %v11229_v7 = vld [vmem:[#allocation75_spill] sm:$0xff] }
 0x545   :  { %v8777_v39 = vpop.f32.mrf.mxu0 }
 0x546   :  { %11222 = vst [vmem:[#allocation237_spill] sm:$0xff] %v8775_v5 }
 0x547   :  { %11223 = vst [vmem:[#allocation238_spill] sm:$0xff] %v8777_v39  ;;  %v11230_v39 = vld [vmem:[#allocation58_spill] sm:$0xff] }
 0x548   :  { %v8780_v51 = vpop.f32.mrf.mxu2  ;;  %v3578_v5 = vadd.f32 %v8474_v41, %v11230_v39 }
 0x54a   :  { %v8784_v49 = vpop.f32.mrf.mxu1 }
 0x54b   :  { %11225 = vst [vmem:[#allocation45_spill] sm:$0xff] %v8784_v49  ;;  %4202 = vmatmul.bf16.gmra.mxu2 %v11226_v62  ;;  %v3743_v14 = vpop.f32.mrf.mxu3 }
 0x54c   :  { %v8787_v59 = vadd.f32 %v3743_v14, %v3575_v45  ;;  %v11234_v45 = vld [vmem:[#allocation163_spill] sm:$0xff] }
 0x54d   :  { %v8789_v28 = vpop.f32.mrf.mxu0  ;;  %4118 = vmatmul.bf16.gmra.mxu1 %v11108_v58 }
 0x54e   :  { %11227 = vst [vmem:[#allocation239_spill] sm:$0xff] %v8787_v59  ;;  %v11235_v59 = vld [vmem:[#allocation54_spill] sm:$0xff] }
 0x54f   :  { %11228 = vst [vmem:[#allocation240_spill] sm:$0xff] %v8789_v28  ;;  %v3831_v28 = vadd.f32 %v11235_v59, %v11234_v45  ;;  %v11241_v59 = vld [vmem:[#allocation65_spill] sm:$0xff] }
 0x550   :  { %v8791_v4 = vpop.f32.mrf.mxu2  ;;  %4545 = vmatmul.bf16.gmra.mxu0 %v10942_v24  ;;  %3785 = vmatmul.bf16.gmra.mxu3 %v11229_v7  ;;  %v11236_v24 = vld [vmem:[#allocation94_spill] sm:$0xff]  ;;  %v11242_v45 = vld [vmem:[#allocation165_spill] sm:$0xff] }
 0x551   :  { %v3580_v7 = vadd.f32 %v8486_v48, %v11236_v24  ;;  %v11243_v48 = vld [vmem:[#allocation69_spill] sm:$0xff] }
 0x552   :  { %v8797_v42 = vpop.f32.mrf.mxu1  ;;  %v3833_v24 = vadd.f32 %v11243_v48, %v11242_v45  ;;  %v11251_v48 = vld [vmem:[#allocation105_spill] sm:$0xff] }
 0x553   :  { %11231 = vst [vmem:[#allocation58_spill] sm:$0xff] %v8797_v42  ;;  %v3746_v6 = vpop.f32.mrf.mxu3 }
 0x554   :  { %v8799_v34 = vadd.f32 %v3746_v6, %v3578_v5  ;;  %v11240_v6 = vld [vmem:[#allocation167_spill] sm:$0xff] }
 0x555   :  { %v8801_v49 = vpop.f32.mrf.mxu0 }
 0x556   :  { %11232 = vst [vmem:[#allocation241_spill] sm:$0xff] %v8799_v34  ;;  %v4000_v34 = vadd.f32 %v11240_v6, %v3831_v28  ;;  %v11248_v28 = vld [vmem:[#allocation170_spill] sm:$0xff]  ;;  %v11249_v6 = vld [vmem:[#allocation168_spill] sm:$0xff] }
 0x557   :  { %11233 = vst [vmem:[#allocation242_spill] sm:$0xff] %v8801_v49 }
 0x558   :  { %v8804_v14 = vpop.f32.mrf.mxu2 }
 0x55a   :  { %v8810_v62 = vpop.f32.mrf.mxu1 }
 0x55b   :  { %11237 = vst [vmem:[#allocation163_spill] sm:$0xff] %v8810_v62  ;;  %4207 = vmatmul.bf16.gmra.mxu2 %v11094_v2  ;;  %v3748_v41 = vpop.f32.mrf.mxu3  ;;  %v11244_v62 = vld [vmem:[#allocation99_spill] sm:$0xff] }
 0x55c   :  { %v8813_v39 = vadd.f32 %v3748_v41, %v3580_v7  ;;  %v3583_v2 = vadd.f32 %v8496_v21, %v11244_v62  ;;  %v3585_v21 = vadd.f32 %v8508_v32, %v11251_v48  ;;  %v11259_v32 = vld [vmem:[#allocation102_spill] sm:$0xff]  ;;  %v11260_v48 = vld [vmem:[#allocation87_spill] sm:$0xff] }
 0x55d   :  { %v8815_v5 = vpop.f32.mrf.mxu0  ;;  %4123 = vmatmul.bf16.gmra.mxu1 %v11116_v56 }
 0x55e   :  { %11238 = vst [vmem:[#allocation54_spill] sm:$0xff] %v8813_v39 }
 0x55f   :  { %11239 = vst [vmem:[#allocation94_spill] sm:$0xff] %v8815_v5 }
 0x560   :  { %v4168_v42 = vpop.f32.mrf.mxu2  ;;  %4550 = vmatmul.bf16.gmra.mxu0 %v10982_v63  ;;  %3790 = vmatmul.bf16.gmra.mxu3 %v11241_v59  ;;  %v11250_v59 = vld [vmem:[#allocation66_spill] sm:$0xff] }
 0x561   :  { %v8818_v49 = vadd.f32 %v4168_v42, %v4000_v34  ;;  %v4002_v42 = vadd.f32 %v11248_v28, %v3833_v24  ;;  %v3836_v45 = vadd.f32 %v11250_v59, %v11249_v6  ;;  %v11256_v24 = vld [vmem:[#allocation172_spill] sm:$0xff]  ;;  %v11257_v59 = vld [vmem:[#allocation111_spill] sm:$0xff] }
 0x562   :  { %v8826_v58 = vpop.f32.mrf.mxu1 }
 0x563   :  { %11245 = vst [vmem:[#allocation167_spill] sm:$0xff] %v8826_v58  ;;  %v3751_v7 = vpop.f32.mrf.mxu3  ;;  %v11253_v58 = vld [vmem:[#allocation72_spill] sm:$0xff]  ;;  %v4005_v28 = vadd.f32 %v11256_v24, %v3836_v45  ;;  %v11264_v45 = vld [vmem:[#allocation175_spill] sm:$0xff] }
 0x564   :  { %v8828_v41 = vadd.f32 %v3751_v7, %v3583_v2 }
 0x565   :  { %v8830_v39 = vpop.f32.mrf.mxu0 }
 0x566   :  { %11246 = vst [vmem:[#allocation165_spill] sm:$0xff] %v8828_v41 }
 0x567   :  { %11247 = vst [vmem:[#allocation69_spill] sm:$0xff] %v8830_v39 }
 0x568   :  { %v4170_v63 = vpop.f32.mrf.mxu2 }
 0x569   :  { %v8834_v34 = vadd.f32 %v4170_v63, %v4002_v42  ;;  %v11258_v63 = vld [vmem:[#allocation56_spill] sm:$0xff] }
 0x56a   :  { %v8840_v62 = vpop.f32.mrf.mxu1  ;;  %v3838_v6 = vadd.f32 %v11259_v32, %v11258_v63  ;;  %v11266_v63 = vld [vmem:[#allocation73_spill] sm:$0xff] }
 0x56b   :  { %11252 = vst [vmem:[#allocation99_spill] sm:$0xff] %v8840_v62  ;;  %4212 = vmatmul.bf16.gmra.mxu2 %v11253_v58  ;;  %v3753_v2 = vpop.f32.mrf.mxu3  ;;  %v3588_v62 = vadd.f32 %v8518_v18, %v11260_v48  ;;  %v11267_v18 = vld [vmem:[#allocation17_spill] sm:$0xff] }
 0x56c   :  { %v8843_v7 = vadd.f32 %v3753_v2, %v3585_v21  ;;  %v3590_v48 = vadd.f32 %v8530_v57, %v11267_v18  ;;  %v11274_v57 = vld [vmem:[#allocation176_spill] sm:$0xff] }
 0x56d   :  { %v8845_v41 = vpop.f32.mrf.mxu0  ;;  %4128 = vmatmul.bf16.gmra.mxu1 %v11124_v30 }
 0x56e   :  { %11254 = vst [vmem:[#allocation170_spill] sm:$0xff] %v8843_v7 }
 0x56f   :  { %11255 = vst [vmem:[#allocation168_spill] sm:$0xff] %v8845_v41 }
 0x570   :  { %v4173_v39 = vpop.f32.mrf.mxu2  ;;  %4555 = vmatmul.bf16.gmra.mxu0 %v8196_v33  ;;  %3795 = vmatmul.bf16.gmra.mxu3 %v11257_v59  ;;  %v11265_v59 = vld [vmem:[#allocation173_spill] sm:$0xff] }
 0x571   :  { %v8848_v42 = vadd.f32 %v4173_v39, %v4005_v28  ;;  %v4007_v39 = vadd.f32 %v11264_v45, %v3838_v6  ;;  %v6004_v28 = vld [vmem:[#allocation9 + $0x180] sm:$0xff]  ;;  %v3841_v32 = vadd.f32 %v11266_v63, %v11265_v59  ;;  %v11272_v45 = vld [vmem:[#allocation178_spill] sm:$0xff]  ;;  %v11275_v63 = vld [vmem:[#allocation109_spill] sm:$0xff] }
 0x572   :  { %v8856_v5 = vpop.f32.mrf.mxu1  ;;  %4335 = vmatpush.bf16.msra.mxu3 %v6004_v28  ;;  %v6020_v59 = vld [vmem:[#allocation9 + $0x200] sm:$0xff]  ;;  %v11273_v28 = vld [vmem:[#allocation113_spill] sm:$0xff]  ;;  %v3843_v18 = vadd.f32 %v11275_v63, %v11274_v57 }
 0x573   :  { %11261 = vst [vmem:[#allocation66_spill] sm:$0xff] %v8856_v5  ;;  %v3756_v21 = vpop.f32.mrf.mxu3  ;;  %4673 = vmatpush.bf16.msra.mxu1 %v6020_v59  ;;  %v11282_v57 = vld [vmem:[#allocation48_spill] sm:$0xff] }
 0x574   :  { %v8858_v2 = vadd.f32 %v3756_v21, %v3588_v62  ;;  %v11269_v62 = vld [vmem:[#allocation95_spill] sm:$0xff]  ;;  %v11283_v63 = vld [vmem:[#allocation112_spill] sm:$0xff] }
 0x575   :  { %v8860_v7 = vpop.f32.mrf.mxu0 }
 0x576   :  { %11262 = vst [vmem:[#allocation105_spill] sm:$0xff] %v8858_v2 }
 0x577   :  { %11263 = vst [vmem:[#allocation72_spill] sm:$0xff] %v8860_v7 }
 0x578   :  { %v4175_v33 = vpop.f32.mrf.mxu2 }
 0x579   :  { %v8864_v24 = vadd.f32 %v4175_v33, %v4007_v39  ;;  %v4010_v39 = vadd.f32 %v11272_v45, %v3841_v32  ;;  %v11279_v32 = vld [vmem:[#allocation181_spill] sm:$0xff] }
 0x57a   :  { %v8870_v5 = vpop.f32.mrf.mxu1  ;;  %v4012_v45 = vadd.f32 %v11279_v32, %v3843_v18  ;;  %v11287_v18 = vld [vmem:[#allocation183_spill] sm:$0xff] }
 0x57b   :  { %11268 = vst [vmem:[#allocation172_spill] sm:$0xff] %v8870_v5  ;;  %4217 = vmatmul.bf16.gmra.mxu2 %v11269_v62  ;;  %v3758_v21 = vpop.f32.mrf.mxu3  ;;  %v11276_v5 = vld [vmem:[#allocation57_spill] sm:$0xff] }
 0x57c   :  { %v8873_v2 = vadd.f32 %v3758_v21, %v3590_v48  ;;  %v3593_v48 = vadd.f32 %v8540_v31, %v11276_v5  ;;  %v3595_v31 = vadd.f32 %v8552_v36, %v11283_v63  ;;  %v11293_v36 = vld [vmem:[#allocation60_spill] sm:$0xff] }
 0x57d   :  { %v8875_v6 = vpop.f32.mrf.mxu0  ;;  %4133 = vmatmul.bf16.gmra.mxu1 %v11132_v54  ;;  %v11295_v54 = vld [vmem:[#allocation200_spill] sm:$0xff] }
 0x57e   :  { %11270 = vst [vmem:[#allocation56_spill] sm:$0xff] %v8873_v2 }
 0x57f   :  { %11271 = vst [vmem:[#allocation102_spill] sm:$0xff] %v8875_v6 }
 0x580   :  { %v4178_v33 = vpop.f32.mrf.mxu2  ;;  %4560 = vmatmul.bf16.gmra.mxu0 %v8231_v44  ;;  %3800 = vmatmul.bf16.gmra.mxu3 %v11273_v28  ;;  %v11281_v28 = vld [vmem:[#allocation179_spill] sm:$0xff] }
 0x581   :  { %v8878_v7 = vadd.f32 %v4178_v33, %v4010_v39  ;;  %v3846_v59 = vadd.f32 %v11282_v57, %v11281_v28  ;;  %v11291_v28 = vld [vmem:[#allocation114_spill] sm:$0xff]  ;;  %v11292_v57 = vld [vmem:[#allocation77_spill] sm:$0xff] }
 0x582   :  { %v8886_v21 = vpop.f32.mrf.mxu1  ;;  %v3848_v63 = vadd.f32 %v11293_v36, %v11292_v57  ;;  %v11303_v57 = vld [vmem:[#allocation119_spill] sm:$0xff]  ;;  %v11304_v36 = vld [vmem:[#allocation204_spill] sm:$0xff] }
 0x583   :  { %11277 = vst [vmem:[#allocation87_spill] sm:$0xff] %v8886_v21  ;;  %v3761_v2 = vpop.f32.mrf.mxu3  ;;  %v11285_v21 = vld [vmem:[#allocation97_spill] sm:$0xff]  ;;  %v4015_v32 = vadd.f32 %v11287_v18, %v3846_v59  ;;  %v11298_v59 = vld [vmem:[#allocation186_spill] sm:$0xff] }
 0x584   :  { %v8888_v6 = vadd.f32 %v3761_v2, %v3593_v48  ;;  %v11299_v18 = vld [vmem:[#allocation101_spill] sm:$0xff] }
 0x585   :  { %v8892_v44 = vpop.f32.mrf.mxu0 }
 0x586   :  { %11278 = vst [vmem:[#allocation175_spill] sm:$0xff] %v8888_v6 }
 0x587   :  { %11280 = vst [vmem:[#allocation173_spill] sm:$0xff] %v8892_v44 }
 0x588   :  { %v4180_v39 = vpop.f32.mrf.mxu2 }
 0x589   :  { %v8894_v33 = vadd.f32 %v4180_v39, %v4012_v45  ;;  %v11290_v39 = vld [vmem:[#allocation131_spill] sm:$0xff] }
 0x58a   :  { %v8900_v5 = vpop.f32.mrf.mxu1 }
 0x58b   :  { %11284 = vst [vmem:[#allocation73_spill] sm:$0xff] %v8900_v5  ;;  %4222 = vmatmul.bf16.gmra.mxu2 %v11285_v21  ;;  %v3763_v2 = vpop.f32.mrf.mxu3  ;;  %v11294_v5 = vld [vmem:[#allocation116_spill] sm:$0xff] }
 0x58c   :  { %v8903_v48 = vadd.f32 %v3763_v2, %v3595_v31  ;;  %v3598_v21 = vadd.f32 %v11295_v54, %v11294_v5  ;;  %v3600_v54 = vadd.f32 %v11304_v36, %v11303_v57  ;;  %v11313_v57 = vld [vmem:[#allocation122_spill] sm:$0xff] }
 0x58d   :  { %v8908_v45 = vpop.f32.mrf.mxu0  ;;  %4138 = vmatmul.bf16.gmra.mxu1 %v11299_v18  ;;  %v3603_v36 = vadd.f32 %v8592_v61, %v11313_v57 }
 0x58e   :  { %11286 = vst [vmem:[#allocation17_spill] sm:$0xff] %v8903_v48 }
 0x58f   :  { %11289 = vst [vmem:[#allocation178_spill] sm:$0xff] %v8908_v45 }
 0x590   :  { %v4183_v6 = vpop.f32.mrf.mxu2  ;;  %4565 = vmatmul.bf16.gmra.mxu0 %v11290_v39  ;;  %3805 = vmatmul.bf16.gmra.mxu3 %v11291_v28  ;;  %v11300_v39 = vld [vmem:[#allocation184_spill] sm:$0xff]  ;;  %v11301_v28 = vld [vmem:[#allocation81_spill] sm:$0xff] }
 0x591   :  { %v8906_v44 = vadd.f32 %v4183_v6, %v4015_v32  ;;  %v4017_v6 = vadd.f32 %v11298_v59, %v3848_v63  ;;  %v3851_v45 = vadd.f32 %v11301_v28, %v11300_v39  ;;  %v11308_v63 = vld [vmem:[#allocation188_spill] sm:$0xff]  ;;  %v11310_v28 = vld [vmem:[#allocation85_spill] sm:$0xff] }
 0x592   :  { %v8916_v41 = vpop.f32.mrf.mxu1  ;;  %v11311_v39 = vld [vmem:[#allocation96_spill] sm:$0xff] }
 0x593   :  { %11288 = vst [vmem:[#allocation95_spill] sm:$0xff] %v8906_v44  ;;  %v3766_v31 = vpop.f32.mrf.mxu3  ;;  %v4020_v59 = vadd.f32 %v11308_v63, %v3851_v45  ;;  %v11317_v45 = vld [vmem:[#allocation191_spill] sm:$0xff] }
 0x594   :  { %11296 = vst [vmem:[#allocation176_spill] sm:$0xff] %v8916_v41  ;;  %v8918_v2 = vadd.f32 %v3766_v31, %v3598_v21  ;;  %v11306_v41 = vld [vmem:[#allocation100_spill] sm:$0xff] }
 0x595   :  { %v8926_v44 = vpop.f32.mrf.mxu0 }
 0x596   :  { %11297 = vst [vmem:[#allocation109_spill] sm:$0xff] %v8918_v2 }
 0x597   :  { %11302 = vst [vmem:[#allocation57_spill] sm:$0xff] %v8926_v44  ;;  %v11312_v44 = vld [vmem:[#allocation118_spill] sm:$0xff] }
 0x598   :  { %v4185_v32 = vpop.f32.mrf.mxu2  ;;  %v3853_v18 = vadd.f32 %v11312_v44, %v11311_v39  ;;  %v11320_v39 = vld [vmem:[#allocation124_spill] sm:$0xff] }
 0x599   :  { %v8922_v48 = vadd.f32 %v4185_v32, %v4017_v6  ;;  %v11309_v32 = vld [vmem:[#allocation137_spill] sm:$0xff]  ;;  %v3605_v61 = vadd.f32 %v8603_v27, %v11320_v39  ;;  %v11329_v27 = vld [vmem:[#allocation123_spill] sm:$0xff]  ;;  %v11330_v39 = vld [vmem:[#allocation128_spill] sm:$0xff] }
 0x59a   :  { %v8930_v5 = vpop.f32.mrf.mxu1 }
 0x59b   :  { %11305 = vst [vmem:[#allocation181_spill] sm:$0xff] %v8930_v5  ;;  %4227 = vmatmul.bf16.gmra.mxu2 %v11306_v41  ;;  %v3768_v21 = vpop.f32.mrf.mxu3 }
 0x59c   :  { %v8933_v31 = vadd.f32 %v3768_v21, %v3600_v54 }
 0x59d   :  { %v8946_v41 = vpop.f32.mrf.mxu0  ;;  %4143 = vmatmul.bf16.gmra.mxu1 %v11148_v0 }
 0x59e   :  { %11307 = vst [vmem:[#allocation179_spill] sm:$0xff] %v8933_v31  ;;  %v11319_v31 = vld [vmem:[#allocation120_spill] sm:$0xff] }
 0x59f   :  { %11315 = vst [vmem:[#allocation112_spill] sm:$0xff] %v8946_v41 }
 0x5a0   :  { %v4188_v2 = vpop.f32.mrf.mxu2  ;;  %4570 = vmatmul.bf16.gmra.mxu0 %v11309_v32  ;;  %3810 = vmatmul.bf16.gmra.mxu3 %v11310_v28  ;;  %v11318_v32 = vld [vmem:[#allocation189_spill] sm:$0xff] }
 0x5a1   :  { %v8936_v6 = vadd.f32 %v4188_v2, %v4020_v59  ;;  %v4022_v2 = vadd.f32 %v11317_v45, %v3853_v18  ;;  %v3856_v44 = vadd.f32 %v11319_v31, %v11318_v32  ;;  %v11327_v31 = vld [vmem:[#allocation115_spill] sm:$0xff] }
 0x5a2   :  { %v8944_v5 = vpop.f32.mrf.mxu1 }
 0x5a3   :  { %11314 = vst [vmem:[#allocation48_spill] sm:$0xff] %v8944_v5  ;;  %v3771_v54 = vpop.f32.mrf.mxu3  ;;  %v11322_v5 = vld [vmem:[#allocation103_spill] sm:$0xff] }
 0x5a4   :  { %v8948_v21 = vadd.f32 %v3771_v54, %v3603_v36  ;;  %v11324_v54 = vld [vmem:[#allocation194_spill] sm:$0xff] }
 0x5a5   :  { %v4025_v18 = vadd.f32 %v11324_v54, %v3856_v44  ;;  %v8964_v45 = vpop.f32.mrf.mxu0  ;;  %v11333_v44 = vld [vmem:[#allocation197_spill] sm:$0xff] }
 0x5a6   :  { %11316 = vst [vmem:[#allocation183_spill] sm:$0xff] %v8948_v21 }
 0x5a7   :  { %11325 = vst [vmem:[#allocation60_spill] sm:$0xff] %v8964_v45 }
 0x5a8   :  { %v4190_v63 = vpop.f32.mrf.mxu2 }
 0x5a9   :  { %v8952_v59 = vadd.f32 %v4190_v63, %v4022_v2  ;;  %v11328_v63 = vld [vmem:[#allocation192_spill] sm:$0xff] }
 0x5aa   :  { %v8958_v57 = vpop.f32.mrf.mxu1  ;;  %v3858_v32 = vadd.f32 %v11329_v27, %v11328_v63  ;;  %v8986_v63 = vld [vmem:[#allocation2 + $0x1a8] sm:$0x3]  ;;  %v8988_v27 = vld [vmem:[#allocation2 + $0x1b8] sm:$0xff] }
 0x5ab   :  { %11321 = vst [vmem:[#allocation131_spill] sm:$0xff] %v8958_v57  ;;  %4232 = vmatmul.bf16.gmra.mxu2 %v11322_v5  ;;  %v3773_v28 = vpop.f32.mrf.mxu3  ;;  %v3608_v57 = vadd.f32 %v8613_v52, %v11330_v39  ;;  %v2055_v52 = vrot.slane %v8988_v27, 1  ;;  %v2057_v39 = vrot.slane %v8986_v63, 1 }
 0x5ac   :  { %v8961_v36 = vadd.f32 %v3773_v28, %v3605_v61  ;;  %v4027_v54 = vadd.f32 %v11333_v44, %v3858_v32  ;;  %11337 = vst [vmem:[#allocation204_spill] sm:$0xff] %v8986_v63  ;;  %v11339_v32 = vld [vmem:[#allocation195_spill] sm:$0xff]  ;;  %v11344_v63 = vld [vmem:[#allocation201_spill] sm:$0xff] }
 0x5ad   :  { %4148 = vmatmul.bf16.gmra.mxu1 %v11153_v35  ;;  %11338 = vst [vmem:[#allocation188_spill] sm:$0xff] %v8988_v27 }
 0x5ae   :  { %11323 = vst [vmem:[#allocation77_spill] sm:$0xff] %v8961_v36  ;;  %v8984_v36 = vld [vmem:[#allocation2 + $0x198] sm:$0xff] }
 0x5af   :  { %11336 = vst [vmem:[#allocation119_spill] sm:$0xff] %v8984_v36 }
 0x5b0   :  { %v4193_v21 = vpop.f32.mrf.mxu2  ;;  %4575 = vmatmul.bf16.gmra.mxu0 %v11152_v55  ;;  %3815 = vmatmul.bf16.gmra.mxu3 %v11327_v31  ;;  %v8982_v55 = vpop.f32.mrf.mxu0  ;;  %v2058_v31 = vsel %vm1420_vm3, %v2055_v52, %v2057_v39 }
 0x5b1   :  { %v8966_v2 = vadd.f32 %v4193_v21, %v4025_v18  ;;  %11335 = vst [vmem:[#allocation81_spill] sm:$0xff] %v8982_v55  ;;  %v11343_v55 = vld [vmem:[#allocation106_spill] sm:$0xff]  ;;  %v2069_v35 = vpack.c.bf16 %v2058_v31, %v2058_v31 }
 0x5b2   :  { %v8974_v41 = vpop.f32.mrf.mxu1 }
 0x5b3   :  { %11326 = vst [vmem:[#allocation116_spill] sm:$0xff] %v8966_v2  ;;  %v3776_v28 = vpop.f32.mrf.mxu3 }
 0x5b4   :  { %11331 = vst [vmem:[#allocation200_spill] sm:$0xff] %v8974_v41  ;;  %v8976_v61 = vadd.f32 %v3776_v28, %v3608_v57  ;;  %v2054_v57 = vrot.slane %v8984_v36, 1  ;;  %v11340_v28 = vld [vmem:[#allocation126_spill] sm:$0xff] }
 0x5b5   :  { %v3861_v44 = vadd.f32 %v11340_v28, %v11339_v32  ;;  %v2719_v32 = vunpack.c.l.b16 %v2069_v35 }
 0x5b6   :  { %11332 = vst [vmem:[#allocation186_spill] sm:$0xff] %v8976_v61  ;;  %v11341_v61 = vld [vmem:[#allocation130_spill] sm:$0xff]  ;;  %v2056_v41 = vsel %vm1420_vm3, %v2054_v57, %v2055_v52 }
 0x5b7   :  { %v2068_v27 = vpack.c.bf16 %v2056_v41, %v2056_v41  ;;  %v11346_v57 = vld [vmem:[#allocation198_spill] sm:$0xff] }
 0x5b8   :  { %v4195_v21 = vpop.f32.mrf.mxu2  ;;  %v9010_v39 = vpop.f32.mrf.mxu0  ;;  %v11348_v41 = vld [vmem:[#allocation134_spill] sm:$0xff] }
 0x5b9   :  { %v8980_v18 = vadd.f32 %v4195_v21, %v4027_v54  ;;  %v3610_v54 = vadd.f32 %v8625_v15, %v11341_v61  ;;  %v2718_v5 = vunpack.c.l.b16 %v2068_v27  ;;  %v11345_v61 = vld [vmem:[#allocation25_spill] sm:$0xff] }
 0x5ba   :  { %v8997_v21 = vpop.f32.mrf.mxu1 }
 0x5bb   :  { %11334 = vst [vmem:[#allocation184_spill] sm:$0xff] %v8980_v18  ;;  %4237 = vmatmul.bf16.gmra.mxu2 %v11343_v55  ;;  %v3778_v45 = vpop.f32.mrf.mxu3  ;;  %v4030_v18 = vadd.f32 %v11344_v63, %v3861_v44  ;;  %v2722_v15 = vpack.c.b16 %v2719_v32, %v2718_v5 }
 0x5bc   :  { %11342 = vst [vmem:[#allocation137_spill] sm:$0xff] %v8997_v21  ;;  %v9002_v36 = vadd.f32 %v3778_v45, %v3610_v54  ;;  %v11347_v21 = vld [vmem:[#allocation129_spill] sm:$0xff]  ;;  %v3613_v45 = vadd.f32 %v8635_v26, %v11348_v41  ;;  %v11351_v54 = vld [vmem:[#allocation202_spill] sm:$0xff]  ;;  %v11354_v26 = vld [vmem:[#allocation83_spill] sm:$0xff] }
 0x5bd   :  { %v3863_v52 = vadd.f32 %v11347_v21, %v11346_v57  ;;  %v11352_v21 = vld [vmem:[#allocation132_spill] sm:$0xff] }
 0x5be   :  { %v3866_v32 = vadd.f32 %v11352_v21, %v11351_v54 }
 0x5bf   :  { %v4032_v35 = vadd.f32 %v8582_v22, %v3863_v52 }
 0x5c0   :  { %v4198_v28 = vpop.f32.mrf.mxu2  ;;  %4336 = vmatmul.bf16.vlgmr.msra.gmra.mxu3 %v11345_v61  ;;  %4580 = vmatmul.bf16.gmra.mxu0 %v2722_v15  ;;  %v9029_v57 = vpop.f32.mrf.mxu0  ;;  %v4035_v22 = vadd.f32 %v8595_v8, %v3866_v32 }
 0x5c1   :  { %v9005_v2 = vadd.f32 %v4198_v28, %v4030_v18  ;;  %v11350_v18 = vld [vmem:[#allocation80_spill] sm:$0xff] }
 0x5c2   :  { %v9014_v31 = vpop.f32.mrf.mxu1  ;;  %4153 = vmatmul.bf16.gmra.mxu1 %v11350_v18  ;;  %v11353_v28 = vld [vmem:[#allocation136_spill] sm:$0xff] }
 0x5c3   :  { %v3781_v63 = vpop.f32.mrf.mxu3  ;;  %v3615_v15 = vadd.f32 %v8647_v43, %v11353_v28  ;;  %v11358_v43 = vld [vmem:[#allocation21_spill] sm:$0xff] }
 0x5c4   :  { %v9016_v27 = vadd.f32 %v3781_v63, %v3613_v45  ;;  %v3618_v21 = vadd.f32 %v8657_v23, %v11358_v43 }
 0x5c6   :  { %11349 = vst [vmem:[#allocation96_spill] sm:$0xff] %v9016_v27 }
 0x5c8   :  { %v4200_v5 = vpop.f32.mrf.mxu2  ;;  %v9048_v32 = vpop.f32.mrf.mxu0 }
 0x5c9   :  { %v9020_v44 = vadd.f32 %v4200_v5, %v4032_v35  ;;  %v11356_v35 = vld [vmem:[#allocation29_spill] sm:$0xff]  ;;  %v11357_v5 = vld [vmem:[#allocation135_spill] sm:$0xff] }
 0x5ca   :  { %v9026_v61 = vpop.f32.mrf.mxu1  ;;  %v3868_v54 = vadd.f32 %v11357_v5, %v8586_v10  ;;  %v11360_v10 = vld [vmem:[#allocation22_spill] sm:$0xff] }
 0x5cb   :  { %4242 = vmatmul.bf16.gmra.mxu2 %v11354_v26  ;;  %v3783_v41 = vpop.f32.mrf.mxu3 }
 0x5cc   :  { %v9031_v45 = vadd.f32 %v3783_v41, %v3615_v15  ;;  %v4037_v8 = vadd.f32 %v8605_v40, %v3868_v54 }
 0x5ce   :  { %11355 = vst [vmem:[#allocation118_spill] sm:$0xff] %v9031_v45 }
 0x5d0   :  { %v4203_v52 = vpop.f32.mrf.mxu2  ;;  %4341 = vmatmul.bf16.gmra.mxu3 %v11356_v35  ;;  %4585 = vmatmul.bf16.gmra.mxu0 %v11046_v29  ;;  %v3871_v29 = vadd.f32 %v11360_v10, %v8598_v60  ;;  %v9064_v43 = vpop.f32.mrf.mxu0  ;;  %v11365_v60 = vld [vmem:[#allocation88_spill] sm:$0xff] }
 0x5d1   :  { %v9034_v63 = vadd.f32 %v4203_v52, %v4035_v22  ;;  %v11361_v52 = vld [vmem:[#allocation26_spill] sm:$0xff] }
 0x5d2   :  { %v9042_v28 = vpop.f32.mrf.mxu1  ;;  %4674 = vmatmul.bf16.vlgmr.msra.gmra.mxu1 %v11034_v50  ;;  %v3620_v23 = vadd.f32 %v8669_v25, %v11361_v52  ;;  %v4040_v50 = vadd.f32 %v8617_v19, %v3871_v29  ;;  %v11366_v25 = vld [vmem:[#allocation139_spill] sm:$0xff]  ;;  %v11369_v29 = vld [vmem:[#allocation92_spill] sm:$0xff] }
 0x5d3   :  { %v3786_v27 = vpop.f32.mrf.mxu3 }
 0x5d4   :  { %v9044_v15 = vadd.f32 %v3786_v27, %v3618_v21  ;;  %v11364_v21 = vld [vmem:[#allocation32_spill] sm:$0xff] }
 0x5d6   :  { %11359 = vst [vmem:[#allocation122_spill] sm:$0xff] %v9044_v15 }
 0x5d8   :  { %v4205_v41 = vpop.f32.mrf.mxu2 }
 0x5d9   :  { %v9050_v22 = vadd.f32 %v4205_v41, %v4037_v8  ;;  %v3873_v8 = vadd.f32 %v11365_v60, %v8609_v47  ;;  %v11373_v60 = vld [vmem:[#allocation221_spill] sm:$0xff] }
 0x5da   :  { %v9056_v35 = vpop.f32.mrf.mxu1 }
 0x5db   :  { %11362 = vst [vmem:[#allocation191_spill] sm:$0xff] %v9056_v35  ;;  %4247 = vmatmul.bf16.gmra.mxu2 %v7975_v16  ;;  %v3788_v27 = vpop.f32.mrf.mxu3  ;;  %v3623_v16 = vadd.f32 %v8679_v38, %v11366_v25  ;;  %v4042_v19 = vadd.f32 %v8627_v37, %v3873_v8  ;;  %v11377_v37 = vld [vmem:[#allocation211_spill] sm:$0xff]  ;;  %v11390_v35 = vld [vmem:[#allocation225_spill] sm:$0xff] }
 0x5dc   :  { %v9059_v5 = vadd.f32 %v3788_v27, %v3620_v23 }
 0x5de   :  { %11363 = vst [vmem:[#allocation189_spill] sm:$0xff] %v9059_v5  ;;  %v11375_v5 = vld [vmem:[#allocation108_spill] sm:$0xff] }
 0x5e0   :  { %v4208_v40 = vpop.f32.mrf.mxu2  ;;  %4346 = vmatmul.bf16.gmra.mxu3 %v11364_v21  ;;  %4590 = vmatmul.bf16.gmra.mxu0 %v11169_v1  ;;  %v9082_v21 = vpop.f32.mrf.mxu0  ;;  %v11372_v1 = vld [vmem:[#allocation27_spill] sm:$0xff] }
 0x5e1   :  { %v9062_v54 = vadd.f32 %v4208_v40, %v4040_v50  ;;  %v11370_v50 = vld [vmem:[#allocation207_spill] sm:$0xff]  ;;  %v11371_v40 = vld [vmem:[#allocation138_spill] sm:$0xff]  ;;  %v3625_v38 = vadd.f32 %v11373_v60, %v11372_v1  ;;  %v11382_v1 = vld [vmem:[#allocation140_spill] sm:$0xff] }
 0x5e2   :  { %v9072_v41 = vpop.f32.mrf.mxu1  ;;  %4679 = vmatmul.bf16.gmra.mxu1 %v11369_v29  ;;  %v3876_v47 = vadd.f32 %v11371_v40, %v11370_v50  ;;  %v11379_v50 = vld [vmem:[#allocation209_spill] sm:$0xff]  ;;  %v11380_v40 = vld [vmem:[#allocation90_spill] sm:$0xff]  ;;  %v3628_v60 = vadd.f32 %v8701_v3, %v11382_v1 }
 0x5e3   :  { %11367 = vst [vmem:[#allocation120_spill] sm:$0xff] %v9072_v41  ;;  %v3791_v10 = vpop.f32.mrf.mxu3  ;;  %v11381_v41 = vld [vmem:[#allocation33_spill] sm:$0xff] }
 0x5e4   :  { %v9074_v52 = vadd.f32 %v3791_v10, %v3623_v16  ;;  %v4045_v8 = vadd.f32 %v11377_v37, %v3876_v47  ;;  %v11385_v47 = vld [vmem:[#allocation214_spill] sm:$0xff] }
 0x5e6   :  { %11368 = vst [vmem:[#allocation124_spill] sm:$0xff] %v9074_v52  ;;  %v3878_v52 = vadd.f32 %v11380_v40, %v11379_v50  ;;  %v11387_v50 = vld [vmem:[#allocation212_spill] sm:$0xff]  ;;  %v11388_v40 = vld [vmem:[#allocation89_spill] sm:$0xff] }
 0x5e8   :  { %v4210_v23 = vpop.f32.mrf.mxu2  ;;  %v9102_v15 = vpop.f32.mrf.mxu0  ;;  %v4047_v37 = vadd.f32 %v11385_v47, %v3878_v52  ;;  %v11395_v52 = vld [vmem:[#allocation217_spill] sm:$0xff] }
 0x5e9   :  { %v9078_v27 = vadd.f32 %v4210_v23, %v4042_v19  ;;  %v11378_v23 = vld [vmem:[#allocation19_spill] sm:$0xff] }
 0x5ea   :  { %v9086_v25 = vpop.f32.mrf.mxu1 }
 0x5eb   :  { %11374 = vst [vmem:[#allocation194_spill] sm:$0xff] %v9086_v25  ;;  %4252 = vmatmul.bf16.gmra.mxu2 %v11375_v5  ;;  %v3793_v16 = vpop.f32.mrf.mxu3 }
 0x5ec   :  { %v9089_v10 = vadd.f32 %v3793_v16, %v3625_v38 }
 0x5ee   :  { %11376 = vst [vmem:[#allocation192_spill] sm:$0xff] %v9089_v10  ;;  %v11389_v10 = vld [vmem:[#allocation35_spill] sm:$0xff] }
 0x5ef   :  { %v3630_v3 = vadd.f32 %v11390_v35, %v11389_v10  ;;  %v11399_v35 = vld [vmem:[#allocation39_spill] sm:$0xff]  ;;  %v11400_v10 = vld [vmem:[#allocation142_spill] sm:$0xff] }
 0x5f0   :  { %v4213_v29 = vpop.f32.mrf.mxu2  ;;  %4351 = vmatmul.bf16.gmra.mxu3 %v11378_v23  ;;  %4595 = vmatmul.bf16.gmra.mxu0 %v11381_v41  ;;  %v3881_v41 = vadd.f32 %v11388_v40, %v11387_v50  ;;  %v11397_v50 = vld [vmem:[#allocation215_spill] sm:$0xff]  ;;  %v11398_v40 = vld [vmem:[#allocation141_spill] sm:$0xff] }
 0x5f1   :  { %v9092_v19 = vadd.f32 %v4213_v29, %v4045_v8  ;;  %v11386_v8 = vld [vmem:[#allocation31_spill] sm:$0xff] }
 0x5f2   :  { %v9100_v25 = vpop.f32.mrf.mxu1  ;;  %4684 = vmatmul.bf16.gmra.mxu1 %v11386_v8  ;;  %v4050_v47 = vadd.f32 %v11395_v52, %v3881_v41  ;;  %v11404_v52 = vld [vmem:[#allocation37_spill] sm:$0xff] }
 0x5f3   :  { %11383 = vst [vmem:[#allocation123_spill] sm:$0xff] %v9100_v25  ;;  %v3796_v38 = vpop.f32.mrf.mxu3  ;;  %v11392_v25 = vld [vmem:[#allocation110_spill] sm:$0xff] }
 0x5f4   :  { %v9104_v16 = vadd.f32 %v3796_v38, %v3628_v60  ;;  %v9119_v38 = vpop.f32.mrf.mxu0 }
 0x5f5   :  { %11394 = vst [vmem:[#allocation126_spill] sm:$0xff] %v9119_v38  ;;  %v11408_v38 = vld [vmem:[#allocation18_spill] sm:$0xff] }
 0x5f6   :  { %11384 = vst [vmem:[#allocation128_spill] sm:$0xff] %v9104_v16  ;;  %v3883_v16 = vadd.f32 %v11398_v40, %v11397_v50  ;;  %v11406_v50 = vld [vmem:[#allocation145_spill] sm:$0xff]  ;;  %v11407_v40 = vld [vmem:[#allocation91_spill] sm:$0xff] }
 0x5f8   :  { %v4215_v29 = vpop.f32.mrf.mxu2 }
 0x5f9   :  { %v9108_v23 = vadd.f32 %v4215_v29, %v4047_v37  ;;  %v11396_v29 = vld [vmem:[#allocation43_spill] sm:$0xff] }
 0x5fa   :  { %v9114_v1 = vpop.f32.mrf.mxu1 }
 0x5fb   :  { %11391 = vst [vmem:[#allocation197_spill] sm:$0xff] %v9114_v1  ;;  %4257 = vmatmul.bf16.gmra.mxu2 %v11392_v25  ;;  %v3798_v45 = vpop.f32.mrf.mxu3  ;;  %v3633_v1 = vadd.f32 %v8723_v11, %v11400_v10  ;;  %v3635_v11 = vadd.f32 %v8735_v12, %v11408_v38  ;;  %v11417_v12 = vld [vmem:[#allocation146_spill] sm:$0xff] }
 0x5fc   :  { %v9117_v60 = vadd.f32 %v3798_v45, %v3630_v3  ;;  %v3638_v38 = vadd.f32 %v8745_v53, %v11417_v12  ;;  %v11425_v12 = vld [vmem:[#allocation30_spill] sm:$0xff] }
 0x5fe   :  { %11393 = vst [vmem:[#allocation195_spill] sm:$0xff] %v9117_v60  ;;  %v11403_v60 = vld [vmem:[#allocation93_spill] sm:$0xff] }
 0x5ff   :  { %v4052_v41 = vadd.f32 %v11403_v60, %v3883_v16  ;;  %v11412_v16 = vld [vmem:[#allocation46_spill] sm:$0xff] }
 0x600   :  { %v4218_v8 = vpop.f32.mrf.mxu2  ;;  %4356 = vmatmul.bf16.gmra.mxu3 %v11396_v29  ;;  %4600 = vmatmul.bf16.gmra.mxu0 %v11399_v35  ;;  %v3886_v35 = vadd.f32 %v11407_v40, %v11406_v50 }
 0x601   :  { %v9122_v37 = vadd.f32 %v4218_v8, %v4050_v47  ;;  %v9136_v8 = vpop.f32.mrf.mxu0 }
 0x602   :  { %v9130_v25 = vpop.f32.mrf.mxu1  ;;  %4689 = vmatmul.bf16.gmra.mxu1 %v11404_v52  ;;  %11405 = vst [vmem:[#allocation201_spill] sm:$0xff] %v9136_v8  ;;  %v4055_v60 = vadd.f32 %v11412_v16, %v3886_v35  ;;  %v11415_v8 = vld [vmem:[#allocation143_spill] sm:$0xff]  ;;  %v11420_v35 = vld [vmem:[#allocation222_spill] sm:$0xff] }
 0x603   :  { %11401 = vst [vmem:[#allocation130_spill] sm:$0xff] %v9130_v25  ;;  %v3801_v45 = vpop.f32.mrf.mxu3  ;;  %v11410_v25 = vld [vmem:[#allocation16_spill] sm:$0xff] }
 0x604   :  { %v9132_v3 = vadd.f32 %v3801_v45, %v3633_v1 }
 0x606   :  { %11402 = vst [vmem:[#allocation106_spill] sm:$0xff] %v9132_v3 }
 0x608   :  { %v4220_v47 = vpop.f32.mrf.mxu2 }
 0x609   :  { %v9138_v29 = vadd.f32 %v4220_v47, %v4052_v41  ;;  %v11413_v41 = vld [vmem:[#allocation52_spill] sm:$0xff]  ;;  %v9155_v40 = vpop.f32.mrf.mxu0 }
 0x60a   :  { %v9144_v10 = vpop.f32.mrf.mxu1  ;;  %v11414_v47 = vld [vmem:[#allocation148_spill] sm:$0xff]  ;;  %11416 = vst [vmem:[#allocation129_spill] sm:$0xff] %v9155_v40 }
 0x60b   :  { %11409 = vst [vmem:[#allocation25_spill] sm:$0xff] %v9144_v10  ;;  %4262 = vmatmul.bf16.gmra.mxu2 %v11410_v25  ;;  %v3803_v1 = vpop.f32.mrf.mxu3  ;;  %v3888_v50 = vadd.f32 %v11415_v8, %v11414_v47  ;;  %v11421_v8 = vld [vmem:[#allocation151_spill] sm:$0xff] }
 0x60c   :  { %v9147_v45 = vadd.f32 %v3803_v1, %v3635_v11 }
 0x60d   :  { %v4057_v16 = vadd.f32 %v11420_v35, %v3888_v50  ;;  %v11427_v50 = vld [vmem:[#allocation51_spill] sm:$0xff] }
 0x60e   :  { %11411 = vst [vmem:[#allocation198_spill] sm:$0xff] %v9147_v45  ;;  %v11423_v45 = vld [vmem:[#allocation149_spill] sm:$0xff] }
 0x610   :  { %v4223_v52 = vpop.f32.mrf.mxu2  ;;  %4361 = vmatmul.bf16.gmra.mxu3 %v11413_v41  ;;  %4605 = vmatmul.bf16.gmra.mxu0 %v11206_v17  ;;  %v11422_v41 = vld [vmem:[#allocation144_spill] sm:$0xff]  ;;  %v3640_v17 = vadd.f32 %v8757_v13, %v11423_v45  ;;  %v11431_v13 = vld [vmem:[#allocation50_spill] sm:$0xff] }
 0x611   :  { %v9150_v3 = vadd.f32 %v4223_v52, %v4055_v60  ;;  %v3891_v47 = vadd.f32 %v11422_v41, %v11421_v8  ;;  %v9174_v53 = vpop.f32.mrf.mxu0  ;;  %v11429_v8 = vld [vmem:[#allocation154_spill] sm:$0xff]  ;;  %v11430_v41 = vld [vmem:[#allocation147_spill] sm:$0xff]  ;;  %v11432_v45 = vld [vmem:[#allocation152_spill] sm:$0xff] }
 0x612   :  { %v9160_v10 = vpop.f32.mrf.mxu1  ;;  %4694 = vmatmul.bf16.gmra.mxu1 %v11208_v9 }
 0x613   :  { %11418 = vst [vmem:[#allocation134_spill] sm:$0xff] %v9160_v10  ;;  %v3806_v11 = vpop.f32.mrf.mxu3  ;;  %v4060_v9 = vadd.f32 %v11427_v50, %v3891_v47  ;;  %v11435_v47 = vld [vmem:[#allocation226_spill] sm:$0xff] }
 0x614   :  { %v9162_v1 = vadd.f32 %v3806_v11, %v3638_v38 }
 0x616   :  { %11419 = vst [vmem:[#allocation80_spill] sm:$0xff] %v9162_v1  ;;  %v3893_v1 = vadd.f32 %v11430_v41, %v11429_v8  ;;  %v11438_v8 = vld [vmem:[#allocation157_spill] sm:$0xff]  ;;  %v11439_v41 = vld [vmem:[#allocation150_spill] sm:$0xff] }
 0x618   :  { %v4225_v60 = vpop.f32.mrf.mxu2  ;;  %v4062_v50 = vadd.f32 %v11435_v47, %v3893_v1 }
 0x619   :  { %v9166_v52 = vadd.f32 %v4225_v60, %v4057_v16  ;;  %v11428_v60 = vld [vmem:[#allocation59_spill] sm:$0xff] }
 0x61a   :  { %v9172_v40 = vpop.f32.mrf.mxu1 }
 0x61b   :  { %11424 = vst [vmem:[#allocation202_spill] sm:$0xff] %v9172_v40  ;;  %4267 = vmatmul.bf16.gmra.mxu2 %v11425_v12  ;;  %v3808_v38 = vpop.f32.mrf.mxu3  ;;  %v3643_v40 = vadd.f32 %v8767_v46, %v11432_v45 }
 0x61c   :  { %v9177_v11 = vadd.f32 %v3808_v38, %v3640_v17  ;;  %v9192_v38 = vpop.f32.mrf.mxu0 }
 0x61e   :  { %11426 = vst [vmem:[#allocation132_spill] sm:$0xff] %v9177_v11  ;;  %v11440_v11 = vld [vmem:[#allocation155_spill] sm:$0xff] }
 0x61f   :  { %v3645_v46 = vadd.f32 %v8780_v51, %v11440_v11  ;;  %v11448_v51 = vld [vmem:[#allocation158_spill] sm:$0xff] }
 0x620   :  { %v4228_v35 = vpop.f32.mrf.mxu2  ;;  %4366 = vmatmul.bf16.gmra.mxu3 %v11428_v60  ;;  %4610 = vmatmul.bf16.gmra.mxu0 %v11431_v13  ;;  %v3896_v13 = vadd.f32 %v11439_v41, %v11438_v8  ;;  %v11446_v8 = vld [vmem:[#allocation227_spill] sm:$0xff]  ;;  %v11447_v41 = vld [vmem:[#allocation153_spill] sm:$0xff]  ;;  %v3648_v11 = vadd.f32 %v8791_v4, %v11448_v51 }
 0x621   :  { %v9180_v16 = vadd.f32 %v4228_v35, %v4060_v9  ;;  %v11436_v9 = vld [vmem:[#allocation44_spill] sm:$0xff] }
 0x622   :  { %v9188_v10 = vpop.f32.mrf.mxu1  ;;  %4699 = vmatmul.bf16.gmra.mxu1 %v11436_v9 }
 0x623   :  { %11433 = vst [vmem:[#allocation136_spill] sm:$0xff] %v9188_v10  ;;  %v3811_v12 = vpop.f32.mrf.mxu3  ;;  %v11442_v10 = vld [vmem:[#allocation41_spill] sm:$0xff] }
 0x624   :  { %v9190_v17 = vadd.f32 %v3811_v12, %v3643_v40  ;;  %v9208_v9 = vpop.f32.mrf.mxu0 }
 0x626   :  { %11434 = vst [vmem:[#allocation83_spill] sm:$0xff] %v9190_v17  ;;  %v11444_v17 = vld [vmem:[#allocation62_spill] sm:$0xff] }
 0x627   :  { %v4065_v1 = vadd.f32 %v11444_v17, %v3896_v13  ;;  %v11451_v17 = vld [vmem:[#allocation42_spill] sm:$0xff] }
 0x628   :  { %v4230_v35 = vpop.f32.mrf.mxu2 }
 0x629   :  { %v9196_v60 = vadd.f32 %v4230_v35, %v4062_v50  ;;  %v11445_v35 = vld [vmem:[#allocation67_spill] sm:$0xff] }
 0x62a   :  { %v9202_v45 = vpop.f32.mrf.mxu1 }
 0x62b   :  { %11437 = vst [vmem:[#allocation29_spill] sm:$0xff] %v9196_v60  ;;  %4272 = vmatmul.bf16.gmra.mxu2 %v11442_v10  ;;  %v3813_v40 = vpop.f32.mrf.mxu3  ;;  %v3898_v60 = vadd.f32 %v11447_v41, %v11446_v8  ;;  %v11455_v10 = vld [vmem:[#allocation156_spill] sm:$0xff] }
 0x62c   :  { %11441 = vst [vmem:[#allocation135_spill] sm:$0xff] %v9202_v45  ;;  %v9205_v12 = vadd.f32 %v3813_v40, %v3645_v46  ;;  %v9228_v41 = vpop.f32.mrf.mxu0 }
 0x62d   :  { %v4067_v13 = vadd.f32 %v11451_v17, %v3898_v60  ;;  %v11460_v60 = vld [vmem:[#allocation231_spill] sm:$0xff] }
 0x62e   :  { %11443 = vst [vmem:[#allocation21_spill] sm:$0xff] %v9205_v12  ;;  %v11452_v12 = vld [vmem:[#allocation53_spill] sm:$0xff] }
 0x630   :  { %v4233_v47 = vpop.f32.mrf.mxu2  ;;  %4371 = vmatmul.bf16.gmra.mxu3 %v11445_v35  ;;  %4615 = vmatmul.bf16.gmra.mxu0 %v11099_v20  ;;  %v11454_v35 = vld [vmem:[#allocation162_spill] sm:$0xff]  ;;  %v11456_v20 = vld [vmem:[#allocation160_spill] sm:$0xff] }
 0x631   :  { %v9210_v50 = vadd.f32 %v4233_v47, %v4065_v1  ;;  %v3901_v8 = vadd.f32 %v11455_v10, %v11454_v35  ;;  %v3650_v4 = vadd.f32 %v8804_v14, %v11456_v20  ;;  %v11463_v10 = vld [vmem:[#allocation38_spill] sm:$0xff]  ;;  %v11464_v35 = vld [vmem:[#allocation159_spill] sm:$0xff] }
 0x632   :  { %v9218_v45 = vpop.f32.mrf.mxu1  ;;  %4704 = vmatmul.bf16.gmra.mxu1 %v11452_v12 }
 0x633   :  { %11449 = vst [vmem:[#allocation22_spill] sm:$0xff] %v9218_v45  ;;  %v3816_v46 = vpop.f32.mrf.mxu3  ;;  %v11458_v45 = vld [vmem:[#allocation40_spill] sm:$0xff]  ;;  %v4070_v12 = vadd.f32 %v11460_v60, %v3901_v8  ;;  %v11468_v8 = vld [vmem:[#allocation61_spill] sm:$0xff] }
 0x634   :  { %v9220_v40 = vadd.f32 %v3816_v46, %v3648_v11  ;;  %v9246_v20 = vpop.f32.mrf.mxu0 }
 0x636   :  { %11450 = vst [vmem:[#allocation26_spill] sm:$0xff] %v9220_v40  ;;  %v3903_v40 = vadd.f32 %v11464_v35, %v11463_v10 }
 0x638   :  { %v4235_v1 = vpop.f32.mrf.mxu2 }
 0x639   :  { %v9224_v47 = vadd.f32 %v4235_v1, %v4067_v13  ;;  %v11462_v1 = vld [vmem:[#allocation70_spill] sm:$0xff] }
 0x63a   :  { %v9232_v51 = vpop.f32.mrf.mxu1 }
 0x63b   :  { %11453 = vst [vmem:[#allocation32_spill] sm:$0xff] %v9224_v47  ;;  %4277 = vmatmul.bf16.gmra.mxu2 %v11458_v45  ;;  %v3818_v11 = vpop.f32.mrf.mxu3  ;;  %v11465_v47 = vld [vmem:[#allocation64_spill] sm:$0xff] }
 0x63c   :  { %11457 = vst [vmem:[#allocation88_spill] sm:$0xff] %v9232_v51  ;;  %v9235_v46 = vadd.f32 %v3818_v11, %v3650_v4  ;;  %v11467_v11 = vld [vmem:[#allocation234_spill] sm:$0xff] }
 0x63e   :  { %11459 = vst [vmem:[#allocation139_spill] sm:$0xff] %v9235_v46  ;;  %v4072_v46 = vadd.f32 %v11467_v11, %v3903_v40 }
 0x640   :  { %v4238_v17 = vpop.f32.mrf.mxu2  ;;  %4376 = vmatmul.bf16.gmra.mxu3 %v11462_v1  ;;  %4620 = vmatmul.bf16.gmra.mxu0 %v11465_v47  ;;  %v11471_v1 = vld [vmem:[#allocation161_spill] sm:$0xff] }
 0x641   :  { %v9238_v13 = vadd.f32 %v4238_v17, %v4070_v12  ;;  %v11470_v17 = vld [vmem:[#allocation232_spill] sm:$0xff]  ;;  %v11473_v47 = vld [vmem:[#allocation49_spill] sm:$0xff] }
 0x642   :  { %v9244_v14 = vpop.f32.mrf.mxu1  ;;  %4709 = vmatmul.bf16.gmra.mxu1 %v11468_v8  ;;  %v3906_v45 = vadd.f32 %v11471_v1, %v11470_v17  ;;  %v11476_v8 = vld [vmem:[#allocation240_spill] sm:$0xff] }
 0x643   :  { %11461 = vst [vmem:[#allocation92_spill] sm:$0xff] %v9238_v13  ;;  %v4337_v51 = vpop.f32.mrf.mxu3  ;;  %v9259_v13 = vpop.f32.mrf.mxu0  ;;  %v11479_v17 = vld [vmem:[#allocation164_spill] sm:$0xff] }
 0x644   :  { %11466 = vst [vmem:[#allocation207_spill] sm:$0xff] %v9244_v14  ;;  %v4338_v4 = vadd.f32 %v4337_v51, %v8818_v49  ;;  %v11475_v49 = vld [vmem:[#allocation34_spill] sm:$0xff] }
 0x645   :  { %11474 = vst [vmem:[#allocation221_spill] sm:$0xff] %v9259_v13  ;;  %v4075_v51 = vadd.f32 %v11475_v49, %v3906_v45  ;;  %v11481_v13 = vld [vmem:[#allocation45_spill] sm:$0xff] }
 0x648   :  { %v4240_v60 = vpop.f32.mrf.mxu2 }
 0x649   :  { %v9251_v12 = vadd.f32 %v4240_v60, %v4072_v46  ;;  %v4507_v46 = vadd.f32 %v11476_v8, %v4338_v4  ;;  %v11477_v60 = vld [vmem:[#allocation76_spill] sm:$0xff] }
 0x64a   :  { %v9255_v10 = vpop.f32.mrf.mxu1 }
 0x64b   :  { %11469 = vst [vmem:[#allocation138_spill] sm:$0xff] %v9251_v12  ;;  %4282 = vmatmul.bf16.gmra.mxu2 %v11473_v47  ;;  %v4339_v35 = vpop.f32.mrf.mxu3  ;;  %v11478_v12 = vld [vmem:[#allocation235_spill] sm:$0xff] }
 0x64c   :  { %11472 = vst [vmem:[#allocation27_spill] sm:$0xff] %v9255_v10  ;;  %v4340_v14 = vadd.f32 %v4339_v35, %v8834_v34  ;;  %v3908_v1 = vadd.f32 %v11479_v17, %v11478_v12  ;;  %v11484_v12 = vld [vmem:[#allocation237_spill] sm:$0xff] }
 0x64e   :  { %v4077_v45 = vadd.f32 %v11481_v13, %v3908_v1  ;;  %v11488_v1 = vld [vmem:[#allocation58_spill] sm:$0xff] }
 0x650   :  { %v4243_v40 = vpop.f32.mrf.mxu2  ;;  %4381 = vmatmul.bf16.gmra.mxu3 %v11477_v60  ;;  %4625 = vmatmul.bf16.gmra.mxu0 %v11116_v56  ;;  %v11485_v60 = vld [vmem:[#allocation166_spill] sm:$0xff] }
 0x651   :  { %v9262_v11 = vadd.f32 %v4243_v40, %v4075_v51  ;;  %v9274_v51 = vpop.f32.mrf.mxu0  ;;  %v11483_v40 = vld [vmem:[#allocation242_spill] sm:$0xff]  ;;  %v3911_v56 = vadd.f32 %v11485_v60, %v11484_v12 }
 0x652   :  { %v4675_v10 = vpop.f32.mrf.mxu1  ;;  %4714 = vmatmul.bf16.gmra.mxu1 %v11253_v58  ;;  %v4509_v8 = vadd.f32 %v11483_v40, %v4340_v14  ;;  %v11491_v14 = vld [vmem:[#allocation239_spill] sm:$0xff]  ;;  %v11492_v40 = vld [vmem:[#allocation169_spill] sm:$0xff] }
 0x653   :  { %v9269_v47 = vadd.f32 %v4675_v10, %v4507_v46  ;;  %v4342_v34 = vpop.f32.mrf.mxu3  ;;  %v11486_v10 = vld [vmem:[#allocation75_spill] sm:$0xff]  ;;  %v4080_v58 = vadd.f32 %v11488_v1, %v3911_v56  ;;  %v3913_v12 = vadd.f32 %v11492_v40, %v11491_v14 }
 0x654   :  { %v4343_v35 = vadd.f32 %v4342_v34, %v8848_v42  ;;  %v11498_v14 = vld [vmem:[#allocation171_spill] sm:$0xff] }
 0x655   :  { %11480 = vst [vmem:[#allocation108_spill] sm:$0xff] %v9269_v47 }
 0x658   :  { %v4245_v49 = vpop.f32.mrf.mxu2 }
 0x659   :  { %v9276_v4 = vadd.f32 %v4245_v49, %v4077_v45  ;;  %v11489_v45 = vld [vmem:[#allocation94_spill] sm:$0xff]  ;;  %v9292_v60 = vpop.f32.mrf.mxu0 }
 0x65a   :  { %v4677_v17 = vpop.f32.mrf.mxu1  ;;  %v4512_v49 = vadd.f32 %v11489_v45, %v4343_v35  ;;  %v11497_v45 = vld [vmem:[#allocation241_spill] sm:$0xff] }
 0x65b   :  { %11482 = vst [vmem:[#allocation211_spill] sm:$0xff] %v9276_v4  ;;  %4287 = vmatmul.bf16.gmra.mxu2 %v11486_v10  ;;  %v9282_v46 = vadd.f32 %v4677_v17, %v4509_v8  ;;  %v4344_v42 = vpop.f32.mrf.mxu3  ;;  %v11490_v4 = vld [vmem:[#allocation79_spill] sm:$0xff]  ;;  %v3916_v40 = vadd.f32 %v11498_v14, %v11497_v45  ;;  %v11505_v45 = vld [vmem:[#allocation54_spill] sm:$0xff] }
 0x65c   :  { %v4345_v13 = vadd.f32 %v4344_v42, %v8864_v24  ;;  %v11494_v42 = vld [vmem:[#allocation163_spill] sm:$0xff]  ;;  %v11506_v14 = vld [vmem:[#allocation174_spill] sm:$0xff] }
 0x65d   :  { %11487 = vst [vmem:[#allocation19_spill] sm:$0xff] %v9282_v46  ;;  %v4082_v1 = vadd.f32 %v11494_v42, %v3913_v12 }
 0x660   :  { %v4248_v34 = vpop.f32.mrf.mxu2  ;;  %4386 = vmatmul.bf16.gmra.mxu3 %v11490_v4  ;;  %4630 = vmatmul.bf16.gmra.mxu0 %v11124_v30  ;;  %v11496_v4 = vld [vmem:[#allocation69_spill] sm:$0xff] }
 0x661   :  { %v9286_v47 = vadd.f32 %v4248_v34, %v4080_v58  ;;  %v4514_v34 = vadd.f32 %v11496_v4, %v4345_v13  ;;  %v9305_v30 = vpop.f32.mrf.mxu0  ;;  %v11504_v4 = vld [vmem:[#allocation84_spill] sm:$0xff] }
 0x662   :  { %v4680_v8 = vpop.f32.mrf.mxu1  ;;  %4719 = vmatmul.bf16.gmra.mxu1 %v11269_v62 }
 0x663   :  { %v9295_v17 = vadd.f32 %v4680_v8, %v4512_v49  ;;  %v4347_v24 = vpop.f32.mrf.mxu3  ;;  %v11499_v49 = vld [vmem:[#allocation65_spill] sm:$0xff] }
 0x664   :  { %v4348_v56 = vadd.f32 %v4347_v24, %v8878_v7  ;;  %v11501_v24 = vld [vmem:[#allocation167_spill] sm:$0xff] }
 0x665   :  { %11493 = vst [vmem:[#allocation209_spill] sm:$0xff] %v9295_v17  ;;  %v4085_v62 = vadd.f32 %v11501_v24, %v3916_v40  ;;  %v3918_v17 = vadd.f32 %v11506_v14, %v11505_v45  ;;  %v11510_v40 = vld [vmem:[#allocation99_spill] sm:$0xff]  ;;  %v11514_v45 = vld [vmem:[#allocation165_spill] sm:$0xff] }
 0x666   :  { %v11515_v14 = vld [vmem:[#allocation177_spill] sm:$0xff] }
 0x667   :  { %v4087_v24 = vadd.f32 %v11510_v40, %v3918_v17 }
 0x668   :  { %v4250_v35 = vpop.f32.mrf.mxu2 }
 0x669   :  { %v9300_v58 = vadd.f32 %v4250_v35, %v4082_v1  ;;  %v11503_v35 = vld [vmem:[#allocation168_spill] sm:$0xff] }
 0x66a   :  { %v4682_v46 = vpop.f32.mrf.mxu1  ;;  %v4517_v13 = vadd.f32 %v11503_v35, %v4348_v56  ;;  %v11513_v35 = vld [vmem:[#allocation72_spill] sm:$0xff] }
 0x66b   :  { %11495 = vst [vmem:[#allocation90_spill] sm:$0xff] %v9300_v58  ;;  %4292 = vmatmul.bf16.gmra.mxu2 %v11499_v49  ;;  %v9308_v8 = vadd.f32 %v4682_v46, %v4514_v34  ;;  %v4349_v7 = vpop.f32.mrf.mxu3  ;;  %v11507_v58 = vld [vmem:[#allocation98_spill] sm:$0xff] }
 0x66c   :  { %v4350_v12 = vadd.f32 %v4349_v7, %v8894_v33  ;;  %v9322_v7 = vpop.f32.mrf.mxu0 }
 0x66d   :  { %11500 = vst [vmem:[#allocation33_spill] sm:$0xff] %v9308_v8  ;;  %v11509_v8 = vld [vmem:[#allocation95_spill] sm:$0xff] }
 0x670   :  { %v4253_v42 = vpop.f32.mrf.mxu2  ;;  %4391 = vmatmul.bf16.gmra.mxu3 %v11504_v4  ;;  %4635 = vmatmul.bf16.gmra.mxu0 %v11507_v58  ;;  %v4519_v4 = vadd.f32 %v11513_v35, %v4350_v12  ;;  %v3921_v58 = vadd.f32 %v11515_v14, %v11514_v45  ;;  %v11521_v35 = vld [vmem:[#allocation121_spill] sm:$0xff]  ;;  %v11522_v45 = vld [vmem:[#allocation170_spill] sm:$0xff]  ;;  %v11523_v14 = vld [vmem:[#allocation180_spill] sm:$0xff] }
 0x671   :  { %v9312_v1 = vadd.f32 %v4253_v42, %v4085_v62  ;;  %v11511_v62 = vld [vmem:[#allocation97_spill] sm:$0xff] }
 0x672   :  { %v4685_v49 = vpop.f32.mrf.mxu1  ;;  %4724 = vmatmul.bf16.gmra.mxu1 %v11511_v62 }
 0x673   :  { %11502 = vst [vmem:[#allocation140_spill] sm:$0xff] %v9312_v1  ;;  %v9319_v46 = vadd.f32 %v4685_v49, %v4517_v13  ;;  %v4352_v34 = vpop.f32.mrf.mxu3  ;;  %v11516_v49 = vld [vmem:[#allocation111_spill] sm:$0xff] }
 0x674   :  { %v4353_v33 = vadd.f32 %v4352_v34, %v11509_v8  ;;  %v9336_v62 = vpop.f32.mrf.mxu0 }
 0x675   :  { %11508 = vst [vmem:[#allocation214_spill] sm:$0xff] %v9319_v46  ;;  %v11518_v46 = vld [vmem:[#allocation66_spill] sm:$0xff] }
 0x676   :  { %v4090_v17 = vadd.f32 %v11518_v46, %v3921_v58  ;;  %v11526_v58 = vld [vmem:[#allocation172_spill] sm:$0xff] }
 0x678   :  { %v4255_v56 = vpop.f32.mrf.mxu2 }
 0x679   :  { %v9326_v42 = vadd.f32 %v4255_v56, %v4087_v24  ;;  %v11520_v56 = vld [vmem:[#allocation102_spill] sm:$0xff] }
 0x67a   :  { %v4687_v1 = vpop.f32.mrf.mxu1  ;;  %v4522_v12 = vadd.f32 %v11520_v56, %v4353_v33  ;;  %v11529_v33 = vld [vmem:[#allocation173_spill] sm:$0xff] }
 0x67b   :  { %11512 = vst [vmem:[#allocation31_spill] sm:$0xff] %v9326_v42  ;;  %4297 = vmatmul.bf16.gmra.mxu2 %v11516_v49  ;;  %v9332_v13 = vadd.f32 %v4687_v1, %v4519_v4  ;;  %v4354_v8 = vpop.f32.mrf.mxu3  ;;  %v3923_v42 = vadd.f32 %v11523_v14, %v11522_v45  ;;  %v11524_v49 = vld [vmem:[#allocation101_spill] sm:$0xff] }
 0x67c   :  { %v4355_v34 = vadd.f32 %v4354_v8, %v8922_v48  ;;  %v9355_v14 = vpop.f32.mrf.mxu0 }
 0x67d   :  { %11517 = vst [vmem:[#allocation212_spill] sm:$0xff] %v9332_v13  ;;  %v4092_v8 = vadd.f32 %v11526_v58, %v3923_v42  ;;  %v11527_v13 = vld [vmem:[#allocation100_spill] sm:$0xff] }
 0x67e   :  { %v4524_v56 = vadd.f32 %v11529_v33, %v4355_v34  ;;  %v11537_v33 = vld [vmem:[#allocation127_spill] sm:$0xff] }
 0x680   :  { %v4258_v40 = vpop.f32.mrf.mxu2  ;;  %4396 = vmatmul.bf16.gmra.mxu3 %v11521_v35  ;;  %4640 = vmatmul.bf16.gmra.mxu0 %v11524_v49  ;;  %v11530_v35 = vld [vmem:[#allocation105_spill] sm:$0xff] }
 0x681   :  { %v9338_v24 = vadd.f32 %v4258_v40, %v4090_v17 }
 0x682   :  { %v4690_v1 = vpop.f32.mrf.mxu1  ;;  %4729 = vmatmul.bf16.gmra.mxu1 %v11527_v13 }
 0x683   :  { %11519 = vst [vmem:[#allocation89_spill] sm:$0xff] %v9338_v24  ;;  %v9345_v4 = vadd.f32 %v4690_v1, %v4522_v12  ;;  %v4357_v48 = vpop.f32.mrf.mxu3  ;;  %v11531_v24 = vld [vmem:[#allocation182_spill] sm:$0xff]  ;;  %v11532_v12 = vld [vmem:[#allocation113_spill] sm:$0xff] }
 0x684   :  { %v4358_v46 = vadd.f32 %v4357_v48, %v8936_v6  ;;  %v3926_v45 = vadd.f32 %v11531_v24, %v11530_v35  ;;  %v11534_v48 = vld [vmem:[#allocation87_spill] sm:$0xff]  ;;  %v11538_v24 = vld [vmem:[#allocation56_spill] sm:$0xff]  ;;  %v11539_v35 = vld [vmem:[#allocation185_spill] sm:$0xff] }
 0x685   :  { %11525 = vst [vmem:[#allocation35_spill] sm:$0xff] %v9345_v4  ;;  %v3928_v4 = vadd.f32 %v11539_v35, %v11538_v24  ;;  %v11547_v24 = vld [vmem:[#allocation175_spill] sm:$0xff] }
 0x686   :  { %v4095_v13 = vadd.f32 %v11534_v48, %v3926_v45  ;;  %v11543_v48 = vld [vmem:[#allocation73_spill] sm:$0xff]  ;;  %v11548_v35 = vld [vmem:[#allocation187_spill] sm:$0xff] }
 0x688   :  { %v4260_v17 = vpop.f32.mrf.mxu2 }
 0x689   :  { %v9350_v40 = vadd.f32 %v4260_v17, %v4092_v8  ;;  %v11536_v17 = vld [vmem:[#allocation178_spill] sm:$0xff] }
 0x68a   :  { %v4692_v49 = vpop.f32.mrf.mxu1  ;;  %v4527_v34 = vadd.f32 %v11536_v17, %v4358_v46 }
 0x68b   :  { %11528 = vst [vmem:[#allocation225_spill] sm:$0xff] %v9350_v40  ;;  %4302 = vmatmul.bf16.gmra.mxu2 %v11532_v12  ;;  %v9358_v1 = vadd.f32 %v4692_v49, %v4524_v56  ;;  %v4359_v6 = vpop.f32.mrf.mxu3  ;;  %v9369_v56 = vpop.f32.mrf.mxu0  ;;  %v11549_v40 = vld [vmem:[#allocation114_spill] sm:$0xff] }
 0x68c   :  { %v4360_v42 = vadd.f32 %v4359_v6, %v8952_v59  ;;  %11540 = vst [vmem:[#allocation215_spill] sm:$0xff] %v9369_v56  ;;  %v11542_v6 = vld [vmem:[#allocation116_spill] sm:$0xff] }
 0x68d   :  { %11533 = vst [vmem:[#allocation217_spill] sm:$0xff] %v9358_v1 }
 0x690   :  { %v4263_v58 = vpop.f32.mrf.mxu2  ;;  %4401 = vmatmul.bf16.gmra.mxu3 %v11537_v33  ;;  %4645 = vmatmul.bf16.gmra.mxu0 %v11148_v0  ;;  %v11546_v33 = vld [vmem:[#allocation57_spill] sm:$0xff]  ;;  %v3931_v0 = vadd.f32 %v11548_v35, %v11547_v24  ;;  %v11558_v35 = vld [vmem:[#allocation190_spill] sm:$0xff] }
 0x691   :  { %v9362_v8 = vadd.f32 %v4263_v58, %v4095_v13  ;;  %v4097_v13 = vadd.f32 %v11543_v48, %v3928_v4  ;;  %v11544_v58 = vld [vmem:[#allocation103_spill] sm:$0xff]  ;;  %v4529_v1 = vadd.f32 %v11546_v33, %v4360_v42  ;;  %v11553_v4 = vld [vmem:[#allocation176_spill] sm:$0xff]  ;;  %v11556_v33 = vld [vmem:[#allocation133_spill] sm:$0xff] }
 0x692   :  { %v4695_v12 = vpop.f32.mrf.mxu1  ;;  %4734 = vmatmul.bf16.gmra.mxu1 %v11544_v58  ;;  %v4100_v48 = vadd.f32 %v11553_v4, %v3931_v0  ;;  %v11557_v24 = vld [vmem:[#allocation17_spill] sm:$0xff] }
 0x693   :  { %11535 = vst [vmem:[#allocation43_spill] sm:$0xff] %v9362_v8  ;;  %v9371_v49 = vadd.f32 %v4695_v12, %v4527_v34  ;;  %v4362_v59 = vpop.f32.mrf.mxu3 }
 0x694   :  { %v4363_v45 = vadd.f32 %v4362_v59, %v11542_v6  ;;  %v9385_v6 = vpop.f32.mrf.mxu0 }
 0x695   :  { %11541 = vst [vmem:[#allocation141_spill] sm:$0xff] %v9371_v49  ;;  %v11551_v49 = vld [vmem:[#allocation184_spill] sm:$0xff] }
 0x696   :  { %11552 = vst [vmem:[#allocation93_spill] sm:$0xff] %v9385_v6  ;;  %v11572_v6 = vld [vmem:[#allocation81_spill] sm:$0xff] }
 0x698   :  { %v4265_v46 = vpop.f32.mrf.mxu2 }
 0x699   :  { %v9376_v17 = vadd.f32 %v4265_v46, %v4097_v13  ;;  %v11555_v46 = vld [vmem:[#allocation112_spill] sm:$0xff] }
 0x69a   :  { %v4697_v8 = vpop.f32.mrf.mxu1  ;;  %v4532_v42 = vadd.f32 %v11555_v46, %v4363_v45 }
 0x69b   :  { %11545 = vst [vmem:[#allocation39_spill] sm:$0xff] %v9376_v17  ;;  %4307 = vmatmul.bf16.gmra.mxu2 %v11549_v40  ;;  %v9382_v12 = vadd.f32 %v4697_v8, %v4529_v1  ;;  %v4364_v34 = vpop.f32.mrf.mxu3  ;;  %v3933_v17 = vadd.f32 %v11558_v35, %v11557_v24  ;;  %v11559_v40 = vld [vmem:[#allocation23_spill] sm:$0xff]  ;;  %v11566_v24 = vld [vmem:[#allocation188_spill] sm:$0xff]  ;;  %v11567_v35 = vld [vmem:[#allocation109_spill] sm:$0xff] }
 0x69c   :  { %v4365_v59 = vadd.f32 %v4364_v34, %v11551_v49 }
 0x69d   :  { %11550 = vst [vmem:[#allocation142_spill] sm:$0xff] %v9382_v12  ;;  %v11561_v12 = vld [vmem:[#allocation181_spill] sm:$0xff] }
 0x69e   :  { %v4102_v0 = vadd.f32 %v11561_v12, %v3933_v17  ;;  %v11569_v12 = vld [vmem:[#allocation85_spill] sm:$0xff] }
 0x6a0   :  { %v4268_v58 = vpop.f32.mrf.mxu2  ;;  %4406 = vmatmul.bf16.gmra.mxu3 %v11556_v33  ;;  %4650 = vmatmul.bf16.gmra.mxu0 %v11559_v40  ;;  %v11565_v33 = vld [vmem:[#allocation119_spill] sm:$0xff] }
 0x6a1   :  { %v9388_v13 = vadd.f32 %v4268_v58, %v4100_v48  ;;  %v9400_v48 = vpop.f32.mrf.mxu0  ;;  %v11564_v58 = vld [vmem:[#allocation60_spill] sm:$0xff]  ;;  %v2044_v40 = vpack.c.bf16 %v11565_v33, %v11565_v33 }
 0x6a2   :  { %v4700_v1 = vpop.f32.mrf.mxu1  ;;  %4739 = vmatmul.bf16.gmra.mxu1 %v11343_v55  ;;  %11562 = vst [vmem:[#allocation91_spill] sm:$0xff] %v9400_v48  ;;  %v4534_v46 = vadd.f32 %v11564_v58, %v4365_v59  ;;  %v11571_v58 = vld [vmem:[#allocation48_spill] sm:$0xff] }
 0x6a3   :  { %11554 = vst [vmem:[#allocation37_spill] sm:$0xff] %v9388_v13  ;;  %v9395_v8 = vadd.f32 %v4700_v1, %v4532_v42  ;;  %v4367_v49 = vpop.f32.mrf.mxu3  ;;  %v2045_v42 = vpack.c.bf16 %v11566_v24, %v11566_v24  ;;  %v11568_v1 = vld [vmem:[#allocation193_spill] sm:$0xff] }
 0x6a4   :  { %v4368_v34 = vadd.f32 %v4367_v49, %v9005_v2  ;;  %v3936_v2 = vadd.f32 %v11568_v1, %v11567_v35  ;;  %v2706_v49 = vunpack.c.l.b16 %v2044_v40  ;;  %v11573_v40 = vld [vmem:[#allocation179_spill] sm:$0xff] }
 0x6a5   :  { %11560 = vst [vmem:[#allocation145_spill] sm:$0xff] %v9395_v8  ;;  %v9411_v17 = vunpack.c.l.b16 %v2045_v42  ;;  %v11574_v42 = vld [vmem:[#allocation196_spill] sm:$0xff] }
 0x6a6   :  { %v4537_v35 = vadd.f32 %v11572_v6, %v4368_v34  ;;  %v3938_v1 = vadd.f32 %v11574_v42, %v11573_v40  ;;  %v11577_v34 = vld [vmem:[#allocation131_spill] sm:$0xff] }
 0x6a7   :  { %v11579_v40 = vld [vmem:[#allocation199_spill] sm:$0xff] }
 0x6a8   :  { %v4270_v4 = vpop.f32.mrf.mxu2 }
 0x6a9   :  { %v9402_v45 = vadd.f32 %v4270_v4, %v4102_v0  ;;  %v2710_v4 = vpack.c.b16 %v9411_v17, %v2706_v49  ;;  %v9424_v56 = vpop.f32.mrf.mxu0  ;;  %v9429_v49 = vrot.slane %v11566_v24, 2 }
 0x6aa   :  { %v4702_v55 = vpop.f32.mrf.mxu1 }
 0x6ab   :  { %11563 = vst [vmem:[#allocation18_spill] sm:$0xff] %v9402_v45  ;;  %4312 = vmatmul.bf16.gmra.mxu2 %v11569_v12  ;;  %v9414_v8 = vadd.f32 %v4702_v55, %v4534_v46  ;;  %v4369_v0 = vpop.f32.mrf.mxu3  ;;  %v4105_v45 = vadd.f32 %v11571_v58, %v3936_v2  ;;  %v11575_v2 = vld [vmem:[#allocation204_spill] sm:$0xff] }
 0x6ac   :  { %v4370_v59 = vadd.f32 %v4369_v0, %v9020_v44  ;;  %v2072_v44 = vrot.slane %v11565_v33, 2  ;;  %v2075_v55 = vrot.slane %v11575_v2, 2  ;;  %v4107_v0 = vadd.f32 %v11577_v34, %v3938_v1  ;;  %v11580_v1 = vld [vmem:[#allocation115_spill] sm:$0xff]  ;;  %v11582_v34 = vld [vmem:[#allocation200_spill] sm:$0xff] }
 0x6ad   :  { %11570 = vst [vmem:[#allocation16_spill] sm:$0xff] %v9414_v8 }
 0x6ae   :  { %v2076_v33 = vsel %vm1709_vm4, %v9429_v49, %v2075_v55  ;;  %v4539_v58 = vadd.f32 %v9010_v39, %v4370_v59  ;;  %v11583_v59 = vld [vmem:[#allocation24_spill] sm:$0xff] }
 0x6b0   :  { %v4273_v13 = vpop.f32.mrf.mxu2  ;;  %4411 = vmatmul.bf16.gmra.mxu3 %v2710_v4  ;;  %4655 = vmatmul.bf16.gmra.mxu0 %v11350_v18  ;;  %v2074_v18 = vsel %vm1709_vm4, %v2072_v44, %v9429_v49 }
 0x6b1   :  { %v9419_v48 = vadd.f32 %v4273_v13, %v4105_v45 }
 0x6b2   :  { %v4705_v46 = vpop.f32.mrf.mxu1  ;;  %4744 = vmatmul.bf16.gmra.mxu1 %v11354_v26 }
 0x6b3   :  { %v9432_v13 = vadd.f32 %v4705_v46, %v4537_v35  ;;  %v4372_v45 = vpop.f32.mrf.mxu3  ;;  %v11578_v35 = vld [vmem:[#allocation183_spill] sm:$0xff]  ;;  %v2086_v46 = vpack.c.bf16 %v2074_v18, %v2074_v18  ;;  %v11584_v18 = vld [vmem:[#allocation77_spill] sm:$0xff] }
 0x6b4   :  { %v4373_v6 = vadd.f32 %v4372_v45, %v9034_v63  ;;  %v3941_v42 = vadd.f32 %v11579_v40, %v11578_v35  ;;  %v2087_v63 = vpack.c.bf16 %v2076_v33, %v2076_v33  ;;  %v11585_v33 = vld [vmem:[#allocation203_spill] sm:$0xff] }
 0x6b5   :  { %11576 = vst [vmem:[#allocation46_spill] sm:$0xff] %v9432_v13  ;;  %v2730_v55 = vunpack.c.l.b16 %v2086_v46  ;;  %v3943_v35 = vadd.f32 %v11585_v33, %v11584_v18 }
 0x6b6   :  { %v4110_v13 = vadd.f32 %v11582_v34, %v3941_v42  ;;  %v4542_v39 = vadd.f32 %v9029_v57, %v4373_v6  ;;  %v11587_v42 = vld [vmem:[#allocation137_spill] sm:$0xff]  ;;  %v11588_v6 = vld [vmem:[#allocation186_spill] sm:$0xff] }
 0x6b7   :  { %v4112_v46 = vadd.f32 %v11587_v42, %v3943_v35  ;;  %v11592_v35 = vld [vmem:[#allocation28_spill] sm:$0xff] }
 0x6b8   :  { %v4275_v4 = vpop.f32.mrf.mxu2 }
 0x6b9   :  { %v9441_v24 = vadd.f32 %v4275_v4, %v4107_v0  ;;  %v2731_v0 = vunpack.c.l.b16 %v2087_v63 }
 0x6ba   :  { %v4707_v2 = vpop.f32.mrf.mxu1 }
 0x6bb   :  { %4317 = vmatmul.bf16.gmra.mxu2 %v11580_v1  ;;  %v9447_v26 = vadd.f32 %v4707_v2, %v4539_v58  ;;  %v4374_v45 = vpop.f32.mrf.mxu3  ;;  %v2734_v40 = vpack.c.b16 %v2731_v0, %v2730_v55 }
 0x6bc   :  { %v4375_v44 = vadd.f32 %v4374_v45, %v9050_v22  ;;  %v11589_v45 = vld [vmem:[#allocation104_spill] sm:$0xff] }
 0x6bd   :  { %11581 = vst [vmem:[#allocation52_spill] sm:$0xff] %v9447_v26  ;;  %v3946_v34 = vadd.f32 %v11589_v45, %v11588_v6 }
 0x6be   :  { %v4544_v57 = vadd.f32 %v9048_v32, %v4375_v44  ;;  %v11593_v32 = vld [vmem:[#allocation206_spill] sm:$0xff] }
 0x6bf   :  { %v3948_v44 = vadd.f32 %v11593_v32, %v9002_v36 }
 0x6c0   :  { %v4278_v4 = vpop.f32.mrf.mxu2  ;;  %4416 = vmatmul.bf16.gmra.mxu3 %v11583_v59  ;;  %v11590_v59 = vld [vmem:[#allocation117_spill] sm:$0xff] }
 0x6c1   :  { %v9451_v8 = vadd.f32 %v4278_v4, %v4110_v13 }
 0x6c2   :  { %v4710_v58 = vpop.f32.mrf.mxu1  ;;  %4749 = vmatmul.bf16.gmra.mxu1 %v2734_v40 }
 0x6c3   :  { %v9457_v2 = vadd.f32 %v4710_v58, %v4542_v39  ;;  %v4377_v26 = vpop.f32.mrf.mxu3 }
 0x6c4   :  { %v4378_v22 = vadd.f32 %v4377_v26, %v9062_v54  ;;  %v4115_v54 = vadd.f32 %v9014_v31, %v3946_v34 }
 0x6c5   :  { %11586 = vst [vmem:[#allocation148_spill] sm:$0xff] %v9457_v2 }
 0x6c6   :  { %v4547_v33 = vadd.f32 %v9064_v43, %v4378_v22  ;;  %v11595_v22 = vld [vmem:[#allocation96_spill] sm:$0xff] }
 0x6c8   :  { %v4280_v63 = vpop.f32.mrf.mxu2 }
 0x6c9   :  { %v9461_v13 = vadd.f32 %v4280_v63, %v4112_v46 }
 0x6ca   :  { %v4712_v4 = vpop.f32.mrf.mxu1 }
 0x6cb   :  { %4322 = vmatmul.bf16.gmra.mxu2 %v11590_v59  ;;  %v9467_v55 = vadd.f32 %v4712_v4, %v4544_v57  ;;  %v4379_v0 = vpop.f32.mrf.mxu3  ;;  %v11596_v57 = vld [vmem:[#allocation107_spill] sm:$0xff] }
 0x6cc   :  { %v4380_v39 = vadd.f32 %v4379_v0, %v9078_v27  ;;  %v4117_v27 = vadd.f32 %v9026_v61, %v3948_v44  ;;  %v3951_v6 = vadd.f32 %v11596_v57, %v11595_v22 }
 0x6cd   :  { %11591 = vst [vmem:[#allocation143_spill] sm:$0xff] %v9467_v55 }
 0x6ce   :  { %v4549_v43 = vadd.f32 %v9082_v21, %v4380_v39  ;;  %v11600_v21 = vld [vmem:[#allocation208_spill] sm:$0xff] }
 0x6d0   :  { %v4283_v26 = vpop.f32.mrf.mxu2  ;;  %4421 = vmatmul.bf16.gmra.mxu3 %v11592_v35 }
 0x6d1   :  { %v9471_v18 = vadd.f32 %v4283_v26, %v4115_v54  ;;  %v11598_v54 = vld [vmem:[#allocation36_spill] sm:$0xff]  ;;  %v11599_v26 = vld [vmem:[#allocation118_spill] sm:$0xff] }
 0x6d2   :  { %v4715_v40 = vpop.f32.mrf.mxu1  ;;  %4754 = vmatmul.bf16.gmra.mxu1 %v11375_v5  ;;  %v3953_v39 = vadd.f32 %v11600_v21, %v11599_v26  ;;  %v11610_v21 = vld [vmem:[#allocation20_spill] sm:$0xff] }
 0x6d3   :  { %v9477_v58 = vadd.f32 %v4715_v40, %v4547_v33  ;;  %v4382_v42 = vpop.f32.mrf.mxu3  ;;  %v11602_v40 = vld [vmem:[#allocation191_spill] sm:$0xff] }
 0x6d4   :  { %v4383_v46 = vadd.f32 %v4382_v42, %v9092_v19  ;;  %v4120_v19 = vadd.f32 %v9042_v28, %v3951_v6  ;;  %v11603_v42 = vld [vmem:[#allocation110_spill] sm:$0xff] }
 0x6d5   :  { %11594 = vst [vmem:[#allocation146_spill] sm:$0xff] %v9477_v58 }
 0x6d6   :  { %v4552_v5 = vadd.f32 %v9102_v15, %v4383_v46  ;;  %v11605_v46 = vld [vmem:[#allocation122_spill] sm:$0xff] }
 0x6d8   :  { %v4285_v31 = vpop.f32.mrf.mxu2 }
 0x6d9   :  { %v9482_v63 = vadd.f32 %v4285_v31, %v4117_v27  ;;  %v11604_v31 = vld [vmem:[#allocation126_spill] sm:$0xff] }
 0x6da   :  { %v4717_v45 = vpop.f32.mrf.mxu1 }
 0x6db   :  { %v9487_v36 = vadd.f32 %v4717_v45, %v4549_v43  ;;  %v4384_v34 = vpop.f32.mrf.mxu3  ;;  %v11606_v43 = vld [vmem:[#allocation210_spill] sm:$0xff] }
 0x6dc   :  { %v4385_v4 = vadd.f32 %v4384_v34, %v9108_v23  ;;  %v4122_v23 = vadd.f32 %v11602_v40, %v3953_v39  ;;  %v3956_v22 = vadd.f32 %v11606_v43, %v11605_v46  ;;  %v11611_v39 = vld [vmem:[#allocation189_spill] sm:$0xff]  ;;  %v11616_v43 = vld [vmem:[#allocation124_spill] sm:$0xff] }
 0x6dd   :  { %11597 = vst [vmem:[#allocation222_spill] sm:$0xff] %v9487_v36  ;;  %v11615_v46 = vld [vmem:[#allocation129_spill] sm:$0xff] }
 0x6de   :  { %v4554_v15 = vadd.f32 %v11604_v31, %v4385_v4  ;;  %v11612_v4 = vld [vmem:[#allocation213_spill] sm:$0xff] }
 0x6e0   :  { %v4288_v0 = vpop.f32.mrf.mxu2  ;;  %4426 = vmatmul.bf16.gmra.mxu3 %v11598_v54  ;;  %v11609_v54 = vld [vmem:[#allocation201_spill] sm:$0xff] }
 0x6e1   :  { %v9491_v61 = vadd.f32 %v4288_v0, %v4120_v19  ;;  %v11608_v19 = vld [vmem:[#allocation120_spill] sm:$0xff] }
 0x6e2   :  { %v4720_v33 = vpop.f32.mrf.mxu1  ;;  %4759 = vmatmul.bf16.gmra.mxu1 %v11603_v42 }
 0x6e3   :  { %v9497_v35 = vadd.f32 %v4720_v33, %v4552_v5  ;;  %v4387_v32 = vpop.f32.mrf.mxu3  ;;  %v3958_v33 = vadd.f32 %v11612_v4, %v11611_v39  ;;  %v11620_v39 = vld [vmem:[#allocation47_spill] sm:$0xff] }
 0x6e4   :  { %v4388_v44 = vadd.f32 %v4387_v32, %v9122_v37  ;;  %v4125_v37 = vadd.f32 %v11608_v19, %v3956_v22  ;;  %v11617_v22 = vld [vmem:[#allocation216_spill] sm:$0xff] }
 0x6e5   :  { %11601 = vst [vmem:[#allocation151_spill] sm:$0xff] %v9497_v35 }
 0x6e6   :  { %v4557_v26 = vadd.f32 %v11609_v54, %v4388_v44  ;;  %v11619_v54 = vld [vmem:[#allocation123_spill] sm:$0xff] }
 0x6e8   :  { %v4290_v28 = vpop.f32.mrf.mxu2 }
 0x6e9   :  { %v9502_v27 = vadd.f32 %v4290_v28, %v4122_v23  ;;  %v11614_v28 = vld [vmem:[#allocation194_spill] sm:$0xff] }
 0x6ea   :  { %v4722_v57 = vpop.f32.mrf.mxu1 }
 0x6eb   :  { %v9507_v6 = vadd.f32 %v4722_v57, %v4554_v15  ;;  %v4389_v45 = vpop.f32.mrf.mxu3  ;;  %v3961_v57 = vadd.f32 %v11617_v22, %v11616_v43 }
 0x6ec   :  { %v4390_v34 = vadd.f32 %v4389_v45, %v9138_v29  ;;  %v4127_v29 = vadd.f32 %v11614_v28, %v3958_v33 }
 0x6ed   :  { %11607 = vst [vmem:[#allocation144_spill] sm:$0xff] %v9507_v6 }
 0x6ee   :  { %v4559_v44 = vadd.f32 %v11615_v46, %v4390_v34  ;;  %v11623_v46 = vld [vmem:[#allocation29_spill] sm:$0xff] }
 0x6f0   :  { %v4293_v0 = vpop.f32.mrf.mxu2  ;;  %4431 = vmatmul.bf16.gmra.mxu3 %v11610_v21 }
 0x6f1   :  { %v9511_v5 = vadd.f32 %v4293_v0, %v4125_v37 }
 0x6f2   :  { %v4725_v32 = vpop.f32.mrf.mxu1  ;;  %4764 = vmatmul.bf16.gmra.mxu1 %v11410_v25 }
 0x6f3   :  { %v9517_v40 = vadd.f32 %v4725_v32, %v4557_v26  ;;  %v4392_v23 = vpop.f32.mrf.mxu3 }
 0x6f4   :  { %v4393_v42 = vadd.f32 %v4392_v23, %v9150_v3  ;;  %v4130_v3 = vadd.f32 %v11619_v54, %v3961_v57  ;;  %v11622_v23 = vld [vmem:[#allocation30_spill] sm:$0xff] }
 0x6f5   :  { %11613 = vst [vmem:[#allocation149_spill] sm:$0xff] %v9517_v40 }
 0x6f6   :  { %v4562_v25 = vadd.f32 %v9174_v53, %v4393_v42  ;;  %v11624_v42 = vld [vmem:[#allocation55_spill] sm:$0xff] }
 0x6f8   :  { %v4295_v31 = vpop.f32.mrf.mxu2 }
 0x6f9   :  { %v9522_v15 = vadd.f32 %v4295_v31, %v4127_v29 }
 0x6fa   :  { %v4727_v45 = vpop.f32.mrf.mxu1 }
 0x6fb   :  { %v9527_v19 = vadd.f32 %v4727_v45, %v4559_v44  ;;  %v4394_v37 = vpop.f32.mrf.mxu3  ;;  %v11625_v45 = vld [vmem:[#allocation41_spill] sm:$0xff] }
 0x6fc   :  { %v4395_v0 = vadd.f32 %v4394_v37, %v9166_v52 }
 0x6fd   :  { %11618 = vst [vmem:[#allocation51_spill] sm:$0xff] %v9527_v19 }
 0x6fe   :  { %v4564_v28 = vadd.f32 %v9192_v38, %v4395_v0 }
 0x700   :  { %v4298_v26 = vpop.f32.mrf.mxu2  ;;  %4436 = vmatmul.bf16.gmra.mxu3 %v11620_v39 }
 0x701   :  { %v9531_v21 = vadd.f32 %v4298_v26, %v4130_v3  ;;  %v11626_v3 = vld [vmem:[#allocation32_spill] sm:$0xff] }
 0x702   :  { %v4730_v4 = vpop.f32.mrf.mxu1  ;;  %4769 = vmatmul.bf16.gmra.mxu1 %v11622_v23  ;;  %v11629_v23 = vld [vmem:[#allocation40_spill] sm:$0xff] }
 0x703   :  { %v9535_v34 = vadd.f32 %v4730_v4, %v4562_v25  ;;  %v4397_v33 = vpop.f32.mrf.mxu3  ;;  %v11627_v25 = vld [vmem:[#allocation63_spill] sm:$0xff] }
 0x704   :  { %v4398_v32 = vadd.f32 %v4397_v33, %v9180_v16 }
 0x705   :  { %11621 = vst [vmem:[#allocation59_spill] sm:$0xff] %v9535_v34 }
 0x706   :  { %v4567_v53 = vadd.f32 %v9208_v9, %v4398_v32  ;;  %v11628_v32 = vld [vmem:[#allocation92_spill] sm:$0xff] }
 0x70a   :  { %v4732_v52 = vpop.f32.mrf.mxu1 }
 0x70b   :  { %v9540_v29 = vadd.f32 %v4732_v52, %v4564_v28  ;;  %v4399_v31 = vpop.f32.mrf.mxu3  ;;  %v11630_v28 = vld [vmem:[#allocation221_spill] sm:$0xff] }
 0x70c   :  { %v4400_v44 = vadd.f32 %v4399_v31, %v11623_v46 }
 0x70e   :  { %v4569_v38 = vadd.f32 %v9228_v41, %v4400_v44  ;;  %v11632_v44 = vld [vmem:[#allocation138_spill] sm:$0xff] }
 0x710   :  { %4441 = vmatmul.bf16.gmra.mxu3 %v11624_v42  ;;  %v11633_v42 = vld [vmem:[#allocation68_spill] sm:$0xff] }
 0x712   :  { %v4735_v43 = vpop.f32.mrf.mxu1  ;;  %4774 = vmatmul.bf16.gmra.mxu1 %v11625_v45 }
 0x713   :  { %v9545_v22 = vadd.f32 %v4735_v43, %v4567_v53  ;;  %v4402_v57 = vpop.f32.mrf.mxu3 }
 0x714   :  { %v4403_v16 = vadd.f32 %v4402_v57, %v9210_v50 }
 0x716   :  { %v4572_v9 = vadd.f32 %v9246_v20, %v4403_v16 }
 0x71a   :  { %v4737_v37 = vpop.f32.mrf.mxu1 }
 0x71b   :  { %v9550_v0 = vadd.f32 %v4737_v37, %v4569_v38  ;;  %v4404_v54 = vpop.f32.mrf.mxu3  ;;  %v11635_v38 = vld [vmem:[#allocation49_spill] sm:$0xff] }
 0x71c   :  { %v4405_v26 = vadd.f32 %v4404_v54, %v11626_v3 }
 0x71e   :  { %v4574_v41 = vadd.f32 %v11630_v28, %v4405_v26 }
 0x720   :  { %4446 = vmatmul.bf16.gmra.mxu3 %v11627_v25 }
 0x722   :  { %v4740_v39 = vpop.f32.mrf.mxu1  ;;  %4779 = vmatmul.bf16.gmra.mxu1 %v11629_v23 }
 0x723   :  { %v9555_v4 = vadd.f32 %v4740_v39, %v4572_v9  ;;  %v4407_v33 = vpop.f32.mrf.mxu3  ;;  %v11637_v9 = vld [vmem:[#allocation211_spill] sm:$0xff]  ;;  %v11638_v39 = vld [vmem:[#allocation74_spill] sm:$0xff] }
 0x724   :  { %v4408_v50 = vadd.f32 %v4407_v33, %v11628_v32 }
 0x726   :  { %v4577_v20 = vadd.f32 %v9274_v51, %v4408_v50 }
 0x72a   :  { %v4742_v52 = vpop.f32.mrf.mxu1 }
 0x72b   :  { %v9560_v31 = vadd.f32 %v4742_v52, %v4574_v41  ;;  %v4409_v46 = vpop.f32.mrf.mxu3  ;;  %v11641_v52 = vld [vmem:[#allocation90_spill] sm:$0xff] }
 0x72c   :  { %v4410_v53 = vadd.f32 %v4409_v46, %v11632_v44  ;;  %v4601_v44 = vpop.f32.mrf.mxu0 }
 0x72d   :  { %11631 = vst [vmem:[#allocation154_spill] sm:$0xff] %v9560_v31 }
 0x72e   :  { %v4579_v37 = vadd.f32 %v9292_v60, %v4410_v53  ;;  %v11642_v53 = vld [vmem:[#allocation78_spill] sm:$0xff] }
 0x730   :  { %4451 = vmatmul.bf16.gmra.mxu3 %v11633_v42 }
 0x732   :  { %v4745_v43 = vpop.f32.mrf.mxu1  ;;  %4784 = vmatmul.bf16.gmra.mxu1 %v11635_v38 }
 0x733   :  { %v9565_v57 = vadd.f32 %v4745_v43, %v4577_v20  ;;  %v4412_v16 = vpop.f32.mrf.mxu3 }
 0x734   :  { %v4413_v45 = vadd.f32 %v4412_v16, %v9262_v11 }
 0x735   :  { %11634 = vst [vmem:[#allocation147_spill] sm:$0xff] %v9565_v57 }
 0x736   :  { %v4582_v51 = vadd.f32 %v9305_v30, %v4413_v45  ;;  %v4603_v45 = vpop.f32.mrf.mxu0 }
 0x73a   :  { %v4747_v54 = vpop.f32.mrf.mxu1 }
 0x73b   :  { %v9570_v3 = vadd.f32 %v4747_v54, %v4579_v37  ;;  %v4414_v26 = vpop.f32.mrf.mxu3 }
 0x73c   :  { %v4415_v25 = vadd.f32 %v4414_v26, %v11637_v9  ;;  %v11647_v26 = vld [vmem:[#allocation31_spill] sm:$0xff] }
 0x73d   :  { %11636 = vst [vmem:[#allocation50_spill] sm:$0xff] %v9570_v3 }
 0x73e   :  { %v4584_v60 = vadd.f32 %v9322_v7, %v4415_v25 }
 0x740   :  { %4456 = vmatmul.bf16.gmra.mxu3 %v11638_v39  ;;  %v4606_v39 = vpop.f32.mrf.mxu0 }
 0x742   :  { %v4750_v33 = vpop.f32.mrf.mxu1  ;;  %4789 = vmatmul.bf16.gmra.mxu1 %v11486_v10  ;;  %v11645_v10 = vld [vmem:[#allocation65_spill] sm:$0xff] }
 0x743   :  { %v9575_v32 = vadd.f32 %v4750_v33, %v4582_v51  ;;  %v4417_v50 = vpop.f32.mrf.mxu3  ;;  %v11649_v51 = vld [vmem:[#allocation82_spill] sm:$0xff] }
 0x744   :  { %v4418_v11 = vadd.f32 %v4417_v50, %v9286_v47  ;;  %v11644_v47 = vld [vmem:[#allocation140_spill] sm:$0xff] }
 0x745   :  { %11639 = vst [vmem:[#allocation152_spill] sm:$0xff] %v9575_v32 }
 0x746   :  { %v4587_v30 = vadd.f32 %v9336_v62, %v4418_v11  ;;  %v11648_v62 = vld [vmem:[#allocation215_spill] sm:$0xff] }
 0x74a   :  { %v4752_v23 = vpop.f32.mrf.mxu1 }
 0x74b   :  { %v9580_v28 = vadd.f32 %v4752_v23, %v4584_v60  ;;  %v4419_v41 = vpop.f32.mrf.mxu3  ;;  %v11651_v60 = vld [vmem:[#allocation89_spill] sm:$0xff] }
 0x74c   :  { %v4420_v46 = vadd.f32 %v4419_v41, %v11641_v52  ;;  %v11652_v41 = vld [vmem:[#allocation111_spill] sm:$0xff] }
 0x74d   :  { %11640 = vst [vmem:[#allocation226_spill] sm:$0xff] %v9580_v28 }
 0x74e   :  { %v4589_v7 = vadd.f32 %v9355_v14, %v4420_v46  ;;  %v11653_v14 = vld [vmem:[#allocation93_spill] sm:$0xff] }
 0x750   :  { %4461 = vmatmul.bf16.gmra.mxu3 %v11642_v53 }
 0x752   :  { %v4755_v20 = vpop.f32.mrf.mxu1  ;;  %4794 = vmatmul.bf16.gmra.mxu1 %v11645_v10 }
 0x753   :  { %v9585_v42 = vadd.f32 %v4755_v20, %v4587_v30  ;;  %v4422_v43 = vpop.f32.mrf.mxu3  ;;  %v4608_v20 = vpop.f32.mrf.mxu0 }
 0x754   :  { %v4423_v16 = vadd.f32 %v4422_v43, %v11644_v47  ;;  %v11655_v43 = vld [vmem:[#allocation225_spill] sm:$0xff] }
 0x755   :  { %11643 = vst [vmem:[#allocation44_spill] sm:$0xff] %v9585_v42 }
 0x756   :  { %v4592_v25 = vadd.f32 %v11648_v62, %v4423_v16  ;;  %v11656_v16 = vld [vmem:[#allocation91_spill] sm:$0xff] }
 0x757   :  { %v11659_v62 = vld [vmem:[#allocation43_spill] sm:$0xff] }
 0x75a   :  { %v4757_v38 = vpop.f32.mrf.mxu1 }
 0x75b   :  { %v9590_v37 = vadd.f32 %v4757_v38, %v4589_v7  ;;  %v4424_v54 = vpop.f32.mrf.mxu3  ;;  %v11657_v7 = vld [vmem:[#allocation86_spill] sm:$0xff] }
 0x75c   :  { %v4425_v9 = vadd.f32 %v4424_v54, %v11647_v26 }
 0x75d   :  { %11646 = vst [vmem:[#allocation157_spill] sm:$0xff] %v9590_v37 }
 0x75e   :  { %v4594_v52 = vadd.f32 %v11653_v14, %v4425_v9  ;;  %v4611_v9 = vpop.f32.mrf.mxu0  ;;  %v11662_v14 = vld [vmem:[#allocation39_spill] sm:$0xff] }
 0x760   :  { %4466 = vmatmul.bf16.gmra.mxu3 %v11649_v51  ;;  %v11660_v51 = vld [vmem:[#allocation113_spill] sm:$0xff] }
 0x762   :  { %v4760_v33 = vpop.f32.mrf.mxu1  ;;  %4799 = vmatmul.bf16.gmra.mxu1 %v11652_v41 }
 0x763   :  { %v9595_v50 = vadd.f32 %v4760_v33, %v4592_v25  ;;  %v4427_v11 = vpop.f32.mrf.mxu3 }
 0x764   :  { %v4428_v23 = vadd.f32 %v4427_v11, %v11651_v60 }
 0x765   :  { %11650 = vst [vmem:[#allocation150_spill] sm:$0xff] %v9595_v50 }
 0x766   :  { %v4597_v10 = vadd.f32 %v11656_v16, %v4428_v23 }
 0x76a   :  { %v4762_v46 = vpop.f32.mrf.mxu1 }
 0x76b   :  { %v9600_v30 = vadd.f32 %v4762_v46, %v4594_v52  ;;  %v4429_v53 = vpop.f32.mrf.mxu3  ;;  %v4613_v46 = vpop.f32.mrf.mxu0 }
 0x76c   :  { %v4430_v47 = vadd.f32 %v4429_v53, %v11655_v43  ;;  %v11663_v53 = vld [vmem:[#allocation71_spill] sm:$0xff] }
 0x76d   :  { %11654 = vst [vmem:[#allocation155_spill] sm:$0xff] %v9600_v30 }
 0x76e   :  { %v4599_v33 = vadd.f32 %v9424_v56, %v4430_v47 }
 0x770   :  { %4471 = vmatmul.bf16.gmra.mxu3 %v11657_v7  ;;  %v11665_v7 = vld [vmem:[#allocation37_spill] sm:$0xff] }
 0x772   :  { %v4765_v38 = vpop.f32.mrf.mxu1  ;;  %4804 = vmatmul.bf16.gmra.mxu1 %v11660_v51 }
 0x773   :  { %v9605_v54 = vadd.f32 %v4765_v38, %v4597_v10  ;;  %v4432_v26 = vpop.f32.mrf.mxu3  ;;  %v4616_v56 = vpop.f32.mrf.mxu0 }
 0x774   :  { %v4433_v25 = vadd.f32 %v4432_v26, %v11659_v62  ;;  %v11666_v26 = vld [vmem:[#allocation114_spill] sm:$0xff] }
 0x775   :  { %11658 = vst [vmem:[#allocation62_spill] sm:$0xff] %v9605_v54 }
 0x776   :  { %v4602_v23 = vadd.f32 %v4601_v44, %v4433_v25  ;;  %v11669_v25 = vld [vmem:[#allocation125_spill] sm:$0xff] }
 0x77a   :  { %v4767_v11 = vpop.f32.mrf.mxu1 }
 0x77b   :  { %v9610_v60 = vadd.f32 %v4767_v11, %v4599_v33  ;;  %v4434_v41 = vpop.f32.mrf.mxu3  ;;  %v11668_v11 = vld [vmem:[#allocation18_spill] sm:$0xff] }
 0x77c   :  { %v4435_v52 = vadd.f32 %v4434_v41, %v11662_v14 }
 0x77d   :  { %11661 = vst [vmem:[#allocation67_spill] sm:$0xff] %v9610_v60 }
 0x77e   :  { %v4604_v62 = vadd.f32 %v4603_v45, %v4435_v52 }
 0x780   :  { %4476 = vmatmul.bf16.gmra.mxu3 %v11663_v53 }
 0x782   :  { %v4770_v43 = vpop.f32.mrf.mxu1  ;;  %4809 = vmatmul.bf16.gmra.mxu1 %v11666_v26 }
 0x783   :  { %v9614_v16 = vadd.f32 %v4770_v43, %v4602_v23  ;;  %v4437_v10 = vpop.f32.mrf.mxu3  ;;  %v4618_v43 = vpop.f32.mrf.mxu0 }
 0x784   :  { %v4438_v38 = vadd.f32 %v4437_v10, %v11665_v7 }
 0x785   :  { %11664 = vst [vmem:[#allocation227_spill] sm:$0xff] %v9614_v16 }
 0x786   :  { %v4607_v44 = vadd.f32 %v4606_v39, %v4438_v38  ;;  %v11672_v38 = vld [vmem:[#allocation205_spill] sm:$0xff] }
 0x78a   :  { %v4772_v47 = vpop.f32.mrf.mxu1 }
 0x78b   :  { %v9618_v51 = vadd.f32 %v4772_v47, %v4604_v62  ;;  %v4439_v33 = vpop.f32.mrf.mxu3  ;;  %v4621_v47 = vpop.f32.mrf.mxu0 }
 0x78c   :  { %v4440_v41 = vadd.f32 %v4439_v33, %v11668_v11  ;;  %v1257_v11 = vld [vmem:[#allocation2 + $0x348] sm:$0xff] }
 0x78d   :  { %11667 = vst [vmem:[#allocation153_spill] sm:$0xff] %v9618_v51 }
 0x78e   :  { %v4609_v45 = vadd.f32 %v4608_v20, %v4440_v41  ;;  %v2046_v41 = vpack.c.bf16 %v1257_v11, %v1257_v11 }
 0x790   :  { %4481 = vmatmul.bf16.gmra.mxu3 %v11669_v25 }
 0x792   :  { %v4775_v14 = vpop.f32.mrf.mxu1  ;;  %4814 = vmatmul.bf16.gmra.mxu1 %v11569_v12  ;;  %v2059_v12 = vrot.slane %v1257_v11, 1 }
 0x793   :  { %v9622_v53 = vadd.f32 %v4775_v14, %v4607_v44  ;;  %v4442_v23 = vpop.f32.mrf.mxu3  ;;  %v6077_v44 = vld [vmem:[#allocation2 + $0x1b8] sm:$0xff] }
 0x794   :  { %v4443_v10 = vadd.f32 %v4442_v23, %v9419_v48  ;;  %v2060_v25 = vrot.slane %v6077_v44, 1  ;;  %v1259_v14 = vld [vmem:[#allocation2 + $0x358] sm:$0x3] }
 0x795   :  { %11670 = vst [vmem:[#allocation158_spill] sm:$0xff] %v9622_v53  ;;  %v2062_v23 = vrot.slane %v1259_v14, 1 }
 0x796   :  { %v4612_v39 = vadd.f32 %v4611_v9, %v4443_v10 }
 0x797   :  { %v2063_v9 = vsel %vm1420_vm3, %v2060_v25, %v2062_v23 }
 0x79a   :  { %v4777_v52 = vpop.f32.mrf.mxu1 }
 0x79b   :  { %v9626_v7 = vadd.f32 %v4777_v52, %v4609_v45  ;;  %v4444_v26 = vpop.f32.mrf.mxu3  ;;  %v2071_v52 = vpack.c.bf16 %v2063_v9, %v2063_v9 }
 0x79c   :  { %v4445_v62 = vadd.f32 %v4444_v26, %v9441_v24  ;;  %v2061_v24 = vsel %vm1420_vm3, %v2059_v12, %v2060_v25  ;;  %v4623_v26 = vpop.f32.mrf.mxu0 }
 0x79d   :  { %11671 = vst [vmem:[#allocation42_spill] sm:$0xff] %v9626_v7  ;;  %v2070_v10 = vpack.c.bf16 %v2061_v24, %v2061_v24 }
 0x79e   :  { %v4614_v45 = vadd.f32 %v4613_v46, %v4445_v62  ;;  %v2077_v46 = vrot.slane %v1257_v11, 2  ;;  %v2080_v62 = vrot.slane %v1259_v14, 2 }
 0x79f   :  { %v2720_v44 = vunpack.c.l.b16 %v2070_v10 }
 0x7a0   :  { %4486 = vmatmul.bf16.gmra.mxu3 %v11672_v38  ;;  %v2708_v38 = vunpack.c.l.b16 %v2046_v41  ;;  %v2079_v10 = vsel %vm1709_vm4, %v2077_v46, %v9429_v49 }
 0x7a2   :  { %v4780_v33 = vpop.f32.mrf.mxu1  ;;  %4819 = vmatmul.bf16.gmra.mxu1 %v11580_v1  ;;  %v2711_v1 = vpack.c.b16 %v9411_v17, %v2708_v38  ;;  %v2081_v17 = vsel %vm1709_vm4, %v9429_v49, %v2080_v62 }
 0x7a3   :  { %v9630_v53 = vadd.f32 %v4780_v33, %v4612_v39  ;;  %v4447_v48 = vpop.f32.mrf.mxu3  ;;  %v2721_v39 = vunpack.c.l.b16 %v2071_v52 }
 0x7a4   :  { %v4448_v20 = vadd.f32 %v4447_v48, %v9451_v8  ;;  %v4626_v25 = vpop.f32.mrf.mxu0 }
 0x7a5   :  { %11673 = vst [vmem:[#allocation53_spill] sm:$0xff] %v9630_v53  ;;  %v2723_v8 = vpack.c.b16 %v2721_v39, %v2720_v44 }
 0x7a6   :  { %v4617_v12 = vadd.f32 %v4616_v56, %v4448_v20  ;;  %v2088_v56 = vpack.c.bf16 %v2079_v10, %v2079_v10 }
 0x7a7   :  { %4660 = vmatmul.bf16.gmra.mxu0 %v2723_v8 }
 0x7a8   :  { %v2732_v38 = vunpack.c.l.b16 %v2088_v56  ;;  %v11680_v56 = vld [vmem:[#allocation33_spill] sm:$0xff] }
 0x7aa   :  { %v4782_v33 = vpop.f32.mrf.mxu1 }
 0x7ab   :  { %v9636_v53 = vadd.f32 %v4782_v33, %v4614_v45  ;;  %v4449_v7 = vpop.f32.mrf.mxu3 }
 0x7ac   :  { %v4450_v48 = vadd.f32 %v4449_v7, %v9461_v13  ;;  %v2089_v7 = vpack.c.bf16 %v2081_v17, %v2081_v17  ;;  %v4628_v14 = vpop.f32.mrf.mxu0 }
 0x7ad   :  { %11674 = vst [vmem:[#allocation162_spill] sm:$0xff] %v9636_v53 }
 0x7ae   :  { %v4619_v13 = vadd.f32 %v4618_v43, %v4450_v48 }
 0x7b0   :  { %4491 = vmatmul.bf16.gmra.mxu3 %v2711_v1 }
 0x7b2   :  { %v4785_v23 = vpop.f32.mrf.mxu1  ;;  %4824 = vmatmul.bf16.gmra.mxu1 %v11590_v59 }
 0x7b3   :  { %v9640_v24 = vadd.f32 %v4785_v23, %v4617_v12  ;;  %v4452_v41 = vpop.f32.mrf.mxu3 }
 0x7b4   :  { %v4453_v9 = vadd.f32 %v4452_v41, %v9471_v18  ;;  %v2733_v18 = vunpack.c.l.b16 %v2089_v7  ;;  %v4631_v43 = vpop.f32.mrf.mxu0  ;;  %v4910_v7 = vmul.f32 %v11680_v56, %v11680_v56 }
 0x7b5   :  { %11675 = vst [vmem:[#allocation156_spill] sm:$0xff] %v9640_v24 }
 0x7b6   :  { %v4622_v44 = vadd.f32 %v4621_v47, %v4453_v9  ;;  %v2735_v59 = vpack.c.b16 %v2733_v18, %v2732_v38  ;;  %v11678_v47 = vld [vmem:[#allocation108_spill] sm:$0xff]  ;;  %v11679_v9 = vld [vmem:[#allocation209_spill] sm:$0xff] }
 0x7b7   :  { %v4907_v41 = vmul.f32 %v11678_v47, %v11678_v47  ;;  %v4909_v10 = vmul.f32 %v11679_v9, %v11679_v9 }
 0x7ba   :  { %v4787_v20 = vpop.f32.mrf.mxu1 }
 0x7bb   :  { %v9648_v45 = vadd.f32 %v4787_v20, %v4619_v13  ;;  %v4454_v11 = vpop.f32.mrf.mxu3 }
 0x7bc   :  { %v4455_v52 = vadd.f32 %v4454_v11, %v9482_v63  ;;  %v11677_v63 = vld [vmem:[#allocation19_spill] sm:$0xff] }
 0x7bd   :  { %v4908_v62 = vmul.f32 %v11677_v63, %v11677_v63 }
 0x7be   :  { %v4624_v48 = vadd.f32 %v4623_v26, %v4455_v52  ;;  %v4837_v26 = vadd.f32 %v11677_v63, %v11678_v47  ;;  %v11681_v52 = vld [vmem:[#allocation214_spill] sm:$0xff]  ;;  %v4946_v63 = vmul.f32 %v9618_v51, %v9618_v51 }
 0x7bf   :  { %v4971_v13 = vadd.f32 %v4908_v62, %v4907_v41  ;;  %v4911_v38 = vmul.f32 %v11681_v52, %v11681_v52 }
 0x7c1   :  { %v4972_v11 = vadd.f32 %v4971_v13, %v4909_v10 }
 0x7c2   :  { %v4790_v39 = vpop.f32.mrf.mxu1  ;;  %4829 = vmatmul.bf16.gmra.mxu1 %v2735_v59 }
 0x7c3   :  { %v9651_v33 = vadd.f32 %v4790_v39, %v4622_v44  ;;  %v4457_v8 = vpop.f32.mrf.mxu3  ;;  %v4973_v39 = vadd.f32 %v4972_v11, %v4910_v7 }
 0x7c4   :  { %v4458_v49 = vadd.f32 %v4457_v8, %v9491_v61  ;;  %v4633_v61 = vpop.f32.mrf.mxu0  ;;  %v11682_v8 = vld [vmem:[#allocation212_spill] sm:$0xff] }
 0x7c5   :  { %11676 = vst [vmem:[#allocation160_spill] sm:$0xff] %v9651_v33 }
 0x7c6   :  { %v4627_v17 = vadd.f32 %v4626_v25, %v4458_v49  ;;  %v4912_v49 = vmul.f32 %v11682_v8, %v11682_v8 }
 0x7ca   :  { %v4792_v1 = vpop.f32.mrf.mxu1 }
 0x7cb   :  { %v9654_v12 = vadd.f32 %v4792_v1, %v4624_v48  ;;  %v4459_v23 = vpop.f32.mrf.mxu3  ;;  %v4974_v1 = vadd.f32 %v4973_v39, %v4911_v38 }
 0x7cc   :  { %v4460_v46 = vadd.f32 %v4459_v23, %v9502_v27  ;;  %v4838_v27 = vadd.f32 %v4837_v26, %v11679_v9  ;;  %v11683_v23 = vld [vmem:[#allocation35_spill] sm:$0xff]  ;;  %v11684_v26 = vld [vmem:[#allocation217_spill] sm:$0xff] }
 0x7cd   :  { %v4913_v62 = vmul.f32 %v11683_v23, %v11683_v23  ;;  %v4914_v13 = vmul.f32 %v11684_v26, %v11684_v26 }
 0x7ce   :  { %v4839_v59 = vadd.f32 %v4838_v27, %v11680_v56  ;;  %v4629_v41 = vadd.f32 %v4628_v14, %v4460_v46  ;;  %v11687_v56 = vld [vmem:[#allocation145_spill] sm:$0xff] }
 0x7d0   :  { %v4840_v48 = vadd.f32 %v4839_v59, %v11681_v52 }
 0x7d2   :  { %v4795_v20 = vpop.f32.mrf.mxu1  ;;  %v4841_v10 = vadd.f32 %v4840_v48, %v11682_v8  ;;  %v11686_v48 = vld [vmem:[#allocation142_spill] sm:$0xff] }
 0x7d3   :  { %v9670_v18 = vadd.f32 %v4795_v20, %v4627_v17  ;;  %v4462_v44 = vpop.f32.mrf.mxu3  ;;  %v4975_v17 = vadd.f32 %v4974_v1, %v4912_v49  ;;  %v4636_v20 = vpop.f32.mrf.mxu0  ;;  %v4916_v1 = vmul.f32 %v11686_v48, %v11686_v48 }
 0x7d4   :  { %v4463_v25 = vadd.f32 %v4462_v44, %v9511_v5  ;;  %v9682_v5 = vpop.f32.mrf.mxu2  ;;  %v4842_v27 = vadd.f32 %v4841_v10, %v11683_v23  ;;  %v11685_v44 = vld [vmem:[#allocation141_spill] sm:$0xff] }
 0x7d5   :  { %v4976_v11 = vadd.f32 %v4975_v17, %v4913_v62  ;;  %v4915_v38 = vmul.f32 %v11685_v44, %v11685_v44  ;;  %v4917_v62 = vmul.f32 %v11687_v56, %v11687_v56 }
 0x7d6   :  { %v4843_v46 = vadd.f32 %v4842_v27, %v11684_v26  ;;  %v4632_v10 = vadd.f32 %v4631_v43, %v4463_v25 }
 0x7d7   :  { %v4977_v49 = vadd.f32 %v4976_v11, %v4914_v13  ;;  %v11689_v11 = vld [vmem:[#allocation46_spill] sm:$0xff] }
 0x7d8   :  { %v4844_v8 = vadd.f32 %v4843_v46, %v11685_v44 }
 0x7d9   :  { %v4978_v52 = vadd.f32 %v4977_v49, %v4915_v38 }
 0x7da   :  { %v4797_v7 = vpop.f32.mrf.mxu1  ;;  %v4845_v17 = vadd.f32 %v4844_v8, %v11686_v48  ;;  %v11690_v8 = vld [vmem:[#allocation52_spill] sm:$0xff] }
 0x7db   :  { %v9687_v59 = vadd.f32 %v4797_v7, %v4629_v41  ;;  %v4464_v39 = vpop.f32.mrf.mxu3  ;;  %v4979_v41 = vadd.f32 %v4978_v52, %v4916_v1  ;;  %v11688_v7 = vld [vmem:[#allocation16_spill] sm:$0xff]  ;;  %v9706_v49 = vpop.f32.mrf.mxu0  ;;  %v4920_v1 = vmul.f32 %v11690_v8, %v11690_v8 }
 0x7dc   :  { %v4465_v14 = vadd.f32 %v4464_v39, %v9522_v15  ;;  %v4918_v23 = vmul.f32 %v11688_v7, %v11688_v7  ;;  %v4846_v27 = vadd.f32 %v4845_v17, %v11687_v56  ;;  %v4919_v39 = vmul.f32 %v11689_v11, %v11689_v11  ;;  %v9702_v26 = vpop.f32.mrf.mxu2 }
 0x7dd   :  { %v4980_v13 = vadd.f32 %v4979_v41, %v4917_v62  ;;  %v4921_v56 = vmul.f32 %v9457_v2, %v9457_v2 }
 0x7de   :  { %v4847_v52 = vadd.f32 %v4846_v27, %v11688_v7 }
 0x7df   :  { %v4981_v25 = vadd.f32 %v4980_v13, %v4918_v23 }
 0x7e0   :  { %v4848_v62 = vadd.f32 %v4847_v52, %v11689_v11  ;;  %v4942_v11 = vmul.f32 %v9600_v30, %v9600_v30 }
 0x7e1   :  { %v4982_v41 = vadd.f32 %v4981_v25, %v4919_v39 }
 0x7e2   :  { %v4800_v15 = vpop.f32.mrf.mxu1 }
 0x7e3   :  { %v9704_v38 = vadd.f32 %v4800_v15, %v4632_v10  ;;  %v4467_v46 = vpop.f32.mrf.mxu3  ;;  %v4634_v10 = vadd.f32 %v4633_v61, %v4465_v14  ;;  %v4849_v15 = vadd.f32 %v4848_v62, %v11690_v8  ;;  %v4983_v48 = vadd.f32 %v4982_v41, %v4920_v1  ;;  %v9730_v25 = vpop.f32.mrf.mxu0 }
 0x7e4   :  { %v4468_v43 = vadd.f32 %v4467_v46, %v9531_v21  ;;  %v4922_v21 = vmul.f32 %v9467_v55, %v9467_v55  ;;  %v4924_v14 = vmul.f32 %v9487_v36, %v9487_v36  ;;  %v9728_v52 = vpop.f32.mrf.mxu2 }
 0x7e5   :  { %v4850_v23 = vadd.f32 %v4849_v15, %v9457_v2  ;;  %v4984_v27 = vadd.f32 %v4983_v48, %v4921_v56  ;;  %v4925_v48 = vmul.f32 %v9497_v35, %v9497_v35 }
 0x7e6   :  { %v4637_v17 = vadd.f32 %v4636_v20, %v4468_v43  ;;  %v4923_v20 = vmul.f32 %v9477_v58, %v9477_v58 }
 0x7e7   :  { %v4851_v43 = vadd.f32 %v4850_v23, %v9467_v55  ;;  %v4985_v61 = vadd.f32 %v4984_v27, %v4922_v21  ;;  %v4927_v23 = vmul.f32 %v9517_v40, %v9517_v40 }
 0x7e9   :  { %v4852_v1 = vadd.f32 %v4851_v43, %v9477_v58  ;;  %v4986_v56 = vadd.f32 %v4985_v61, %v4923_v20  ;;  %v4937_v58 = vmul.f32 %v9575_v32, %v9575_v32 }
 0x7ea   :  { %v4802_v46 = vpop.f32.mrf.mxu1 }
 0x7eb   :  { %v9721_v13 = vadd.f32 %v4802_v46, %v4634_v10  ;;  %v9723_v39 = vpop.f32.mrf.mxu3  ;;  %v4853_v62 = vadd.f32 %v4852_v1, %v9487_v36  ;;  %v4987_v41 = vadd.f32 %v4986_v56, %v4924_v14  ;;  %v4926_v10 = vmul.f32 %v9507_v6, %v9507_v6 }
 0x7ec   :  { %v4928_v14 = vmul.f32 %v9527_v19, %v9527_v19 }
 0x7ed   :  { %v4854_v21 = vadd.f32 %v4853_v62, %v9497_v35  ;;  %v4988_v46 = vadd.f32 %v4987_v41, %v4925_v48  ;;  %v4929_v62 = vmul.f32 %v9535_v34, %v9535_v34  ;;  %v9751_v48 = vpop.f32.mrf.mxu2  ;;  %v9753_v41 = vpop.f32.mrf.mxu0 }
 0x7ef   :  { %v4855_v20 = vadd.f32 %v4854_v21, %v9507_v6  ;;  %v4989_v61 = vadd.f32 %v4988_v46, %v4926_v10  ;;  %v4930_v21 = vmul.f32 %v9540_v29, %v9540_v29 }
 0x7f1   :  { %v4856_v1 = vadd.f32 %v4855_v20, %v9517_v40  ;;  %v4990_v56 = vadd.f32 %v4989_v61, %v4927_v23  ;;  %v4931_v23 = vmul.f32 %v9545_v22, %v9545_v22 }
 0x7f2   :  { %v4805_v15 = vpop.f32.mrf.mxu1 }
 0x7f3   :  { %v9741_v27 = vadd.f32 %v4805_v15, %v4637_v17  ;;  %v9743_v43 = vpop.f32.mrf.mxu3  ;;  %v4857_v17 = vadd.f32 %v4856_v1, %v9527_v19  ;;  %v4991_v15 = vadd.f32 %v4990_v56, %v4928_v14  ;;  %v4932_v1 = vmul.f32 %v9550_v0, %v9550_v0 }
 0x7f4   :  { %v4933_v19 = vmul.f32 %v9555_v4, %v9555_v4 }
 0x7f5   :  { %v4858_v46 = vadd.f32 %v4857_v17, %v9535_v34  ;;  %v4992_v6 = vadd.f32 %v4991_v15, %v4929_v62  ;;  %v9772_v15 = vpop.f32.mrf.mxu2  ;;  %v4934_v34 = vmul.f32 %v9560_v31, %v9560_v31  ;;  %v9776_v35 = vpop.f32.mrf.mxu0 }
 0x7f7   :  { %v4859_v61 = vadd.f32 %v4858_v46, %v9540_v29  ;;  %v4993_v40 = vadd.f32 %v4992_v6, %v4930_v21 }
 0x7f9   :  { %v4860_v14 = vadd.f32 %v4859_v61, %v9545_v22  ;;  %v4994_v56 = vadd.f32 %v4993_v40, %v4931_v23  ;;  %v4935_v40 = vmul.f32 %v9565_v57, %v9565_v57 }
 0x7fa   :  { %v9758_v10 = vpop.f32.mrf.mxu1 }
 0x7fb   :  { %v9763_v20 = vpop.f32.mrf.mxu3  ;;  %v4861_v17 = vadd.f32 %v4860_v14, %v9550_v0  ;;  %v4995_v62 = vadd.f32 %v4994_v56, %v4932_v1  ;;  %v4936_v14 = vmul.f32 %v9570_v3, %v9570_v3 }
 0x7fd   :  { %v4862_v21 = vadd.f32 %v4861_v17, %v9555_v4  ;;  %v4996_v46 = vadd.f32 %v4995_v62, %v4933_v19  ;;  %v4938_v62 = vmul.f32 %v9580_v28, %v9580_v28  ;;  %v9796_v2 = vpop.f32.mrf.mxu2 }
 0x7ff   :  { %v4863_v61 = vadd.f32 %v4862_v21, %v9560_v31  ;;  %v4997_v1 = vadd.f32 %v4996_v46, %v4934_v34  ;;  %v4939_v46 = vmul.f32 %v9585_v42, %v9585_v42  ;;  %v11702_v31 = vld [vmem:[#allocation223_spill] sm:$0xff] }
 0x801   :  { %v4864_v56 = vadd.f32 %v4863_v61, %v9565_v57  ;;  %v4998_v36 = vadd.f32 %v4997_v1, %v4935_v40  ;;  %v9803_v61 = vpop.f32.mrf.mxu0  ;;  %v11701_v57 = vld [vmem:[#allocation106_spill] sm:$0xff] }
 0x802   :  { %v9778_v6 = vpop.f32.mrf.mxu1 }
 0x803   :  { %v9783_v23 = vpop.f32.mrf.mxu3  ;;  %v4865_v17 = vadd.f32 %v4864_v56, %v9570_v3  ;;  %v4999_v19 = vadd.f32 %v4998_v36, %v4936_v14  ;;  %v4940_v14 = vmul.f32 %v9590_v37, %v9590_v37  ;;  %v11700_v3 = vld [vmem:[#allocation197_spill] sm:$0xff] }
 0x805   :  { %v4866_v34 = vadd.f32 %v4865_v17, %v9575_v32  ;;  %v5000_v21 = vadd.f32 %v4999_v19, %v4937_v58  ;;  %v4941_v17 = vmul.f32 %v9595_v50, %v9595_v50 }
 0x807   :  { %v4867_v1 = vadd.f32 %v4866_v34, %v9580_v28  ;;  %v5001_v36 = vadd.f32 %v5000_v21, %v4938_v62  ;;  %v4943_v21 = vmul.f32 %v9605_v54, %v9605_v54  ;;  %v11697_v28 = vld [vmem:[#allocation219_spill] sm:$0xff] }
 0x809   :  { %v4868_v56 = vadd.f32 %v4867_v1, %v9585_v42  ;;  %v5002_v8 = vadd.f32 %v5001_v36, %v4939_v46  ;;  %v9821_v46 = vpop.f32.mrf.mxu2 }
 0x80a   :  { %v9794_v55 = vpop.f32.mrf.mxu1 }
 0x80b   :  { %v9801_v40 = vpop.f32.mrf.mxu3  ;;  %v4869_v58 = vadd.f32 %v4868_v56, %v9590_v37  ;;  %v5003_v19 = vadd.f32 %v5002_v8, %v4940_v14  ;;  %v4944_v8 = vmul.f32 %v9610_v60, %v9610_v60  ;;  %v9826_v14 = vpop.f32.mrf.mxu0 }
 0x80d   :  { %v4870_v34 = vadd.f32 %v4869_v58, %v9595_v50  ;;  %v5004_v62 = vadd.f32 %v5003_v19, %v4941_v17  ;;  %v4945_v17 = vmul.f32 %v9614_v16, %v9614_v16 }
 0x80f   :  { %v4871_v1 = vadd.f32 %v4870_v34, %v9600_v30  ;;  %v5005_v36 = vadd.f32 %v5004_v62, %v4942_v11  ;;  %v11691_v62 = vld [vmem:[#allocation158_spill] sm:$0xff] }
 0x810   :  { %v4947_v30 = vmul.f32 %v11691_v62, %v11691_v62 }
 0x811   :  { %v4872_v56 = vadd.f32 %v4871_v1, %v9605_v54  ;;  %v5006_v9 = vadd.f32 %v5005_v36, %v4943_v21  ;;  %v11692_v36 = vld [vmem:[#allocation42_spill] sm:$0xff]  ;;  %v11693_v54 = vld [vmem:[#allocation53_spill] sm:$0xff] }
 0x812   :  { %v9814_v7 = vpop.f32.mrf.mxu1 }
 0x813   :  { %v9819_v44 = vpop.f32.mrf.mxu3  ;;  %v4873_v58 = vadd.f32 %v4872_v56, %v9610_v60  ;;  %v5007_v19 = vadd.f32 %v5006_v9, %v4944_v8  ;;  %v4948_v56 = vmul.f32 %v11692_v36, %v11692_v36  ;;  %v9844_v9 = vpop.f32.mrf.mxu2 }
 0x815   :  { %v4874_v11 = vadd.f32 %v4873_v58, %v9614_v16  ;;  %v5008_v34 = vadd.f32 %v5007_v19, %v4945_v17  ;;  %v4949_v58 = vmul.f32 %v11693_v54, %v11693_v54  ;;  %v9849_v17 = vpop.f32.mrf.mxu0 }
 0x817   :  { %v4875_v21 = vadd.f32 %v4874_v11, %v9618_v51  ;;  %v5009_v1 = vadd.f32 %v5008_v34, %v4946_v63  ;;  %v4950_v11 = vmul.f32 %v9636_v53, %v9636_v53  ;;  %v11694_v63 = vld [vmem:[#allocation192_spill] sm:$0xff]  ;;  %v11695_v34 = vld [vmem:[#allocation218_spill] sm:$0xff] }
 0x818   :  { %v3963_v51 = vadd.f32 %v11695_v34, %v11694_v63  ;;  %v11698_v63 = vld [vmem:[#allocation195_spill] sm:$0xff]  ;;  %v11699_v34 = vld [vmem:[#allocation220_spill] sm:$0xff] }
 0x819   :  { %v4876_v8 = vadd.f32 %v4875_v21, %v11691_v62  ;;  %v5010_v60 = vadd.f32 %v5009_v1, %v4947_v30  ;;  %v4951_v30 = vmul.f32 %v9640_v24, %v9640_v24  ;;  %v11696_v62 = vld [vmem:[#allocation128_spill] sm:$0xff]  ;;  %v3968_v32 = vadd.f32 %v11699_v34, %v11698_v63  ;;  %v11706_v34 = vld [vmem:[#allocation25_spill] sm:$0xff] }
 0x81a   :  { %v9834_v47 = vpop.f32.mrf.mxu1 }
 0x81b   :  { %v9839_v50 = vpop.f32.mrf.mxu3  ;;  %v4877_v19 = vadd.f32 %v4876_v8, %v11692_v36  ;;  %v5011_v16 = vadd.f32 %v5010_v60, %v4948_v56  ;;  %v3966_v8 = vadd.f32 %v11697_v28, %v11696_v62  ;;  %v4952_v36 = vmul.f32 %v9648_v45, %v9648_v45  ;;  %v11703_v62 = vld [vmem:[#allocation130_spill] sm:$0xff] }
 0x81c   :  { %v3971_v28 = vadd.f32 %v11702_v31, %v11701_v57 }
 0x81d   :  { %v4878_v42 = vadd.f32 %v4877_v19, %v11693_v54  ;;  %v5012_v21 = vadd.f32 %v5011_v16, %v4949_v58  ;;  %v4132_v19 = vadd.f32 %v11700_v3, %v3963_v51  ;;  %v4953_v54 = vmul.f32 %v9651_v33, %v9651_v33  ;;  %v11704_v51 = vld [vmem:[#allocation198_spill] sm:$0xff]  ;;  %v9887_v31 = vpop.f32.mrf.mxu0 }
 0x81e   :  { %v4954_v3 = vmul.f32 %v9654_v12, %v9654_v12 }
 0x81f   :  { %v4879_v60 = vadd.f32 %v4878_v42, %v9636_v53  ;;  %v5013_v56 = vadd.f32 %v5012_v21, %v4950_v11  ;;  %v4301_v42 = vadd.f32 %v9682_v5, %v4132_v19  ;;  %v4135_v11 = vadd.f32 %v11703_v62, %v3966_v8  ;;  %v9878_v21 = vpop.f32.mrf.mxu2 }
 0x821   :  { %v4880_v16 = vadd.f32 %v4879_v60, %v9640_v24  ;;  %v5014_v58 = vadd.f32 %v5013_v56, %v4951_v30  ;;  %v11705_v30 = vld [vmem:[#allocation224_spill] sm:$0xff]  ;;  %v4304_v56 = vadd.f32 %v9702_v26, %v4135_v11  ;;  %v4137_v24 = vadd.f32 %v11706_v34, %v3968_v32 }
 0x822   :  { %v9856_v37 = vpop.f32.mrf.mxu1  ;;  %v3973_v60 = vadd.f32 %v11705_v30, %v11704_v51  ;;  %v4470_v57 = vadd.f32 %v9723_v39, %v4301_v42  ;;  %v11708_v32 = vld [vmem:[#allocation80_spill] sm:$0xff] }
 0x823   :  { %v9861_v1 = vpop.f32.mrf.mxu3  ;;  %v4881_v53 = vadd.f32 %v4880_v16, %v9648_v45  ;;  %v5015_v63 = vadd.f32 %v5014_v58, %v4952_v36  ;;  %v4955_v36 = vmul.f32 %v9670_v18, %v9670_v18  ;;  %v4306_v16 = vadd.f32 %v9728_v52, %v4137_v24  ;;  %v11707_v58 = vld [vmem:[#allocation134_spill] sm:$0xff]  ;;  %v11709_v51 = vld [vmem:[#allocation228_spill] sm:$0xff] }
 0x824   :  { %v4140_v62 = vadd.f32 %v11707_v58, %v3971_v28  ;;  %v4473_v26 = vadd.f32 %v9743_v43, %v4304_v56  ;;  %v3976_v30 = vadd.f32 %v11709_v51, %v11708_v32  ;;  %v4639_v24 = vadd.f32 %v9706_v49, %v4470_v57  ;;  %v11711_v43 = vld [vmem:[#allocation132_spill] sm:$0xff]  ;;  %v11712_v28 = vld [vmem:[#allocation229_spill] sm:$0xff]  ;;  %v11713_v58 = vld [vmem:[#allocation83_spill] sm:$0xff] }
 0x825   :  { %v4882_v8 = vadd.f32 %v4881_v53, %v9651_v33  ;;  %v5016_v19 = vadd.f32 %v5015_v63, %v4953_v54  ;;  %v4956_v54 = vmul.f32 %v9687_v59, %v9687_v59  ;;  %v11710_v63 = vld [vmem:[#allocation202_spill] sm:$0xff]  ;;  %v4475_v52 = vadd.f32 %v9763_v20, %v4306_v16  ;;  %v11715_v57 = vld [vmem:[#allocation21_spill] sm:$0xff] }
 0x826   :  { %v4309_v53 = vadd.f32 %v9751_v48, %v4140_v62  ;;  %v4142_v34 = vadd.f32 %v11710_v63, %v3973_v60  ;;  %v3978_v56 = vadd.f32 %v11712_v28, %v11711_v43  ;;  %v11714_v33 = vld [vmem:[#allocation230_spill] sm:$0xff]  ;;  %v4957_v48 = vmul.f32 %v9704_v38, %v9704_v38  ;;  %v11716_v20 = vld [vmem:[#allocation233_spill] sm:$0xff]  ;;  %v11717_v62 = vld [vmem:[#allocation136_spill] sm:$0xff] }
 0x827   :  { %v4883_v39 = vadd.f32 %v4882_v8, %v9654_v12  ;;  %v5017_v42 = vadd.f32 %v5016_v19, %v4954_v3  ;;  %v3981_v32 = vadd.f32 %v11714_v33, %v11713_v58  ;;  %v4642_v60 = vadd.f32 %v9730_v25, %v4473_v26  ;;  %v4323_v28 = vpop.f32.mrf.mxu2  ;;  %v4658_v58 = vpop.f32.mrf.mxu0 }
 0x828   :  { %v4311_v19 = vadd.f32 %v9772_v15, %v4142_v34  ;;  %v4478_v49 = vadd.f32 %v9783_v23, %v4309_v53  ;;  %v3983_v16 = vadd.f32 %v11716_v20, %v11715_v57  ;;  %v4145_v51 = vadd.f32 %v11717_v62, %v3976_v30  ;;  %v11718_v23 = vld [vmem:[#allocation26_spill] sm:$0xff]  ;;  %v11720_v30 = vld [vmem:[#allocation135_spill] sm:$0xff] }
 0x829   :  { %v4884_v8 = vadd.f32 %v4883_v39, %v9670_v18  ;;  %v5018_v3 = vadd.f32 %v5017_v42, %v4955_v36  ;;  %v4958_v36 = vmul.f32 %v9721_v13, %v9721_v13  ;;  %v9926_v15 = vadd.f32 %v9758_v10, %v4639_v24  ;;  %v11719_v42 = vld [vmem:[#allocation236_spill] sm:$0xff]  ;;  %v11723_v62 = vld [vmem:[#allocation207_spill] sm:$0xff] }
 0x82a   :  { %v9890_v5 = vpop.f32.mrf.mxu1  ;;  %v4644_v39 = vadd.f32 %v9753_v41, %v4475_v52  ;;  %v4480_v25 = vadd.f32 %v9801_v40, %v4311_v19  ;;  %v3986_v53 = vadd.f32 %v11719_v42, %v11718_v23  ;;  %v4314_v34 = vadd.f32 %v9796_v2, %v4145_v51  ;;  %v11721_v52 = vld [vmem:[#allocation22_spill] sm:$0xff] }
 0x82b   :  { %v9898_v11 = vpop.f32.mrf.mxu3  ;;  %v4885_v63 = vadd.f32 %v4884_v8, %v9687_v59  ;;  %v5019_v33 = vadd.f32 %v5018_v3, %v4956_v54  ;;  %v4147_v43 = vadd.f32 %v11720_v30, %v3978_v56  ;;  %v4959_v10 = vmul.f32 %v9741_v27, %v9741_v27 }
 0x82c   :  { %v9938_v41 = vadd.f32 %v9778_v6, %v4642_v60  ;;  %v4647_v40 = vadd.f32 %v9776_v35, %v4478_v49  ;;  %v4150_v3 = vadd.f32 %v11721_v52, %v3981_v32  ;;  %v4483_v56 = vadd.f32 %v9819_v44, %v4314_v34  ;;  %v11722_v49 = vld [vmem:[#allocation88_spill] sm:$0xff] }
 0x82d   :  { %v4886_v54 = vadd.f32 %v4885_v63, %v9704_v38  ;;  %v5020_v8 = vadd.f32 %v5019_v33, %v4957_v48  ;;  %v4316_v24 = vadd.f32 %v9821_v46, %v4147_v43  ;;  %v4960_v48 = vmul.f32 %v9926_v15, %v9926_v15 }
 0x82e   :  { %v9948_v57 = vadd.f32 %v9794_v55, %v4644_v39  ;;  %v4649_v6 = vadd.f32 %v9803_v61, %v4480_v25  ;;  %v4319_v35 = vadd.f32 %v9844_v9, %v4150_v3  ;;  %v4152_v46 = vadd.f32 %v11722_v49, %v3983_v16  ;;  %v11725_v39 = vld [vmem:[#allocation238_spill] sm:$0xff] }
 0x82f   :  { %v4887_v2 = vadd.f32 %v4886_v54, %v9721_v13  ;;  %v5021_v19 = vadd.f32 %v5020_v8, %v4958_v36  ;;  %v4485_v20 = vadd.f32 %v9839_v50, %v4316_v24  ;;  %v4155_v44 = vadd.f32 %v11723_v62, %v3986_v53  ;;  %v11724_v36 = vld [vmem:[#allocation139_spill] sm:$0xff]  ;;  %v4661_v43 = vpop.f32.mrf.mxu0  ;;  %v4325_v54 = vpop.f32.mrf.mxu2 }
 0x830   :  { %v4961_v63 = vmul.f32 %v9938_v41, %v9938_v41  ;;  %v9959_v55 = vadd.f32 %v9814_v7, %v4647_v40  ;;  %v4321_v61 = vadd.f32 %v9878_v21, %v4152_v46  ;;  %v4652_v9 = vadd.f32 %v9826_v14, %v4483_v56  ;;  %v11726_v40 = vld [vmem:[#allocation27_spill] sm:$0xff] }
 0x831   :  { %v4888_v32 = vadd.f32 %v4887_v2, %v9741_v27  ;;  %v5022_v51 = vadd.f32 %v5021_v19, %v4959_v10  ;;  %v4488_v16 = vadd.f32 %v9861_v1, %v4319_v35  ;;  %v3988_v50 = vadd.f32 %v11725_v39, %v11724_v36 }
 0x832   :  { %v4825_v26 = vpop.f32.mrf.mxu1  ;;  %v4962_v23 = vmul.f32 %v9948_v57, %v9948_v57  ;;  %v9970_v42 = vadd.f32 %v9834_v47, %v4649_v6  ;;  %v4324_v53 = vadd.f32 %v4323_v28, %v4155_v44  ;;  %v4654_v34 = vadd.f32 %v9849_v17, %v4485_v20 }
 0x833   :  { %v4492_v60 = vpop.f32.mrf.mxu3  ;;  %v4889_v33 = vadd.f32 %v4888_v32, %v9926_v15  ;;  %v5023_v25 = vadd.f32 %v5022_v51, %v4960_v48  ;;  %v4490_v14 = vadd.f32 %v9898_v11, %v4321_v61  ;;  %v4963_v1 = vmul.f32 %v9959_v55, %v9959_v55 }
 0x834   :  { %v9979_v10 = vadd.f32 %v9856_v37, %v4652_v9  ;;  %v4657_v47 = vadd.f32 %v9887_v31, %v4488_v16  ;;  %v4493_v28 = vadd.f32 %v4492_v60, %v4324_v53  ;;  %v4157_v24 = vadd.f32 %v11726_v40, %v3988_v50 }
 0x835   :  { %v4890_v21 = vadd.f32 %v4889_v33, %v9938_v41  ;;  %v5024_v30 = vadd.f32 %v5023_v25, %v4961_v63  ;;  %v4964_v17 = vmul.f32 %v9970_v42, %v9970_v42  ;;  %v9987_v3 = vadd.f32 %v9890_v5, %v4654_v34 }
 0x836   :  { %v4659_v2 = vadd.f32 %v4658_v58, %v4490_v14  ;;  %v4326_v56 = vadd.f32 %v4325_v54, %v4157_v24  ;;  %v4965_v31 = vmul.f32 %v9979_v10, %v9979_v10  ;;  %v9992_v6 = vadd.f32 %v4825_v26, %v4657_v47 }
 0x837   :  { %v4891_v8 = vadd.f32 %v4890_v21, %v9948_v57  ;;  %v5025_v52 = vadd.f32 %v5024_v30, %v4962_v23  ;;  %v4662_v60 = vadd.f32 %v4661_v43, %v4493_v28  ;;  %v4966_v5 = vmul.f32 %v9987_v3, %v9987_v3  ;;  %v4663_v26 = vpop.f32.mrf.mxu0 }
 0x838   :  { %v4967_v44 = vmul.f32 %v9992_v6, %v9992_v6 }
 0x839   :  { %v4892_v11 = vadd.f32 %v4891_v8, %v9959_v55  ;;  %v5026_v19 = vadd.f32 %v5025_v52, %v4963_v1 }
 0x83a   :  { %v4827_v7 = vpop.f32.mrf.mxu1 }
 0x83b   :  { %v4494_v48 = vpop.f32.mrf.mxu3  ;;  %v4893_v37 = vadd.f32 %v4892_v11, %v9970_v42  ;;  %v5027_v35 = vadd.f32 %v5026_v19, %v4964_v17  ;;  %v9997_v32 = vadd.f32 %v4827_v7, %v4659_v2 }
 0x83c   :  { %v4495_v58 = vadd.f32 %v4494_v48, %v4326_v56 }
 0x83d   :  { %v4894_v46 = vadd.f32 %v4893_v37, %v9979_v10  ;;  %v5028_v20 = vadd.f32 %v5027_v35, %v4965_v31  ;;  %v4968_v33 = vmul.f32 %v9997_v32, %v9997_v32 }
 0x83e   :  { %v4664_v9 = vadd.f32 %v4663_v26, %v4495_v58 }
 0x83f   :  { %v4895_v62 = vadd.f32 %v4894_v46, %v9987_v3  ;;  %v5029_v63 = vadd.f32 %v5028_v20, %v4966_v5  ;;  %v4835_v5 = vld [vmem:[%s10344_s6] sm:$0x1]  ;;  %s6216_s6 = smov [#allocation11]  }
 0x841   :  { %v4896_v61 = vadd.f32 %v4895_v62, %v9992_v6  ;;  %v5030_v16 = vadd.f32 %v5029_v63, %v4967_v44  ;;  %v4836_v44 = vld [vmem:[%s10345_s7] sm:$0x1]  ;;  %s5451_s7 = sshll.u32 %s6216_s6, 4  ;;  %s5452_s7 = int_to_ptr.vmem [resolvable:$true] %s5451_s7 }
 0x842   :  { %v4830_v49 = vpop.f32.mrf.mxu1 }
 0x843   :  { %v10002_v51 = vadd.f32 %v4830_v49, %v4662_v60  ;;  %v4897_v36 = vadd.f32 %v4896_v61, %v9997_v32  ;;  %v5031_v25 = vadd.f32 %v5030_v16, %v4968_v33  ;;  %v5254_v16 = vld [vmem:[#allocation6 + $0x1f8] sm:$0xff] }
 0x845   :  { %v4969_v39 = vmul.f32 %v10002_v51, %v10002_v51  ;;  %v4898_v23 = vadd.f32 %v4897_v36, %v10002_v51 }
 0x847   :  { %v5032_v53 = vadd.f32 %v5031_v25, %v4969_v39 }
 0x84a   :  { %v4832_v50 = vpop.f32.mrf.mxu1 }
 0x84b   :  { %v4833_v7 = vadd.f32 %v4832_v50, %v4664_v9 }
 0x84d   :  { %v4899_v21 = vadd.f32 %v4898_v23, %v4833_v7  ;;  %v4970_v34 = vmul.f32 %v4833_v7, %v4833_v7 }
 0x84f   :  { %v4900_v14 = vrot.slane %v4899_v21, 4  ;;  %v5033_v30 = vadd.f32 %v5032_v53, %v4970_v34 }
 0x851   :  { %v4901_v1 = vadd.f32 %v4900_v14, %v4899_v21  ;;  %v5034_v43 = vrot.slane %v5033_v30, 4  ;;  %v11727_v21 = vld [vmem:[#allocation154_spill] sm:$0xff]  ;;  %v11728_v14 = vld [vmem:[#allocation147_spill] sm:$0xff] }
 0x853   :  { %v4902_v54 = vrot.slane %v4901_v1, 2  ;;  %v5035_v8 = vadd.f32 %v5034_v43, %v5033_v30 }
 0x855   :  { %v4903_v47 = vadd.f32 %v4902_v54, %v4901_v1  ;;  %v5036_v28 = vrot.slane %v5035_v8, 2  ;;  %v11729_v1 = vld [vmem:[#allocation50_spill] sm:$0xff]  ;;  %v11730_v54 = vld [vmem:[#allocation152_spill] sm:$0xff] }
 0x857   :  { %v4904_v40 = vrot.slane %v4903_v47, 1  ;;  %v5037_v24 = vadd.f32 %v5036_v28, %v5035_v8  ;;  %v11731_v8 = vld [vmem:[#allocation226_spill] sm:$0xff]  ;;  %v11733_v28 = vld [vmem:[#allocation157_spill] sm:$0xff] }
 0x859   :  { %v4905_v52 = vadd.f32 %v4904_v40, %v4903_v47  ;;  %v5038_v17 = vrot.slane %v5037_v24, 1  ;;  %v11732_v47 = vld [vmem:[#allocation44_spill] sm:$0xff]  ;;  %v11734_v40 = vld [vmem:[#allocation150_spill] sm:$0xff] }
 0x85b   :  { %v4906_v11 = vmul.f32 0.001953125, %v4905_v52  ;;  %v5039_v2 = vadd.f32 %v5038_v17, %v5037_v24  ;;  %v11735_v52 = vld [vmem:[#allocation155_spill] sm:$0xff] }
 0x85d   :  { %v5040_v56 = vmul.f32 0.001953125, %v5039_v2  ;;  %v5041_v19 = vmul.f32 %v4906_v11, %v4906_v11 }
 0x85f   :  { %v5042_v48 = vsub.f32 %v5040_v56, %v5041_v19  ;;  %v11737_v56 = vld [vmem:[#allocation67_spill] sm:$0xff] }
 0x861   :  { %v5043_v37 = vadd.f32 1e-05, %v5042_v48  ;;  %v11738_v48 = vld [vmem:[#allocation227_spill] sm:$0xff] }
 0x863   :  { %6056 = vrsqrt.f32 %v5043_v37  ;;  %vm5050_vm6 = vweird.f32 %v5043_v37 }
 0x869   :  { %v6057_v31 = vpop.eup %6056 }
 0x86a   :  { %v5045_v60 = vmul.f32 %v6057_v31, %v5043_v37  ;;  %vm5051_vm5 = vweird.f32 %v6057_v31 }
 0x86b   :  { %vm5052_vm7 = vmor %vm5050_vm6, %vm5051_vm5 }
 0x86c   :  { %v5046_v35 = vmul.f32 %v6057_v31, %v5045_v60 }
 0x86e   :  { %v5047_v49 = vmul.f32 0.5, %v5046_v35  ;;  %v11740_v35 = vld [vmem:[#allocation158_spill] sm:$0xff] }
 0x870   :  { %v5048_v46 = vsub.f32 1.5, %v5047_v49 }
 0x872   :  { %v5049_v58 = vmul.f32 %v6057_v31, %v5048_v46  ;;  %v11741_v46 = vld [vmem:[#allocation42_spill] sm:$0xff] }
 0x874   :  { %v5053_v20 = vsel %vm5052_vm7, %v6057_v31, %v5049_v58  ;;  %v11739_v31 = vld [vmem:[#allocation153_spill] sm:$0xff] }
 0x875   :  { %v5054_v62 = vmul.f32 %v5053_v20, %v4835_v5  ;;  %v11742_v58 = vld [vmem:[#allocation53_spill] sm:$0xff] }
 0x877   :  { %v5055_v26 = vmul.f32 %v5054_v62, %v4906_v11  ;;  %v10017_v63 = vperm.slane %v5054_v62, 0  ;;  %v11736_v11 = vld [vmem:[#allocation62_spill] sm:$0xff] }
 0x878   :  { %v11743_v62 = vld [vmem:[#allocation162_spill] sm:$0xff] }
 0x879   :  { %v5056_v61 = vsub.f32 %v4836_v44, %v5055_v26  ;;  %v5123_v33 = vmul.f32 %v10017_v63, %v4833_v7  ;;  %v5083_v25 = vmul.f32 %v10017_v63, %v9540_v29  ;;  %v5084_v23 = vmul.f32 %v10017_v63, %v9545_v22  ;;  %v11744_v26 = vld [vmem:[#allocation156_spill] sm:$0xff] }
 0x87a   :  { %v5085_v53 = vmul.f32 %v10017_v63, %v9550_v0  ;;  %v5086_v7 = vmul.f32 %v10017_v63, %v9555_v4  ;;  %v5087_v34 = vmul.f32 %v10017_v63, %v11727_v21  ;;  %v5088_v30 = vmul.f32 %v10017_v63, %v11728_v14 }
 0x87b   :  { %v10020_v9 = vperm.slane %v5056_v61, 0  ;;  %v5089_v43 = vmul.f32 %v10017_v63, %v11729_v1  ;;  %v5090_v29 = vmul.f32 %v10017_v63, %v11730_v54  ;;  %v5091_v22 = vmul.f32 %v10017_v63, %v11731_v8 }
 0x87c   :  { %v5092_v0 = vmul.f32 %v10017_v63, %v11732_v47  ;;  %v5093_v4 = vmul.f32 %v10017_v63, %v11733_v28  ;;  %v5094_v24 = vmul.f32 %v10017_v63, %v11734_v40  ;;  %v5095_v17 = vmul.f32 %v10017_v63, %v11735_v52 }
 0x87d   :  { %v5190_v36 = vadd.f32 %v10020_v9, %v5123_v33  ;;  %v5096_v2 = vmul.f32 %v10017_v63, %v11736_v11  ;;  %v5097_v19 = vmul.f32 %v10017_v63, %v11737_v56  ;;  %v5098_v37 = vmul.f32 %v10017_v63, %v11738_v48 }
 0x87e   :  { %v5099_v60 = vmul.f32 %v10017_v63, %v11739_v31  ;;  %v5100_v49 = vmul.f32 %v10017_v63, %v11740_v35  ;;  %v5101_v5 = vmul.f32 %v10017_v63, %v11741_v46  ;;  %v5102_v20 = vmul.f32 %v10017_v63, %v11742_v58 }
 0x87f   :  { %v5318_v39 = vadd.f32 %v5254_v16, %v5190_v36  ;;  %v5103_v44 = vmul.f32 %v10017_v63, %v11743_v62  ;;  %v5104_v61 = vmul.f32 %v10017_v63, %v11744_v26  ;;  %v5105_v33 = vmul.f32 %v10017_v63, %v9648_v45  ;;  %v11745_v16 = vld [vmem:[#allocation160_spill] sm:$0xff] }
 0x880   :  { %v5106_v36 = vmul.f32 %v10017_v63, %v11745_v16  ;;  %v5109_v21 = vmul.f32 %v10017_v63, %v9687_v59  ;;  %v5110_v14 = vmul.f32 %v10017_v63, %v9704_v38  ;;  %v5111_v1 = vmul.f32 %v10017_v63, %v9721_v13  ;;  %v11760_v16 = vld [vmem:[#allocation209_spill] sm:$0xff] }
 0x881   :  { %v5382_v50 = vmax.f32 %v5318_v39, 0.0  ;;  %v5107_v39 = vmul.f32 %v10017_v63, %v9654_v12  ;;  %v5112_v45 = vmul.f32 %v10017_v63, %v9741_v27  ;;  %v5113_v54 = vmul.f32 %v10017_v63, %v9926_v15 }
 0x882   :  { %v5114_v12 = vmul.f32 %v10017_v63, %v9938_v41  ;;  %v5116_v59 = vmul.f32 %v10017_v63, %v9959_v55  ;;  %v5117_v38 = vmul.f32 %v10017_v63, %v9970_v42  ;;  %v5118_v13 = vmul.f32 %v10017_v63, %v9979_v10 }
 0x883   :  { %5446 = vst [vmem:[#allocation11 + $0x1f8] sm:$0xff] %v5382_v50  ;;  %v5108_v50 = vmul.f32 %v10017_v63, %v9670_v18  ;;  %v5115_v18 = vmul.f32 %v10017_v63, %v9948_v57  ;;  %v5119_v27 = vmul.f32 %v10017_v63, %v9987_v3  ;;  %v5120_v15 = vmul.f32 %v10017_v63, %v9992_v6 }
 0x884   :  { %v5121_v41 = vmul.f32 %v10017_v63, %v9997_v32  ;;  %v5122_v57 = vmul.f32 %v10017_v63, %v10002_v51  ;;  %v10104_v55 = vadd.f32 %v10020_v9, %v5083_v25  ;;  %v10107_v42 = vadd.f32 %v10020_v9, %v5084_v23 }
 0x885   :  { %v10110_v10 = vadd.f32 %v10020_v9, %v5085_v53  ;;  %v10113_v3 = vadd.f32 %v10020_v9, %v5086_v7  ;;  %v10116_v6 = vadd.f32 %v10020_v9, %v5087_v34  ;;  %v10119_v32 = vadd.f32 %v10020_v9, %v5088_v30 }
 0x886   :  { %v10122_v51 = vadd.f32 %v10020_v9, %v5089_v43  ;;  %v10125_v25 = vadd.f32 %v10020_v9, %v5090_v29  ;;  %v10128_v23 = vadd.f32 %v10020_v9, %v5091_v22  ;;  %v10131_v53 = vadd.f32 %v10020_v9, %v5092_v0 }
 0x887   :  { %v10134_v7 = vadd.f32 %v10020_v9, %v5093_v4  ;;  %v10137_v34 = vadd.f32 %v10020_v9, %v5094_v24  ;;  %v10140_v30 = vadd.f32 %v10020_v9, %v5095_v17  ;;  %v10143_v43 = vadd.f32 %v10020_v9, %v5096_v2 }
 0x888   :  { %v10146_v29 = vadd.f32 %v10020_v9, %v5097_v19  ;;  %v10149_v8 = vadd.f32 %v10020_v9, %v5098_v37  ;;  %v10152_v22 = vadd.f32 %v10020_v9, %v5099_v60  ;;  %v10155_v47 = vadd.f32 %v10020_v9, %v5100_v49 }
 0x889   :  { %v10158_v0 = vadd.f32 %v10020_v9, %v5101_v5  ;;  %v10161_v28 = vadd.f32 %v10020_v9, %v5102_v20  ;;  %v10164_v4 = vadd.f32 %v10020_v9, %v5103_v44  ;;  %v10167_v40 = vadd.f32 %v10020_v9, %v5104_v61  ;;  %v11758_v44 = vld [vmem:[#allocation108_spill] sm:$0xff]  ;;  %v11759_v61 = vld [vmem:[#allocation19_spill] sm:$0xff] }
 0x88a   :  { %v10170_v24 = vadd.f32 %v10020_v9, %v5105_v33  ;;  %v10173_v52 = vadd.f32 %v10020_v9, %v5106_v36  ;;  %v10176_v17 = vadd.f32 %v10020_v9, %v5107_v39  ;;  %v10179_v11 = vadd.f32 %v10020_v9, %v5108_v50  ;;  %v11761_v39 = vld [vmem:[#allocation33_spill] sm:$0xff] }
 0x88b   :  { %v10182_v2 = vadd.f32 %v10020_v9, %v5109_v21  ;;  %v10185_v56 = vadd.f32 %v10020_v9, %v5110_v14  ;;  %v10188_v19 = vadd.f32 %v10020_v9, %v5111_v1  ;;  %v10191_v48 = vadd.f32 %v10020_v9, %v5112_v45  ;;  %v11762_v21 = vld [vmem:[#allocation214_spill] sm:$0xff]  ;;  %v5191_v45 = vld [vmem:[#allocation6] sm:$0xff] }
 0x88c   :  { %v10194_v37 = vadd.f32 %v10020_v9, %v5113_v54  ;;  %v10197_v31 = vadd.f32 %v10020_v9, %v5114_v12  ;;  %v10200_v60 = vadd.f32 %v10020_v9, %v5115_v18  ;;  %v10203_v35 = vadd.f32 %v10020_v9, %v5116_v59  ;;  %v11763_v54 = vld [vmem:[#allocation212_spill] sm:$0xff] }
 0x88d   :  { %11746 = vst [vmem:[#allocation231_spill] sm:$0xff] %v10188_v19  ;;  %v10206_v49 = vadd.f32 %v10020_v9, %v5117_v38  ;;  %v10209_v46 = vadd.f32 %v10020_v9, %v5118_v13  ;;  %v10212_v5 = vadd.f32 %v10020_v9, %v5119_v27  ;;  %v10215_v58 = vadd.f32 %v10020_v9, %v5120_v15  ;;  %v5192_v13 = vld [vmem:[#allocation6 + $0x8] sm:$0xff]  ;;  %v5193_v27 = vld [vmem:[#allocation6 + $0x10] sm:$0xff]  ;;  %v5194_v15 = vld [vmem:[#allocation6 + $0x18] sm:$0xff] }
 0x88e   :  { %11747 = vst [vmem:[#allocation70_spill] sm:$0xff] %v10191_v48  ;;  %v10218_v20 = vadd.f32 %v10020_v9, %v5121_v41  ;;  %v10221_v62 = vadd.f32 %v10020_v9, %v5122_v57  ;;  %v5060_v26 = vmul.f32 %v10017_v63, %v11758_v44  ;;  %v5061_v33 = vmul.f32 %v10017_v63, %v11759_v61  ;;  %v11764_v41 = vld [vmem:[#allocation35_spill] sm:$0xff]  ;;  %v5195_v61 = vld [vmem:[#allocation6 + $0x20] sm:$0xff] }
 0x88f   :  { %11748 = vst [vmem:[#allocation38_spill] sm:$0xff] %v10194_v37  ;;  %v5062_v36 = vmul.f32 %v10017_v63, %v11760_v16  ;;  %v5063_v50 = vmul.f32 %v10017_v63, %v11761_v39  ;;  %v5064_v14 = vmul.f32 %v10017_v63, %v11762_v21  ;;  %v5065_v12 = vmul.f32 %v10017_v63, %v11763_v54  ;;  %v5196_v21 = vld [vmem:[#allocation6 + $0x28] sm:$0xff]  ;;  %v11767_v54 = vld [vmem:[#allocation142_spill] sm:$0xff]  ;;  %v5202_v48 = vld [vmem:[#allocation6 + $0x58] sm:$0xff] }
 0x890   :  { %11749 = vst [vmem:[#allocation159_spill] sm:$0xff] %v10197_v31  ;;  %v5127_v1 = vadd.f32 %v10020_v9, %v5060_v26  ;;  %v5128_v18 = vadd.f32 %v10020_v9, %v5061_v33  ;;  %v5066_v57 = vmul.f32 %v10017_v63, %v11764_v41  ;;  %v11765_v26 = vld [vmem:[#allocation217_spill] sm:$0xff]  ;;  %v11770_v37 = vld [vmem:[#allocation46_spill] sm:$0xff] }
 0x891   :  { %11750 = vst [vmem:[#allocation64_spill] sm:$0xff] %v10200_v60  ;;  %v5129_v59 = vadd.f32 %v10020_v9, %v5062_v36  ;;  %v5130_v38 = vadd.f32 %v10020_v9, %v5063_v50  ;;  %v5131_v44 = vadd.f32 %v10020_v9, %v5064_v14  ;;  %v5067_v16 = vmul.f32 %v10017_v63, %v11765_v26  ;;  %v11766_v33 = vld [vmem:[#allocation141_spill] sm:$0xff] }
 0x892   :  { %11751 = vst [vmem:[#allocation234_spill] sm:$0xff] %v10203_v35  ;;  %v5132_v39 = vadd.f32 %v10020_v9, %v5065_v12  ;;  %v5068_v36 = vmul.f32 %v10017_v63, %v11766_v33  ;;  %v5069_v50 = vmul.f32 %v10017_v63, %v11767_v54  ;;  %v5256_v14 = vadd.f32 %v5192_v13, %v5128_v18  ;;  %v11768_v26 = vld [vmem:[#allocation145_spill] sm:$0xff]  ;;  %v11769_v35 = vld [vmem:[#allocation16_spill] sm:$0xff] }
 0x893   :  { %11752 = vst [vmem:[#allocation61_spill] sm:$0xff] %v10206_v49  ;;  %v5134_v41 = vadd.f32 %v10020_v9, %v5067_v16  ;;  %v5198_v49 = vld [vmem:[#allocation6 + $0x38] sm:$0xff]  ;;  %v5070_v12 = vmul.f32 %v10017_v63, %v11768_v26  ;;  %v5071_v60 = vmul.f32 %v10017_v63, %v11769_v35  ;;  %v5259_v31 = vadd.f32 %v5195_v61, %v5131_v44  ;;  %v5199_v54 = vld [vmem:[#allocation6 + $0x40] sm:$0xff]  ;;  %v5201_v16 = vld [vmem:[#allocation6 + $0x50] sm:$0xff] }
 0x894   :  { %11753 = vst [vmem:[#allocation232_spill] sm:$0xff] %v10209_v46  ;;  %v5258_v46 = vadd.f32 %v5194_v15, %v5130_v38  ;;  %v5135_v33 = vadd.f32 %v10020_v9, %v5068_v36  ;;  %v5136_v18 = vadd.f32 %v10020_v9, %v5069_v50  ;;  %v5200_v38 = vld [vmem:[#allocation6 + $0x48] sm:$0xff]  ;;  %v5320_v44 = vmax.f32 %v5256_v14, 0.0 }
 0x895   :  { %11754 = vst [vmem:[#allocation161_spill] sm:$0xff] %v10212_v5  ;;  %v5257_v5 = vadd.f32 %v5193_v27, %v5129_v59  ;;  %v5260_v59 = vadd.f32 %v5196_v21, %v5132_v39  ;;  %v5137_v13 = vadd.f32 %v10020_v9, %v5070_v12  ;;  %v5138_v27 = vadd.f32 %v10020_v9, %v5071_v60  ;;  %v5203_v21 = vld [vmem:[#allocation6 + $0x60] sm:$0xff]  ;;  %v11773_v12 = vld [vmem:[#allocation143_spill] sm:$0xff] }
 0x896   :  { %11755 = vst [vmem:[#allocation34_spill] sm:$0xff] %v10215_v58  ;;  %v5197_v58 = vld [vmem:[#allocation6 + $0x30] sm:$0xff]  ;;  %v5262_v36 = vadd.f32 %v5198_v49, %v5134_v41  ;;  %v5322_v26 = vmax.f32 %v5258_v46, 0.0  ;;  %v5263_v50 = vadd.f32 %v5199_v54, %v5135_v33  ;;  %v5323_v39 = vmax.f32 %v5259_v31, 0.0 }
 0x897   :  { %11756 = vst [vmem:[#allocation240_spill] sm:$0xff] %v10218_v20  ;;  %v5255_v20 = vadd.f32 %v5191_v45, %v5127_v1  ;;  %v5072_v1 = vmul.f32 %v10017_v63, %v11770_v37  ;;  %v11771_v45 = vld [vmem:[#allocation52_spill] sm:$0xff]  ;;  %v5321_v61 = vmax.f32 %v5257_v5, 0.0  ;;  %v5075_v60 = vmul.f32 %v10017_v63, %v11773_v12  ;;  %v5204_v5 = vld [vmem:[#allocation6 + $0x68] sm:$0xff]  ;;  %v11774_v46 = vld [vmem:[#allocation146_spill] sm:$0xff] }
 0x898   :  { %11757 = vst [vmem:[#allocation76_spill] sm:$0xff] %v10221_v62  ;;  %v5133_v62 = vadd.f32 %v10020_v9, %v5066_v57  ;;  %v5073_v57 = vmul.f32 %v10017_v63, %v11771_v45  ;;  %v11772_v37 = vld [vmem:[#allocation148_spill] sm:$0xff]  ;;  %v5324_v49 = vmax.f32 %v5260_v59, 0.0  ;;  %v5265_v14 = vadd.f32 %v5201_v16, %v5137_v13  ;;  %v5205_v31 = vld [vmem:[#allocation6 + $0x70] sm:$0xff]  ;;  %v11776_v59 = vld [vmem:[#allocation151_spill] sm:$0xff] }
 0x899   :  { %v5319_v35 = vmax.f32 %v5255_v20, 0.0  ;;  %v5074_v19 = vmul.f32 %v10017_v63, %v11772_v37  ;;  %v5139_v45 = vadd.f32 %v10020_v9, %v5072_v1  ;;  %v5264_v20 = vadd.f32 %v5200_v38, %v5136_v18  ;;  %5384 = vst [vmem:[#allocation11 + $0x8] sm:$0xff] %v5320_v44  ;;  %v11775_v33 = vld [vmem:[#allocation222_spill] sm:$0xff]  ;;  %v5206_v18 = vld [vmem:[#allocation6 + $0x78] sm:$0xff]  ;;  %v5207_v13 = vld [vmem:[#allocation6 + $0x80] sm:$0xff] }
 0x89a   :  { %v5261_v15 = vadd.f32 %v5197_v58, %v5133_v62  ;;  %v5140_v58 = vadd.f32 %v10020_v9, %v5073_v57  ;;  %v5076_v62 = vmul.f32 %v10017_v63, %v11774_v46  ;;  %5385 = vst [vmem:[#allocation11 + $0x10] sm:$0xff] %v5321_v61  ;;  %v5077_v54 = vmul.f32 %v10017_v63, %v11775_v33 }
 0x89b   :  { %5383 = vst [vmem:[#allocation11] sm:$0xff] %v5319_v35  ;;  %v5141_v41 = vadd.f32 %v10020_v9, %v5074_v19  ;;  %v5142_v35 = vadd.f32 %v10020_v9, %v5075_v60  ;;  %v5266_v37 = vadd.f32 %v5202_v48, %v5138_v27  ;;  %v5326_v57 = vmax.f32 %v5262_v36, 0.0  ;;  %v5208_v48 = vld [vmem:[#allocation6 + $0x88] sm:$0xff] }
 0x89c   :  { %v5325_v1 = vmax.f32 %v5261_v15, 0.0  ;;  %5386 = vst [vmem:[#allocation11 + $0x18] sm:$0xff] %v5322_v26  ;;  %v5078_v38 = vmul.f32 %v10017_v63, %v11776_v59  ;;  %v5143_v44 = vadd.f32 %v10020_v9, %v5076_v62  ;;  %v5267_v12 = vadd.f32 %v5203_v21, %v5139_v45  ;;  %v11777_v15 = vld [vmem:[#allocation144_spill] sm:$0xff]  ;;  %v11778_v27 = vld [vmem:[#allocation149_spill] sm:$0xff]  ;;  %v5209_v45 = vld [vmem:[#allocation6 + $0x90] sm:$0xff] }
 0x89d   :  { %v5327_v19 = vmax.f32 %v5263_v50, 0.0  ;;  %5387 = vst [vmem:[#allocation11 + $0x20] sm:$0xff] %v5323_v39  ;;  %v5079_v16 = vmul.f32 %v10017_v63, %v11777_v15  ;;  %v5144_v61 = vadd.f32 %v10020_v9, %v5077_v54  ;;  %v5268_v46 = vadd.f32 %v5204_v5, %v5140_v58  ;;  %v11779_v50 = vld [vmem:[#allocation51_spill] sm:$0xff] }
 0x89e   :  { %v5328_v60 = vmax.f32 %v5264_v20, 0.0  ;;  %5388 = vst [vmem:[#allocation11 + $0x28] sm:$0xff] %v5324_v49  ;;  %v5080_v36 = vmul.f32 %v10017_v63, %v11778_v27  ;;  %v5145_v26 = vadd.f32 %v10020_v9, %v5078_v38  ;;  %v5269_v33 = vadd.f32 %v5205_v31, %v5141_v41  ;;  %v5210_v58 = vld [vmem:[#allocation6 + $0x98] sm:$0xff]  ;;  %v5211_v41 = vld [vmem:[#allocation6 + $0xa0] sm:$0xff]  ;;  %v5212_v27 = vld [vmem:[#allocation6 + $0xa8] sm:$0xff] }
 0x89f   :  { %v5329_v62 = vmax.f32 %v5265_v14, 0.0  ;;  %5389 = vst [vmem:[#allocation11 + $0x30] sm:$0xff] %v5325_v1  ;;  %v5081_v39 = vmul.f32 %v10017_v63, %v11779_v50  ;;  %v5146_v21 = vadd.f32 %v10020_v9, %v5079_v16  ;;  %v5270_v59 = vadd.f32 %v5206_v18, %v5142_v35  ;;  %v11780_v20 = vld [vmem:[#allocation59_spill] sm:$0xff]  ;;  %v5213_v18 = vld [vmem:[#allocation6 + $0xb0] sm:$0xff] }
 0x8a0   :  { %v5330_v54 = vmax.f32 %v5266_v37, 0.0  ;;  %5390 = vst [vmem:[#allocation11 + $0x38] sm:$0xff] %v5326_v57  ;;  %v5082_v49 = vmul.f32 %v10017_v63, %v11780_v20  ;;  %v5147_v5 = vadd.f32 %v10020_v9, %v5080_v36  ;;  %v5271_v15 = vadd.f32 %v5207_v13, %v5143_v44  ;;  %v5214_v36 = vld [vmem:[#allocation6 + $0xb8] sm:$0xff] }
 0x8a1   :  { %v5331_v38 = vmax.f32 %v5267_v12, 0.0  ;;  %5391 = vst [vmem:[#allocation11 + $0x40] sm:$0xff] %v5327_v19  ;;  %v5148_v14 = vadd.f32 %v10020_v9, %v5081_v39  ;;  %v5272_v1 = vadd.f32 %v5208_v48, %v5144_v61  ;;  %v5332_v31 = vmax.f32 %v5268_v46, 0.0  ;;  %v5215_v19 = vld [vmem:[#allocation6 + $0xc0] sm:$0xff]  ;;  %v5216_v61 = vld [vmem:[#allocation6 + $0xc8] sm:$0xff] }
 0x8a2   :  { %5392 = vst [vmem:[#allocation11 + $0x48] sm:$0xff] %v5328_v60  ;;  %v5149_v35 = vadd.f32 %v10020_v9, %v5082_v49  ;;  %v5273_v37 = vadd.f32 %v5209_v45, %v5145_v26  ;;  %v5333_v57 = vmax.f32 %v5269_v33, 0.0  ;;  %v5274_v16 = vadd.f32 %v5210_v58, %v5146_v21  ;;  %v5217_v9 = vld [vmem:[#allocation6 + $0xd0] sm:$0xff]  ;;  %v5218_v33 = vld [vmem:[#allocation6 + $0xd8] sm:$0xff]  ;;  %v5219_v39 = vld [vmem:[#allocation6 + $0xe0] sm:$0xff] }
 0x8a3   :  { %5393 = vst [vmem:[#allocation11 + $0x50] sm:$0xff] %v5329_v62  ;;  %v5334_v63 = vmax.f32 %v5270_v59, 0.0  ;;  %v5275_v44 = vadd.f32 %v5211_v41, %v5147_v5  ;;  %v5335_v12 = vmax.f32 %v5271_v15, 0.0  ;;  %v5276_v13 = vadd.f32 %v5212_v27, %v5148_v14  ;;  %v5221_v49 = vld [vmem:[#allocation6 + $0xf0] sm:$0xff]  ;;  %v5222_v15 = vld [vmem:[#allocation6 + $0xf8] sm:$0xff]  ;;  %v5223_v41 = vld [vmem:[#allocation6 + $0x100] sm:$0xff] }
 0x8a4   :  { %5394 = vst [vmem:[#allocation11 + $0x58] sm:$0xff] %v5330_v54  ;;  %v5336_v50 = vmax.f32 %v5272_v1, 0.0  ;;  %v5277_v46 = vadd.f32 %v5213_v18, %v5149_v35  ;;  %v5337_v60 = vmax.f32 %v5273_v37, 0.0  ;;  %v5278_v48 = vadd.f32 %v5214_v36, %v10104_v55  ;;  %v5220_v54 = vld [vmem:[#allocation6 + $0xe8] sm:$0xff]  ;;  %v5225_v27 = vld [vmem:[#allocation6 + $0x110] sm:$0xff]  ;;  %v5226_v37 = vld [vmem:[#allocation6 + $0x118] sm:$0xff] }
 0x8a5   :  { %5395 = vst [vmem:[#allocation11 + $0x60] sm:$0xff] %v5331_v38  ;;  %v5338_v26 = vmax.f32 %v5274_v16, 0.0  ;;  %v5279_v62 = vadd.f32 %v5215_v19, %v10107_v42  ;;  %v5339_v45 = vmax.f32 %v5275_v44, 0.0  ;;  %v5280_v21 = vadd.f32 %v5216_v61, %v10110_v10  ;;  %v5224_v1 = vld [vmem:[#allocation6 + $0x108] sm:$0xff]  ;;  %v5227_v18 = vld [vmem:[#allocation6 + $0x120] sm:$0xff]  ;;  %v5229_v44 = vld [vmem:[#allocation6 + $0x130] sm:$0xff] }
 0x8a6   :  { %5396 = vst [vmem:[#allocation11 + $0x68] sm:$0xff] %v5332_v31  ;;  %v5340_v59 = vmax.f32 %v5276_v13, 0.0  ;;  %v5281_v58 = vadd.f32 %v5217_v9, %v10113_v3  ;;  %v5341_v20 = vmax.f32 %v5277_v46, 0.0  ;;  %v5282_v55 = vadd.f32 %v5218_v33, %v10116_v6  ;;  %v5230_v19 = vld [vmem:[#allocation6 + $0x138] sm:$0xff]  ;;  %v5232_v46 = vld [vmem:[#allocation6 + $0x148] sm:$0xff]  ;;  %v5233_v9 = vld [vmem:[#allocation6 + $0x150] sm:$0xff] }
 0x8a7   :  { %5397 = vst [vmem:[#allocation11 + $0x70] sm:$0xff] %v5333_v57  ;;  %v5342_v5 = vmax.f32 %v5278_v48, 0.0  ;;  %v5283_v42 = vadd.f32 %v5219_v39, %v10119_v32  ;;  %v5343_v38 = vmax.f32 %v5279_v62, 0.0  ;;  %v5284_v10 = vadd.f32 %v5220_v54, %v10122_v51  ;;  %v5235_v62 = vld [vmem:[#allocation6 + $0x160] sm:$0xff]  ;;  %v5236_v39 = vld [vmem:[#allocation6 + $0x168] sm:$0xff] }
 0x8a8   :  { %5398 = vst [vmem:[#allocation11 + $0x78] sm:$0xff] %v5334_v63  ;;  %v5344_v14 = vmax.f32 %v5280_v21, 0.0  ;;  %v5285_v3 = vadd.f32 %v5221_v49, %v10125_v25  ;;  %v5345_v31 = vmax.f32 %v5281_v58, 0.0  ;;  %v5286_v6 = vadd.f32 %v5222_v15, %v10128_v23  ;;  %v5228_v63 = vld [vmem:[#allocation6 + $0x128] sm:$0xff]  ;;  %v5238_v58 = vld [vmem:[#allocation6 + $0x178] sm:$0xff]  ;;  %v5239_v49 = vld [vmem:[#allocation6 + $0x180] sm:$0xff] }
 0x8a9   :  { %5399 = vst [vmem:[#allocation11 + $0x80] sm:$0xff] %v5335_v12  ;;  %v5346_v35 = vmax.f32 %v5282_v55, 0.0  ;;  %v5287_v32 = vadd.f32 %v5223_v41, %v10131_v53  ;;  %v5347_v57 = vmax.f32 %v5283_v42, 0.0  ;;  %v5288_v51 = vadd.f32 %v5224_v1, %v10134_v7  ;;  %v5241_v42 = vld [vmem:[#allocation6 + $0x190] sm:$0xff]  ;;  %v5242_v41 = vld [vmem:[#allocation6 + $0x198] sm:$0xff] }
 0x8aa   :  { %5400 = vst [vmem:[#allocation11 + $0x88] sm:$0xff] %v5336_v50  ;;  %v5348_v16 = vmax.f32 %v5284_v10, 0.0  ;;  %v5289_v25 = vadd.f32 %v5225_v27, %v10137_v34  ;;  %v5349_v36 = vmax.f32 %v5285_v3, 0.0  ;;  %v5290_v23 = vadd.f32 %v5226_v37, %v10140_v30  ;;  %v5231_v50 = vld [vmem:[#allocation6 + $0x140] sm:$0xff]  ;;  %v5244_v3 = vld [vmem:[#allocation6 + $0x1a8] sm:$0xff]  ;;  %v5245_v27 = vld [vmem:[#allocation6 + $0x1b0] sm:$0xff] }
 0x8ab   :  { %5401 = vst [vmem:[#allocation11 + $0x90] sm:$0xff] %v5337_v60  ;;  %v5350_v12 = vmax.f32 %v5286_v6, 0.0  ;;  %v5291_v53 = vadd.f32 %v5227_v18, %v10143_v43  ;;  %v5351_v13 = vmax.f32 %v5287_v32, 0.0  ;;  %v5292_v7 = vadd.f32 %v5228_v63, %v10146_v29  ;;  %v11781_v6 = vld [vmem:[#allocation231_spill] sm:$0xff]  ;;  %v11782_v32 = vld [vmem:[#allocation70_spill] sm:$0xff]  ;;  %v5247_v18 = vld [vmem:[#allocation6 + $0x1c0] sm:$0xff] }
 0x8ac   :  { %5402 = vst [vmem:[#allocation11 + $0x98] sm:$0xff] %v5338_v26  ;;  %v5352_v61 = vmax.f32 %v5288_v51, 0.0  ;;  %v5293_v34 = vadd.f32 %v5229_v44, %v10149_v8  ;;  %v5353_v60 = vmax.f32 %v5289_v25, 0.0  ;;  %v5294_v30 = vadd.f32 %v5230_v19, %v10152_v22  ;;  %v5234_v26 = vld [vmem:[#allocation6 + $0x158] sm:$0xff]  ;;  %v11783_v51 = vld [vmem:[#allocation38_spill] sm:$0xff]  ;;  %v5248_v63 = vld [vmem:[#allocation6 + $0x1c8] sm:$0xff] }
 0x8ad   :  { %5403 = vst [vmem:[#allocation11 + $0xa0] sm:$0xff] %v5339_v45  ;;  %v5354_v48 = vmax.f32 %v5290_v23, 0.0  ;;  %v5295_v43 = vadd.f32 %v5231_v50, %v10155_v47  ;;  %v5355_v33 = vmax.f32 %v5291_v53, 0.0  ;;  %v5296_v29 = vadd.f32 %v5232_v46, %v10158_v0  ;;  %v5246_v37 = vld [vmem:[#allocation6 + $0x1b8] sm:$0xff]  ;;  %v5249_v44 = vld [vmem:[#allocation6 + $0x1d0] sm:$0xff]  ;;  %v11785_v23 = vld [vmem:[#allocation64_spill] sm:$0xff] }
 0x8ae   :  { %5404 = vst [vmem:[#allocation11 + $0xa8] sm:$0xff] %v5340_v59  ;;  %v5356_v45 = vmax.f32 %v5292_v7, 0.0  ;;  %v5297_v8 = vadd.f32 %v5233_v9, %v10161_v28  ;;  %v5357_v21 = vmax.f32 %v5293_v34, 0.0  ;;  %v5237_v59 = vld [vmem:[#allocation6 + $0x170] sm:$0xff]  ;;  %v5298_v22 = vadd.f32 %v5234_v26, %v10164_v4  ;;  %v11784_v25 = vld [vmem:[#allocation159_spill] sm:$0xff]  ;;  %v11787_v46 = vld [vmem:[#allocation61_spill] sm:$0xff] }
 0x8af   :  { %5405 = vst [vmem:[#allocation11 + $0xb0] sm:$0xff] %v5341_v20  ;;  %v5358_v54 = vmax.f32 %v5294_v30, 0.0  ;;  %v5299_v47 = vadd.f32 %v5235_v62, %v10167_v40  ;;  %v5359_v20 = vmax.f32 %v5295_v43, 0.0  ;;  %v5300_v0 = vadd.f32 %v5236_v39, %v10170_v24  ;;  %v5250_v53 = vld [vmem:[#allocation6 + $0x1d8] sm:$0xff]  ;;  %v5252_v9 = vld [vmem:[#allocation6 + $0x1e8] sm:$0xff]  ;;  %v11788_v30 = vld [vmem:[#allocation232_spill] sm:$0xff] }
 0x8b0   :  { %5406 = vst [vmem:[#allocation11 + $0xb8] sm:$0xff] %v5342_v5  ;;  %v5360_v55 = vmax.f32 %v5296_v29, 0.0  ;;  %v5240_v5 = vld [vmem:[#allocation6 + $0x188] sm:$0xff]  ;;  %v5301_v28 = vadd.f32 %v5237_v59, %v10173_v52  ;;  %v5361_v15 = vmax.f32 %v5297_v8, 0.0  ;;  %v5302_v4 = vadd.f32 %v5238_v58, %v10176_v17  ;;  %v5253_v43 = vld [vmem:[#allocation6 + $0x1f0] sm:$0xff] }
 0x8b1   :  { %5407 = vst [vmem:[#allocation11 + $0xc0] sm:$0xff] %v5343_v38  ;;  %v5362_v38 = vmax.f32 %v5298_v22, 0.0  ;;  %v5303_v40 = vadd.f32 %v5239_v49, %v10179_v11  ;;  %v5363_v10 = vmax.f32 %v5299_v47, 0.0  ;;  %v5304_v24 = vadd.f32 %v5240_v5, %v10182_v2 }
 0x8b2   :  { %5408 = vst [vmem:[#allocation11 + $0xc8] sm:$0xff] %v5344_v14  ;;  %v5243_v14 = vld [vmem:[#allocation6 + $0x1a0] sm:$0xff]  ;;  %v5364_v1 = vmax.f32 %v5300_v0, 0.0  ;;  %v5305_v52 = vadd.f32 %v5241_v42, %v10185_v56  ;;  %v5306_v17 = vadd.f32 %v5242_v41, %v11781_v6  ;;  %v5308_v2 = vadd.f32 %v5244_v3, %v11783_v51 }
 0x8b3   :  { %5409 = vst [vmem:[#allocation11 + $0xd0] sm:$0xff] %v5345_v31  ;;  %v5365_v31 = vmax.f32 %v5301_v28, 0.0  ;;  %v5307_v11 = vadd.f32 %v5243_v14, %v11782_v32  ;;  %v5309_v56 = vadd.f32 %v5245_v27, %v11784_v25  ;;  %v5312_v34 = vadd.f32 %v5248_v63, %v11787_v46 }
 0x8b4   :  { %5410 = vst [vmem:[#allocation11 + $0xd8] sm:$0xff] %v5346_v35  ;;  %v5366_v35 = vmax.f32 %v5302_v4, 0.0  ;;  %v5370_v19 = vmax.f32 %v5306_v17, 0.0 }
 0x8b5   :  { %5411 = vst [vmem:[#allocation11 + $0xe0] sm:$0xff] %v5347_v57  ;;  %v5367_v57 = vmax.f32 %v5303_v40, 0.0  ;;  %v5371_v7 = vmax.f32 %v5307_v11, 0.0  ;;  %v5373_v26 = vmax.f32 %v5309_v56, 0.0  ;;  %v5376_v22 = vmax.f32 %v5312_v34, 0.0 }
 0x8b6   :  { %5412 = vst [vmem:[#allocation11 + $0xe8] sm:$0xff] %v5348_v16  ;;  %v5368_v16 = vmax.f32 %v5304_v24, 0.0 }
 0x8b7   :  { %5413 = vst [vmem:[#allocation11 + $0xf0] sm:$0xff] %v5349_v36  ;;  %v5369_v36 = vmax.f32 %v5305_v52, 0.0 }
 0x8b8   :  { %5414 = vst [vmem:[#allocation11 + $0xf8] sm:$0xff] %v5350_v12  ;;  %v5310_v12 = vadd.f32 %v5246_v37, %v11785_v23 }
 0x8b9   :  { %5415 = vst [vmem:[#allocation11 + $0x100] sm:$0xff] %v5351_v13  ;;  %v11786_v13 = vld [vmem:[#allocation234_spill] sm:$0xff] }
 0x8ba   :  { %5416 = vst [vmem:[#allocation11 + $0x108] sm:$0xff] %v5352_v61  ;;  %v5311_v50 = vadd.f32 %v5247_v18, %v11786_v13  ;;  %v5251_v61 = vld [vmem:[#allocation6 + $0x1e0] sm:$0xff]  ;;  %v5374_v29 = vmax.f32 %v5310_v12, 0.0 }
 0x8bb   :  { %5417 = vst [vmem:[#allocation11 + $0x110] sm:$0xff] %v5353_v60  ;;  %v5372_v60 = vmax.f32 %v5308_v2, 0.0 }
 0x8bc   :  { %5418 = vst [vmem:[#allocation11 + $0x118] sm:$0xff] %v5354_v48  ;;  %v5313_v48 = vadd.f32 %v5249_v44, %v11788_v30  ;;  %v5375_v8 = vmax.f32 %v5311_v50, 0.0 }
 0x8bd   :  { %5419 = vst [vmem:[#allocation11 + $0x120] sm:$0xff] %v5355_v33  ;;  %v11789_v33 = vld [vmem:[#allocation161_spill] sm:$0xff] }
 0x8be   :  { %5420 = vst [vmem:[#allocation11 + $0x128] sm:$0xff] %v5356_v45  ;;  %v5314_v62 = vadd.f32 %v5250_v53, %v11789_v33  ;;  %v11790_v45 = vld [vmem:[#allocation34_spill] sm:$0xff]  ;;  %v5377_v47 = vmax.f32 %v5313_v48, 0.0 }
 0x8bf   :  { %5421 = vst [vmem:[#allocation11 + $0x130] sm:$0xff] %v5357_v21  ;;  %v5315_v39 = vadd.f32 %v5251_v61, %v11790_v45  ;;  %v11791_v21 = vld [vmem:[#allocation240_spill] sm:$0xff] }
 0x8c0   :  { %5422 = vst [vmem:[#allocation11 + $0x138] sm:$0xff] %v5358_v54  ;;  %v5316_v59 = vadd.f32 %v5252_v9, %v11791_v21  ;;  %v11792_v54 = vld [vmem:[#allocation76_spill] sm:$0xff] }
 0x8c1   :  { %5423 = vst [vmem:[#allocation11 + $0x140] sm:$0xff] %v5359_v20  ;;  %v5317_v58 = vadd.f32 %v5253_v43, %v11792_v54  ;;  %v5378_v20 = vmax.f32 %v5314_v62, 0.0  ;;  %v5379_v49 = vmax.f32 %v5315_v39, 0.0 }
 0x8c2   :  { %5424 = vst [vmem:[#allocation11 + $0x148] sm:$0xff] %v5360_v55  ;;  %v5380_v0 = vmax.f32 %v5316_v59, 0.0 }
 0x8c3   :  { %5425 = vst [vmem:[#allocation11 + $0x150] sm:$0xff] %v5361_v15  ;;  %v5381_v55 = vmax.f32 %v5317_v58, 0.0 }
 0x8c4   :  { %5426 = vst [vmem:[#allocation11 + $0x158] sm:$0xff] %v5362_v38 }
 0x8c5   :  { %5427 = vst [vmem:[#allocation11 + $0x160] sm:$0xff] %v5363_v10 }
 0x8c6   :  { %5428 = vst [vmem:[#allocation11 + $0x168] sm:$0xff] %v5364_v1 }
 0x8c7   :  { %5429 = vst [vmem:[#allocation11 + $0x170] sm:$0xff] %v5365_v31 }
 0x8c8   :  { %5430 = vst [vmem:[#allocation11 + $0x178] sm:$0xff] %v5366_v35 }
 0x8c9   :  { %5431 = vst [vmem:[#allocation11 + $0x180] sm:$0xff] %v5367_v57 }
 0x8ca   :  { %5432 = vst [vmem:[#allocation11 + $0x188] sm:$0xff] %v5368_v16 }
 0x8cb   :  { %5433 = vst [vmem:[#allocation11 + $0x190] sm:$0xff] %v5369_v36 }
 0x8cc   :  { %5434 = vst [vmem:[#allocation11 + $0x198] sm:$0xff] %v5370_v19 }
 0x8cd   :  { %5435 = vst [vmem:[#allocation11 + $0x1a0] sm:$0xff] %v5371_v7 }
 0x8ce   :  { %5436 = vst [vmem:[#allocation11 + $0x1a8] sm:$0xff] %v5372_v60 }
 0x8cf   :  { %5437 = vst [vmem:[#allocation11 + $0x1b0] sm:$0xff] %v5373_v26 }
 0x8d0   :  { %5438 = vst [vmem:[#allocation11 + $0x1b8] sm:$0xff] %v5374_v29 }
 0x8d1   :  { %5439 = vst [vmem:[#allocation11 + $0x1c0] sm:$0xff] %v5375_v8 }
 0x8d2   :  { %5440 = vst [vmem:[#allocation11 + $0x1c8] sm:$0xff] %v5376_v22 }
 0x8d3   :  { %5441 = vst [vmem:[#allocation11 + $0x1d0] sm:$0xff] %v5377_v47 }
 0x8d4   :  { %5442 = vst [vmem:[#allocation11 + $0x1d8] sm:$0xff] %v5378_v20 }
 0x8d5   :  { %5443 = vst [vmem:[#allocation11 + $0x1e0] sm:$0xff] %v5379_v49 }
 0x8d6   :  { %5444 = vst [vmem:[#allocation11 + $0x1e8] sm:$0xff] %v5380_v0 }
 0x8d7   :  { %5445 = vst [vmem:[#allocation11 + $0x1f0] sm:$0xff] %v5381_v55 }
 0x8d8   :  { %5459 = dma.vmem_to_hbm [thread:$0]  %s5452_s7, 8192, %s5454_s11, [#allocation5], %s6207_s13, %s6207_s13, %s6208_s14  }
 0x8d9   :  { %6204 = dma.done.wait [#allocation5], 8192  }
 0x8da   :  { %6205 = vsyncadd [#allocation5], 4294959104 }
 0x8db   :  { %5464 = vsyncpa [#allocation4], 1 }
 0x8dc   :  { %5465 = vsyncpa [#allocation7], 1 }
 0x8dd   :  { %5466 = vsyncpa [#allocation10], 1 }
 0x8de   :  { %5467 = vsyncpa [#allocation5], 1 }

</bundles_post_ra>
